<compile_context>
chip_gen: v7x
topology: tpu7x:2x2x1
jax: 0.10.0
libtpu: 0.0.40
codegen_flags: <defaults>
</compile_context>

<pallas_src>
import functools

import jax
import jax.numpy as jnp
from jax.experimental import pallas as pl
from jax.experimental.pallas import tpu as pltpu


LANE = 128
VMEM_LIMIT = 48 * 1024 * 1024


def _round_up(x, m):
    return ((x + m - 1) // m) * m


# ----------------------------------------------------------------------------
# Kernel 1: 1x1 conv (pointwise matmul) + bias (+ fused top-down residual add).
#   x_ref: (tm, Cin) f32   w_ref: (Cin, Cp) bf16   b_ref: (1, Cp) f32
#   r_ref: (tm, Cp) bf16 (optional)                o_ref: (tm, Cp) bf16
# ----------------------------------------------------------------------------
def _conv1x1_kernel(has_residual, x_ref, w_ref, b_ref, *rest):
    if has_residual:
        r_ref, o_ref = rest
    else:
        (o_ref,) = rest
        r_ref = None
    acc = jnp.dot(x_ref[...].astype(jnp.bfloat16), w_ref[...],
                  preferred_element_type=jnp.float32)
    acc = acc + b_ref[...]
    if has_residual:
        acc = acc + r_ref[...].astype(jnp.float32)
    o_ref[...] = acc.astype(o_ref.dtype)


def conv1x1(x_nhwc, w, bias, residual=None, *, tile_m=512):
    """1x1 conv over NHWC input; returns (N, H, W, Cp) bf16 (Cp = padded Cout)."""
    N, H, W, Cin = x_nhwc.shape
    Cp = w.shape[-1]
    M = N * H * W
    # At least 2 grid blocks when possible (v7x megacore), tile multiple of 8.
    tm = min(tile_m, max(8, _round_up(pl.cdiv(M, 2), 8)))
    grid = (pl.cdiv(M, tm),)

    x2 = x_nhwc.reshape(M, Cin)                       # no jnp.pad: ragged last
    inputs = [x2, w, bias.reshape(1, Cp)]             # block is masked by Pallas
    in_specs = [
        pl.BlockSpec((tm, Cin), lambda i: (i, 0)),
        pl.BlockSpec((Cin, Cp), lambda i: (0, 0)),    # weights resident in VMEM
        pl.BlockSpec((1, Cp), lambda i: (0, 0)),
    ]
    has_res = residual is not None
    if has_res:
        inputs.append(residual.reshape(M, Cp))        # bf16 residual
        in_specs.append(pl.BlockSpec((tm, Cp), lambda i: (i, 0)))

    out = pl.pallas_call(
        functools.partial(_conv1x1_kernel, has_res),
        out_shape=jax.ShapeDtypeStruct((M, Cp), jnp.bfloat16),
        grid=grid,
        in_specs=in_specs,
        out_specs=pl.BlockSpec((tm, Cp), lambda i: (i, 0)),
        compiler_params=pltpu.CompilerParams(
            dimension_semantics=("parallel",),
            vmem_limit_bytes=VMEM_LIMIT),
    )(*inputs)
    return out.reshape(N, H, W, Cp)


# ----------------------------------------------------------------------------
# Kernel 2: 3x3 stride-1 pad-1 conv, manual double-buffered halo DMA.
#   x_hbm: (N, Hpad*Wp, Cp) bf16 in HBM (memory_space=pl.ANY)
#   w_ref: (9, Cp, Cp) bf16     b_ref: (1, Cp) f32
#   o_ref: (th, Wp, Cp) f32 (full padded-width slab; columns >= W trimmed in
#          the wrapper, so the wrapped-row tap garbage there is discarded).
# ----------------------------------------------------------------------------
def _conv3x3_s1_kernel(x_hbm, w_ref, b_ref, o_ref, xbuf, sem, *, th, wp, cp):
    n = pl.program_id(0)
    t = pl.program_id(1)
    nt = pl.num_programs(1)
    L = (th + 3) * wp
    m = th * wp

    def issue(nn, tt, slot):
        start = pl.multiple_of(tt * (th * wp), 8)
        pltpu.make_async_copy(x_hbm.at[nn, pl.ds(start, L)],
                              xbuf.at[slot], sem.at[slot]).start()

    slot = t & 1

    @pl.when(t == 0)                                  # prime first tile of batch
    def _():
        issue(n, t, slot)

    @pl.when(t + 1 < nt)                              # prefetch next tile
    def _():
        issue(n, t + 1, 1 - slot)

    pltpu.make_async_copy(x_hbm.at[n, pl.ds(0, L)],
                          xbuf.at[slot], sem.at[slot]).wait()

    x = xbuf[slot]                                    # (L, Cp) bf16, no per-tap cast
    acc = jnp.zeros((m, cp), jnp.float32)
    for kh in range(3):                               # static unrolled tap loop
        for kw in range(3):
            off = kh * wp + kw
            # TODO(synk): kw in {1,2} is a sublane-misaligned slice (relayout
            #             copy); a pltpu.roll-based aligned variant is next.
            acc = acc + jnp.dot(x[off:off + m, :], w_ref[kh * 3 + kw],
                                preferred_element_type=jnp.float32)
    acc = acc + b_ref[...]
    o_ref[...] = acc.reshape(th, wp, cp)              # lane-dense full-slab store


def conv3x3_s1(x_nhwc, w_taps, bias, *, tile_h=16):
    N, H, W, Cin = x_nhwc.shape
    K, Cin_w, Cp = w_taps.shape
    assert K == 9 and Cin_w == Cin
    th = min(tile_h, H)
    T = pl.cdiv(H, th)
    Wp = _round_up(W + 2, 8)                          # sublane-aligned row stride
    Hpad = T * th + 3
    L = (th + 3) * Wp

    xp = jnp.pad(x_nhwc.astype(jnp.bfloat16),
                 ((0, 0), (1, Hpad - 1 - H), (1, Wp - 1 - W), (0, 0)))
    x_flat = xp.reshape(N, Hpad * Wp, Cin)            # stays in HBM (pl.ANY)

    out = pl.pallas_call(
        functools.partial(_conv3x3_s1_kernel, th=th, wp=Wp, cp=Cp),
        out_shape=jax.ShapeDtypeStruct((N, T * th, Wp, Cp), jnp.float32),
        grid=(N, T),
        in_specs=[
            pl.BlockSpec(memory_space=pl.ANY),
            pl.BlockSpec((K, Cin, Cp), lambda n, t: (0, 0, 0)),
            pl.BlockSpec((1, Cp), lambda n, t: (0, 0)),
        ],
        out_specs=pl.BlockSpec((None, th, Wp, Cp), lambda n, t: (n, t, 0, 0)),
        scratch_shapes=[
            pltpu.VMEM((2, L, Cin), jnp.bfloat16),    # halo double buffer
            pltpu.SemaphoreType.DMA((2,)),
        ],
        compiler_params=pltpu.CompilerParams(
            # row-tile axis carries the manual double-buffer -> "arbitrary";
            # batch axis is "parallel" for v7x megacore sharding.
            dimension_semantics=("parallel", "arbitrary"),
            vmem_limit_bytes=VMEM_LIMIT),
    )(x_flat, w_taps, bias.reshape(1, Cp))
    return out[:, :H, :W]                             # trim pad rows/cols in XLA


# ----------------------------------------------------------------------------
# Kernel 3: small tap-matmul path for the stride-2 P6/P7 convs (tiny tensors).
# ----------------------------------------------------------------------------
def _tap_matmul_kernel(x_ref, w_ref, b_ref, o_ref):
    num_taps = x_ref.shape[0]
    acc = jnp.zeros(o_ref.shape, jnp.float32)
    for k in range(num_taps):
        acc = acc + jnp.dot(x_ref[k], w_ref[k],
                            preferred_element_type=jnp.float32)
    o_ref[...] = acc + b_ref[...]


def conv3x3_s2(x_nhwc, w_taps, bias):
    # TODO(synk): P6+P7 could be fused into one pallas_call (keep P6 in a VMEM
    #             scratch, apply the ReLU in-kernel); kept separate for clarity.
    N, H, W, Cin = x_nhwc.shape
    K, _, Cp = w_taps.shape
    Ho = (H - 1) // 2 + 1
    Wo = (W - 1) // 2 + 1
    M = N * Ho * Wo
    xp = jnp.pad(x_nhwc.astype(jnp.bfloat16), ((0, 0), (1, 1), (1, 1), (0, 0)))
    taps = []
    for kh in range(3):
        for kw in range(3):
            t = jax.lax.slice(
                xp, (0, kh, kw, 0),
                (N, kh + 2 * (Ho - 1) + 1, kw + 2 * (Wo - 1) + 1, Cin),
                (1, 2, 2, 1))
            taps.append(t.reshape(M, Cin))
    x_taps = jnp.stack(taps, axis=0)                  # (9, M, Cin) bf16 -- tiny
    vmem = pl.BlockSpec(memory_space=pltpu.MemorySpace.VMEM)
    out = pl.pallas_call(
        _tap_matmul_kernel,
        out_shape=jax.ShapeDtypeStruct((M, Cp), jnp.float32),
        in_specs=[vmem, vmem, vmem],
        out_specs=vmem,
    )(x_taps, w_taps, bias.reshape(1, Cp))
    return out.reshape(N, Ho, Wo, Cp)


# ----------------------------------------------------------------------------
# Nearest-neighbor upsample (F.interpolate mode='nearest' semantics), bf16.
# TODO(synk): fusing the 2x repeat into the conv1x1 residual BlockSpec (in-VMEM
#             row/col repeat) would remove this HBM round trip entirely; kept
#             as an XLA gather because the target size is not guaranteed 2x.
# ----------------------------------------------------------------------------
def upsample_nearest(src_nhwc, Ht, Wt):
    _, Hs, Ws, _ = src_nhwc.shape
    hi = (jnp.arange(Ht) * Hs) // Ht
    wi = (jnp.arange(Wt) * Ws) // Wt
    return src_nhwc[:, hi][:, :, wi]


# ----------------------------------------------------------------------------
# Parameter init: Kaiming-uniform (a=1), bias=0.  PyTorch weight (Cout,Cin,k,k)
# -> tap layout (k*k, Cin, Cout), zero-padded to the lane-dense channel count
# Cp = round_up(out_channel, 128), stored as bf16 (MXU operand dtype).
# ----------------------------------------------------------------------------
def _kaiming_uniform_taps(key, cout, cin, k, a=1.0):
    fan_in = cin * k * k
    bound = (6.0 / ((1.0 + a * a) * fan_in)) ** 0.5
    w = jax.random.uniform(key, (cout, cin, k, k), jnp.float32, -bound, bound)
    return jnp.transpose(w, (2, 3, 1, 0)).reshape(k * k, cin, cout)


def _pad_taps(w, cin_pad, cout_pad):
    K, ci, co = w.shape
    return jnp.pad(w, ((0, 0), (0, cin_pad - ci), (0, cout_pad - co)))


def init_fpn_params(key, in_channels, out_channel):
    c3_in, c4_in, c5_in = in_channels[-3], in_channels[-2], in_channels[-1]
    cp = _round_up(out_channel, LANE)
    ks = jax.random.split(key, 8)
    zeros = jnp.zeros((cp,), jnp.float32)

    def lat(k, cin):     # (Cin, Cp) bf16 (1x1 conv)
        w = _kaiming_uniform_taps(k, out_channel, cin, 1)
        return _pad_taps(w, cin, cp)[0].astype(jnp.bfloat16)

    def c3x3(k):         # (9, Cp, Cp) bf16 (operates on channel-padded acts)
        w = _kaiming_uniform_taps(k, out_channel, out_channel, 3)
        return _pad_taps(w, cp, cp).astype(jnp.bfloat16)

    return {
        "lat5_w": lat(ks[0], c5_in), "lat5_b": zeros,
        "lat4_w": lat(ks[1], c4_in), "lat4_b": zeros,
        "lat3_w": lat(ks[2], c3_in), "lat3_b": zeros,
        "c5_w": c3x3(ks[3]), "c5_b": zeros,
        "c4_w": c3x3(ks[4]), "c4_b": zeros,
        "c3_w": c3x3(ks[5]), "c3_b": zeros,
        "o6_w": c3x3(ks[6]), "o6_b": zeros,
        "o7_w": c3x3(ks[7]), "o7_b": zeros,
    }


# ----------------------------------------------------------------------------
# FPN forward (use_p5=True).  Inputs/outputs in PyTorch NCHW convention.
# ----------------------------------------------------------------------------
def fpn_forward(params, C3, C4, C5, *, out_channel):
    c3 = jnp.transpose(C3, (0, 2, 3, 1)).astype(jnp.float32)
    c4 = jnp.transpose(C4, (0, 2, 3, 1)).astype(jnp.float32)
    c5 = jnp.transpose(C5, (0, 2, 3, 1)).astype(jnp.float32)

    # Lateral 1x1 convs with the top-down pathway fused as a bf16 residual add.
    P5 = conv1x1(c5, params["lat5_w"], params["lat5_b"])
    up5 = upsample_nearest(P5, c4.shape[1], c4.shape[2])
    P4 = conv1x1(c4, params["lat4_w"], params["lat4_b"], residual=up5)
    up4 = upsample_nearest(P4, c3.shape[1], c3.shape[2])
    P3 = conv1x1(c3, params["lat3_w"], params["lat3_b"], residual=up4)

    # 3x3 smoothing convs (halo-row-tiled, manually double-buffered DMA).
    P3 = conv3x3_s1(P3, params["c3_w"], params["c3_b"])
    P4 = conv3x3_s1(P4, params["c4_w"], params["c4_b"])
    P5 = conv3x3_s1(P5, params["c5_w"], params["c5_b"])

    # Extra pyramid levels; ReLU applied once in glue (fuses with im2col slices).
    P6 = conv3x3_s2(P5, params["o6_w"], params["o6_b"])
    P7 = conv3x3_s2(jnp.maximum(P6, 0.0), params["o7_w"], params["o7_b"])

    # Slice channels in NHWC *before* the transpose back to NCHW.
    outs = (P3, P4, P5, P6, P7)
    return [jnp.transpose(p[..., :out_channel], (0, 3, 1, 2)) for p in outs]


# ----------------------------------------------------------------------------
# Pure-JAX reference with matching numerics (bf16 MXU operands, bf16 storage of
# the lateral/top-down intermediates, f32 accumulation).
# ----------------------------------------------------------------------------
def _conv1x1_ref(x, w, b):
    y = jax.lax.dot_general(x.astype(jnp.bfloat16), w, (((3,), (0,)), ((), ())),
                            preferred_element_type=jnp.float32)
    return y + b.reshape(1, 1, 1, -1)


def _conv_ref(x, w_taps, b, k, s, p):
    K, ci, co = w_taps.shape
    w = w_taps.reshape(k, k, ci, co)
    y = jax.lax.conv_general_dilated(
        x.astype(jnp.bfloat16), w, (s, s), [(p, p), (p, p)],
        dimension_numbers=("NHWC", "HWIO", "NHWC"),
        preferred_element_type=jnp.float32)
    return y + b.reshape(1, 1, 1, co)


def fpn_ref(params, C3, C4, C5, *, out_channel):
    c3 = jnp.transpose(C3, (0, 2, 3, 1)).astype(jnp.float32)
    c4 = jnp.transpose(C4, (0, 2, 3, 1)).astype(jnp.float32)
    c5 = jnp.transpose(C5, (0, 2, 3, 1)).astype(jnp.float32)
    P5 = _conv1x1_ref(c5, params["lat5_w"], params["lat5_b"]).astype(jnp.bfloat16)
    up5 = upsample_nearest(P5, c4.shape[1], c4.shape[2]).astype(jnp.float32)
    P4 = (_conv1x1_ref(c4, params["lat4_w"], params["lat4_b"]) + up5
          ).astype(jnp.bfloat16)
    up4 = upsample_nearest(P4, c3.shape[1], c3.shape[2]).astype(jnp.float32)
    P3 = (_conv1x1_ref(c3, params["lat3_w"], params["lat3_b"]) + up4
          ).astype(jnp.bfloat16)
    P3 = _conv_ref(P3, params["c3_w"], params["c3_b"], 3, 1, 1)
    P4 = _conv_ref(P4, params["c4_w"], params["c4_b"], 3, 1, 1)
    P5 = _conv_ref(P5, params["c5_w"], params["c5_b"], 3, 1, 1)
    P6 = _conv_ref(P5, params["o6_w"], params["o6_b"], 3, 2, 1)
    P7 = _conv_ref(jnp.maximum(P6, 0.0), params["o7_w"], params["o7_b"], 3, 2, 1)
    return [jnp.transpose(p[..., :out_channel], (0, 3, 1, 2))
            for p in (P3, P4, P5, P6, P7)]


if __name__ == "__main__":
    key = jax.random.PRNGKey(0)
    k_p, k_b, k3, k4, k5 = jax.random.split(key, 5)

    # Small FPN: in_channels for (C3, C4, C5) = (16, 32, 64), out_channel = 32.
    in_channels = [16, 32, 64]
    out_channel = 32
    cp = _round_up(out_channel, LANE)
    params = init_fpn_params(k_p, in_channels, out_channel)

    # Exercise the bias path with nonzero biases (the module init is zeros,
    # but the forward supports arbitrary bias).
    bias_names = ["lat5_b", "lat4_b", "lat3_b",
                  "c5_b", "c4_b", "c3_b", "o6_b", "o7_b"]
    for name, kb in zip(bias_names, jax.random.split(k_b, len(bias_names))):
        b = 0.1 * jax.random.normal(kb, (out_channel,), jnp.float32)
        params[name] = jnp.pad(b, (0, cp - out_channel))

    # PyTorch-convention NCHW feature maps: C3 16x16, C4 8x8, C5 4x4, batch 2.
    C3 = jax.random.normal(k3, (2, 16, 16, 16), jnp.float32)
    C4 = jax.random.normal(k4, (2, 32, 8, 8), jnp.float32)
    C5 = jax.random.normal(k5, (2, 64, 4, 4), jnp.float32)

    fwd = jax.jit(functools.partial(fpn_forward, out_channel=out_channel))
    outs = fwd(params, C3, C4, C5)
    outs = [jax.block_until_ready(o) for o in outs]

    # Sanity check against the pure-JAX reference (same bf16/f32 numerics).
    refs = fpn_ref(params, C3, C4, C5, out_channel=out_channel)
    for o, r in zip(outs, refs):
        assert o.shape == r.shape, (o.shape, r.shape)
        err = float(jnp.max(jnp.abs(o - r)))
        assert err < 2e-2, err

    print("KERNEL_OK")
</pallas_src>

<mosaic_0001>
module attributes {stable_mosaic.version = 11 : i64} {
  func.func @_conv1x1_kernel(%arg0: i32, %arg1: memref<16x64xf32, #tpu.memory_space<vmem>>, %arg2: memref<64x128xbf16, #tpu.memory_space<vmem>>, %arg3: memref<1x128xf32, #tpu.memory_space<vmem>>, %arg4: memref<16x128xbf16, #tpu.memory_space<vmem>>) attributes {dimension_semantics = [#tpu.dimension_semantics<parallel>], iteration_bounds = array<i64: 2>, scalar_prefetch = 0 : i64, scratch_operands = 0 : i64, tpu.core_type = #tpu.core_type<tc>, window_params = [{transform_indices = @transform_0, window_bounds = array<i64: 16, 64>}, {pipeline_mode = #tpu.pipeline_mode<synchronous>, transform_indices = @transform_1, window_bounds = array<i64: 64, 128>}, {pipeline_mode = #tpu.pipeline_mode<synchronous>, transform_indices = @transform_2, window_bounds = array<i64: 1, 128>}, {transform_indices = @transform_3, window_bounds = array<i64: 16, 128>}]} {
    %c0 = arith.constant 0 : index
    %c0_0 = arith.constant 0 : index
    %0 = vector.load %arg1[%c0, %c0_0] : memref<16x64xf32, #tpu.memory_space<vmem>>, vector<16x64xf32>
    %1 = arith.truncf %0 : vector<16x64xf32> to vector<16x64xbf16>
    %c0_1 = arith.constant 0 : index
    %c0_2 = arith.constant 0 : index
    %2 = vector.load %arg2[%c0_1, %c0_2] : memref<64x128xbf16, #tpu.memory_space<vmem>>, vector<64x128xbf16>
    %cst = arith.constant dense<0.000000e+00> : vector<16x128xf32>
    %3 = tpu.matmul %1, %2, %cst {dimension_numbers = #tpu.dot_dimension_numbers<[1], [0], [0], [1], [0, 0, 1, 1], [], []>} : vector<16x64xbf16>, vector<64x128xbf16>, vector<16x128xf32> -> vector<16x128xf32>
    %c0_3 = arith.constant 0 : index
    %c0_4 = arith.constant 0 : index
    %4 = vector.load %arg3[%c0_3, %c0_4] : memref<1x128xf32, #tpu.memory_space<vmem>>, vector<1x128xf32>
    %5 = vector.broadcast %4 : vector<1x128xf32> to vector<16x128xf32>
    %6 = arith.addf %3, %5 : vector<16x128xf32>
    %7 = arith.truncf %6 : vector<16x128xf32> to vector<16x128xbf16>
    %c0_5 = arith.constant 0 : index
    %c0_6 = arith.constant 0 : index
    %8 = vector.load %arg4[%c0_5, %c0_6] : memref<16x128xbf16, #tpu.memory_space<vmem>>, vector<16x128xbf16>
    tpu.vector_store %arg4[%c0_5, %c0_6], %7 {strides = array<i32>} : memref<16x128xbf16, #tpu.memory_space<vmem>>, vector<16x128xbf16>,
    return
  }
  func.func @transform_0(%arg0: i32) -> (i32, i32) {
    %c0_i32 = arith.constant 0 : i32
    %c0_i32_0 = arith.constant 0 : i32
    return %arg0, %c0_i32 : i32, i32
  }
  func.func @transform_1(%arg0: i32) -> (i32, i32) {
    %c0_i32 = arith.constant 0 : i32
    %c0_i32_0 = arith.constant 0 : i32
    %c0_i32_1 = arith.constant 0 : i32
    return %c0_i32, %c0_i32_0 : i32, i32
  }
  func.func @transform_2(%arg0: i32) -> (i32, i32) {
    %c0_i32 = arith.constant 0 : i32
    %c0_i32_0 = arith.constant 0 : i32
    %c0_i32_1 = arith.constant 0 : i32
    return %c0_i32, %c0_i32_0 : i32, i32
  }
  func.func @transform_3(%arg0: i32) -> (i32, i32) {
    %c0_i32 = arith.constant 0 : i32
    %c0_i32_0 = arith.constant 0 : i32
    return %arg0, %c0_i32 : i32, i32
  }
}

module attributes {stable_mosaic.version = 11 : i64} {
  func.func @_conv1x1_kernel(%arg0: i32, %arg1: memref<64x32xf32, #tpu.memory_space<vmem>>, %arg2: memref<32x128xbf16, #tpu.memory_space<vmem>>, %arg3: memref<1x128xf32, #tpu.memory_space<vmem>>, %arg4: memref<64x128xbf16, #tpu.memory_space<vmem>>, %arg5: memref<64x128xbf16, #tpu.memory_space<vmem>>) attributes {dimension_semantics = [#tpu.dimension_semantics<parallel>], iteration_bounds = array<i64: 2>, scalar_prefetch = 0 : i64, scratch_operands = 0 : i64, tpu.core_type = #tpu.core_type<tc>, window_params = [{transform_indices = @transform_0, window_bounds = array<i64: 64, 32>}, {pipeline_mode = #tpu.pipeline_mode<synchronous>, transform_indices = @transform_1, window_bounds = array<i64: 32, 128>}, {pipeline_mode = #tpu.pipeline_mode<synchronous>, transform_indices = @transform_2, window_bounds = array<i64: 1, 128>}, {transform_indices = @transform_3, window_bounds = array<i64: 64, 128>}, {transform_indices = @transform_4, window_bounds = array<i64: 64, 128>}]} {
    %c0 = arith.constant 0 : index
    %c0_0 = arith.constant 0 : index
    %0 = vector.load %arg1[%c0, %c0_0] : memref<64x32xf32, #tpu.memory_space<vmem>>, vector<64x32xf32>
    %1 = arith.truncf %0 : vector<64x32xf32> to vector<64x32xbf16>
    %c0_1 = arith.constant 0 : index
    %c0_2 = arith.constant 0 : index
    %2 = vector.load %arg2[%c0_1, %c0_2] : memref<32x128xbf16, #tpu.memory_space<vmem>>, vector<32x128xbf16>
    %cst = arith.constant dense<0.000000e+00> : vector<64x128xf32>
    %3 = tpu.matmul %1, %2, %cst {dimension_numbers = #tpu.dot_dimension_numbers<[1], [0], [0], [1], [0, 0, 1, 1], [], []>} : vector<64x32xbf16>, vector<32x128xbf16>, vector<64x128xf32> -> vector<64x128xf32>
    %c0_3 = arith.constant 0 : index
    %c0_4 = arith.constant 0 : index
    %4 = vector.load %arg3[%c0_3, %c0_4] : memref<1x128xf32, #tpu.memory_space<vmem>>, vector<1x128xf32>
    %5 = vector.broadcast %4 : vector<1x128xf32> to vector<64x128xf32>
    %6 = arith.addf %3, %5 : vector<64x128xf32>
    %c0_5 = arith.constant 0 : index
    %c0_6 = arith.constant 0 : index
    %7 = vector.load %arg4[%c0_5, %c0_6] : memref<64x128xbf16, #tpu.memory_space<vmem>>, vector<64x128xbf16>
    %8 = arith.extf %7 : vector<64x128xbf16> to vector<64x128xf32>
    %9 = arith.addf %6, %8 : vector<64x128xf32>
    %10 = arith.truncf %9 : vector<64x128xf32> to vector<64x128xbf16>
    %c0_7 = arith.constant 0 : index
    %c0_8 = arith.constant 0 : index
    %11 = vector.load %arg5[%c0_7, %c0_8] : memref<64x128xbf16, #tpu.memory_space<vmem>>, vector<64x128xbf16>
    tpu.vector_store %arg5[%c0_7, %c0_8], %10 {strides = array<i32>} : memref<64x128xbf16, #tpu.memory_space<vmem>>, vector<64x128xbf16>,
    return
  }
  func.func @transform_0(%arg0: i32) -> (i32, i32) {
    %c0_i32 = arith.constant 0 : i32
    %c0_i32_0 = arith.constant 0 : i32
    return %arg0, %c0_i32 : i32, i32
  }
  func.func @transform_1(%arg0: i32) -> (i32, i32) {
    %c0_i32 = arith.constant 0 : i32
    %c0_i32_0 = arith.constant 0 : i32
    %c0_i32_1 = arith.constant 0 : i32
    return %c0_i32, %c0_i32_0 : i32, i32
  }
  func.func @transform_2(%arg0: i32) -> (i32, i32) {
    %c0_i32 = arith.constant 0 : i32
    %c0_i32_0 = arith.constant 0 : i32
    %c0_i32_1 = arith.constant 0 : i32
    return %c0_i32, %c0_i32_0 : i32, i32
  }
  func.func @transform_3(%arg0: i32) -> (i32, i32) {
    %c0_i32 = arith.constant 0 : i32
    %c0_i32_0 = arith.constant 0 : i32
    return %arg0, %c0_i32 : i32, i32
  }
  func.func @transform_4(%arg0: i32) -> (i32, i32) {
    %c0_i32 = arith.constant 0 : i32
    %c0_i32_0 = arith.constant 0 : i32
    return %arg0, %c0_i32 : i32, i32
  }
}

module attributes {stable_mosaic.version = 11 : i64} {
  func.func @_conv1x1_kernel(%arg0: i32, %arg1: memref<256x16xf32, #tpu.memory_space<vmem>>, %arg2: memref<16x128xbf16, #tpu.memory_space<vmem>>, %arg3: memref<1x128xf32, #tpu.memory_space<vmem>>, %arg4: memref<256x128xbf16, #tpu.memory_space<vmem>>, %arg5: memref<256x128xbf16, #tpu.memory_space<vmem>>) attributes {dimension_semantics = [#tpu.dimension_semantics<parallel>], iteration_bounds = array<i64: 2>, scalar_prefetch = 0 : i64, scratch_operands = 0 : i64, tpu.core_type = #tpu.core_type<tc>, window_params = [{transform_indices = @transform_0, window_bounds = array<i64: 256, 16>}, {pipeline_mode = #tpu.pipeline_mode<synchronous>, transform_indices = @transform_1, window_bounds = array<i64: 16, 128>}, {pipeline_mode = #tpu.pipeline_mode<synchronous>, transform_indices = @transform_2, window_bounds = array<i64: 1, 128>}, {transform_indices = @transform_3, window_bounds = array<i64: 256, 128>}, {transform_indices = @transform_4, window_bounds = array<i64: 256, 128>}]} {
    %c0 = arith.constant 0 : index
    %c0_0 = arith.constant 0 : index
    %0 = vector.load %arg1[%c0, %c0_0] : memref<256x16xf32, #tpu.memory_space<vmem>>, vector<256x16xf32>
    %1 = arith.truncf %0 : vector<256x16xf32> to vector<256x16xbf16>
    %c0_1 = arith.constant 0 : index
    %c0_2 = arith.constant 0 : index
    %2 = vector.load %arg2[%c0_1, %c0_2] : memref<16x128xbf16, #tpu.memory_space<vmem>>, vector<16x128xbf16>
    %cst = arith.constant dense<0.000000e+00> : vector<256x128xf32>
    %3 = tpu.matmul %1, %2, %cst {dimension_numbers = #tpu.dot_dimension_numbers<[1], [0], [0], [1], [0, 0, 1, 1], [], []>} : vector<256x16xbf16>, vector<16x128xbf16>, vector<256x128xf32> -> vector<256x128xf32>
    %c0_3 = arith.constant 0 : index
    %c0_4 = arith.constant 0 : index
    %4 = vector.load %arg3[%c0_3, %c0_4] : memref<1x128xf32, #tpu.memory_space<vmem>>, vector<1x128xf32>
    %5 = vector.broadcast %4 : vector<1x128xf32> to vector<256x128xf32>
    %6 = arith.addf %3, %5 : vector<256x128xf32>
    %c0_5 = arith.constant 0 : index
    %c0_6 = arith.constant 0 : index
    %7 = vector.load %arg4[%c0_5, %c0_6] : memref<256x128xbf16, #tpu.memory_space<vmem>>, vector<256x128xbf16>
    %8 = arith.extf %7 : vector<256x128xbf16> to vector<256x128xf32>
    %9 = arith.addf %6, %8 : vector<256x128xf32>
    %10 = arith.truncf %9 : vector<256x128xf32> to vector<256x128xbf16>
    %c0_7 = arith.constant 0 : index
    %c0_8 = arith.constant 0 : index
    %11 = vector.load %arg5[%c0_7, %c0_8] : memref<256x128xbf16, #tpu.memory_space<vmem>>, vector<256x128xbf16>
    tpu.vector_store %arg5[%c0_7, %c0_8], %10 {strides = array<i32>} : memref<256x128xbf16, #tpu.memory_space<vmem>>, vector<256x128xbf16>,
    return
  }
  func.func @transform_0(%arg0: i32) -> (i32, i32) {
    %c0_i32 = arith.constant 0 : i32
    %c0_i32_0 = arith.constant 0 : i32
    return %arg0, %c0_i32 : i32, i32
  }
  func.func @transform_1(%arg0: i32) -> (i32, i32) {
    %c0_i32 = arith.constant 0 : i32
    %c0_i32_0 = arith.constant 0 : i32
    %c0_i32_1 = arith.constant 0 : i32
    return %c0_i32, %c0_i32_0 : i32, i32
  }
  func.func @transform_2(%arg0: i32) -> (i32, i32) {
    %c0_i32 = arith.constant 0 : i32
    %c0_i32_0 = arith.constant 0 : i32
    %c0_i32_1 = arith.constant 0 : i32
    return %c0_i32, %c0_i32_0 : i32, i32
  }
  func.func @transform_3(%arg0: i32) -> (i32, i32) {
    %c0_i32 = arith.constant 0 : i32
    %c0_i32_0 = arith.constant 0 : i32
    return %arg0, %c0_i32 : i32, i32
  }
  func.func @transform_4(%arg0: i32) -> (i32, i32) {
    %c0_i32 = arith.constant 0 : i32
    %c0_i32_0 = arith.constant 0 : i32
    return %arg0, %c0_i32 : i32, i32
  }
}

module attributes {stable_mosaic.version = 11 : i64} {
  func.func @_conv3x3_s1_kernel(%arg0: i32, %arg1: i32, %arg2: memref<2x456x128xbf16, #tpu.memory_space<any>>, %arg3: memref<9x128x128xbf16, #tpu.memory_space<vmem>>, %arg4: memref<1x128xf32, #tpu.memory_space<vmem>>, %arg5: memref<1x16x24x128xf32, #tpu.memory_space<vmem>>, %arg6: memref<2x456x128xbf16, #tpu.memory_space<vmem>>, %arg7: memref<2x!tpu.dma_semaphore, #tpu.memory_space<semaphore_mem>>) attributes {dimension_semantics = [#tpu.dimension_semantics<parallel>, #tpu.dimension_semantics<arbitrary>], iteration_bounds = array<i64: 2, 1>, scalar_prefetch = 0 : i64, scratch_operands = 2 : i64, tpu.core_type = #tpu.core_type<tc>, window_params = [{}, {pipeline_mode = #tpu.pipeline_mode<synchronous>, transform_indices = @transform_1, window_bounds = array<i64: 9, 128, 128>}, {pipeline_mode = #tpu.pipeline_mode<synchronous>, transform_indices = @transform_2, window_bounds = array<i64: 1, 128>}, {transform_indices = @transform_3, window_bounds = array<i64: 1, 16, 24, 128>}]} {
    %c1_i32 = arith.constant 1 : i32
    %0 = arith.andi %arg1, %c1_i32 : i32
    %c0_i32 = arith.constant 0 : i32
    %1 = arith.cmpi eq, %arg1, %c0_i32 : i32
    %2 = arith.extui %1 : i1 to i32
    %c0_i32_0 = arith.constant 0 : i32
    %3 = arith.cmpi ne, %2, %c0_i32_0 : i32
    scf.if %3 {
      %c384_i32 = arith.constant 384 : i32
      %70 = arith.muli %arg1, %c384_i32 : i32
      %71 = tpu.assume_multiple %70, 8 : i32
      %c0_i32_43 = arith.constant 0 : i32
      %72 = tpu.memref_slice %arg2[%arg0, %71, %c0_i32_43] : memref<2x456x128xbf16, #tpu.memory_space<any>> -> memref<1x456x128xbf16, #tpu.memory_space<any>>
      %73 = tpu.memref_squeeze %72 : memref<1x456x128xbf16, #tpu.memory_space<any>> -> memref<456x128xbf16, #tpu.memory_space<any>>
      %c0_i32_44 = arith.constant 0 : i32
      %c0_i32_45 = arith.constant 0 : i32
      %74 = tpu.memref_slice %arg6[%0, %c0_i32_44, %c0_i32_45] : memref<2x456x128xbf16, #tpu.memory_space<vmem>> -> memref<1x456x128xbf16, #tpu.memory_space<vmem>>
      %75 = tpu.memref_squeeze %74 : memref<1x456x128xbf16, #tpu.memory_space<vmem>> -> memref<456x128xbf16, #tpu.memory_space<vmem>>
      %76 = tpu.memref_slice %arg7[%0] : memref<2x!tpu.dma_semaphore, #tpu.memory_space<semaphore_mem>> -> memref<1x!tpu.dma_semaphore, #tpu.memory_space<semaphore_mem>>
      %77 = tpu.memref_squeeze %76 : memref<1x!tpu.dma_semaphore, #tpu.memory_space<semaphore_mem>> -> memref<!tpu.dma_semaphore, #tpu.memory_space<semaphore_mem>>
      tpu.enqueue_dma source(%73 : memref<456x128xbf16, #tpu.memory_space<any>>) target(%75 : memref<456x128xbf16, #tpu.memory_space<vmem>>) target_semaphore(%77 : memref<!tpu.dma_semaphore, #tpu.memory_space<semaphore_mem>>)
    } else {
    }
    %c1_i32_1 = arith.constant 1 : i32
    %4 = arith.addi %arg1, %c1_i32_1 : i32
    %c1_i32_2 = arith.constant 1 : i32
    %5 = arith.cmpi slt, %4, %c1_i32_2 : i32
    %6 = arith.extui %5 : i1 to i32
    %c0_i32_3 = arith.constant 0 : i32
    %7 = arith.cmpi ne, %6, %c0_i32_3 : i32
    scf.if %7 {
      %c1_i32_43 = arith.constant 1 : i32
      %70 = arith.addi %arg1, %c1_i32_43 : i32
      %c1_i32_44 = arith.constant 1 : i32
      %71 = arith.subi %c1_i32_44, %0 : i32
      %c384_i32 = arith.constant 384 : i32
      %72 = arith.muli %70, %c384_i32 : i32
      %73 = tpu.assume_multiple %72, 8 : i32
      %c0_i32_45 = arith.constant 0 : i32
      %74 = tpu.memref_slice %arg2[%arg0, %73, %c0_i32_45] : memref<2x456x128xbf16, #tpu.memory_space<any>> -> memref<1x456x128xbf16, #tpu.memory_space<any>>
      %75 = tpu.memref_squeeze %74 : memref<1x456x128xbf16, #tpu.memory_space<any>> -> memref<456x128xbf16, #tpu.memory_space<any>>
      %c0_i32_46 = arith.constant 0 : i32
      %c0_i32_47 = arith.constant 0 : i32
      %76 = tpu.memref_slice %arg6[%71, %c0_i32_46, %c0_i32_47] : memref<2x456x128xbf16, #tpu.memory_space<vmem>> -> memref<1x456x128xbf16, #tpu.memory_space<vmem>>
      %77 = tpu.memref_squeeze %76 : memref<1x456x128xbf16, #tpu.memory_space<vmem>> -> memref<456x128xbf16, #tpu.memory_space<vmem>>
      %78 = tpu.memref_slice %arg7[%71] : memref<2x!tpu.dma_semaphore, #tpu.memory_space<semaphore_mem>> -> memref<1x!tpu.dma_semaphore, #tpu.memory_space<semaphore_mem>>
      %79 = tpu.memref_squeeze %78 : memref<1x!tpu.dma_semaphore, #tpu.memory_space<semaphore_mem>> -> memref<!tpu.dma_semaphore, #tpu.memory_space<semaphore_mem>>
      tpu.enqueue_dma source(%75 : memref<456x128xbf16, #tpu.memory_space<any>>) target(%77 : memref<456x128xbf16, #tpu.memory_space<vmem>>) target_semaphore(%79 : memref<!tpu.dma_semaphore, #tpu.memory_space<semaphore_mem>>)
    } else {
    }
    %c0_i32_4 = arith.constant 0 : i32
    %c0_i32_5 = arith.constant 0 : i32
    %8 = tpu.memref_slice %arg2[%arg0, %c0_i32_4, %c0_i32_5] : memref<2x456x128xbf16, #tpu.memory_space<any>> -> memref<1x456x128xbf16, #tpu.memory_space<any>>
    %9 = tpu.memref_squeeze %8 : memref<1x456x128xbf16, #tpu.memory_space<any>> -> memref<456x128xbf16, #tpu.memory_space<any>>
    %c0_i32_6 = arith.constant 0 : i32
    %c0_i32_7 = arith.constant 0 : i32
    %10 = tpu.memref_slice %arg6[%0, %c0_i32_6, %c0_i32_7] : memref<2x456x128xbf16, #tpu.memory_space<vmem>> -> memref<1x456x128xbf16, #tpu.memory_space<vmem>>
    %11 = tpu.memref_squeeze %10 : memref<1x456x128xbf16, #tpu.memory_space<vmem>> -> memref<456x128xbf16, #tpu.memory_space<vmem>>
    %12 = tpu.memref_slice %arg7[%0] : memref<2x!tpu.dma_semaphore, #tpu.memory_space<semaphore_mem>> -> memref<1x!tpu.dma_semaphore, #tpu.memory_space<semaphore_mem>>
    %13 = tpu.memref_squeeze %12 : memref<1x!tpu.dma_semaphore, #tpu.memory_space<semaphore_mem>> -> memref<!tpu.dma_semaphore, #tpu.memory_space<semaphore_mem>>
    tpu.wait_dma2 semaphore(%13 : memref<!tpu.dma_semaphore, #tpu.memory_space<semaphore_mem>>) src(%9 : memref<456x128xbf16, #tpu.memory_space<any>>) dst(%11 : memref<456x128xbf16, #tpu.memory_space<vmem>>)
    %14 = arith.index_cast %0 : i32 to index
    %c0 = arith.constant 0 : index
    %c0_8 = arith.constant 0 : index
    %15 = vector.load %arg6[%14, %c0, %c0_8] : memref<2x456x128xbf16, #tpu.memory_space<vmem>>, vector<1x456x128xbf16>
    %16 = vector.shape_cast %15 : vector<1x456x128xbf16> to vector<456x128xbf16>
    %cst = arith.constant 0.000000e+00 : f32
    %17 = vector.broadcast %cst : f32 to vector<384x128xf32>
    %18 = vector.extract_strided_slice %16 {offsets = [0, 0], sizes = [384, 128], strides = [1, 1]} : vector<456x128xbf16> to vector<384x128xbf16>
    %c0_9 = arith.constant 0 : index
    %c0_10 = arith.constant 0 : index
    %c0_11 = arith.constant 0 : index
    %19 = vector.load %arg3[%c0_9, %c0_10, %c0_11] : memref<9x128x128xbf16, #tpu.memory_space<vmem>>, vector<1x128x128xbf16>
    %20 = vector.shape_cast %19 : vector<1x128x128xbf16> to vector<128x128xbf16>
    %cst_12 = arith.constant dense<0.000000e+00> : vector<384x128xf32>
    %21 = tpu.matmul %18, %20, %cst_12 {dimension_numbers = #tpu.dot_dimension_numbers<[1], [0], [0], [1], [0, 0, 1, 1], [], []>} : vector<384x128xbf16>, vector<128x128xbf16>, vector<384x128xf32> -> vector<384x128xf32>
    %22 = arith.addf %17, %21 : vector<384x128xf32>
    %23 = vector.extract_strided_slice %16 {offsets = [1, 0], sizes = [384, 128], strides = [1, 1]} : vector<456x128xbf16> to vector<384x128xbf16>
    %c1 = arith.constant 1 : index
    %c0_13 = arith.constant 0 : index
    %c0_14 = arith.constant 0 : index
    %24 = vector.load %arg3[%c1, %c0_13, %c0_14] : memref<9x128x128xbf16, #tpu.memory_space<vmem>>, vector<1x128x128xbf16>
    %25 = vector.shape_cast %24 : vector<1x128x128xbf16> to vector<128x128xbf16>
    %cst_15 = arith.constant dense<0.000000e+00> : vector<384x128xf32>
    %26 = tpu.matmul %23, %25, %cst_15 {dimension_numbers = #tpu.dot_dimension_numbers<[1], [0], [0], [1], [0, 0, 1, 1], [], []>} : vector<384x128xbf16>, vector<128x128xbf16>, vector<384x128xf32> -> vector<384x128xf32>
    %27 = arith.addf %22, %26 : vector<384x128xf32>
    %28 = vector.extract_strided_slice %16 {offsets = [2, 0], sizes = [384, 128], strides = [1, 1]} : vector<456x128xbf16> to vector<384x128xbf16>
    %c2 = arith.constant 2 : index
    %c0_16 = arith.constant 0 : index
    %c0_17 = arith.constant 0 : index
    %29 = vector.load %arg3[%c2, %c0_16, %c0_17] : memref<9x128x128xbf16, #tpu.memory_space<vmem>>, vector<1x128x128xbf16>
    %30 = vector.shape_cast %29 : vector<1x128x128xbf16> to vector<128x128xbf16>
    %cst_18 = arith.constant dense<0.000000e+00> : vector<384x128xf32>
    %31 = tpu.matmul %28, %30, %cst_18 {dimension_numbers = #tpu.dot_dimension_numbers<[1], [0], [0], [1], [0, 0, 1, 1], [], []>} : vector<384x128xbf16>, vector<128x128xbf16>, vector<384x128xf32> -> vector<384x128xf32>
    %32 = arith.addf %27, %31 : vector<384x128xf32>
    %33 = vector.extract_strided_slice %16 {offsets = [24, 0], sizes = [384, 128], strides = [1, 1]} : vector<456x128xbf16> to vector<384x128xbf16>
    %c3 = arith.constant 3 : index
    %c0_19 = arith.constant 0 : index
    %c0_20 = arith.constant 0 : index
    %34 = vector.load %arg3[%c3, %c0_19, %c0_20] : memref<9x128x128xbf16, #tpu.memory_space<vmem>>, vector<1x128x128xbf16>
    %35 = vector.shape_cast %34 : vector<1x128x128xbf16> to vector<128x128xbf16>
    %cst_21 = arith.constant dense<0.000000e+00> : vector<384x128xf32>
    %36 = tpu.matmul %33, %35, %cst_21 {dimension_numbers = #tpu.dot_dimension_numbers<[1], [0], [0], [1], [0, 0, 1, 1], [], []>} : vector<384x128xbf16>, vector<128x128xbf16>, vector<384x128xf32> -> vector<384x128xf32>
    %37 = arith.addf %32, %36 : vector<384x128xf32>
    %38 = vector.extract_strided_slice %16 {offsets = [25, 0], sizes = [384, 128], strides = [1, 1]} : vector<456x128xbf16> to vector<384x128xbf16>
    %c4 = arith.constant 4 : index
    %c0_22 = arith.constant 0 : index
    %c0_23 = arith.constant 0 : index
    %39 = vector.load %arg3[%c4, %c0_22, %c0_23] : memref<9x128x128xbf16, #tpu.memory_space<vmem>>, vector<1x128x128xbf16>
    %40 = vector.shape_cast %39 : vector<1x128x128xbf16> to vector<128x128xbf16>
    %cst_24 = arith.constant dense<0.000000e+00> : vector<384x128xf32>
    %41 = tpu.matmul %38, %40, %cst_24 {dimension_numbers = #tpu.dot_dimension_numbers<[1], [0], [0], [1], [0, 0, 1, 1], [], []>} : vector<384x128xbf16>, vector<128x128xbf16>, vector<384x128xf32> -> vector<384x128xf32>
    %42 = arith.addf %37, %41 : vector<384x128xf32>
    %43 = vector.extract_strided_slice %16 {offsets = [26, 0], sizes = [384, 128], strides = [1, 1]} : vector<456x128xbf16> to vector<384x128xbf16>
    %c5 = arith.constant 5 : index
    %c0_25 = arith.constant 0 : index
    %c0_26 = arith.constant 0 : index
    %44 = vector.load %arg3[%c5, %c0_25, %c0_26] : memref<9x128x128xbf16, #tpu.memory_space<vmem>>, vector<1x128x128xbf16>
    %45 = vector.shape_cast %44 : vector<1x128x128xbf16> to vector<128x128xbf16>
    %cst_27 = arith.constant dense<0.000000e+00> : vector<384x128xf32>
    %46 = tpu.matmul %43, %45, %cst_27 {dimension_numbers = #tpu.dot_dimension_numbers<[1], [0], [0], [1], [0, 0, 1, 1], [], []>} : vector<384x128xbf16>, vector<128x128xbf16>, vector<384x128xf32> -> vector<384x128xf32>
    %47 = arith.addf %42, %46 : vector<384x128xf32>
    %48 = vector.extract_strided_slice %16 {offsets = [48, 0], sizes = [384, 128], strides = [1, 1]} : vector<456x128xbf16> to vector<384x128xbf16>
    %c6 = arith.constant 6 : index
    %c0_28 = arith.constant 0 : index
    %c0_29 = arith.constant 0 : index
    %49 = vector.load %arg3[%c6, %c0_28, %c0_29] : memref<9x128x128xbf16, #tpu.memory_space<vmem>>, vector<1x128x128xbf16>
    %50 = vector.shape_cast %49 : vector<1x128x128xbf16> to vector<128x128xbf16>
    %cst_30 = arith.constant dense<0.000000e+00> : vector<384x128xf32>
    %51 = tpu.matmul %48, %50, %cst_30 {dimension_numbers = #tpu.dot_dimension_numbers<[1], [0], [0], [1], [0, 0, 1, 1], [], []>} : vector<384x128xbf16>, vector<128x128xbf16>, vector<384x128xf32> -> vector<384x128xf32>
    %52 = arith.addf %47, %51 : vector<384x128xf32>
    %53 = vector.extract_strided_slice %16 {offsets = [49, 0], sizes = [384, 128], strides = [1, 1]} : vector<456x128xbf16> to vector<384x128xbf16>
    %c7 = arith.constant 7 : index
    %c0_31 = arith.constant 0 : index
    %c0_32 = arith.constant 0 : index
    %54 = vector.load %arg3[%c7, %c0_31, %c0_32] : memref<9x128x128xbf16, #tpu.memory_space<vmem>>, vector<1x128x128xbf16>
    %55 = vector.shape_cast %54 : vector<1x128x128xbf16> to vector<128x128xbf16>
    %cst_33 = arith.constant dense<0.000000e+00> : vector<384x128xf32>
    %56 = tpu.matmul %53, %55, %cst_33 {dimension_numbers = #tpu.dot_dimension_numbers<[1], [0], [0], [1], [0, 0, 1, 1], [], []>} : vector<384x128xbf16>, vector<128x128xbf16>, vector<384x128xf32> -> vector<384x128xf32>
    %57 = arith.addf %52, %56 : vector<384x128xf32>
    %58 = vector.extract_strided_slice %16 {offsets = [50, 0], sizes = [384, 128], strides = [1, 1]} : vector<456x128xbf16> to vector<384x128xbf16>
    %c8 = arith.constant 8 : index
    %c0_34 = arith.constant 0 : index
    %c0_35 = arith.constant 0 : index
    %59 = vector.load %arg3[%c8, %c0_34, %c0_35] : memref<9x128x128xbf16, #tpu.memory_space<vmem>>, vector<1x128x128xbf16>
    %60 = vector.shape_cast %59 : vector<1x128x128xbf16> to vector<128x128xbf16>
    %cst_36 = arith.constant dense<0.000000e+00> : vector<384x128xf32>
    %61 = tpu.matmul %58, %60, %cst_36 {dimension_numbers = #tpu.dot_dimension_numbers<[1], [0], [0], [1], [0, 0, 1, 1], [], []>} : vector<384x128xbf16>, vector<128x128xbf16>, vector<384x128xf32> -> vector<384x128xf32>
    %62 = arith.addf %57, %61 : vector<384x128xf32>
    %c0_37 = arith.constant 0 : index
    %c0_38 = arith.constant 0 : index
    %63 = vector.load %arg4[%c0_37, %c0_38] : memref<1x128xf32, #tpu.memory_space<vmem>>, vector<1x128xf32>
    %64 = vector.broadcast %63 : vector<1x128xf32> to vector<384x128xf32>
    %65 = arith.addf %62, %64 : vector<384x128xf32>
    %66 = vector.shape_cast %65 : vector<384x128xf32> to vector<16x24x128xf32>
    %c0_39 = arith.constant 0 : index
    %c0_40 = arith.constant 0 : index
    %c0_41 = arith.constant 0 : index
    %c0_42 = arith.constant 0 : index
    %67 = vector.load %arg5[%c0_39, %c0_40, %c0_41, %c0_42] : memref<1x16x24x128xf32, #tpu.memory_space<vmem>>, vector<1x16x24x128xf32>
    %68 = vector.shape_cast %67 : vector<1x16x24x128xf32> to vector<16x24x128xf32>
    %69 = vector.shape_cast %66 : vector<16x24x128xf32> to vector<1x16x24x128xf32>
    tpu.vector_store %arg5[%c0_39, %c0_40, %c0_41, %c0_42], %69 {strides = array<i32>} : memref<1x16x24x128xf32, #tpu.memory_space<vmem>>, vector<1x16x24x128xf32>,
    return
  }
  func.func @transform_1(%arg0: i32, %arg1: i32) -> (i32, i32, i32) {
    %c0_i32 = arith.constant 0 : i32
    %c0_i32_0 = arith.constant 0 : i32
    %c0_i32_1 = arith.constant 0 : i32
    %c0_i32_2 = arith.constant 0 : i32
    return %c0_i32, %c0_i32_0, %c0_i32_1 : i32, i32, i32
  }
  func.func @transform_2(%arg0: i32, %arg1: i32) -> (i32, i32) {
    %c0_i32 = arith.constant 0 : i32
    %c0_i32_0 = arith.constant 0 : i32
    %c0_i32_1 = arith.constant 0 : i32
    return %c0_i32, %c0_i32_0 : i32, i32
  }
  func.func @transform_3(%arg0: i32, %arg1: i32) -> (i32, i32, i32, i32) {
    %c0_i32 = arith.constant 0 : i32
    %c0_i32_0 = arith.constant 0 : i32
    %c0_i32_1 = arith.constant 0 : i32
    return %arg0, %arg1, %c0_i32, %c0_i32_0 : i32, i32, i32, i32
  }
}

module attributes {stable_mosaic.version = 11 : i64} {
  func.func @_conv3x3_s1_kernel(%arg0: i32, %arg1: i32, %arg2: memref<2x176x128xbf16, #tpu.memory_space<any>>, %arg3: memref<9x128x128xbf16, #tpu.memory_space<vmem>>, %arg4: memref<1x128xf32, #tpu.memory_space<vmem>>, %arg5: memref<1x8x16x128xf32, #tpu.memory_space<vmem>>, %arg6: memref<2x176x128xbf16, #tpu.memory_space<vmem>>, %arg7: memref<2x!tpu.dma_semaphore, #tpu.memory_space<semaphore_mem>>) attributes {dimension_semantics = [#tpu.dimension_semantics<parallel>, #tpu.dimension_semantics<arbitrary>], iteration_bounds = array<i64: 2, 1>, scalar_prefetch = 0 : i64, scratch_operands = 2 : i64, tpu.core_type = #tpu.core_type<tc>, window_params = [{}, {pipeline_mode = #tpu.pipeline_mode<synchronous>, transform_indices = @transform_1, window_bounds = array<i64: 9, 128, 128>}, {pipeline_mode = #tpu.pipeline_mode<synchronous>, transform_indices = @transform_2, window_bounds = array<i64: 1, 128>}, {transform_indices = @transform_3, window_bounds = array<i64: 1, 8, 16, 128>}]} {
    %c1_i32 = arith.constant 1 : i32
    %0 = arith.andi %arg1, %c1_i32 : i32
    %c0_i32 = arith.constant 0 : i32
    %1 = arith.cmpi eq, %arg1, %c0_i32 : i32
    %2 = arith.extui %1 : i1 to i32
    %c0_i32_0 = arith.constant 0 : i32
    %3 = arith.cmpi ne, %2, %c0_i32_0 : i32
    scf.if %3 {
      %c128_i32 = arith.constant 128 : i32
      %70 = arith.muli %arg1, %c128_i32 : i32
      %71 = tpu.assume_multiple %70, 8 : i32
      %c0_i32_43 = arith.constant 0 : i32
      %72 = tpu.memref_slice %arg2[%arg0, %71, %c0_i32_43] : memref<2x176x128xbf16, #tpu.memory_space<any>> -> memref<1x176x128xbf16, #tpu.memory_space<any>>
      %73 = tpu.memref_squeeze %72 : memref<1x176x128xbf16, #tpu.memory_space<any>> -> memref<176x128xbf16, #tpu.memory_space<any>>
      %c0_i32_44 = arith.constant 0 : i32
      %c0_i32_45 = arith.constant 0 : i32
      %74 = tpu.memref_slice %arg6[%0, %c0_i32_44, %c0_i32_45] : memref<2x176x128xbf16, #tpu.memory_space<vmem>> -> memref<1x176x128xbf16, #tpu.memory_space<vmem>>
      %75 = tpu.memref_squeeze %74 : memref<1x176x128xbf16, #tpu.memory_space<vmem>> -> memref<176x128xbf16, #tpu.memory_space<vmem>>
      %76 = tpu.memref_slice %arg7[%0] : memref<2x!tpu.dma_semaphore, #tpu.memory_space<semaphore_mem>> -> memref<1x!tpu.dma_semaphore, #tpu.memory_space<semaphore_mem>>
      %77 = tpu.memref_squeeze %76 : memref<1x!tpu.dma_semaphore, #tpu.memory_space<semaphore_mem>> -> memref<!tpu.dma_semaphore, #tpu.memory_space<semaphore_mem>>
      tpu.enqueue_dma source(%73 : memref<176x128xbf16, #tpu.memory_space<any>>) target(%75 : memref<176x128xbf16, #tpu.memory_space<vmem>>) target_semaphore(%77 : memref<!tpu.dma_semaphore, #tpu.memory_space<semaphore_mem>>)
    } else {
    }
    %c1_i32_1 = arith.constant 1 : i32
    %4 = arith.addi %arg1, %c1_i32_1 : i32
    %c1_i32_2 = arith.constant 1 : i32
    %5 = arith.cmpi slt, %4, %c1_i32_2 : i32
    %6 = arith.extui %5 : i1 to i32
    %c0_i32_3 = arith.constant 0 : i32
    %7 = arith.cmpi ne, %6, %c0_i32_3 : i32
    scf.if %7 {
      %c1_i32_43 = arith.constant 1 : i32
      %70 = arith.addi %arg1, %c1_i32_43 : i32
      %c1_i32_44 = arith.constant 1 : i32
      %71 = arith.subi %c1_i32_44, %0 : i32
      %c128_i32 = arith.constant 128 : i32
      %72 = arith.muli %70, %c128_i32 : i32
      %73 = tpu.assume_multiple %72, 8 : i32
      %c0_i32_45 = arith.constant 0 : i32
      %74 = tpu.memref_slice %arg2[%arg0, %73, %c0_i32_45] : memref<2x176x128xbf16, #tpu.memory_space<any>> -> memref<1x176x128xbf16, #tpu.memory_space<any>>
      %75 = tpu.memref_squeeze %74 : memref<1x176x128xbf16, #tpu.memory_space<any>> -> memref<176x128xbf16, #tpu.memory_space<any>>
      %c0_i32_46 = arith.constant 0 : i32
      %c0_i32_47 = arith.constant 0 : i32
      %76 = tpu.memref_slice %arg6[%71, %c0_i32_46, %c0_i32_47] : memref<2x176x128xbf16, #tpu.memory_space<vmem>> -> memref<1x176x128xbf16, #tpu.memory_space<vmem>>
      %77 = tpu.memref_squeeze %76 : memref<1x176x128xbf16, #tpu.memory_space<vmem>> -> memref<176x128xbf16, #tpu.memory_space<vmem>>
      %78 = tpu.memref_slice %arg7[%71] : memref<2x!tpu.dma_semaphore, #tpu.memory_space<semaphore_mem>> -> memref<1x!tpu.dma_semaphore, #tpu.memory_space<semaphore_mem>>
      %79 = tpu.memref_squeeze %78 : memref<1x!tpu.dma_semaphore, #tpu.memory_space<semaphore_mem>> -> memref<!tpu.dma_semaphore, #tpu.memory_space<semaphore_mem>>
      tpu.enqueue_dma source(%75 : memref<176x128xbf16, #tpu.memory_space<any>>) target(%77 : memref<176x128xbf16, #tpu.memory_space<vmem>>) target_semaphore(%79 : memref<!tpu.dma_semaphore, #tpu.memory_space<semaphore_mem>>)
    } else {
    }
    %c0_i32_4 = arith.constant 0 : i32
    %c0_i32_5 = arith.constant 0 : i32
    %8 = tpu.memref_slice %arg2[%arg0, %c0_i32_4, %c0_i32_5] : memref<2x176x128xbf16, #tpu.memory_space<any>> -> memref<1x176x128xbf16, #tpu.memory_space<any>>
    %9 = tpu.memref_squeeze %8 : memref<1x176x128xbf16, #tpu.memory_space<any>> -> memref<176x128xbf16, #tpu.memory_space<any>>
    %c0_i32_6 = arith.constant 0 : i32
    %c0_i32_7 = arith.constant 0 : i32
    %10 = tpu.memref_slice %arg6[%0, %c0_i32_6, %c0_i32_7] : memref<2x176x128xbf16, #tpu.memory_space<vmem>> -> memref<1x176x128xbf16, #tpu.memory_space<vmem>>
    %11 = tpu.memref_squeeze %10 : memref<1x176x128xbf16, #tpu.memory_space<vmem>> -> memref<176x128xbf16, #tpu.memory_space<vmem>>
    %12 = tpu.memref_slice %arg7[%0] : memref<2x!tpu.dma_semaphore, #tpu.memory_space<semaphore_mem>> -> memref<1x!tpu.dma_semaphore, #tpu.memory_space<semaphore_mem>>
    %13 = tpu.memref_squeeze %12 : memref<1x!tpu.dma_semaphore, #tpu.memory_space<semaphore_mem>> -> memref<!tpu.dma_semaphore, #tpu.memory_space<semaphore_mem>>
    tpu.wait_dma2 semaphore(%13 : memref<!tpu.dma_semaphore, #tpu.memory_space<semaphore_mem>>) src(%9 : memref<176x128xbf16, #tpu.memory_space<any>>) dst(%11 : memref<176x128xbf16, #tpu.memory_space<vmem>>)
    %14 = arith.index_cast %0 : i32 to index
    %c0 = arith.constant 0 : index
    %c0_8 = arith.constant 0 : index
    %15 = vector.load %arg6[%14, %c0, %c0_8] : memref<2x176x128xbf16, #tpu.memory_space<vmem>>, vector<1x176x128xbf16>
    %16 = vector.shape_cast %15 : vector<1x176x128xbf16> to vector<176x128xbf16>
    %cst = arith.constant 0.000000e+00 : f32
    %17 = vector.broadcast %cst : f32 to vector<128x128xf32>
    %18 = vector.extract_strided_slice %16 {offsets = [0, 0], sizes = [128, 128], strides = [1, 1]} : vector<176x128xbf16> to vector<128x128xbf16>
    %c0_9 = arith.constant 0 : index
    %c0_10 = arith.constant 0 : index
    %c0_11 = arith.constant 0 : index
    %19 = vector.load %arg3[%c0_9, %c0_10, %c0_11] : memref<9x128x128xbf16, #tpu.memory_space<vmem>>, vector<1x128x128xbf16>
    %20 = vector.shape_cast %19 : vector<1x128x128xbf16> to vector<128x128xbf16>
    %cst_12 = arith.constant dense<0.000000e+00> : vector<128x128xf32>
    %21 = tpu.matmul %18, %20, %cst_12 {dimension_numbers = #tpu.dot_dimension_numbers<[1], [0], [0], [1], [0, 0, 1, 1], [], []>} : vector<128x128xbf16>, vector<128x128xbf16>, vector<128x128xf32> -> vector<128x128xf32>
    %22 = arith.addf %17, %21 : vector<128x128xf32>
    %23 = vector.extract_strided_slice %16 {offsets = [1, 0], sizes = [128, 128], strides = [1, 1]} : vector<176x128xbf16> to vector<128x128xbf16>
    %c1 = arith.constant 1 : index
    %c0_13 = arith.constant 0 : index
    %c0_14 = arith.constant 0 : index
    %24 = vector.load %arg3[%c1, %c0_13, %c0_14] : memref<9x128x128xbf16, #tpu.memory_space<vmem>>, vector<1x128x128xbf16>
    %25 = vector.shape_cast %24 : vector<1x128x128xbf16> to vector<128x128xbf16>
    %cst_15 = arith.constant dense<0.000000e+00> : vector<128x128xf32>
    %26 = tpu.matmul %23, %25, %cst_15 {dimension_numbers = #tpu.dot_dimension_numbers<[1], [0], [0], [1], [0, 0, 1, 1], [], []>} : vector<128x128xbf16>, vector<128x128xbf16>, vector<128x128xf32> -> vector<128x128xf32>
    %27 = arith.addf %22, %26 : vector<128x128xf32>
    %28 = vector.extract_strided_slice %16 {offsets = [2, 0], sizes = [128, 128], strides = [1, 1]} : vector<176x128xbf16> to vector<128x128xbf16>
    %c2 = arith.constant 2 : index
    %c0_16 = arith.constant 0 : index
    %c0_17 = arith.constant 0 : index
    %29 = vector.load %arg3[%c2, %c0_16, %c0_17] : memref<9x128x128xbf16, #tpu.memory_space<vmem>>, vector<1x128x128xbf16>
    %30 = vector.shape_cast %29 : vector<1x128x128xbf16> to vector<128x128xbf16>
    %cst_18 = arith.constant dense<0.000000e+00> : vector<128x128xf32>
    %31 = tpu.matmul %28, %30, %cst_18 {dimension_numbers = #tpu.dot_dimension_numbers<[1], [0], [0], [1], [0, 0, 1, 1], [], []>} : vector<128x128xbf16>, vector<128x128xbf16>, vector<128x128xf32> -> vector<128x128xf32>
    %32 = arith.addf %27, %31 : vector<128x128xf32>
    %33 = vector.extract_strided_slice %16 {offsets = [16, 0], sizes = [128, 128], strides = [1, 1]} : vector<176x128xbf16> to vector<128x128xbf16>
    %c3 = arith.constant 3 : index
    %c0_19 = arith.constant 0 : index
    %c0_20 = arith.constant 0 : index
    %34 = vector.load %arg3[%c3, %c0_19, %c0_20] : memref<9x128x128xbf16, #tpu.memory_space<vmem>>, vector<1x128x128xbf16>
    %35 = vector.shape_cast %34 : vector<1x128x128xbf16> to vector<128x128xbf16>
    %cst_21 = arith.constant dense<0.000000e+00> : vector<128x128xf32>
    %36 = tpu.matmul %33, %35, %cst_21 {dimension_numbers = #tpu.dot_dimension_numbers<[1], [0], [0], [1], [0, 0, 1, 1], [], []>} : vector<128x128xbf16>, vector<128x128xbf16>, vector<128x128xf32> -> vector<128x128xf32>
    %37 = arith.addf %32, %36 : vector<128x128xf32>
    %38 = vector.extract_strided_slice %16 {offsets = [17, 0], sizes = [128, 128], strides = [1, 1]} : vector<176x128xbf16> to vector<128x128xbf16>
    %c4 = arith.constant 4 : index
    %c0_22 = arith.constant 0 : index
    %c0_23 = arith.constant 0 : index
    %39 = vector.load %arg3[%c4, %c0_22, %c0_23] : memref<9x128x128xbf16, #tpu.memory_space<vmem>>, vector<1x128x128xbf16>
    %40 = vector.shape_cast %39 : vector<1x128x128xbf16> to vector<128x128xbf16>
    %cst_24 = arith.constant dense<0.000000e+00> : vector<128x128xf32>
    %41 = tpu.matmul %38, %40, %cst_24 {dimension_numbers = #tpu.dot_dimension_numbers<[1], [0], [0], [1], [0, 0, 1, 1], [], []>} : vector<128x128xbf16>, vector<128x128xbf16>, vector<128x128xf32> -> vector<128x128xf32>
    %42 = arith.addf %37, %41 : vector<128x128xf32>
    %43 = vector.extract_strided_slice %16 {offsets = [18, 0], sizes = [128, 128], strides = [1, 1]} : vector<176x128xbf16> to vector<128x128xbf16>
    %c5 = arith.constant 5 : index
    %c0_25 = arith.constant 0 : index
    %c0_26 = arith.constant 0 : index
    %44 = vector.load %arg3[%c5, %c0_25, %c0_26] : memref<9x128x128xbf16, #tpu.memory_space<vmem>>, vector<1x128x128xbf16>
    %45 = vector.shape_cast %44 : vector<1x128x128xbf16> to vector<128x128xbf16>
    %cst_27 = arith.constant dense<0.000000e+00> : vector<128x128xf32>
    %46 = tpu.matmul %43, %45, %cst_27 {dimension_numbers = #tpu.dot_dimension_numbers<[1], [0], [0], [1], [0, 0, 1, 1], [], []>} : vector<128x128xbf16>, vector<128x128xbf16>, vector<128x128xf32> -> vector<128x128xf32>
    %47 = arith.addf %42, %46 : vector<128x128xf32>
    %48 = vector.extract_strided_slice %16 {offsets = [32, 0], sizes = [128, 128], strides = [1, 1]} : vector<176x128xbf16> to vector<128x128xbf16>
    %c6 = arith.constant 6 : index
    %c0_28 = arith.constant 0 : index
    %c0_29 = arith.constant 0 : index
    %49 = vector.load %arg3[%c6, %c0_28, %c0_29] : memref<9x128x128xbf16, #tpu.memory_space<vmem>>, vector<1x128x128xbf16>
    %50 = vector.shape_cast %49 : vector<1x128x128xbf16> to vector<128x128xbf16>
    %cst_30 = arith.constant dense<0.000000e+00> : vector<128x128xf32>
    %51 = tpu.matmul %48, %50, %cst_30 {dimension_numbers = #tpu.dot_dimension_numbers<[1], [0], [0], [1], [0, 0, 1, 1], [], []>} : vector<128x128xbf16>, vector<128x128xbf16>, vector<128x128xf32> -> vector<128x128xf32>
    %52 = arith.addf %47, %51 : vector<128x128xf32>
    %53 = vector.extract_strided_slice %16 {offsets = [33, 0], sizes = [128, 128], strides = [1, 1]} : vector<176x128xbf16> to vector<128x128xbf16>
    %c7 = arith.constant 7 : index
    %c0_31 = arith.constant 0 : index
    %c0_32 = arith.constant 0 : index
    %54 = vector.load %arg3[%c7, %c0_31, %c0_32] : memref<9x128x128xbf16, #tpu.memory_space<vmem>>, vector<1x128x128xbf16>
    %55 = vector.shape_cast %54 : vector<1x128x128xbf16> to vector<128x128xbf16>
    %cst_33 = arith.constant dense<0.000000e+00> : vector<128x128xf32>
    %56 = tpu.matmul %53, %55, %cst_33 {dimension_numbers = #tpu.dot_dimension_numbers<[1], [0], [0], [1], [0, 0, 1, 1], [], []>} : vector<128x128xbf16>, vector<128x128xbf16>, vector<128x128xf32> -> vector<128x128xf32>
    %57 = arith.addf %52, %56 : vector<128x128xf32>
    %58 = vector.extract_strided_slice %16 {offsets = [34, 0], sizes = [128, 128], strides = [1, 1]} : vector<176x128xbf16> to vector<128x128xbf16>
    %c8 = arith.constant 8 : index
    %c0_34 = arith.constant 0 : index
    %c0_35 = arith.constant 0 : index
    %59 = vector.load %arg3[%c8, %c0_34, %c0_35] : memref<9x128x128xbf16, #tpu.memory_space<vmem>>, vector<1x128x128xbf16>
    %60 = vector.shape_cast %59 : vector<1x128x128xbf16> to vector<128x128xbf16>
    %cst_36 = arith.constant dense<0.000000e+00> : vector<128x128xf32>
    %61 = tpu.matmul %58, %60, %cst_36 {dimension_numbers = #tpu.dot_dimension_numbers<[1], [0], [0], [1], [0, 0, 1, 1], [], []>} : vector<128x128xbf16>, vector<128x128xbf16>, vector<128x128xf32> -> vector<128x128xf32>
    %62 = arith.addf %57, %61 : vector<128x128xf32>
    %c0_37 = arith.constant 0 : index
    %c0_38 = arith.constant 0 : index
    %63 = vector.load %arg4[%c0_37, %c0_38] : memref<1x128xf32, #tpu.memory_space<vmem>>, vector<1x128xf32>
    %64 = vector.broadcast %63 : vector<1x128xf32> to vector<128x128xf32>
    %65 = arith.addf %62, %64 : vector<128x128xf32>
    %66 = vector.shape_cast %65 : vector<128x128xf32> to vector<8x16x128xf32>
    %c0_39 = arith.constant 0 : index
    %c0_40 = arith.constant 0 : index
    %c0_41 = arith.constant 0 : index
    %c0_42 = arith.constant 0 : index
    %67 = vector.load %arg5[%c0_39, %c0_40, %c0_41, %c0_42] : memref<1x8x16x128xf32, #tpu.memory_space<vmem>>, vector<1x8x16x128xf32>
    %68 = vector.shape_cast %67 : vector<1x8x16x128xf32> to vector<8x16x128xf32>
    %69 = vector.shape_cast %66 : vector<8x16x128xf32> to vector<1x8x16x128xf32>
    tpu.vector_store %arg5[%c0_39, %c0_40, %c0_41, %c0_42], %69 {strides = array<i32>} : memref<1x8x16x128xf32, #tpu.memory_space<vmem>>, vector<1x8x16x128xf32>,
    return
  }
  func.func @transform_1(%arg0: i32, %arg1: i32) -> (i32, i32, i32) {
    %c0_i32 = arith.constant 0 : i32
    %c0_i32_0 = arith.constant 0 : i32
    %c0_i32_1 = arith.constant 0 : i32
    %c0_i32_2 = arith.constant 0 : i32
    return %c0_i32, %c0_i32_0, %c0_i32_1 : i32, i32, i32
  }
  func.func @transform_2(%arg0: i32, %arg1: i32) -> (i32, i32) {
    %c0_i32 = arith.constant 0 : i32
    %c0_i32_0 = arith.constant 0 : i32
    %c0_i32_1 = arith.constant 0 : i32
    return %c0_i32, %c0_i32_0 : i32, i32
  }
  func.func @transform_3(%arg0: i32, %arg1: i32) -> (i32, i32, i32, i32) {
    %c0_i32 = arith.constant 0 : i32
    %c0_i32_0 = arith.constant 0 : i32
    %c0_i32_1 = arith.constant 0 : i32
    return %arg0, %arg1, %c0_i32, %c0_i32_0 : i32, i32, i32, i32
  }
}

module attributes {stable_mosaic.version = 11 : i64} {
  func.func @_conv3x3_s1_kernel(%arg0: i32, %arg1: i32, %arg2: memref<2x56x128xbf16, #tpu.memory_space<any>>, %arg3: memref<9x128x128xbf16, #tpu.memory_space<vmem>>, %arg4: memref<1x128xf32, #tpu.memory_space<vmem>>, %arg5: memref<1x4x8x128xf32, #tpu.memory_space<vmem>>, %arg6: memref<2x56x128xbf16, #tpu.memory_space<vmem>>, %arg7: memref<2x!tpu.dma_semaphore, #tpu.memory_space<semaphore_mem>>) attributes {dimension_semantics = [#tpu.dimension_semantics<parallel>, #tpu.dimension_semantics<arbitrary>], iteration_bounds = array<i64: 2, 1>, scalar_prefetch = 0 : i64, scratch_operands = 2 : i64, tpu.core_type = #tpu.core_type<tc>, window_params = [{}, {pipeline_mode = #tpu.pipeline_mode<synchronous>, transform_indices = @transform_1, window_bounds = array<i64: 9, 128, 128>}, {pipeline_mode = #tpu.pipeline_mode<synchronous>, transform_indices = @transform_2, window_bounds = array<i64: 1, 128>}, {transform_indices = @transform_3, window_bounds = array<i64: 1, 4, 8, 128>}]} {
    %c1_i32 = arith.constant 1 : i32
    %0 = arith.andi %arg1, %c1_i32 : i32
    %c0_i32 = arith.constant 0 : i32
    %1 = arith.cmpi eq, %arg1, %c0_i32 : i32
    %2 = arith.extui %1 : i1 to i32
    %c0_i32_0 = arith.constant 0 : i32
    %3 = arith.cmpi ne, %2, %c0_i32_0 : i32
    scf.if %3 {
      %c32_i32 = arith.constant 32 : i32
      %70 = arith.muli %arg1, %c32_i32 : i32
      %71 = tpu.assume_multiple %70, 8 : i32
      %c0_i32_43 = arith.constant 0 : i32
      %72 = tpu.memref_slice %arg2[%arg0, %71, %c0_i32_43] : memref<2x56x128xbf16, #tpu.memory_space<any>> -> memref<1x56x128xbf16, #tpu.memory_space<any>>
      %73 = tpu.memref_squeeze %72 : memref<1x56x128xbf16, #tpu.memory_space<any>> -> memref<56x128xbf16, #tpu.memory_space<any>>
      %c0_i32_44 = arith.constant 0 : i32
      %c0_i32_45 = arith.constant 0 : i32
      %74 = tpu.memref_slice %arg6[%0, %c0_i32_44, %c0_i32_45] : memref<2x56x128xbf16, #tpu.memory_space<vmem>> -> memref<1x56x128xbf16, #tpu.memory_space<vmem>>
      %75 = tpu.memref_squeeze %74 : memref<1x56x128xbf16, #tpu.memory_space<vmem>> -> memref<56x128xbf16, #tpu.memory_space<vmem>>
      %76 = tpu.memref_slice %arg7[%0] : memref<2x!tpu.dma_semaphore, #tpu.memory_space<semaphore_mem>> -> memref<1x!tpu.dma_semaphore, #tpu.memory_space<semaphore_mem>>
      %77 = tpu.memref_squeeze %76 : memref<1x!tpu.dma_semaphore, #tpu.memory_space<semaphore_mem>> -> memref<!tpu.dma_semaphore, #tpu.memory_space<semaphore_mem>>
      tpu.enqueue_dma source(%73 : memref<56x128xbf16, #tpu.memory_space<any>>) target(%75 : memref<56x128xbf16, #tpu.memory_space<vmem>>) target_semaphore(%77 : memref<!tpu.dma_semaphore, #tpu.memory_space<semaphore_mem>>)
    } else {
    }
    %c1_i32_1 = arith.constant 1 : i32
    %4 = arith.addi %arg1, %c1_i32_1 : i32
    %c1_i32_2 = arith.constant 1 : i32
    %5 = arith.cmpi slt, %4, %c1_i32_2 : i32
    %6 = arith.extui %5 : i1 to i32
    %c0_i32_3 = arith.constant 0 : i32
    %7 = arith.cmpi ne, %6, %c0_i32_3 : i32
    scf.if %7 {
      %c1_i32_43 = arith.constant 1 : i32
      %70 = arith.addi %arg1, %c1_i32_43 : i32
      %c1_i32_44 = arith.constant 1 : i32
      %71 = arith.subi %c1_i32_44, %0 : i32
      %c32_i32 = arith.constant 32 : i32
      %72 = arith.muli %70, %c32_i32 : i32
      %73 = tpu.assume_multiple %72, 8 : i32
      %c0_i32_45 = arith.constant 0 : i32
      %74 = tpu.memref_slice %arg2[%arg0, %73, %c0_i32_45] : memref<2x56x128xbf16, #tpu.memory_space<any>> -> memref<1x56x128xbf16, #tpu.memory_space<any>>
      %75 = tpu.memref_squeeze %74 : memref<1x56x128xbf16, #tpu.memory_space<any>> -> memref<56x128xbf16, #tpu.memory_space<any>>
      %c0_i32_46 = arith.constant 0 : i32
      %c0_i32_47 = arith.constant 0 : i32
      %76 = tpu.memref_slice %arg6[%71, %c0_i32_46, %c0_i32_47] : memref<2x56x128xbf16, #tpu.memory_space<vmem>> -> memref<1x56x128xbf16, #tpu.memory_space<vmem>>
      %77 = tpu.memref_squeeze %76 : memref<1x56x128xbf16, #tpu.memory_space<vmem>> -> memref<56x128xbf16, #tpu.memory_space<vmem>>
      %78 = tpu.memref_slice %arg7[%71] : memref<2x!tpu.dma_semaphore, #tpu.memory_space<semaphore_mem>> -> memref<1x!tpu.dma_semaphore, #tpu.memory_space<semaphore_mem>>
      %79 = tpu.memref_squeeze %78 : memref<1x!tpu.dma_semaphore, #tpu.memory_space<semaphore_mem>> -> memref<!tpu.dma_semaphore, #tpu.memory_space<semaphore_mem>>
      tpu.enqueue_dma source(%75 : memref<56x128xbf16, #tpu.memory_space<any>>) target(%77 : memref<56x128xbf16, #tpu.memory_space<vmem>>) target_semaphore(%79 : memref<!tpu.dma_semaphore, #tpu.memory_space<semaphore_mem>>)
    } else {
    }
    %c0_i32_4 = arith.constant 0 : i32
    %c0_i32_5 = arith.constant 0 : i32
    %8 = tpu.memref_slice %arg2[%arg0, %c0_i32_4, %c0_i32_5] : memref<2x56x128xbf16, #tpu.memory_space<any>> -> memref<1x56x128xbf16, #tpu.memory_space<any>>
    %9 = tpu.memref_squeeze %8 : memref<1x56x128xbf16, #tpu.memory_space<any>> -> memref<56x128xbf16, #tpu.memory_space<any>>
    %c0_i32_6 = arith.constant 0 : i32
    %c0_i32_7 = arith.constant 0 : i32
    %10 = tpu.memref_slice %arg6[%0, %c0_i32_6, %c0_i32_7] : memref<2x56x128xbf16, #tpu.memory_space<vmem>> -> memref<1x56x128xbf16, #tpu.memory_space<vmem>>
    %11 = tpu.memref_squeeze %10 : memref<1x56x128xbf16, #tpu.memory_space<vmem>> -> memref<56x128xbf16, #tpu.memory_space<vmem>>
    %12 = tpu.memref_slice %arg7[%0] : memref<2x!tpu.dma_semaphore, #tpu.memory_space<semaphore_mem>> -> memref<1x!tpu.dma_semaphore, #tpu.memory_space<semaphore_mem>>
    %13 = tpu.memref_squeeze %12 : memref<1x!tpu.dma_semaphore, #tpu.memory_space<semaphore_mem>> -> memref<!tpu.dma_semaphore, #tpu.memory_space<semaphore_mem>>
    tpu.wait_dma2 semaphore(%13 : memref<!tpu.dma_semaphore, #tpu.memory_space<semaphore_mem>>) src(%9 : memref<56x128xbf16, #tpu.memory_space<any>>) dst(%11 : memref<56x128xbf16, #tpu.memory_space<vmem>>)
    %14 = arith.index_cast %0 : i32 to index
    %c0 = arith.constant 0 : index
    %c0_8 = arith.constant 0 : index
    %15 = vector.load %arg6[%14, %c0, %c0_8] : memref<2x56x128xbf16, #tpu.memory_space<vmem>>, vector<1x56x128xbf16>
    %16 = vector.shape_cast %15 : vector<1x56x128xbf16> to vector<56x128xbf16>
    %cst = arith.constant 0.000000e+00 : f32
    %17 = vector.broadcast %cst : f32 to vector<32x128xf32>
    %18 = vector.extract_strided_slice %16 {offsets = [0, 0], sizes = [32, 128], strides = [1, 1]} : vector<56x128xbf16> to vector<32x128xbf16>
    %c0_9 = arith.constant 0 : index
    %c0_10 = arith.constant 0 : index
    %c0_11 = arith.constant 0 : index
    %19 = vector.load %arg3[%c0_9, %c0_10, %c0_11] : memref<9x128x128xbf16, #tpu.memory_space<vmem>>, vector<1x128x128xbf16>
    %20 = vector.shape_cast %19 : vector<1x128x128xbf16> to vector<128x128xbf16>
    %cst_12 = arith.constant dense<0.000000e+00> : vector<32x128xf32>
    %21 = tpu.matmul %18, %20, %cst_12 {dimension_numbers = #tpu.dot_dimension_numbers<[1], [0], [0], [1], [0, 0, 1, 1], [], []>} : vector<32x128xbf16>, vector<128x128xbf16>, vector<32x128xf32> -> vector<32x128xf32>
    %22 = arith.addf %17, %21 : vector<32x128xf32>
    %23 = vector.extract_strided_slice %16 {offsets = [1, 0], sizes = [32, 128], strides = [1, 1]} : vector<56x128xbf16> to vector<32x128xbf16>
    %c1 = arith.constant 1 : index
    %c0_13 = arith.constant 0 : index
    %c0_14 = arith.constant 0 : index
    %24 = vector.load %arg3[%c1, %c0_13, %c0_14] : memref<9x128x128xbf16, #tpu.memory_space<vmem>>, vector<1x128x128xbf16>
    %25 = vector.shape_cast %24 : vector<1x128x128xbf16> to vector<128x128xbf16>
    %cst_15 = arith.constant dense<0.000000e+00> : vector<32x128xf32>
    %26 = tpu.matmul %23, %25, %cst_15 {dimension_numbers = #tpu.dot_dimension_numbers<[1], [0], [0], [1], [0, 0, 1, 1], [], []>} : vector<32x128xbf16>, vector<128x128xbf16>, vector<32x128xf32> -> vector<32x128xf32>
    %27 = arith.addf %22, %26 : vector<32x128xf32>
    %28 = vector.extract_strided_slice %16 {offsets = [2, 0], sizes = [32, 128], strides = [1, 1]} : vector<56x128xbf16> to vector<32x128xbf16>
    %c2 = arith.constant 2 : index
    %c0_16 = arith.constant 0 : index
    %c0_17 = arith.constant 0 : index
    %29 = vector.load %arg3[%c2, %c0_16, %c0_17] : memref<9x128x128xbf16, #tpu.memory_space<vmem>>, vector<1x128x128xbf16>
    %30 = vector.shape_cast %29 : vector<1x128x128xbf16> to vector<128x128xbf16>
    %cst_18 = arith.constant dense<0.000000e+00> : vector<32x128xf32>
    %31 = tpu.matmul %28, %30, %cst_18 {dimension_numbers = #tpu.dot_dimension_numbers<[1], [0], [0], [1], [0, 0, 1, 1], [], []>} : vector<32x128xbf16>, vector<128x128xbf16>, vector<32x128xf32> -> vector<32x128xf32>
    %32 = arith.addf %27, %31 : vector<32x128xf32>
    %33 = vector.extract_strided_slice %16 {offsets = [8, 0], sizes = [32, 128], strides = [1, 1]} : vector<56x128xbf16> to vector<32x128xbf16>
    %c3 = arith.constant 3 : index
    %c0_19 = arith.constant 0 : index
    %c0_20 = arith.constant 0 : index
    %34 = vector.load %arg3[%c3, %c0_19, %c0_20] : memref<9x128x128xbf16, #tpu.memory_space<vmem>>, vector<1x128x128xbf16>
    %35 = vector.shape_cast %34 : vector<1x128x128xbf16> to vector<128x128xbf16>
    %cst_21 = arith.constant dense<0.000000e+00> : vector<32x128xf32>
    %36 = tpu.matmul %33, %35, %cst_21 {dimension_numbers = #tpu.dot_dimension_numbers<[1], [0], [0], [1], [0, 0, 1, 1], [], []>} : vector<32x128xbf16>, vector<128x128xbf16>, vector<32x128xf32> -> vector<32x128xf32>
    %37 = arith.addf %32, %36 : vector<32x128xf32>
    %38 = vector.extract_strided_slice %16 {offsets = [9, 0], sizes = [32, 128], strides = [1, 1]} : vector<56x128xbf16> to vector<32x128xbf16>
    %c4 = arith.constant 4 : index
    %c0_22 = arith.constant 0 : index
    %c0_23 = arith.constant 0 : index
    %39 = vector.load %arg3[%c4, %c0_22, %c0_23] : memref<9x128x128xbf16, #tpu.memory_space<vmem>>, vector<1x128x128xbf16>
    %40 = vector.shape_cast %39 : vector<1x128x128xbf16> to vector<128x128xbf16>
    %cst_24 = arith.constant dense<0.000000e+00> : vector<32x128xf32>
    %41 = tpu.matmul %38, %40, %cst_24 {dimension_numbers = #tpu.dot_dimension_numbers<[1], [0], [0], [1], [0, 0, 1, 1], [], []>} : vector<32x128xbf16>, vector<128x128xbf16>, vector<32x128xf32> -> vector<32x128xf32>
    %42 = arith.addf %37, %41 : vector<32x128xf32>
    %43 = vector.extract_strided_slice %16 {offsets = [10, 0], sizes = [32, 128], strides = [1, 1]} : vector<56x128xbf16> to vector<32x128xbf16>
    %c5 = arith.constant 5 : index
    %c0_25 = arith.constant 0 : index
    %c0_26 = arith.constant 0 : index
    %44 = vector.load %arg3[%c5, %c0_25, %c0_26] : memref<9x128x128xbf16, #tpu.memory_space<vmem>>, vector<1x128x128xbf16>
    %45 = vector.shape_cast %44 : vector<1x128x128xbf16> to vector<128x128xbf16>
    %cst_27 = arith.constant dense<0.000000e+00> : vector<32x128xf32>
    %46 = tpu.matmul %43, %45, %cst_27 {dimension_numbers = #tpu.dot_dimension_numbers<[1], [0], [0], [1], [0, 0, 1, 1], [], []>} : vector<32x128xbf16>, vector<128x128xbf16>, vector<32x128xf32> -> vector<32x128xf32>
    %47 = arith.addf %42, %46 : vector<32x128xf32>
    %48 = vector.extract_strided_slice %16 {offsets = [16, 0], sizes = [32, 128], strides = [1, 1]} : vector<56x128xbf16> to vector<32x128xbf16>
    %c6 = arith.constant 6 : index
    %c0_28 = arith.constant 0 : index
    %c0_29 = arith.constant 0 : index
    %49 = vector.load %arg3[%c6, %c0_28, %c0_29] : memref<9x128x128xbf16, #tpu.memory_space<vmem>>, vector<1x128x128xbf16>
    %50 = vector.shape_cast %49 : vector<1x128x128xbf16> to vector<128x128xbf16>
    %cst_30 = arith.constant dense<0.000000e+00> : vector<32x128xf32>
    %51 = tpu.matmul %48, %50, %cst_30 {dimension_numbers = #tpu.dot_dimension_numbers<[1], [0], [0], [1], [0, 0, 1, 1], [], []>} : vector<32x128xbf16>, vector<128x128xbf16>, vector<32x128xf32> -> vector<32x128xf32>
    %52 = arith.addf %47, %51 : vector<32x128xf32>
    %53 = vector.extract_strided_slice %16 {offsets = [17, 0], sizes = [32, 128], strides = [1, 1]} : vector<56x128xbf16> to vector<32x128xbf16>
    %c7 = arith.constant 7 : index
    %c0_31 = arith.constant 0 : index
    %c0_32 = arith.constant 0 : index
    %54 = vector.load %arg3[%c7, %c0_31, %c0_32] : memref<9x128x128xbf16, #tpu.memory_space<vmem>>, vector<1x128x128xbf16>
    %55 = vector.shape_cast %54 : vector<1x128x128xbf16> to vector<128x128xbf16>
    %cst_33 = arith.constant dense<0.000000e+00> : vector<32x128xf32>
    %56 = tpu.matmul %53, %55, %cst_33 {dimension_numbers = #tpu.dot_dimension_numbers<[1], [0], [0], [1], [0, 0, 1, 1], [], []>} : vector<32x128xbf16>, vector<128x128xbf16>, vector<32x128xf32> -> vector<32x128xf32>
    %57 = arith.addf %52, %56 : vector<32x128xf32>
    %58 = vector.extract_strided_slice %16 {offsets = [18, 0], sizes = [32, 128], strides = [1, 1]} : vector<56x128xbf16> to vector<32x128xbf16>
    %c8 = arith.constant 8 : index
    %c0_34 = arith.constant 0 : index
    %c0_35 = arith.constant 0 : index
    %59 = vector.load %arg3[%c8, %c0_34, %c0_35] : memref<9x128x128xbf16, #tpu.memory_space<vmem>>, vector<1x128x128xbf16>
    %60 = vector.shape_cast %59 : vector<1x128x128xbf16> to vector<128x128xbf16>
    %cst_36 = arith.constant dense<0.000000e+00> : vector<32x128xf32>
    %61 = tpu.matmul %58, %60, %cst_36 {dimension_numbers = #tpu.dot_dimension_numbers<[1], [0], [0], [1], [0, 0, 1, 1], [], []>} : vector<32x128xbf16>, vector<128x128xbf16>, vector<32x128xf32> -> vector<32x128xf32>
    %62 = arith.addf %57, %61 : vector<32x128xf32>
    %c0_37 = arith.constant 0 : index
    %c0_38 = arith.constant 0 : index
    %63 = vector.load %arg4[%c0_37, %c0_38] : memref<1x128xf32, #tpu.memory_space<vmem>>, vector<1x128xf32>
    %64 = vector.broadcast %63 : vector<1x128xf32> to vector<32x128xf32>
    %65 = arith.addf %62, %64 : vector<32x128xf32>
    %66 = vector.shape_cast %65 : vector<32x128xf32> to vector<4x8x128xf32>
    %c0_39 = arith.constant 0 : index
    %c0_40 = arith.constant 0 : index
    %c0_41 = arith.constant 0 : index
    %c0_42 = arith.constant 0 : index
    %67 = vector.load %arg5[%c0_39, %c0_40, %c0_41, %c0_42] : memref<1x4x8x128xf32, #tpu.memory_space<vmem>>, vector<1x4x8x128xf32>
    %68 = vector.shape_cast %67 : vector<1x4x8x128xf32> to vector<4x8x128xf32>
    %69 = vector.shape_cast %66 : vector<4x8x128xf32> to vector<1x4x8x128xf32>
    tpu.vector_store %arg5[%c0_39, %c0_40, %c0_41, %c0_42], %69 {strides = array<i32>} : memref<1x4x8x128xf32, #tpu.memory_space<vmem>>, vector<1x4x8x128xf32>,
    return
  }
  func.func @transform_1(%arg0: i32, %arg1: i32) -> (i32, i32, i32) {
    %c0_i32 = arith.constant 0 : i32
    %c0_i32_0 = arith.constant 0 : i32
    %c0_i32_1 = arith.constant 0 : i32
    %c0_i32_2 = arith.constant 0 : i32
    return %c0_i32, %c0_i32_0, %c0_i32_1 : i32, i32, i32
  }
  func.func @transform_2(%arg0: i32, %arg1: i32) -> (i32, i32) {
    %c0_i32 = arith.constant 0 : i32
    %c0_i32_0 = arith.constant 0 : i32
    %c0_i32_1 = arith.constant 0 : i32
    return %c0_i32, %c0_i32_0 : i32, i32
  }
  func.func @transform_3(%arg0: i32, %arg1: i32) -> (i32, i32, i32, i32) {
    %c0_i32 = arith.constant 0 : i32
    %c0_i32_0 = arith.constant 0 : i32
    %c0_i32_1 = arith.constant 0 : i32
    return %arg0, %arg1, %c0_i32, %c0_i32_0 : i32, i32, i32, i32
  }
}

module attributes {stable_mosaic.version = 11 : i64} {
  func.func @_tap_matmul_kernel(%arg0: memref<9x8x128xbf16, #tpu.memory_space<vmem>>, %arg1: memref<9x128x128xbf16, #tpu.memory_space<vmem>>, %arg2: memref<1x128xf32, #tpu.memory_space<vmem>>, %arg3: memref<8x128xf32, #tpu.memory_space<vmem>>) attributes {dimension_semantics = [], scalar_prefetch = 0 : i64, scratch_operands = 0 : i64, tpu.core_type = #tpu.core_type<tc>} {
    %cst = arith.constant 0.000000e+00 : f32
    %0 = vector.broadcast %cst : f32 to vector<8x128xf32>
    %c0 = arith.constant 0 : index
    %c0_0 = arith.constant 0 : index
    %c0_1 = arith.constant 0 : index
    %1 = vector.load %arg0[%c0, %c0_0, %c0_1] : memref<9x8x128xbf16, #tpu.memory_space<vmem>>, vector<1x8x128xbf16>
    %2 = vector.shape_cast %1 : vector<1x8x128xbf16> to vector<8x128xbf16>
    %c0_2 = arith.constant 0 : index
    %c0_3 = arith.constant 0 : index
    %c0_4 = arith.constant 0 : index
    %3 = vector.load %arg1[%c0_2, %c0_3, %c0_4] : memref<9x128x128xbf16, #tpu.memory_space<vmem>>, vector<1x128x128xbf16>
    %4 = vector.shape_cast %3 : vector<1x128x128xbf16> to vector<128x128xbf16>
    %cst_5 = arith.constant dense<0.000000e+00> : vector<8x128xf32>
    %5 = tpu.matmul %2, %4, %cst_5 {dimension_numbers = #tpu.dot_dimension_numbers<[1], [0], [0], [1], [0, 0, 1, 1], [], []>} : vector<8x128xbf16>, vector<128x128xbf16>, vector<8x128xf32> -> vector<8x128xf32>
    %6 = arith.addf %0, %5 : vector<8x128xf32>
    %c1 = arith.constant 1 : index
    %c0_6 = arith.constant 0 : index
    %c0_7 = arith.constant 0 : index
    %7 = vector.load %arg0[%c1, %c0_6, %c0_7] : memref<9x8x128xbf16, #tpu.memory_space<vmem>>, vector<1x8x128xbf16>
    %8 = vector.shape_cast %7 : vector<1x8x128xbf16> to vector<8x128xbf16>
    %c1_8 = arith.constant 1 : index
    %c0_9 = arith.constant 0 : index
    %c0_10 = arith.constant 0 : index
    %9 = vector.load %arg1[%c1_8, %c0_9, %c0_10] : memref<9x128x128xbf16, #tpu.memory_space<vmem>>, vector<1x128x128xbf16>
    %10 = vector.shape_cast %9 : vector<1x128x128xbf16> to vector<128x128xbf16>
    %cst_11 = arith.constant dense<0.000000e+00> : vector<8x128xf32>
    %11 = tpu.matmul %8, %10, %cst_11 {dimension_numbers = #tpu.dot_dimension_numbers<[1], [0], [0], [1], [0, 0, 1, 1], [], []>} : vector<8x128xbf16>, vector<128x128xbf16>, vector<8x128xf32> -> vector<8x128xf32>
    %12 = arith.addf %6, %11 : vector<8x128xf32>
    %c2 = arith.constant 2 : index
    %c0_12 = arith.constant 0 : index
    %c0_13 = arith.constant 0 : index
    %13 = vector.load %arg0[%c2, %c0_12, %c0_13] : memref<9x8x128xbf16, #tpu.memory_space<vmem>>, vector<1x8x128xbf16>
    %14 = vector.shape_cast %13 : vector<1x8x128xbf16> to vector<8x128xbf16>
    %c2_14 = arith.constant 2 : index
    %c0_15 = arith.constant 0 : index
    %c0_16 = arith.constant 0 : index
    %15 = vector.load %arg1[%c2_14, %c0_15, %c0_16] : memref<9x128x128xbf16, #tpu.memory_space<vmem>>, vector<1x128x128xbf16>
    %16 = vector.shape_cast %15 : vector<1x128x128xbf16> to vector<128x128xbf16>
    %cst_17 = arith.constant dense<0.000000e+00> : vector<8x128xf32>
    %17 = tpu.matmul %14, %16, %cst_17 {dimension_numbers = #tpu.dot_dimension_numbers<[1], [0], [0], [1], [0, 0, 1, 1], [], []>} : vector<8x128xbf16>, vector<128x128xbf16>, vector<8x128xf32> -> vector<8x128xf32>
    %18 = arith.addf %12, %17 : vector<8x128xf32>
    %c3 = arith.constant 3 : index
    %c0_18 = arith.constant 0 : index
    %c0_19 = arith.constant 0 : index
    %19 = vector.load %arg0[%c3, %c0_18, %c0_19] : memref<9x8x128xbf16, #tpu.memory_space<vmem>>, vector<1x8x128xbf16>
    %20 = vector.shape_cast %19 : vector<1x8x128xbf16> to vector<8x128xbf16>
    %c3_20 = arith.constant 3 : index
    %c0_21 = arith.constant 0 : index
    %c0_22 = arith.constant 0 : index
    %21 = vector.load %arg1[%c3_20, %c0_21, %c0_22] : memref<9x128x128xbf16, #tpu.memory_space<vmem>>, vector<1x128x128xbf16>
    %22 = vector.shape_cast %21 : vector<1x128x128xbf16> to vector<128x128xbf16>
    %cst_23 = arith.constant dense<0.000000e+00> : vector<8x128xf32>
    %23 = tpu.matmul %20, %22, %cst_23 {dimension_numbers = #tpu.dot_dimension_numbers<[1], [0], [0], [1], [0, 0, 1, 1], [], []>} : vector<8x128xbf16>, vector<128x128xbf16>, vector<8x128xf32> -> vector<8x128xf32>
    %24 = arith.addf %18, %23 : vector<8x128xf32>
    %c4 = arith.constant 4 : index
    %c0_24 = arith.constant 0 : index
    %c0_25 = arith.constant 0 : index
    %25 = vector.load %arg0[%c4, %c0_24, %c0_25] : memref<9x8x128xbf16, #tpu.memory_space<vmem>>, vector<1x8x128xbf16>
    %26 = vector.shape_cast %25 : vector<1x8x128xbf16> to vector<8x128xbf16>
    %c4_26 = arith.constant 4 : index
    %c0_27 = arith.constant 0 : index
    %c0_28 = arith.constant 0 : index
    %27 = vector.load %arg1[%c4_26, %c0_27, %c0_28] : memref<9x128x128xbf16, #tpu.memory_space<vmem>>, vector<1x128x128xbf16>
    %28 = vector.shape_cast %27 : vector<1x128x128xbf16> to vector<128x128xbf16>
    %cst_29 = arith.constant dense<0.000000e+00> : vector<8x128xf32>
    %29 = tpu.matmul %26, %28, %cst_29 {dimension_numbers = #tpu.dot_dimension_numbers<[1], [0], [0], [1], [0, 0, 1, 1], [], []>} : vector<8x128xbf16>, vector<128x128xbf16>, vector<8x128xf32> -> vector<8x128xf32>
    %30 = arith.addf %24, %29 : vector<8x128xf32>
    %c5 = arith.constant 5 : index
    %c0_30 = arith.constant 0 : index
    %c0_31 = arith.constant 0 : index
    %31 = vector.load %arg0[%c5, %c0_30, %c0_31] : memref<9x8x128xbf16, #tpu.memory_space<vmem>>, vector<1x8x128xbf16>
    %32 = vector.shape_cast %31 : vector<1x8x128xbf16> to vector<8x128xbf16>
    %c5_32 = arith.constant 5 : index
    %c0_33 = arith.constant 0 : index
    %c0_34 = arith.constant 0 : index
    %33 = vector.load %arg1[%c5_32, %c0_33, %c0_34] : memref<9x128x128xbf16, #tpu.memory_space<vmem>>, vector<1x128x128xbf16>
    %34 = vector.shape_cast %33 : vector<1x128x128xbf16> to vector<128x128xbf16>
    %cst_35 = arith.constant dense<0.000000e+00> : vector<8x128xf32>
    %35 = tpu.matmul %32, %34, %cst_35 {dimension_numbers = #tpu.dot_dimension_numbers<[1], [0], [0], [1], [0, 0, 1, 1], [], []>} : vector<8x128xbf16>, vector<128x128xbf16>, vector<8x128xf32> -> vector<8x128xf32>
    %36 = arith.addf %30, %35 : vector<8x128xf32>
    %c6 = arith.constant 6 : index
    %c0_36 = arith.constant 0 : index
    %c0_37 = arith.constant 0 : index
    %37 = vector.load %arg0[%c6, %c0_36, %c0_37] : memref<9x8x128xbf16, #tpu.memory_space<vmem>>, vector<1x8x128xbf16>
    %38 = vector.shape_cast %37 : vector<1x8x128xbf16> to vector<8x128xbf16>
    %c6_38 = arith.constant 6 : index
    %c0_39 = arith.constant 0 : index
    %c0_40 = arith.constant 0 : index
    %39 = vector.load %arg1[%c6_38, %c0_39, %c0_40] : memref<9x128x128xbf16, #tpu.memory_space<vmem>>, vector<1x128x128xbf16>
    %40 = vector.shape_cast %39 : vector<1x128x128xbf16> to vector<128x128xbf16>
    %cst_41 = arith.constant dense<0.000000e+00> : vector<8x128xf32>
    %41 = tpu.matmul %38, %40, %cst_41 {dimension_numbers = #tpu.dot_dimension_numbers<[1], [0], [0], [1], [0, 0, 1, 1], [], []>} : vector<8x128xbf16>, vector<128x128xbf16>, vector<8x128xf32> -> vector<8x128xf32>
    %42 = arith.addf %36, %41 : vector<8x128xf32>
    %c7 = arith.constant 7 : index
    %c0_42 = arith.constant 0 : index
    %c0_43 = arith.constant 0 : index
    %43 = vector.load %arg0[%c7, %c0_42, %c0_43] : memref<9x8x128xbf16, #tpu.memory_space<vmem>>, vector<1x8x128xbf16>
    %44 = vector.shape_cast %43 : vector<1x8x128xbf16> to vector<8x128xbf16>
    %c7_44 = arith.constant 7 : index
    %c0_45 = arith.constant 0 : index
    %c0_46 = arith.constant 0 : index
    %45 = vector.load %arg1[%c7_44, %c0_45, %c0_46] : memref<9x128x128xbf16, #tpu.memory_space<vmem>>, vector<1x128x128xbf16>
    %46 = vector.shape_cast %45 : vector<1x128x128xbf16> to vector<128x128xbf16>
    %cst_47 = arith.constant dense<0.000000e+00> : vector<8x128xf32>
    %47 = tpu.matmul %44, %46, %cst_47 {dimension_numbers = #tpu.dot_dimension_numbers<[1], [0], [0], [1], [0, 0, 1, 1], [], []>} : vector<8x128xbf16>, vector<128x128xbf16>, vector<8x128xf32> -> vector<8x128xf32>
    %48 = arith.addf %42, %47 : vector<8x128xf32>
    %c8 = arith.constant 8 : index
    %c0_48 = arith.constant 0 : index
    %c0_49 = arith.constant 0 : index
    %49 = vector.load %arg0[%c8, %c0_48, %c0_49] : memref<9x8x128xbf16, #tpu.memory_space<vmem>>, vector<1x8x128xbf16>
    %50 = vector.shape_cast %49 : vector<1x8x128xbf16> to vector<8x128xbf16>
    %c8_50 = arith.constant 8 : index
    %c0_51 = arith.constant 0 : index
    %c0_52 = arith.constant 0 : index
    %51 = vector.load %arg1[%c8_50, %c0_51, %c0_52] : memref<9x128x128xbf16, #tpu.memory_space<vmem>>, vector<1x128x128xbf16>
    %52 = vector.shape_cast %51 : vector<1x128x128xbf16> to vector<128x128xbf16>
    %cst_53 = arith.constant dense<0.000000e+00> : vector<8x128xf32>
    %53 = tpu.matmul %50, %52, %cst_53 {dimension_numbers = #tpu.dot_dimension_numbers<[1], [0], [0], [1], [0, 0, 1, 1], [], []>} : vector<8x128xbf16>, vector<128x128xbf16>, vector<8x128xf32> -> vector<8x128xf32>
    %54 = arith.addf %48, %53 : vector<8x128xf32>
    %c0_54 = arith.constant 0 : index
    %c0_55 = arith.constant 0 : index
    %55 = vector.load %arg2[%c0_54, %c0_55] : memref<1x128xf32, #tpu.memory_space<vmem>>, vector<1x128xf32>
    %56 = vector.broadcast %55 : vector<1x128xf32> to vector<8x128xf32>
    %57 = arith.addf %54, %56 : vector<8x128xf32>
    %c0_56 = arith.constant 0 : index
    %c0_57 = arith.constant 0 : index
    %58 = vector.load %arg3[%c0_56, %c0_57] : memref<8x128xf32, #tpu.memory_space<vmem>>, vector<8x128xf32>
    tpu.vector_store %arg3[%c0_56, %c0_57], %57 {strides = array<i32>} : memref<8x128xf32, #tpu.memory_space<vmem>>, vector<8x128xf32>,
    return
  }
}

module attributes {stable_mosaic.version = 11 : i64} {
  func.func @_tap_matmul_kernel(%arg0: memref<9x2x128xbf16, #tpu.memory_space<vmem>>, %arg1: memref<9x128x128xbf16, #tpu.memory_space<vmem>>, %arg2: memref<1x128xf32, #tpu.memory_space<vmem>>, %arg3: memref<2x128xf32, #tpu.memory_space<vmem>>) attributes {dimension_semantics = [], scalar_prefetch = 0 : i64, scratch_operands = 0 : i64, tpu.core_type = #tpu.core_type<tc>} {
    %cst = arith.constant 0.000000e+00 : f32
    %0 = vector.broadcast %cst : f32 to vector<2x128xf32>
    %c0 = arith.constant 0 : index
    %c0_0 = arith.constant 0 : index
    %c0_1 = arith.constant 0 : index
    %1 = vector.load %arg0[%c0, %c0_0, %c0_1] : memref<9x2x128xbf16, #tpu.memory_space<vmem>>, vector<1x2x128xbf16>
    %2 = vector.shape_cast %1 : vector<1x2x128xbf16> to vector<2x128xbf16>
    %c0_2 = arith.constant 0 : index
    %c0_3 = arith.constant 0 : index
    %c0_4 = arith.constant 0 : index
    %3 = vector.load %arg1[%c0_2, %c0_3, %c0_4] : memref<9x128x128xbf16, #tpu.memory_space<vmem>>, vector<1x128x128xbf16>
    %4 = vector.shape_cast %3 : vector<1x128x128xbf16> to vector<128x128xbf16>
    %cst_5 = arith.constant dense<0.000000e+00> : vector<2x128xf32>
    %5 = tpu.matmul %2, %4, %cst_5 {dimension_numbers = #tpu.dot_dimension_numbers<[1], [0], [0], [1], [0, 0, 1, 1], [], []>} : vector<2x128xbf16>, vector<128x128xbf16>, vector<2x128xf32> -> vector<2x128xf32>
    %6 = arith.addf %0, %5 : vector<2x128xf32>
    %c1 = arith.constant 1 : index
    %c0_6 = arith.constant 0 : index
    %c0_7 = arith.constant 0 : index
    %7 = vector.load %arg0[%c1, %c0_6, %c0_7] : memref<9x2x128xbf16, #tpu.memory_space<vmem>>, vector<1x2x128xbf16>
    %8 = vector.shape_cast %7 : vector<1x2x128xbf16> to vector<2x128xbf16>
    %c1_8 = arith.constant 1 : index
    %c0_9 = arith.constant 0 : index
    %c0_10 = arith.constant 0 : index
    %9 = vector.load %arg1[%c1_8, %c0_9, %c0_10] : memref<9x128x128xbf16, #tpu.memory_space<vmem>>, vector<1x128x128xbf16>
    %10 = vector.shape_cast %9 : vector<1x128x128xbf16> to vector<128x128xbf16>
    %cst_11 = arith.constant dense<0.000000e+00> : vector<2x128xf32>
    %11 = tpu.matmul %8, %10, %cst_11 {dimension_numbers = #tpu.dot_dimension_numbers<[1], [0], [0], [1], [0, 0, 1, 1], [], []>} : vector<2x128xbf16>, vector<128x128xbf16>, vector<2x128xf32> -> vector<2x128xf32>
    %12 = arith.addf %6, %11 : vector<2x128xf32>
    %c2 = arith.constant 2 : index
    %c0_12 = arith.constant 0 : index
    %c0_13 = arith.constant 0 : index
    %13 = vector.load %arg0[%c2, %c0_12, %c0_13] : memref<9x2x128xbf16, #tpu.memory_space<vmem>>, vector<1x2x128xbf16>
    %14 = vector.shape_cast %13 : vector<1x2x128xbf16> to vector<2x128xbf16>
    %c2_14 = arith.constant 2 : index
    %c0_15 = arith.constant 0 : index
    %c0_16 = arith.constant 0 : index
    %15 = vector.load %arg1[%c2_14, %c0_15, %c0_16] : memref<9x128x128xbf16, #tpu.memory_space<vmem>>, vector<1x128x128xbf16>
    %16 = vector.shape_cast %15 : vector<1x128x128xbf16> to vector<128x128xbf16>
    %cst_17 = arith.constant dense<0.000000e+00> : vector<2x128xf32>
    %17 = tpu.matmul %14, %16, %cst_17 {dimension_numbers = #tpu.dot_dimension_numbers<[1], [0], [0], [1], [0, 0, 1, 1], [], []>} : vector<2x128xbf16>, vector<128x128xbf16>, vector<2x128xf32> -> vector<2x128xf32>
    %18 = arith.addf %12, %17 : vector<2x128xf32>
    %c3 = arith.constant 3 : index
    %c0_18 = arith.constant 0 : index
    %c0_19 = arith.constant 0 : index
    %19 = vector.load %arg0[%c3, %c0_18, %c0_19] : memref<9x2x128xbf16, #tpu.memory_space<vmem>>, vector<1x2x128xbf16>
    %20 = vector.shape_cast %19 : vector<1x2x128xbf16> to vector<2x128xbf16>
    %c3_20 = arith.constant 3 : index
    %c0_21 = arith.constant 0 : index
    %c0_22 = arith.constant 0 : index
    %21 = vector.load %arg1[%c3_20, %c0_21, %c0_22] : memref<9x128x128xbf16, #tpu.memory_space<vmem>>, vector<1x128x128xbf16>
    %22 = vector.shape_cast %21 : vector<1x128x128xbf16> to vector<128x128xbf16>
    %cst_23 = arith.constant dense<0.000000e+00> : vector<2x128xf32>
    %23 = tpu.matmul %20, %22, %cst_23 {dimension_numbers = #tpu.dot_dimension_numbers<[1], [0], [0], [1], [0, 0, 1, 1], [], []>} : vector<2x128xbf16>, vector<128x128xbf16>, vector<2x128xf32> -> vector<2x128xf32>
    %24 = arith.addf %18, %23 : vector<2x128xf32>
    %c4 = arith.constant 4 : index
    %c0_24 = arith.constant 0 : index
    %c0_25 = arith.constant 0 : index
    %25 = vector.load %arg0[%c4, %c0_24, %c0_25] : memref<9x2x128xbf16, #tpu.memory_space<vmem>>, vector<1x2x128xbf16>
    %26 = vector.shape_cast %25 : vector<1x2x128xbf16> to vector<2x128xbf16>
    %c4_26 = arith.constant 4 : index
    %c0_27 = arith.constant 0 : index
    %c0_28 = arith.constant 0 : index
    %27 = vector.load %arg1[%c4_26, %c0_27, %c0_28] : memref<9x128x128xbf16, #tpu.memory_space<vmem>>, vector<1x128x128xbf16>
    %28 = vector.shape_cast %27 : vector<1x128x128xbf16> to vector<128x128xbf16>
    %cst_29 = arith.constant dense<0.000000e+00> : vector<2x128xf32>
    %29 = tpu.matmul %26, %28, %cst_29 {dimension_numbers = #tpu.dot_dimension_numbers<[1], [0], [0], [1], [0, 0, 1, 1], [], []>} : vector<2x128xbf16>, vector<128x128xbf16>, vector<2x128xf32> -> vector<2x128xf32>
    %30 = arith.addf %24, %29 : vector<2x128xf32>
    %c5 = arith.constant 5 : index
    %c0_30 = arith.constant 0 : index
    %c0_31 = arith.constant 0 : index
    %31 = vector.load %arg0[%c5, %c0_30, %c0_31] : memref<9x2x128xbf16, #tpu.memory_space<vmem>>, vector<1x2x128xbf16>
    %32 = vector.shape_cast %31 : vector<1x2x128xbf16> to vector<2x128xbf16>
    %c5_32 = arith.constant 5 : index
    %c0_33 = arith.constant 0 : index
    %c0_34 = arith.constant 0 : index
    %33 = vector.load %arg1[%c5_32, %c0_33, %c0_34] : memref<9x128x128xbf16, #tpu.memory_space<vmem>>, vector<1x128x128xbf16>
    %34 = vector.shape_cast %33 : vector<1x128x128xbf16> to vector<128x128xbf16>
    %cst_35 = arith.constant dense<0.000000e+00> : vector<2x128xf32>
    %35 = tpu.matmul %32, %34, %cst_35 {dimension_numbers = #tpu.dot_dimension_numbers<[1], [0], [0], [1], [0, 0, 1, 1], [], []>} : vector<2x128xbf16>, vector<128x128xbf16>, vector<2x128xf32> -> vector<2x128xf32>
    %36 = arith.addf %30, %35 : vector<2x128xf32>
    %c6 = arith.constant 6 : index
    %c0_36 = arith.constant 0 : index
    %c0_37 = arith.constant 0 : index
    %37 = vector.load %arg0[%c6, %c0_36, %c0_37] : memref<9x2x128xbf16, #tpu.memory_space<vmem>>, vector<1x2x128xbf16>
    %38 = vector.shape_cast %37 : vector<1x2x128xbf16> to vector<2x128xbf16>
    %c6_38 = arith.constant 6 : index
    %c0_39 = arith.constant 0 : index
    %c0_40 = arith.constant 0 : index
    %39 = vector.load %arg1[%c6_38, %c0_39, %c0_40] : memref<9x128x128xbf16, #tpu.memory_space<vmem>>, vector<1x128x128xbf16>
    %40 = vector.shape_cast %39 : vector<1x128x128xbf16> to vector<128x128xbf16>
    %cst_41 = arith.constant dense<0.000000e+00> : vector<2x128xf32>
    %41 = tpu.matmul %38, %40, %cst_41 {dimension_numbers = #tpu.dot_dimension_numbers<[1], [0], [0], [1], [0, 0, 1, 1], [], []>} : vector<2x128xbf16>, vector<128x128xbf16>, vector<2x128xf32> -> vector<2x128xf32>
    %42 = arith.addf %36, %41 : vector<2x128xf32>
    %c7 = arith.constant 7 : index
    %c0_42 = arith.constant 0 : index
    %c0_43 = arith.constant 0 : index
    %43 = vector.load %arg0[%c7, %c0_42, %c0_43] : memref<9x2x128xbf16, #tpu.memory_space<vmem>>, vector<1x2x128xbf16>
    %44 = vector.shape_cast %43 : vector<1x2x128xbf16> to vector<2x128xbf16>
    %c7_44 = arith.constant 7 : index
    %c0_45 = arith.constant 0 : index
    %c0_46 = arith.constant 0 : index
    %45 = vector.load %arg1[%c7_44, %c0_45, %c0_46] : memref<9x128x128xbf16, #tpu.memory_space<vmem>>, vector<1x128x128xbf16>
    %46 = vector.shape_cast %45 : vector<1x128x128xbf16> to vector<128x128xbf16>
    %cst_47 = arith.constant dense<0.000000e+00> : vector<2x128xf32>
    %47 = tpu.matmul %44, %46, %cst_47 {dimension_numbers = #tpu.dot_dimension_numbers<[1], [0], [0], [1], [0, 0, 1, 1], [], []>} : vector<2x128xbf16>, vector<128x128xbf16>, vector<2x128xf32> -> vector<2x128xf32>
    %48 = arith.addf %42, %47 : vector<2x128xf32>
    %c8 = arith.constant 8 : index
    %c0_48 = arith.constant 0 : index
    %c0_49 = arith.constant 0 : index
    %49 = vector.load %arg0[%c8, %c0_48, %c0_49] : memref<9x2x128xbf16, #tpu.memory_space<vmem>>, vector<1x2x128xbf16>
    %50 = vector.shape_cast %49 : vector<1x2x128xbf16> to vector<2x128xbf16>
    %c8_50 = arith.constant 8 : index
    %c0_51 = arith.constant 0 : index
    %c0_52 = arith.constant 0 : index
    %51 = vector.load %arg1[%c8_50, %c0_51, %c0_52] : memref<9x128x128xbf16, #tpu.memory_space<vmem>>, vector<1x128x128xbf16>
    %52 = vector.shape_cast %51 : vector<1x128x128xbf16> to vector<128x128xbf16>
    %cst_53 = arith.constant dense<0.000000e+00> : vector<2x128xf32>
    %53 = tpu.matmul %50, %52, %cst_53 {dimension_numbers = #tpu.dot_dimension_numbers<[1], [0], [0], [1], [0, 0, 1, 1], [], []>} : vector<2x128xbf16>, vector<128x128xbf16>, vector<2x128xf32> -> vector<2x128xf32>
    %54 = arith.addf %48, %53 : vector<2x128xf32>
    %c0_54 = arith.constant 0 : index
    %c0_55 = arith.constant 0 : index
    %55 = vector.load %arg2[%c0_54, %c0_55] : memref<1x128xf32, #tpu.memory_space<vmem>>, vector<1x128xf32>
    %56 = vector.broadcast %55 : vector<1x128xf32> to vector<2x128xf32>
    %57 = arith.addf %54, %56 : vector<2x128xf32>
    %c0_56 = arith.constant 0 : index
    %c0_57 = arith.constant 0 : index
    %58 = vector.load %arg3[%c0_56, %c0_57] : memref<2x128xf32, #tpu.memory_space<vmem>>, vector<2x128xf32>
    tpu.vector_store %arg3[%c0_56, %c0_57], %57 {strides = array<i32>} : memref<2x128xf32, #tpu.memory_space<vmem>>, vector<2x128xf32>,
    return
  }
}

</mosaic_0001>

<bundles_post_ra>
// kernel: fpn_forward.8
= control target key start
LH: loop header
LB: loop body
LE: loop exit
PB: predicated region body
PF: predicated region fallthrough
CT: control target
= control target key end

     0   :  { %s415_s12 = smov 0   ;;  %s447_s0 = inlined_call_operand.vmem [shape: f32[32,64], index: 0, kind: input, shape index: {}]   ;;  %s448_s1 = inlined_call_operand.vmem [shape: bf16[64,128], index: 1, kind: input, shape index: {}]   ;;  %s449_s2 = inlined_call_operand.vmem [shape: f32[1,128], index: 2, kind: input, shape index: {}]   ;;  %s450_s3 = inlined_call_operand.vmem [shape: bf16[32,128], index: 3, kind: output, shape index: {}]  }
   0x1 LB: > { %s328_s13 = sadd.s32 4294967295, %s391_s12   ;;  %p332_p0 = scmp.ge.s32.totalorder %s391_s12, 1  ;;  %s391_s12 = sphi %s415_s12, %s13_s12  }
   0x2   : > { %p138_p1 = scmp.lt.s32.totalorder %s391_s12, 3 }
   0x4   : > { %p139_p2 = pnand %p332_p0, %p138_p1 }
   0x5   : > { %v381_v0 = vld [vmem:[%s448_s1] sm:$0xff] (!%p139_p2)   ;;  %v393_v1 = vmov (!%p139_p2), 0.0   ;;  %v382_v2 = vld [vmem:[%s448_s1 + $0x8] sm:$0xff] (!%p139_p2)   ;;  %vm394_vm0 = vmmov (!%p139_p2), 0   ;;  %s333_s18 = sshll.u32 (!%p139_p2), %s328_s13, 1  ;;  %v383_v3 = vld [vmem:[%s448_s1 + $0x10] sm:$0xff] (!%p139_p2)  }
   0x6   : > { %142 = sbr.rel (%p139_p2) target bundleno = 241 (0xf1), region = 32  ;;  %359 = vmatprep.subr.bf16.mxu0 (!%p139_p2), %v393_v1  ;;  %367 = vmatprep.mubr.msk.bf16.mxu0 (!%p139_p2), %vm394_vm0, %v393_v1  ;;  %p163_p3 = scmp.lt.s32.totalorder (!%p139_p2), %s333_s18, 3  ;;  %v384_v4 = vld [vmem:[%s448_s1 + $0x18] sm:$0xff] (!%p139_p2)   ;;  %vm217_vm1 = vcmask (!%p139_p2), 523264   ;;  %v337_v8 = vld [vmem:[%s449_s2] ss:$0 sm:$0xff] (!%p139_p2) }
   0x7   : > { %360 = vmatpush3.bf16.msra.mxu0 (!%p139_p2), %v381_v0 }
   0x8   : > { %361 = vmatprep.subr.bf16.mxu0 (!%p139_p2), %v393_v1 }
   0xb   : > { %362 = vmatpush3.bf16.msra.mxu0 (!%p139_p2), %v382_v2 }
   0xc   : > { %363 = vmatprep.subr.bf16.mxu0 (!%p139_p2), %v393_v1 }
   0xd   : > { %s452_s18 = smov (!%p163_p3, %s333_s18), 3 }
   0xe   : > { %s334_s21 = sshll.u32 %s452_s18, 3  ;;  %s336_s29 = sshll.u32 %s452_s18, 2 }
   0xf   : > { %s166_s24 = scalar_lea.vmem %s447_s0, %s334_s21  ;;  %364 = vmatpush3.bf16.msra.mxu0 %v383_v3  ;;  %s172_s5 = scalar_lea.vmem %s450_s3, %s336_s29 }
  0x10   : > { %v175_v5 = vld [vmem:[%s166_s24] sm:$0xff]  ;;  %v176_v6 = vld [vmem:[%s166_s24 + $0x8] sm:$0xff]  ;;  %365 = vmatprep.subr.bf16.mxu0 %v393_v1 }
  0x11   : > { %v177_v7 = vpack.c.bf16 %v176_v6, %v175_v5 }
  0x13   : > { %366 = vmatpush3.bf16.msra.mxu0 %v384_v4 }
  0x16   : > { %368 = vmatmul.mubr.msk.bf16.vlgmr.msra.gmra.mrb[0].mxu0 %vm217_vm1, %v177_v7 }
  0xe9   : > { %v255_v9 = vpop.f32.mrb[0].mxu0 }
  0xea   : > { %v369_v10 = vpop.f32.mrb[1].mxu0  ;;  %v256_v12 = vadd.f32 %v337_v8, %v255_v9 }
  0xeb   : > { %v258_v11 = vpop.f32.mrb[2].mxu0 }
  0xec   : > { %v259_v13 = vadd.f32 %v337_v8, %v258_v11  ;;  %v370_v14 = vpop.f32.mrb[3].mxu0 }
  0xee   : > { %v352_v15 = vpack.c.bf16 %v259_v13, %v256_v12 }
  0xf0   : > { %353 = vst [vmem:[%s172_s5] sm:$0xff] %v352_v15  }
  0xf1 PF: > { %s13_s12 = sadd.s32 1, %s391_s12  }
  0xf2   : > { %p10_p4 = scmp.ge.s32.totalorder %s13_s12, 4  }
  0xf4   :  { %12 = sbr.rel (!%p10_p4) target bundleno = 1 (0x1), region = 62 }

// kernel: fpn_forward.9
= control target key start
LH: loop header
LB: loop body
LE: loop exit
PB: predicated region body
PF: predicated region fallthrough
CT: control target
= control target key end

     0   :  { %s612_s15 = smov 0   ;;  %s649_s0 = inlined_call_operand.vmem [shape: f32[128,32], index: 0, kind: input, shape index: {}]   ;;  %s650_s1 = inlined_call_operand.vmem [shape: bf16[32,128], index: 1, kind: input, shape index: {}]   ;;  %s651_s2 = inlined_call_operand.vmem [shape: f32[1,128], index: 2, kind: input, shape index: {}]   ;;  %s652_s3 = inlined_call_operand.vmem [shape: bf16[128,128], index: 3, kind: input, shape index: {}]   ;;  %s653_s4 = inlined_call_operand.vmem [shape: bf16[128,128], index: 4, kind: output, shape index: {}]  }
   0x1 LB: > { %s469_s16 = sadd.s32 4294967295, %s585_s15   ;;  %p473_p0 = scmp.ge.s32.totalorder %s585_s15, 1  ;;  %s585_s15 = sphi %s612_s15, %s14_s15  }
   0x2   : > { %p174_p1 = scmp.lt.s32.totalorder %s585_s15, 3 }
   0x4   : > { %p175_p2 = pnand %p473_p0, %p174_p1 }
   0x5   : > { %v577_v0 = vld [vmem:[%s650_s1] sm:$0xff] (!%p175_p2)   ;;  %s474_s19 = sshll.u32 (!%p175_p2), %s469_s16, 3  ;;  %v578_v1 = vld [vmem:[%s650_s1 + $0x8] sm:$0xff] (!%p175_p2)   ;;  %vm259_vm0 = vcmask (!%p175_p2), 261120  }
   0x6   : > { %178 = sbr.rel (%p175_p2) target bundleno = 243 (0xf3), region = 36  ;;  %p206_p3 = scmp.lt.s32.totalorder (!%p175_p2), %s474_s19, 15  ;;  %553 = vmatprep.subr.bf16.mxu0 (!%p175_p2), %v577_v0  ;;  %565 = vmatprep.subr.bf16.mxu1 (!%p175_p2), %v577_v0  ;;  %v480_v17 = vld [vmem:[%s651_s2] ss:$0 sm:$0xff] (!%p175_p2) }
   0x7   : > { %554 = vmatpush3.bf16.msra.mxu0 (!%p175_p2), %v577_v0  ;;  %567 = vmatpush3.bf16.msra.mxu1 (!%p175_p2), %v577_v0 }
   0x8   : > { %555 = vmatprep.subr.bf16.mxu0 (!%p175_p2), %v578_v1  ;;  %566 = vmatprep.subr.bf16.mxu1 (!%p175_p2), %v578_v1 }
   0xb   : > { %556 = vmatpush3.bf16.msra.mxu0 (!%p175_p2), %v578_v1  ;;  %568 = vmatpush3.bf16.msra.mxu1 (!%p175_p2), %v578_v1 }
   0xd   : > { %s655_s19 = smov (!%p206_p3, %s474_s19), 15 }
   0xe   : > { %s475_s22 = sshll.u32 %s655_s19, 3  ;;  %s477_s26 = sshll.u32 %s655_s19, 2 }
   0xf   : > { %s209_s25 = scalar_lea.vmem %s649_s0, %s475_s22  ;;  %s215_s29 = scalar_lea.vmem %s652_s3, %s477_s26 }
  0x10   : > { %v224_v2 = vld [vmem:[%s209_s25] sm:$0xff]  ;;  %v225_v3 = vld [vmem:[%s209_s25 + $0x8] sm:$0xff]  ;;  %v226_v7 = vld [vmem:[%s209_s25 + $0x10] sm:$0xff]  ;;  %s221_s8 = scalar_lea.vmem %s653_s4, %s477_s26 }
  0x11   : > { %v228_v4 = vld [vmem:[%s209_s25 + $0x20] sm:$0xff]  ;;  %v232_v5 = vpack.c.bf16 %v225_v3, %v224_v2  ;;  %v229_v6 = vld [vmem:[%s209_s25 + $0x28] sm:$0xff]  ;;  %v227_v8 = vld [vmem:[%s209_s25 + $0x18] sm:$0xff] }
  0x12   : > { %v234_v9 = vpack.c.bf16 %v229_v6, %v228_v4  ;;  %v233_v10 = vpack.c.bf16 %v227_v8, %v226_v7  ;;  %v230_v11 = vld [vmem:[%s209_s25 + $0x30] sm:$0xff]  ;;  %v231_v12 = vld [vmem:[%s209_s25 + $0x38] sm:$0xff]  ;;  %v541_v14 = vld [vmem:[%s215_s29 + $0x8] sm:$0xff]  }
  0x13   : > { %557 = vmatprep.mubr.msk.bf16.mxu0 %vm259_vm0, %v232_v5  ;;  %v235_v13 = vpack.c.bf16 %v231_v12, %v230_v11  ;;  %v543_v15 = vld [vmem:[%s215_s29 + $0x18] sm:$0xff]   ;;  %v506_v16 = vld [vmem:[%s215_s29] sm:$0xff]   ;;  %v542_v18 = vld [vmem:[%s215_s29 + $0x10] sm:$0xff]   ;;  %v511_v19 = vunpack.c.l.bf16 %v541_v14  ;;  %v512_v27 = vunpack.c.h.bf16 %v541_v14 }
  0x14   : > { %561 = vmatprep.mubr.msk.bf16.mxu1 %vm259_vm0, %v234_v9  ;;  %558 = vmatmul.mubr.msk.bf16.vlgmr.msra.gmra.mrb[0].mxu0 %vm259_vm0, %v233_v10  ;;  %v519_v21 = vunpack.c.l.bf16 %v543_v15  ;;  %v507_v22 = vunpack.c.l.bf16 %v506_v16  ;;  %v515_v26 = vunpack.c.l.bf16 %v542_v18  ;;  %v520_v32 = vunpack.c.h.bf16 %v543_v15 }
  0x15   : > { %562 = vmatmul.mubr.msk.bf16.vlgmr.msra.gmra.mrb[0].mxu1 %vm259_vm0, %v235_v13  ;;  %v508_v33 = vunpack.c.h.bf16 %v506_v16  ;;  %v516_v39 = vunpack.c.h.bf16 %v542_v18 }
  0xe7   : > { %v559_v20 = vpop.f32.mrb[0].mxu0 }
  0xe8   : > { %v315_v23 = vadd.f32 %v559_v20, %v480_v17  ;;  %v563_v24 = vpop.f32.mrb[0].mxu1  ;;  %v306_v25 = vpop.f32.mrb[1].mxu0 }
  0xe9   : > { %v331_v28 = vadd.f32 %v563_v24, %v480_v17  ;;  %v307_v29 = vadd.f32 %v480_v17, %v306_v25  ;;  %v322_v30 = vpop.f32.mrb[1].mxu1  ;;  %v560_v31 = vpop.f32.mrb[2].mxu0 }
  0xea   : > { %v355_v34 = vadd.f32 %v511_v19, %v315_v23  ;;  %v323_v35 = vadd.f32 %v480_v17, %v322_v30  ;;  %v318_v36 = vadd.f32 %v560_v31, %v480_v17  ;;  %v564_v37 = vpop.f32.mrb[2].mxu1  ;;  %v309_v38 = vpop.f32.mrb[3].mxu0 }
  0xeb   : > { %v359_v40 = vadd.f32 %v519_v21, %v331_v28  ;;  %v353_v41 = vadd.f32 %v507_v22, %v307_v29  ;;  %v334_v42 = vadd.f32 %v564_v37, %v480_v17  ;;  %v310_v43 = vadd.f32 %v480_v17, %v309_v38  ;;  %v325_v44 = vpop.f32.mrb[3].mxu1 }
  0xec   : > { %v357_v45 = vadd.f32 %v515_v26, %v323_v35  ;;  %v356_v46 = vadd.f32 %v512_v27, %v318_v36  ;;  %v326_v47 = vadd.f32 %v480_v17, %v325_v44 }
  0xed   : > { %v360_v48 = vadd.f32 %v520_v32, %v334_v42  ;;  %v354_v49 = vadd.f32 %v508_v33, %v310_v43 }
  0xee   : > { %v529_v50 = vpack.c.bf16 %v356_v46, %v355_v34  ;;  %v358_v51 = vadd.f32 %v516_v39, %v326_v47 }
  0xef   : > { %v539_v52 = vpack.c.bf16 %v360_v48, %v359_v40  ;;  %v524_v53 = vpack.c.bf16 %v354_v49, %v353_v41 }
  0xf0   : > { %544 = vst [vmem:[%s221_s8 + $0x8] sm:$0xff] %v529_v50   ;;  %v534_v54 = vpack.c.bf16 %v358_v51, %v357_v45 }
  0xf1   : > { %546 = vst [vmem:[%s221_s8 + $0x18] sm:$0xff] %v539_v52   ;;  %525 = vst [vmem:[%s221_s8] sm:$0xff] %v524_v53  }
  0xf2   : > { %545 = vst [vmem:[%s221_s8 + $0x10] sm:$0xff] %v534_v54  }
  0xf3 PF: > { %s14_s15 = sadd.s32 1, %s585_s15  }
  0xf4   : > { %p11_p4 = scmp.ge.s32.totalorder %s14_s15, 4  }
  0xf6   :  { %13 = sbr.rel (!%p11_p4) target bundleno = 1 (0x1), region = 69 }

// kernel: fpn_forward.10
= control target key start
LH: loop header
LB: loop body
LE: loop exit
PB: predicated region body
PF: predicated region fallthrough
CT: control target
= control target key end

     0   :  { %s1185_s15 = smov 0   ;;  %s1339_s0 = inlined_call_operand.vmem [shape: f32[512,16], index: 0, kind: input, shape index: {}]   ;;  %s1340_s1 = inlined_call_operand.vmem [shape: bf16[16,128], index: 1, kind: input, shape index: {}]   ;;  %s1341_s2 = inlined_call_operand.vmem [shape: f32[1,128], index: 2, kind: input, shape index: {}]   ;;  %s1342_s3 = inlined_call_operand.vmem [shape: bf16[512,128], index: 3, kind: input, shape index: {}]   ;;  %s1343_s4 = inlined_call_operand.vmem [shape: bf16[512,128], index: 4, kind: output, shape index: {}]  }
   0x1 LB: > { %s821_s16 = sadd.s32 4294967295, %s1158_s15   ;;  %p825_p0 = scmp.ge.s32.totalorder %s1158_s15, 1  ;;  %s1158_s15 = sphi %s1185_s15, %s14_s15  }
   0x2   : > { %p174_p1 = scmp.lt.s32.totalorder %s1158_s15, 3 }
   0x4   : > { %p175_p2 = pnand %p825_p0, %p174_p1 }
   0x5   : > { %v1151_v0 = vld [vmem:[%s1340_s1] sm:$0xff] (!%p175_p2)   ;;  %s826_s19 = sshll.u32 (!%p175_p2), %s821_s16, 5  ;;  %vm287_vm0 = vcmask (!%p175_p2), 130048  }
   0x6   : > { %178 = sbr.rel (%p175_p2) target bundleno = 267 (0x10b), region = 36  ;;  %p206_p3 = scmp.lt.s32.totalorder (!%p175_p2), %s826_s19, 63  ;;  %1107 = vmatprep.subr.bf16.mxu0 (!%p175_p2), %v1151_v0  ;;  %1141 = vmatprep.subr.bf16.mxu1 (!%p175_p2), %v1151_v0  ;;  %v1266_v52 = vld [vmem:[%s1341_s2] ss:$0 sm:$0xff] (!%p175_p2) }
   0x7   : > { %1108 = vmatpush3.bf16.msra.mxu0 (!%p175_p2), %v1151_v0  ;;  %1142 = vmatpush3.bf16.msra.mxu1 (!%p175_p2), %v1151_v0 }
   0xd   : > { %s1345_s19 = smov (!%p206_p3, %s826_s19), 63 }
   0xe   : > { %s827_s20 = sshll.u32 %s1345_s19, 3  ;;  %s829_s24 = sshll.u32 %s1345_s19, 2 }
   0xf   : > { %s1202_s23 = scalar_lea.vmem %s1339_s0, %s827_s20  ;;  %s1258_s27 = scalar_lea.vmem %s1342_s3, %s829_s24 }
  0x10   : > { %v224_v1 = vld [vmem:[%s1202_s23] sm:$0xff]  ;;  %v225_v2 = vld [vmem:[%s1202_s23 + $0x8] sm:$0xff]  ;;  %v226_v6 = vld [vmem:[%s1202_s23 + $0x10] sm:$0xff]  ;;  %s1285_s6 = scalar_lea.vmem %s1343_s4, %s829_s24 }
  0x11   : > { %v240_v3 = vld [vmem:[%s1202_s23 + $0x80] sm:$0xff]  ;;  %v256_v4 = vpack.c.bf16 %v225_v2, %v224_v1  ;;  %v241_v5 = vld [vmem:[%s1202_s23 + $0x88] sm:$0xff]  ;;  %v227_v7 = vld [vmem:[%s1202_s23 + $0x18] sm:$0xff] }
  0x12   : > { %v264_v8 = vpack.c.bf16 %v241_v5, %v240_v3  ;;  %v257_v9 = vpack.c.bf16 %v227_v7, %v226_v6  ;;  %v242_v10 = vld [vmem:[%s1202_s23 + $0x90] sm:$0xff]  ;;  %v243_v11 = vld [vmem:[%s1202_s23 + $0x98] sm:$0xff]  ;;  %v228_v12 = vld [vmem:[%s1202_s23 + $0x20] sm:$0xff] }
  0x13   : > { %1109 = vmatprep.mubr.msk.bf16.mxu0 %vm287_vm0, %v256_v4  ;;  %v265_v13 = vpack.c.bf16 %v243_v11, %v242_v10  ;;  %v229_v14 = vld [vmem:[%s1202_s23 + $0x28] sm:$0xff]  ;;  %v244_v15 = vld [vmem:[%s1202_s23 + $0xa0] sm:$0xff]  ;;  %v230_v19 = vld [vmem:[%s1202_s23 + $0x30] sm:$0xff] }
  0x14   : > { %v245_v16 = vld [vmem:[%s1202_s23 + $0xa8] sm:$0xff]  ;;  %1125 = vmatprep.mubr.msk.bf16.mxu1 %vm287_vm0, %v264_v8  ;;  %1110 = vmatmul.mubr.msk.bf16.vlgmr.msra.gmra.mrb[0].mxu0 %vm287_vm0, %v257_v9  ;;  %v258_v17 = vpack.c.bf16 %v229_v14, %v228_v12  ;;  %v231_v20 = vld [vmem:[%s1202_s23 + $0x38] sm:$0xff]  ;;  %v246_v21 = vld [vmem:[%s1202_s23 + $0xb0] sm:$0xff] }
  0x15   : > { %v266_v18 = vpack.c.bf16 %v245_v16, %v244_v15  ;;  %1126 = vmatmul.mubr.msk.bf16.vlgmr.msra.gmra.mrb[0].mxu1 %vm287_vm0, %v265_v13  ;;  %v247_v22 = vld [vmem:[%s1202_s23 + $0xb8] sm:$0xff]  ;;  %v232_v23 = vld [vmem:[%s1202_s23 + $0x40] sm:$0xff]  ;;  %v233_v24 = vld [vmem:[%s1202_s23 + $0x48] sm:$0xff]  ;;  %v259_v27 = vpack.c.bf16 %v231_v20, %v230_v19 }
  0x16   : > { %1113 = vmatprep.mubr.msk.bf16.mxu0 %vm287_vm0, %v258_v17  ;;  %v248_v25 = vld [vmem:[%s1202_s23 + $0xc0] sm:$0xff]  ;;  %v249_v26 = vld [vmem:[%s1202_s23 + $0xc8] sm:$0xff]  ;;  %v267_v28 = vpack.c.bf16 %v247_v22, %v246_v21  ;;  %v260_v29 = vpack.c.bf16 %v233_v24, %v232_v23  ;;  %v234_v31 = vld [vmem:[%s1202_s23 + $0x50] sm:$0xff] }
  0x17   : > { %1129 = vmatprep.mubr.msk.bf16.mxu1 %vm287_vm0, %v266_v18  ;;  %v268_v30 = vpack.c.bf16 %v249_v26, %v248_v25  ;;  %v235_v32 = vld [vmem:[%s1202_s23 + $0x58] sm:$0xff]  ;;  %v250_v33 = vld [vmem:[%s1202_s23 + $0xd0] sm:$0xff]  ;;  %v236_v35 = vld [vmem:[%s1202_s23 + $0x60] sm:$0xff] }
  0x18   : > { %v251_v34 = vld [vmem:[%s1202_s23 + $0xd8] sm:$0xff]  ;;  %v237_v36 = vld [vmem:[%s1202_s23 + $0x68] sm:$0xff]  ;;  %v252_v37 = vld [vmem:[%s1202_s23 + $0xe0] sm:$0xff]  ;;  %v261_v39 = vpack.c.bf16 %v235_v32, %v234_v31 }
  0x19   : > { %v253_v38 = vld [vmem:[%s1202_s23 + $0xe8] sm:$0xff]  ;;  %v269_v40 = vpack.c.bf16 %v251_v34, %v250_v33  ;;  %v262_v41 = vpack.c.bf16 %v237_v36, %v236_v35  ;;  %v238_v43 = vld [vmem:[%s1202_s23 + $0x70] sm:$0xff]  ;;  %v239_v44 = vld [vmem:[%s1202_s23 + $0x78] sm:$0xff] }
  0x1a   : > { %v270_v42 = vpack.c.bf16 %v253_v38, %v252_v37  ;;  %v254_v45 = vld [vmem:[%s1202_s23 + $0xf0] sm:$0xff]  ;;  %v255_v46 = vld [vmem:[%s1202_s23 + $0xf8] sm:$0xff]  ;;  %v263_v47 = vpack.c.bf16 %v239_v44, %v238_v43  ;;  %v1060_v49 = vld [vmem:[%s1258_s27 + $0x8] sm:$0xff]  }
  0x1b   : > { %v271_v48 = vpack.c.bf16 %v255_v46, %v254_v45  ;;  %v1068_v50 = vld [vmem:[%s1258_s27 + $0x48] sm:$0xff]   ;;  %v917_v51 = vld [vmem:[%s1258_s27] sm:$0xff]   ;;  %v922_v54 = vunpack.c.l.bf16 %v1060_v49  ;;  %v923_v62 = vunpack.c.h.bf16 %v1060_v49  ;;  %v1062_v16 = vld [vmem:[%s1258_s27 + $0x18] sm:$0xff]  }
  0x1c   : > { %1114 = vmatmul.mubr.msk.bf16.gmra.mrb[4].mxu0 %vm287_vm0, %v259_v27  ;;  %v1067_v53 = vld [vmem:[%s1258_s27 + $0x40] sm:$0xff]   ;;  %v954_v56 = vunpack.c.l.bf16 %v1068_v50  ;;  %v918_v57 = vunpack.c.l.bf16 %v917_v51  ;;  %v955_v3 = vunpack.c.h.bf16 %v1068_v50  ;;  %v919_v4 = vunpack.c.h.bf16 %v917_v51  ;;  %v1070_v20 = vld [vmem:[%s1258_s27 + $0x58] sm:$0xff]   ;;  %v1061_v21 = vld [vmem:[%s1258_s27 + $0x10] sm:$0xff]  }
  0x1d   : > { %1130 = vmatmul.mubr.msk.bf16.gmra.mrb[4].mxu1 %vm287_vm0, %v267_v28  ;;  %1117 = vmatprep.mubr.msk.bf16.mxu0 %vm287_vm0, %v260_v29  ;;  %v950_v61 = vunpack.c.l.bf16 %v1067_v53  ;;  %v951_v10 = vunpack.c.h.bf16 %v1067_v53  ;;  %v1069_v24 = vld [vmem:[%s1258_s27 + $0x50] sm:$0xff]   ;;  %v930_v27 = vunpack.c.l.bf16 %v1062_v16  ;;  %v962_v31 = vunpack.c.l.bf16 %v1070_v20 }
  0x1e   : > { %1133 = vmatprep.mubr.msk.bf16.mxu1 %vm287_vm0, %v268_v30  ;;  %v926_v32 = vunpack.c.l.bf16 %v1061_v21  ;;  %v958_v37 = vunpack.c.l.bf16 %v1069_v24  ;;  %v931_v38 = vunpack.c.h.bf16 %v1062_v16  ;;  %v963_v43 = vunpack.c.h.bf16 %v1070_v20 }
  0x1f   : > { %v927_v44 = vunpack.c.h.bf16 %v1061_v21  ;;  %v959_v50 = vunpack.c.h.bf16 %v1069_v24 }
  0x24   : > { %1118 = vmatmul.mubr.msk.bf16.gmra.mrb[8].mxu0 %vm287_vm0, %v261_v39 }
  0x25   : > { %1134 = vmatmul.mubr.msk.bf16.gmra.mrb[8].mxu1 %vm287_vm0, %v269_v40  ;;  %1121 = vmatprep.mubr.msk.bf16.mxu0 %vm287_vm0, %v262_v41 }
  0x26   : > { %1137 = vmatprep.mubr.msk.bf16.mxu1 %vm287_vm0, %v270_v42 }
  0x2c   : > { %1122 = vmatmul.mubr.msk.bf16.gmra.mrb[12].mxu0 %vm287_vm0, %v263_v47 }
  0x2d   : > { %1138 = vmatmul.mubr.msk.bf16.gmra.mrb[12].mxu1 %vm287_vm0, %v271_v48 }
  0xe7   : > { %v1111_v55 = vpop.f32.mrb[0].mxu0 }
  0xe8   : > { %v379_v58 = vadd.f32 %v1111_v55, %v1266_v52  ;;  %v1127_v59 = vpop.f32.mrb[0].mxu1  ;;  %v370_v60 = vpop.f32.mrb[1].mxu0 }
  0xe9   : > { %v443_v63 = vadd.f32 %v1127_v59, %v1266_v52  ;;  %v371_v0 = vadd.f32 %v1266_v52, %v370_v60  ;;  %v434_v1 = vpop.f32.mrb[1].mxu1  ;;  %v1112_v2 = vpop.f32.mrb[2].mxu0 }
  0xea   : > { %v563_v5 = vadd.f32 %v922_v54, %v379_v58  ;;  %v435_v6 = vadd.f32 %v1266_v52, %v434_v1  ;;  %v382_v7 = vadd.f32 %v1112_v2, %v1266_v52  ;;  %v1128_v8 = vpop.f32.mrb[2].mxu1  ;;  %v373_v9 = vpop.f32.mrb[3].mxu0  ;;  %v1071_v1 = vld [vmem:[%s1258_s27 + $0x60] sm:$0xff]  }
  0xeb   : > { %v579_v11 = vadd.f32 %v954_v56, %v443_v63  ;;  %v561_v12 = vadd.f32 %v918_v57, %v371_v0  ;;  %v446_v13 = vadd.f32 %v1128_v8, %v1266_v52  ;;  %v374_v14 = vadd.f32 %v1266_v52, %v373_v9  ;;  %v437_v15 = vpop.f32.mrb[3].mxu1  ;;  %v1064_v57 = vld [vmem:[%s1258_s27 + $0x28] sm:$0xff]  }
  0xec   : > { %v577_v17 = vadd.f32 %v950_v61, %v435_v6  ;;  %v564_v18 = vadd.f32 %v923_v62, %v382_v7  ;;  %v438_v19 = vadd.f32 %v1266_v52, %v437_v15  ;;  %v1072_v61 = vld [vmem:[%s1258_s27 + $0x68] sm:$0xff]   ;;  %v1063_v62 = vld [vmem:[%s1258_s27 + $0x20] sm:$0xff]   ;;  %v939_v15 = vunpack.c.h.bf16 %v1064_v57 }
  0xed   : > { %v580_v22 = vadd.f32 %v955_v3, %v446_v13  ;;  %v562_v23 = vadd.f32 %v919_v4, %v374_v14  ;;  %v938_v4 = vunpack.c.l.bf16 %v1064_v57  ;;  %v970_v8 = vunpack.c.l.bf16 %v1072_v61 }
  0xee   : > { %v988_v25 = vpack.c.bf16 %v564_v18, %v563_v5  ;;  %v578_v26 = vadd.f32 %v951_v10, %v438_v19  ;;  %v934_v9 = vunpack.c.l.bf16 %v1063_v62  ;;  %v966_v14 = vunpack.c.l.bf16 %v1071_v1 }
  0xef   : > { %v1028_v28 = vpack.c.bf16 %v580_v22, %v579_v11  ;;  %v983_v29 = vpack.c.bf16 %v562_v23, %v561_v12  ;;  %v1115_v30 = vpop.f32.mrb[4].mxu0  ;;  %v971_v20 = vunpack.c.h.bf16 %v1072_v61  ;;  %v935_v21 = vunpack.c.h.bf16 %v1063_v62 }
  0xf0   : > { %1075 = vst [vmem:[%s1285_s6 + $0x8] sm:$0xff] %v988_v25   ;;  %v1023_v33 = vpack.c.bf16 %v578_v26, %v577_v17  ;;  %v395_v34 = vadd.f32 %v1115_v30, %v1266_v52  ;;  %v1131_v35 = vpop.f32.mrb[4].mxu1  ;;  %v386_v36 = vpop.f32.mrb[5].mxu0 }
  0xf1   : > { %1083 = vst [vmem:[%s1285_s6 + $0x48] sm:$0xff] %v1028_v28   ;;  %984 = vst [vmem:[%s1285_s6] sm:$0xff] %v983_v29   ;;  %v459_v39 = vadd.f32 %v1131_v35, %v1266_v52  ;;  %v387_v40 = vadd.f32 %v1266_v52, %v386_v36  ;;  %v450_v41 = vpop.f32.mrb[5].mxu1  ;;  %v1116_v42 = vpop.f32.mrb[6].mxu0 }
  0xf2   : > { %1082 = vst [vmem:[%s1285_s6 + $0x40] sm:$0xff] %v1023_v33   ;;  %v567_v45 = vadd.f32 %v930_v27, %v395_v34  ;;  %v451_v46 = vadd.f32 %v1266_v52, %v450_v41  ;;  %v398_v47 = vadd.f32 %v1116_v42, %v1266_v52  ;;  %v1132_v48 = vpop.f32.mrb[6].mxu1  ;;  %v389_v49 = vpop.f32.mrb[7].mxu0  ;;  %v967_v27 = vunpack.c.h.bf16 %v1071_v1  ;;  %v1066_v33 = vld [vmem:[%s1258_s27 + $0x38] sm:$0xff]   ;;  %v1073_v41 = vld [vmem:[%s1258_s27 + $0x70] sm:$0xff]  }
  0xf3   : > { %v583_v51 = vadd.f32 %v962_v31, %v459_v39  ;;  %v565_v53 = vadd.f32 %v926_v32, %v387_v40  ;;  %v462_v54 = vadd.f32 %v1132_v48, %v1266_v52  ;;  %v390_v55 = vadd.f32 %v1266_v52, %v389_v49  ;;  %v453_v56 = vpop.f32.mrb[7].mxu1 }
  0xf4   : > { %v581_v58 = vadd.f32 %v958_v37, %v451_v46  ;;  %v568_v59 = vadd.f32 %v931_v38, %v398_v47  ;;  %v454_v60 = vadd.f32 %v1266_v52, %v453_v56  ;;  %v1074_v37 = vld [vmem:[%s1258_s27 + $0x78] sm:$0xff]   ;;  %v1065_v38 = vld [vmem:[%s1258_s27 + $0x30] sm:$0xff]   ;;  %v947_v56 = vunpack.c.h.bf16 %v1066_v33 }
  0xf5   : > { %v584_v63 = vadd.f32 %v963_v43, %v462_v54  ;;  %v566_v0 = vadd.f32 %v927_v44, %v390_v55  ;;  %v946_v44 = vunpack.c.l.bf16 %v1066_v33  ;;  %v978_v48 = vunpack.c.l.bf16 %v1074_v37 }
  0xf6   : > { %v998_v2 = vpack.c.bf16 %v568_v59, %v567_v45  ;;  %v582_v3 = vadd.f32 %v959_v50, %v454_v60  ;;  %v942_v49 = vunpack.c.l.bf16 %v1065_v38  ;;  %v974_v55 = vunpack.c.l.bf16 %v1073_v41 }
  0xf7   : > { %v1038_v5 = vpack.c.bf16 %v584_v63, %v583_v51  ;;  %v993_v6 = vpack.c.bf16 %v566_v0, %v565_v53  ;;  %v1119_v7 = vpop.f32.mrb[8].mxu0  ;;  %v979_v61 = vunpack.c.h.bf16 %v1074_v37  ;;  %v943_v62 = vunpack.c.h.bf16 %v1065_v38 }
  0xf8   : > { %1077 = vst [vmem:[%s1285_s6 + $0x18] sm:$0xff] %v998_v2   ;;  %v1033_v10 = vpack.c.bf16 %v582_v3, %v581_v58  ;;  %v411_v11 = vadd.f32 %v1119_v7, %v1266_v52  ;;  %v1135_v12 = vpop.f32.mrb[8].mxu1  ;;  %v402_v13 = vpop.f32.mrb[9].mxu0 }
  0xf9   : > { %1085 = vst [vmem:[%s1285_s6 + $0x58] sm:$0xff] %v1038_v5   ;;  %1076 = vst [vmem:[%s1285_s6 + $0x10] sm:$0xff] %v993_v6   ;;  %v475_v16 = vadd.f32 %v1135_v12, %v1266_v52  ;;  %v403_v17 = vadd.f32 %v1266_v52, %v402_v13  ;;  %v466_v18 = vpop.f32.mrb[9].mxu1  ;;  %v1120_v19 = vpop.f32.mrb[10].mxu0 }
  0xfa   : > { %1084 = vst [vmem:[%s1285_s6 + $0x50] sm:$0xff] %v1033_v10   ;;  %v571_v22 = vadd.f32 %v938_v4, %v411_v11  ;;  %v467_v23 = vadd.f32 %v1266_v52, %v466_v18  ;;  %v414_v24 = vadd.f32 %v1120_v19, %v1266_v52  ;;  %v1136_v25 = vpop.f32.mrb[10].mxu1  ;;  %v405_v26 = vpop.f32.mrb[11].mxu0  ;;  %v975_v4 = vunpack.c.h.bf16 %v1073_v41 }
  0xfb   : > { %v587_v28 = vadd.f32 %v970_v8, %v475_v16  ;;  %v569_v29 = vadd.f32 %v934_v9, %v403_v17  ;;  %v478_v30 = vadd.f32 %v1136_v25, %v1266_v52  ;;  %v406_v31 = vadd.f32 %v1266_v52, %v405_v26  ;;  %v469_v32 = vpop.f32.mrb[11].mxu1 }
  0xfc   : > { %v585_v34 = vadd.f32 %v966_v14, %v467_v23  ;;  %v572_v35 = vadd.f32 %v939_v15, %v414_v24  ;;  %v470_v36 = vadd.f32 %v1266_v52, %v469_v32 }
  0xfd   : > { %v588_v39 = vadd.f32 %v971_v20, %v478_v30  ;;  %v570_v40 = vadd.f32 %v935_v21, %v406_v31 }
  0xfe   : > { %v1008_v42 = vpack.c.bf16 %v572_v35, %v571_v22  ;;  %v586_v43 = vadd.f32 %v967_v27, %v470_v36 }
  0xff   : > { %v1048_v45 = vpack.c.bf16 %v588_v39, %v587_v28  ;;  %v1003_v46 = vpack.c.bf16 %v570_v40, %v569_v29  ;;  %v1123_v47 = vpop.f32.mrb[12].mxu0 }
 0x100   : > { %1079 = vst [vmem:[%s1285_s6 + $0x28] sm:$0xff] %v1008_v42   ;;  %v1043_v50 = vpack.c.bf16 %v586_v43, %v585_v34  ;;  %v427_v51 = vadd.f32 %v1123_v47, %v1266_v52  ;;  %v1139_v53 = vpop.f32.mrb[12].mxu1  ;;  %v418_v54 = vpop.f32.mrb[13].mxu0 }
 0x101   : > { %1087 = vst [vmem:[%s1285_s6 + $0x68] sm:$0xff] %v1048_v45   ;;  %1078 = vst [vmem:[%s1285_s6 + $0x20] sm:$0xff] %v1003_v46   ;;  %v491_v57 = vadd.f32 %v1139_v53, %v1266_v52  ;;  %v419_v58 = vadd.f32 %v1266_v52, %v418_v54  ;;  %v482_v59 = vpop.f32.mrb[13].mxu1  ;;  %v1124_v60 = vpop.f32.mrb[14].mxu0 }
 0x102   : > { %1086 = vst [vmem:[%s1285_s6 + $0x60] sm:$0xff] %v1043_v50   ;;  %v575_v63 = vadd.f32 %v946_v44, %v427_v51  ;;  %v483_v0 = vadd.f32 %v1266_v52, %v482_v59  ;;  %v430_v1 = vadd.f32 %v1124_v60, %v1266_v52  ;;  %v1140_v2 = vpop.f32.mrb[14].mxu1  ;;  %v421_v3 = vpop.f32.mrb[15].mxu0 }
 0x103   : > { %v591_v5 = vadd.f32 %v978_v48, %v491_v57  ;;  %v573_v6 = vadd.f32 %v942_v49, %v419_v58  ;;  %v494_v7 = vadd.f32 %v1140_v2, %v1266_v52  ;;  %v422_v8 = vadd.f32 %v1266_v52, %v421_v3  ;;  %v485_v9 = vpop.f32.mrb[15].mxu1 }
 0x104   : > { %v589_v10 = vadd.f32 %v974_v55, %v483_v0  ;;  %v576_v11 = vadd.f32 %v947_v56, %v430_v1  ;;  %v486_v12 = vadd.f32 %v1266_v52, %v485_v9 }
 0x105   : > { %v592_v13 = vadd.f32 %v979_v61, %v494_v7  ;;  %v574_v14 = vadd.f32 %v943_v62, %v422_v8 }
 0x106   : > { %v1018_v15 = vpack.c.bf16 %v576_v11, %v575_v63  ;;  %v590_v16 = vadd.f32 %v975_v4, %v486_v12 }
 0x107   : > { %v1058_v17 = vpack.c.bf16 %v592_v13, %v591_v5  ;;  %v1013_v18 = vpack.c.bf16 %v574_v14, %v573_v6 }
 0x108   : > { %1081 = vst [vmem:[%s1285_s6 + $0x38] sm:$0xff] %v1018_v15   ;;  %v1053_v19 = vpack.c.bf16 %v590_v16, %v589_v10 }
 0x109   : > { %1089 = vst [vmem:[%s1285_s6 + $0x78] sm:$0xff] %v1058_v17   ;;  %1080 = vst [vmem:[%s1285_s6 + $0x30] sm:$0xff] %v1013_v18  }
 0x10a   : > { %1088 = vst [vmem:[%s1285_s6 + $0x70] sm:$0xff] %v1053_v19  }
 0x10b PF: > { %s14_s15 = sadd.s32 1, %s1158_s15  }
 0x10c   : > { %p11_p4 = scmp.ge.s32.totalorder %s14_s15, 4  }
 0x10e   :  { %13 = sbr.rel (!%p11_p4) target bundleno = 1 (0x1), region = 69 }

// kernel: fpn_forward.12
= control target key start
LH: loop header
LB: loop body
LE: loop exit
PB: predicated region body
PF: predicated region fallthrough
CT: control target
= control target key end

     0   :  { %s3141_s12 = smov 0   ;;  %s3143_s13 = smov 0   ;;  %s3619_s0 = inlined_call_operand.vmem [shape: bf16[2,176,128], index: 0, kind: input, shape index: {}]   ;;  %s3620_s1 = inlined_call_operand.vmem [shape: bf16[9,128,128], index: 1, kind: input, shape index: {}]   ;;  %s3621_s2 = inlined_call_operand.vmem [shape: f32[1,128], index: 2, kind: input, shape index: {}]   ;;  %s3622_s3 = inlined_call_operand.vmem [shape: f32[2,8,16,128], index: 3, kind: output, shape index: {}]  }
   0x1   :  { %s3145_s14 = smov 0  }
   0x2 LB: > { %s25_s15 = sadd.s32 1, %s3115_s13  ;;  %p2197_p0 = scmp.ge.s32.totalorder %s3119_s14, 1  ;;  %s3119_s14 = sphi %s3145_s14, %s13_s14   ;;  %s3115_s13 = sphi %s3143_s13, %s3624_s13   ;;  %s3111_s12 = sphi %s3141_s12, %s3623_s12  }
   0x3   : > { %p27_p1 = scmp.ge.s32.totalorder %s25_s15, 2  ;;  %p117_p2 = scmp.lt.s32.totalorder %s3119_s14, 3 }
   0x5   : > { %s3626_s15 = smov (%p27_p1, %s25_s15), 0  ;;  %p118_p3 = pnand %p2197_p0, %p117_p2 }
   0x6   : > { %p140_p4 = scmp.lt.s32.totalorder (!%p118_p3), %s3111_s12, 1  ;;  %s2420_s16 = smul.u32 (!%p118_p3), 88, %s3111_s12 }
   0x7   : > { %121 = sbr.rel (%p118_p3) target bundleno = 410 (0x19a), region = 28 }
   0x8   : > { %s162_s19 = scalar_lea.vmem (!%p118_p3), %s3619_s0, %s2420_s16 }
   0x9   : > { %v3162_v0 = vld [vmem:[%s162_s19] sm:$0xff] (!%p118_p3)  ;;  %v3164_v1 = vld [vmem:[%s162_s19 + $0x8] sm:$0xff] (!%p118_p3)  ;;  %v3166_v2 = vld [vmem:[%s162_s19 + $0x10] sm:$0xff] (!%p118_p3) }
   0xa   : > { %v3173_v3 = vld [vmem:[%s162_s19 + $0x18] sm:$0xff] (!%p118_p3)  ;;  %v3175_v4 = vld [vmem:[%s162_s19 + $0x20] sm:$0xff] (!%p118_p3)  ;;  %v3177_v5 = vld [vmem:[%s162_s19 + $0x28] sm:$0xff] (!%p118_p3) }
   0xb   : > { %v3179_v6 = vld [vmem:[%s162_s19 + $0x30] sm:$0xff] (!%p118_p3)  ;;  %v3181_v7 = vld [vmem:[%s162_s19 + $0x38] sm:$0xff] (!%p118_p3)  ;;  %v3183_v8 = vld [vmem:[%s162_s19 + $0x40] sm:$0xff] (!%p118_p3) }
   0xc   : > { %v3185_v9 = vld [vmem:[%s162_s19 + $0x48] sm:$0xff] (!%p118_p3)  ;;  %v3187_v10 = vld [vmem:[%s162_s19 + $0x50] sm:$0xff] (!%p118_p3) }
   0xe   : > { %s3628_s12 = smov (!%p140_p4, %s3111_s12), 1 }
   0xf   : > { %s2419_s20 = sshll.u32 %s3628_s12, 7 }
  0x10   : > { %s3171_s23 = scalar_lea.vmem %s3622_s3, %s2419_s20 }
  0x11   : > { %228 = vsyncadd [#allocation3], 1408 }
  0x12   : > { %3107 = dma.done.wait [#allocation3], 1408 }
  0x13   : > { %3108 = vsyncadd [#allocation3], 4294965888  ;;  %v362_v11 = vshrl.u32 %v3162_v0, 16  ;;  %v364_v12 = vshll.u32 %v3162_v0, 16  ;;  %v369_v13 = vshll.u32 %v3164_v1, 16  ;;  %v373_v14 = vshrl.u32 %v3164_v1, 16 }
  0x14   : > { %v377_v15 = vshll.u32 %v3166_v2, 16  ;;  %vm360_vm0 = vsmask.f32 7424  ;;  %v3023_v22 = vld [vmem:[%s3620_s1 + $0x40] sm:$0xff]   ;;  %v3025_v25 = vld [vmem:[%s3620_s1 + $0x48] sm:$0xff]   ;;  %v3027_v27 = vld [vmem:[%s3620_s1 + $0x50] sm:$0xff]  }
  0x15   : > { %v366_v16 = vrot.slane %v364_v12, 1  ;;  %v371_v17 = vrot.slane %v369_v13, 1  ;;  %v3024_v24 = vld [vmem:[%s3620_s1 + $0x100] sm:$0xff]   ;;  %2567 = vmatprep.subr.bf16.mxu1 %v3023_v22  ;;  %v3026_v26 = vld [vmem:[%s3620_s1 + $0x108] sm:$0xff]   ;;  %v3028_v28 = vld [vmem:[%s3620_s1 + $0x110] sm:$0xff]   ;;  %v1139_v35 = vshll.u32 %v3185_v9, 16 }
  0x16   : > { %v3194_v18 = vrot.slane %v377_v15, 1  ;;  %2695 = vmatprep.subr.bf16.mxu0 %v3024_v24  ;;  %2568 = vmatpush3.bf16.msra.mxu1 %v3023_v22  ;;  %v3029_v29 = vld [vmem:[%s3620_s1 + $0x58] sm:$0xff]   ;;  %v3031_v31 = vld [vmem:[%s3620_s1 + $0x60] sm:$0xff]   ;;  %v3033_v33 = vld [vmem:[%s3620_s1 + $0x68] sm:$0xff]   ;;  %v1682_v39 = vshrl.u32 %v3185_v9, 16  ;;  %v381_v40 = vshrl.u32 %v3166_v2, 16 }
  0x17   : > { %v367_v19 = vor.u32 %v366_v16, %v362_v11  ;;  %v375_v20 = vor.u32 %v373_v14, %v371_v17  ;;  %2696 = vmatpush3.bf16.msra.mxu0 %v3024_v24  ;;  %2569 = vmatprep.subr.bf16.mxu1 %v3025_v25  ;;  %v3030_v30 = vld [vmem:[%s3620_s1 + $0x118] sm:$0xff]   ;;  %v3032_v32 = vld [vmem:[%s3620_s1 + $0x120] sm:$0xff]   ;;  %v3034_v34 = vld [vmem:[%s3620_s1 + $0x128] sm:$0xff]   ;;  %v3245_v38 = vrot.slane %v1139_v35, 1  ;;  %v1686_v41 = vshll.u32 %v3187_v10, 16 }
  0x18   : > { %2697 = vmatprep.subr.bf16.mxu0 %v3026_v26  ;;  %v3035_v36 = vld [vmem:[%s3620_s1 + $0x70] sm:$0xff]   ;;  %v3037_v42 = vld [vmem:[%s3620_s1 + $0x78] sm:$0xff]   ;;  %v385_v43 = vshll.u32 %v3173_v3, 16  ;;  %v389_v47 = vshrl.u32 %v3173_v3, 16  ;;  %v393_v48 = vshll.u32 %v3175_v4, 16  ;;  %v3039_v50 = vld [vmem:[%s3620_s1] sm:$0xff]   ;;  %v383_v51 = vor.u32 %v381_v40, %v3194_v18 }
  0x19   : > { %v372_v21 = vsel %vm360_vm0, %v367_v19, %v371_v17  ;;  %v3202_v23 = vsel %vm360_vm0, %v375_v20, %v3194_v18  ;;  %v3036_v37 = vld [vmem:[%s3620_s1 + $0x130] sm:$0xff]   ;;  %v1684_v44 = vor.u32 %v1682_v39, %v3245_v38  ;;  %v3038_v45 = vld [vmem:[%s3620_s1 + $0x138] sm:$0xff]   ;;  %v1688_v46 = vrot.slane %v1686_v41, 1  ;;  %v3040_v53 = vld [vmem:[%s3620_s1 + $0x140] sm:$0xff]  }
  0x1a   : > { %2583 = vmatprep.mubr.bf16.mxu1 %v372_v21  ;;  %2711 = vmatprep.mubr.bf16.mxu0 %v3202_v23  ;;  %v387_v52 = vrot.slane %v385_v43, 1  ;;  %v395_v55 = vrot.slane %v393_v48, 1  ;;  %v397_v56 = vshrl.u32 %v3175_v4, 16  ;;  %v3041_v58 = vld [vmem:[%s3620_s1 + $0x8] sm:$0xff]   ;;  %v401_v59 = vshll.u32 %v3177_v5, 16  ;;  %v3043_v11 = vld [vmem:[%s3620_s1 + $0x10] sm:$0xff]  }
  0x1b   : > { %2570 = vmatpush3.bf16.msra.mxu1 %v3025_v25  ;;  %2698 = vmatpush3.bf16.msra.mxu0 %v3026_v26  ;;  %v3261_v49 = vsel %vm360_vm0, %v1684_v44, %v1688_v46  ;;  %v3042_v60 = vld [vmem:[%s3620_s1 + $0x148] sm:$0xff]   ;;  %v409_v61 = vshll.u32 %v3179_v6, 16  ;;  %v405_v63 = vshrl.u32 %v3177_v5, 16  ;;  %v3044_v14 = vld [vmem:[%s3620_s1 + $0x150] sm:$0xff]   ;;  %v413_v16 = vshrl.u32 %v3179_v6, 16  ;;  %v3045_v21 = vld [vmem:[%s3620_s1 + $0x18] sm:$0xff]  }
  0x1c   : > { %2571 = vmatprep.subr.bf16.mxu1 %v3027_v27  ;;  %2699 = vmatprep.subr.bf16.mxu0 %v3028_v28  ;;  %v391_v54 = vor.u32 %v389_v47, %v387_v52  ;;  %v3272_v57 = vsel %vm360_vm0, %v383_v51, %v387_v52  ;;  %v399_v12 = vor.u32 %v397_v56, %v395_v55  ;;  %v403_v13 = vrot.slane %v401_v59, 1  ;;  %v3051_v39 = vld [vmem:[%s3620_s1 + $0x30] sm:$0xff]   ;;  %v3054_v46 = vld [vmem:[%s3620_s1 + $0x178] sm:$0xff]  }
  0x1d   : > { %v411_v15 = vrot.slane %v409_v61, 1  ;;  %v417_v18 = vshll.u32 %v3181_v7, 16  ;;  %v1323_v19 = vrot.slane %v3185_v9, 1  ;;  %v1870_v22 = vrot.slane %v3187_v10, 1  ;;  %v3052_v41 = vld [vmem:[%s3620_s1 + $0x170] sm:$0xff]  }
  0x1e   : > { %v3285_v62 = vsel %vm360_vm0, %v391_v54, %v395_v55  ;;  %v407_v17 = vor.u32 %v405_v63, %v403_v13  ;;  %v3300_v20 = vsel %vm360_vm0, %v399_v12, %v403_v13  ;;  %vm753_vm1 = vcmask 1046528   ;;  %v3058_v54 = vld [vmem:[%s3620_s1 + $0x188] sm:$0xff]   ;;  %v3059_v56 = vld [vmem:[%s3620_s1 + $0x90] sm:$0xff]   ;;  %v3061_v63 = vld [vmem:[%s3620_s1 + $0x98] sm:$0xff]  }
  0x1f   : > { %2572 = vmatpush3.bf16.msra.mxu1 %v3027_v27  ;;  %2700 = vmatpush3.bf16.msra.mxu0 %v3028_v28  ;;  %v3313_v24 = vsel %vm753_vm1, %v1323_v19, %v1870_v22  ;;  %v421_v10 = vshrl.u32 %v3181_v7, 16  ;;  %v425_v26 = vshll.u32 %v3183_v8, 16  ;;  %v3047_v27 = vld [vmem:[%s3620_s1 + $0x20] sm:$0xff]   ;;  %v415_v28 = vor.u32 %v413_v16, %v411_v15  ;;  %v3060_v59 = vld [vmem:[%s3620_s1 + $0x190] sm:$0xff]  }
  0x20   : > { %2573 = vmatprep.subr.bf16.mxu1 %v3029_v29  ;;  %2701 = vmatprep.subr.bf16.mxu0 %v3030_v30  ;;  %v3317_v25 = vsel %vm360_vm0, %v407_v17, %v411_v15  ;;  %v1135_v35 = vshrl.u32 %v3183_v8, 16  ;;  %v757_v43 = vrot.slane %v3166_v2, 1  ;;  %v759_v48 = vrot.slane %v3173_v3, 1  ;;  %v3063_v13 = vld [vmem:[%s3620_s1 + $0xa0] sm:$0xff]  }
  0x21   : > { %v761_v51 = vrot.slane %v3175_v4, 1  ;;  %v3064_v15 = vld [vmem:[%s3620_s1 + $0x1a0] sm:$0xff]   ;;  %v769_v16 = vrot.slane %v3183_v8, 1 }
  0x22   : > { %v3382_v52 = vsel %vm753_vm1, %v757_v43, %v759_v48 }
  0x23   : > { %2574 = vmatpush3.bf16.msra.mxu1 %v3029_v29  ;;  %2702 = vmatpush3.bf16.msra.mxu0 %v3030_v30  ;;  %v419_v29 = vrot.slane %v417_v18, 1  ;;  %v3048_v30 = vld [vmem:[%s3620_s1 + $0x160] sm:$0xff]   ;;  %v3393_v55 = vsel %vm753_vm1, %v759_v48, %v761_v51  ;;  %v3065_v18 = vld [vmem:[%s3620_s1 + $0xa8] sm:$0xff]  }
  0x24   : > { %2575 = vmatprep.subr.bf16.mxu1 %v3031_v31  ;;  %2703 = vmatprep.subr.bf16.mxu0 %v3032_v32  ;;  %v3087_v48 = vld [vmem:[%s3620_s1 + $0x200] sm:$0xff]  }
  0x27   : > { %2576 = vmatpush3.bf16.msra.mxu1 %v3031_v31  ;;  %2704 = vmatpush3.bf16.msra.mxu0 %v3032_v32  ;;  %v423_v31 = vor.u32 %v421_v10, %v419_v29  ;;  %v427_v32 = vrot.slane %v425_v26, 1  ;;  %v3068_v10 = vld [vmem:[%s3620_s1 + $0x1b0] sm:$0xff]   ;;  %v754_v26 = vrot.slane %v3162_v0, 1 }
  0x28   : > { %2577 = vmatprep.subr.bf16.mxu1 %v3033_v33  ;;  %2705 = vmatprep.subr.bf16.mxu0 %v3034_v34 }
  0x29   : > { %v1137_v40 = vor.u32 %v1135_v35, %v427_v32  ;;  %v3076_v35 = vld [vmem:[%s3620_s1 + $0x1d0] sm:$0xff]  }
  0x2b   : > { %2578 = vmatpush3.bf16.msra.mxu1 %v3033_v33  ;;  %2706 = vmatpush3.bf16.msra.mxu0 %v3034_v34  ;;  %v3330_v33 = vsel %vm360_vm0, %v415_v28, %v419_v29  ;;  %v3049_v34 = vld [vmem:[%s3620_s1 + $0x28] sm:$0xff]   ;;  %v3356_v44 = vsel %vm360_vm0, %v1137_v40, %v3245_v38  ;;  %v3055_v38 = vld [vmem:[%s3620_s1 + $0x80] sm:$0xff]   ;;  %v3069_v28 = vld [vmem:[%s3620_s1 + $0xb8] sm:$0xff]  }
  0x2c   : > { %2579 = vmatprep.subr.bf16.mxu1 %v3035_v36  ;;  %2707 = vmatprep.subr.bf16.mxu0 %v3036_v37  ;;  %v3070_v29 = vld [vmem:[%s3620_s1 + $0x1b8] sm:$0xff]   ;;  %v3079_v40 = vld [vmem:[%s3620_s1 + $0xe0] sm:$0xff]  }
  0x2f   : > { %2580 = vmatpush3.bf16.msra.mxu1 %v3035_v36  ;;  %2708 = vmatpush3.bf16.msra.mxu0 %v3036_v37  ;;  %v3050_v36 = vld [vmem:[%s3620_s1 + $0x168] sm:$0xff]   ;;  %v3342_v37 = vsel %vm360_vm0, %v423_v31, %v427_v32 }
  0x30   : > { %2581 = vmatprep.subr.bf16.mxu1 %v3037_v42  ;;  %2709 = vmatprep.subr.bf16.mxu0 %v3038_v45  ;;  %v3073_v31 = vld [vmem:[%s3620_s1 + $0xc8] sm:$0xff]  }
  0x31   : > { %v3074_v32 = vld [vmem:[%s3620_s1 + $0x1c8] sm:$0xff]  }
  0x33   : > { %2582 = vmatpush3.bf16.msra.mxu1 %v3037_v42  ;;  %2710 = vmatpush3.bf16.msra.mxu0 %v3038_v45  ;;  %v755_v42 = vrot.slane %v3164_v1, 1  ;;  %v3053_v45 = vld [vmem:[%s3620_s1 + $0x38] sm:$0xff]  }
  0x34   : > { %2599 = vmatprep.subr.bf16.mxu1 %v3039_v50  ;;  %2727 = vmatprep.subr.bf16.mxu0 %v3040_v53 }
  0x35   : > { %v3369_v47 = vsel %vm753_vm1, %v755_v42, %v757_v43  ;;  %v3082_v43 = vld [vmem:[%s3620_s1 + $0x1e8] sm:$0xff]  }
  0x36   : > { %2584 = vmatmul.mubr.bf16.vlgmr.msra.gmra.mrb[0].mxu1 %v3202_v23  ;;  %2712 = vmatmul.mubr.bf16.vlgmr.msra.gmra.mrb[0].mxu0 %v3272_v57  ;;  %v3046_v23 = vld [vmem:[%s3620_s1 + $0x158] sm:$0xff]  }
  0x37   : > { %2600 = vmatpush3.bf16.msra.mxu1 %v3039_v50  ;;  %2728 = vmatpush3.bf16.msra.mxu0 %v3040_v53  ;;  %v3056_v50 = vld [vmem:[%s3620_s1 + $0x180] sm:$0xff]   ;;  %v3057_v53 = vld [vmem:[%s3620_s1 + $0x88] sm:$0xff]  }
  0x38   : > { %2601 = vmatprep.subr.bf16.mxu1 %v3041_v58  ;;  %2729 = vmatprep.subr.bf16.mxu0 %v3042_v60 }
  0x39   : > { %2587 = vmatprep.mubr.bf16.mxu1 %v3272_v57  ;;  %2715 = vmatprep.mubr.bf16.mxu0 %v3285_v62 }
  0x3b   : > { %2602 = vmatpush3.bf16.msra.mxu1 %v3041_v58  ;;  %2730 = vmatpush3.bf16.msra.mxu0 %v3042_v60  ;;  %v763_v58 = vrot.slane %v3177_v5, 1  ;;  %v765_v60 = vrot.slane %v3179_v6, 1 }
  0x3c   : > { %2603 = vmatprep.subr.bf16.mxu1 %v3043_v11  ;;  %2731 = vmatprep.subr.bf16.mxu0 %v3044_v14 }
  0x3d   : > { %v3406_v61 = vsel %vm753_vm1, %v761_v51, %v763_v58  ;;  %v3417_v12 = vsel %vm753_vm1, %v763_v58, %v765_v60 }
  0x3e   : > { %2588 = vmatmul.mubr.bf16.gmra.mrb[4].mxu1 %v3285_v62  ;;  %2716 = vmatmul.mubr.bf16.gmra.mrb[4].mxu0 %v3300_v20 }
  0x3f   : > { %2604 = vmatpush3.bf16.msra.mxu1 %v3043_v11  ;;  %2732 = vmatpush3.bf16.msra.mxu0 %v3044_v14  ;;  %v3062_v11 = vld [vmem:[%s3620_s1 + $0x198] sm:$0xff]   ;;  %v767_v14 = vrot.slane %v3181_v7, 1 }
  0x40   : > { %2605 = vmatprep.subr.bf16.mxu1 %v3045_v21  ;;  %2733 = vmatprep.subr.bf16.mxu0 %v3046_v23 }
  0x41   : > { %2591 = vmatprep.mubr.bf16.mxu1 %v3300_v20  ;;  %2719 = vmatprep.mubr.bf16.mxu0 %v3317_v25  ;;  %v3430_v17 = vsel %vm753_vm1, %v765_v60, %v767_v14  ;;  %v3441_v22 = vsel %vm753_vm1, %v767_v14, %v769_v16 }
  0x43   : > { %2606 = vmatpush3.bf16.msra.mxu1 %v3045_v21  ;;  %2734 = vmatpush3.bf16.msra.mxu0 %v3046_v23  ;;  %v3066_v21 = vld [vmem:[%s3620_s1 + $0x1a8] sm:$0xff]   ;;  %v3067_v23 = vld [vmem:[%s3620_s1 + $0xb0] sm:$0xff]  }
  0x44   : > { %2607 = vmatprep.subr.bf16.mxu1 %v3047_v27  ;;  %2735 = vmatprep.subr.bf16.mxu0 %v3048_v30 }
  0x46   : > { %2592 = vmatmul.mubr.bf16.gmra.mrb[8].mxu1 %v3317_v25  ;;  %2720 = vmatmul.mubr.bf16.gmra.mrb[8].mxu0 %v3330_v33 }
  0x47   : > { %2608 = vmatpush3.bf16.msra.mxu1 %v3047_v27  ;;  %2736 = vmatpush3.bf16.msra.mxu0 %v3048_v30  ;;  %v3455_v27 = vsel %vm753_vm1, %v769_v16, %v1323_v19  ;;  %v3071_v19 = vld [vmem:[%s3620_s1 + $0xc0] sm:$0xff]  }
  0x48   : > { %2609 = vmatprep.subr.bf16.mxu1 %v3049_v34  ;;  %2737 = vmatprep.subr.bf16.mxu0 %v3050_v36  ;;  %v3072_v30 = vld [vmem:[%s3620_s1 + $0x1c0] sm:$0xff]  }
  0x49   : > { %2595 = vmatprep.mubr.bf16.mxu1 %v3330_v33  ;;  %2723 = vmatprep.mubr.bf16.mxu0 %v3342_v37 }
  0x4b   : > { %2610 = vmatpush3.bf16.msra.mxu1 %v3049_v34  ;;  %2738 = vmatpush3.bf16.msra.mxu0 %v3050_v36  ;;  %v3075_v34 = vld [vmem:[%s3620_s1 + $0xd0] sm:$0xff]   ;;  %v3077_v36 = vld [vmem:[%s3620_s1 + $0xd8] sm:$0xff]  }
  0x4c   : > { %2611 = vmatprep.subr.bf16.mxu1 %v3051_v39  ;;  %2739 = vmatprep.subr.bf16.mxu0 %v3052_v41 }
  0x4e   : > { %2596 = vmatmul.mubr.bf16.gmra.mrb[12].mxu1 %v3342_v37  ;;  %2724 = vmatmul.mubr.bf16.gmra.mrb[12].mxu0 %v3356_v44 }
  0x4f   : > { %2612 = vmatpush3.bf16.msra.mxu1 %v3051_v39  ;;  %2740 = vmatpush3.bf16.msra.mxu0 %v3052_v41  ;;  %v3078_v39 = vld [vmem:[%s3620_s1 + $0x1d8] sm:$0xff]   ;;  %v3080_v41 = vld [vmem:[%s3620_s1 + $0x1e0] sm:$0xff]  }
  0x50   : > { %2613 = vmatprep.subr.bf16.mxu1 %v3053_v45  ;;  %2741 = vmatprep.subr.bf16.mxu0 %v3054_v46 }
  0x51   : > { %2615 = vmatprep.mubr.bf16.mxu1 %v3162_v0  ;;  %2743 = vmatprep.mubr.bf16.mxu0 %v3369_v47  ;;  %v756_v0 = vsel %vm753_vm1, %v754_v26, %v755_v42  ;;  %v3081_v42 = vld [vmem:[%s3620_s1 + $0xe8] sm:$0xff]  }
  0x53   : > { %2614 = vmatpush3.bf16.msra.mxu1 %v3053_v45  ;;  %2742 = vmatpush3.bf16.msra.mxu0 %v3054_v46  ;;  %v3083_v45 = vld [vmem:[%s3620_s1 + $0xf0] sm:$0xff]  }
  0x54   : > { %2631 = vmatprep.subr.bf16.mxu1 %v3055_v38  ;;  %2759 = vmatprep.subr.bf16.mxu0 %v3056_v50  ;;  %v3084_v46 = vld [vmem:[%s3620_s1 + $0x1f0] sm:$0xff]  }
  0x56   : > { %2616 = vmatmul.mubr.bf16.vlgmr.msra.gmra.mrb[0].mxu1 %v3164_v1  ;;  %2744 = vmatmul.mubr.bf16.vlgmr.msra.gmra.mrb[0].mxu0 %v3382_v52 }
  0x57   : > { %2632 = vmatpush3.bf16.msra.mxu1 %v3055_v38  ;;  %2760 = vmatpush3.bf16.msra.mxu0 %v3056_v50  ;;  %v3086_v38 = vld [vmem:[%s3620_s1 + $0x1f8] sm:$0xff]   ;;  %v3088_v50 = vld [vmem:[%s3620_s1 + $0x208] sm:$0xff]  }
  0x58   : > { %2633 = vmatprep.subr.bf16.mxu1 %v3057_v53  ;;  %2761 = vmatprep.subr.bf16.mxu0 %v3058_v54 }
  0x59   : > { %2619 = vmatprep.mubr.bf16.mxu1 %v3166_v2  ;;  %2747 = vmatprep.mubr.bf16.mxu0 %v3393_v55 }
  0x5b   : > { %2634 = vmatpush3.bf16.msra.mxu1 %v3057_v53  ;;  %2762 = vmatpush3.bf16.msra.mxu0 %v3058_v54 }
  0x5c   : > { %2635 = vmatprep.subr.bf16.mxu1 %v3059_v56  ;;  %2763 = vmatprep.subr.bf16.mxu0 %v3060_v59 }
  0x5e   : > { %2620 = vmatmul.mubr.bf16.gmra.mrb[4].mxu1 %v3173_v3  ;;  %2748 = vmatmul.mubr.bf16.gmra.mrb[4].mxu0 %v3406_v61 }
  0x5f   : > { %2636 = vmatpush3.bf16.msra.mxu1 %v3059_v56  ;;  %2764 = vmatpush3.bf16.msra.mxu0 %v3060_v59 }
  0x60   : > { %2637 = vmatprep.subr.bf16.mxu1 %v3061_v63  ;;  %2765 = vmatprep.subr.bf16.mxu0 %v3062_v11 }
  0x61   : > { %2623 = vmatprep.mubr.bf16.mxu1 %v3175_v4  ;;  %2751 = vmatprep.mubr.bf16.mxu0 %v3417_v12 }
  0x63   : > { %2638 = vmatpush3.bf16.msra.mxu1 %v3061_v63  ;;  %2766 = vmatpush3.bf16.msra.mxu0 %v3062_v11 }
  0x64   : > { %2639 = vmatprep.subr.bf16.mxu1 %v3063_v13  ;;  %2767 = vmatprep.subr.bf16.mxu0 %v3064_v15 }
  0x66   : > { %2624 = vmatmul.mubr.bf16.gmra.mrb[8].mxu1 %v3177_v5  ;;  %2752 = vmatmul.mubr.bf16.gmra.mrb[8].mxu0 %v3430_v17 }
  0x67   : > { %2640 = vmatpush3.bf16.msra.mxu1 %v3063_v13  ;;  %2768 = vmatpush3.bf16.msra.mxu0 %v3064_v15 }
  0x68   : > { %2641 = vmatprep.subr.bf16.mxu1 %v3065_v18  ;;  %2769 = vmatprep.subr.bf16.mxu0 %v3066_v21 }
  0x69   : > { %2627 = vmatprep.mubr.bf16.mxu1 %v3179_v6  ;;  %2755 = vmatprep.mubr.bf16.mxu0 %v3441_v22 }
  0x6b   : > { %2642 = vmatpush3.bf16.msra.mxu1 %v3065_v18  ;;  %2770 = vmatpush3.bf16.msra.mxu0 %v3066_v21 }
  0x6c   : > { %2643 = vmatprep.subr.bf16.mxu1 %v3067_v23  ;;  %2771 = vmatprep.subr.bf16.mxu0 %v3068_v10 }
  0x6e   : > { %2628 = vmatmul.mubr.bf16.gmra.mrb[12].mxu1 %v3181_v7  ;;  %2756 = vmatmul.mubr.bf16.gmra.mrb[12].mxu0 %v3455_v27 }
  0x6f   : > { %2644 = vmatpush3.bf16.msra.mxu1 %v3067_v23  ;;  %2772 = vmatpush3.bf16.msra.mxu0 %v3068_v10 }
  0x70   : > { %2645 = vmatprep.subr.bf16.mxu1 %v3069_v28  ;;  %2773 = vmatprep.subr.bf16.mxu0 %v3070_v29 }
  0x71   : > { %2647 = vmatprep.mubr.bf16.mxu1 %v756_v0  ;;  %2775 = vmatprep.mubr.bf16.mxu0 %v3166_v2 }
  0x73   : > { %2646 = vmatpush3.bf16.msra.mxu1 %v3069_v28  ;;  %2774 = vmatpush3.bf16.msra.mxu0 %v3070_v29 }
  0x74   : > { %2663 = vmatprep.subr.bf16.mxu1 %v3071_v19  ;;  %2791 = vmatprep.subr.bf16.mxu0 %v3072_v30 }
  0x76   : > { %2648 = vmatmul.mubr.bf16.vlgmr.msra.gmra.mrb[0].mxu1 %v3369_v47  ;;  %2776 = vmatmul.mubr.bf16.vlgmr.msra.gmra.mrb[0].mxu0 %v3173_v3  ;;  %v3085_v47 = vld [vmem:[%s3620_s1 + $0xf8] sm:$0xff]  }
  0x77   : > { %2664 = vmatpush3.bf16.msra.mxu1 %v3071_v19  ;;  %2792 = vmatpush3.bf16.msra.mxu0 %v3072_v30 }
  0x78   : > { %2665 = vmatprep.subr.bf16.mxu1 %v3073_v31  ;;  %2793 = vmatprep.subr.bf16.mxu0 %v3074_v32 }
  0x79   : > { %2651 = vmatprep.mubr.bf16.mxu1 %v3382_v52  ;;  %2779 = vmatprep.mubr.bf16.mxu0 %v3175_v4 }
  0x7b   : > { %2666 = vmatpush3.bf16.msra.mxu1 %v3073_v31  ;;  %2794 = vmatpush3.bf16.msra.mxu0 %v3074_v32 }
  0x7c   : > { %2667 = vmatprep.subr.bf16.mxu1 %v3075_v34  ;;  %2795 = vmatprep.subr.bf16.mxu0 %v3076_v35 }
  0x7e   : > { %2652 = vmatmul.mubr.bf16.gmra.mrb[4].mxu1 %v3393_v55  ;;  %2780 = vmatmul.mubr.bf16.gmra.mrb[4].mxu0 %v3177_v5 }
  0x7f   : > { %2668 = vmatpush3.bf16.msra.mxu1 %v3075_v34  ;;  %2796 = vmatpush3.bf16.msra.mxu0 %v3076_v35 }
  0x80   : > { %2669 = vmatprep.subr.bf16.mxu1 %v3077_v36  ;;  %2797 = vmatprep.subr.bf16.mxu0 %v3078_v39 }
  0x81   : > { %2655 = vmatprep.mubr.bf16.mxu1 %v3406_v61  ;;  %2783 = vmatprep.mubr.bf16.mxu0 %v3179_v6 }
  0x83   : > { %2670 = vmatpush3.bf16.msra.mxu1 %v3077_v36  ;;  %2798 = vmatpush3.bf16.msra.mxu0 %v3078_v39 }
  0x84   : > { %2671 = vmatprep.subr.bf16.mxu1 %v3079_v40  ;;  %2799 = vmatprep.subr.bf16.mxu0 %v3080_v41 }
  0x86   : > { %2656 = vmatmul.mubr.bf16.gmra.mrb[8].mxu1 %v3417_v12  ;;  %2784 = vmatmul.mubr.bf16.gmra.mrb[8].mxu0 %v3181_v7 }
  0x87   : > { %2672 = vmatpush3.bf16.msra.mxu1 %v3079_v40  ;;  %2800 = vmatpush3.bf16.msra.mxu0 %v3080_v41 }
  0x88   : > { %2673 = vmatprep.subr.bf16.mxu1 %v3081_v42  ;;  %2801 = vmatprep.subr.bf16.mxu0 %v3082_v43 }
  0x89   : > { %2659 = vmatprep.mubr.bf16.mxu1 %v3430_v17  ;;  %2787 = vmatprep.mubr.bf16.mxu0 %v3183_v8 }
  0x8b   : > { %2674 = vmatpush3.bf16.msra.mxu1 %v3081_v42  ;;  %2802 = vmatpush3.bf16.msra.mxu0 %v3082_v43 }
  0x8c   : > { %2675 = vmatprep.subr.bf16.mxu1 %v3083_v45  ;;  %2803 = vmatprep.subr.bf16.mxu0 %v3084_v46 }
  0x8e   : > { %2660 = vmatmul.mubr.bf16.gmra.mrb[12].mxu1 %v3441_v22  ;;  %2788 = vmatmul.mubr.bf16.gmra.mrb[12].mxu0 %v3185_v9 }
  0x8f   : > { %2676 = vmatpush3.bf16.msra.mxu1 %v3083_v45  ;;  %2804 = vmatpush3.bf16.msra.mxu0 %v3084_v46 }
  0x90   : > { %2677 = vmatprep.subr.bf16.mxu1 %v3085_v47  ;;  %2805 = vmatprep.subr.bf16.mxu0 %v3086_v38 }
  0x91   : > { %2679 = vmatprep.mubr.bf16.mxu1 %v3164_v1  ;;  %2807 = vmatprep.mubr.bf16.mxu0 %v3272_v57  ;;  %v3089_v1 = vld [vmem:[%s3620_s1 + $0x210] sm:$0xff]  }
  0x93   : > { %2678 = vmatpush3.bf16.msra.mxu1 %v3085_v47  ;;  %2806 = vmatpush3.bf16.msra.mxu0 %v3086_v38 }
  0x94   : > { %2855 = vmatprep.subr.bf16.mxu1 %v3087_v48  ;;  %2823 = vmatprep.subr.bf16.mxu0 %v3087_v48 }
  0x96   : > { %2680 = vmatmul.mubr.bf16.vlgmr.msra.gmra.mrb[0].mxu1 %v3166_v2  ;;  %2808 = vmatmul.mubr.bf16.vlgmr.msra.gmra.mrb[0].mxu0 %v3285_v62  ;;  %v3090_v2 = vld [vmem:[%s3620_s1 + $0x218] sm:$0xff]  }
  0x97   : > { %2863 = vmatpush3.bf16.msra.mxu1 %v3087_v48  ;;  %2824 = vmatpush3.bf16.msra.mxu0 %v3087_v48 }
  0x98   : > { %2856 = vmatprep.subr.bf16.mxu1 %v3088_v50  ;;  %2825 = vmatprep.subr.bf16.mxu0 %v3088_v50 }
  0x99   : > { %2683 = vmatprep.mubr.bf16.mxu1 %v3173_v3  ;;  %2811 = vmatprep.mubr.bf16.mxu0 %v3300_v20  ;;  %v3091_v3 = vld [vmem:[%s3620_s1 + $0x220] sm:$0xff]  }
  0x9b   : > { %2864 = vmatpush3.bf16.msra.mxu1 %v3088_v50  ;;  %2826 = vmatpush3.bf16.msra.mxu0 %v3088_v50 }
  0x9c   : > { %2857 = vmatprep.subr.bf16.mxu1 %v3089_v1  ;;  %2827 = vmatprep.subr.bf16.mxu0 %v3089_v1 }
  0x9e   : > { %2684 = vmatmul.mubr.bf16.gmra.mrb[4].mxu1 %v3175_v4  ;;  %2812 = vmatmul.mubr.bf16.gmra.mrb[4].mxu0 %v3317_v25  ;;  %v3092_v4 = vld [vmem:[%s3620_s1 + $0x228] sm:$0xff]  }
  0x9f   : > { %2865 = vmatpush3.bf16.msra.mxu1 %v3089_v1  ;;  %2828 = vmatpush3.bf16.msra.mxu0 %v3089_v1 }
  0xa0   : > { %2858 = vmatprep.subr.bf16.mxu1 %v3090_v2  ;;  %2829 = vmatprep.subr.bf16.mxu0 %v3090_v2 }
  0xa1   : > { %2687 = vmatprep.mubr.bf16.mxu1 %v3177_v5  ;;  %2815 = vmatprep.mubr.bf16.mxu0 %v3330_v33  ;;  %v3093_v5 = vld [vmem:[%s3620_s1 + $0x230] sm:$0xff]  }
  0xa3   : > { %2866 = vmatpush3.bf16.msra.mxu1 %v3090_v2  ;;  %2830 = vmatpush3.bf16.msra.mxu0 %v3090_v2 }
  0xa4   : > { %2859 = vmatprep.subr.bf16.mxu1 %v3091_v3  ;;  %2831 = vmatprep.subr.bf16.mxu0 %v3091_v3 }
  0xa6   : > { %2688 = vmatmul.mubr.bf16.gmra.mrb[8].mxu1 %v3179_v6  ;;  %2816 = vmatmul.mubr.bf16.gmra.mrb[8].mxu0 %v3342_v37  ;;  %v3094_v6 = vld [vmem:[%s3620_s1 + $0x238] sm:$0xff]  }
  0xa7   : > { %2867 = vmatpush3.bf16.msra.mxu1 %v3091_v3  ;;  %2832 = vmatpush3.bf16.msra.mxu0 %v3091_v3 }
  0xa8   : > { %2860 = vmatprep.subr.bf16.mxu1 %v3092_v4  ;;  %2833 = vmatprep.subr.bf16.mxu0 %v3092_v4 }
  0xa9   : > { %2691 = vmatprep.mubr.bf16.mxu1 %v3181_v7  ;;  %2819 = vmatprep.mubr.bf16.mxu0 %v3356_v44 }
  0xab   : > { %2868 = vmatpush3.bf16.msra.mxu1 %v3092_v4  ;;  %2834 = vmatpush3.bf16.msra.mxu0 %v3092_v4 }
  0xac   : > { %2861 = vmatprep.subr.bf16.mxu1 %v3093_v5  ;;  %2835 = vmatprep.subr.bf16.mxu0 %v3093_v5 }
  0xae   : > { %2692 = vmatmul.mubr.bf16.gmra.mrb[12].mxu1 %v3183_v8  ;;  %2820 = vmatmul.mubr.bf16.gmra.mrb[12].mxu0 %v3261_v49 }
  0xaf   : > { %2869 = vmatpush3.bf16.msra.mxu1 %v3093_v5  ;;  %2836 = vmatpush3.bf16.msra.mxu0 %v3093_v5 }
  0xb0   : > { %2862 = vmatprep.subr.bf16.mxu1 %v3094_v6  ;;  %2837 = vmatprep.subr.bf16.mxu0 %v3094_v6 }
  0xb1   : > { %2839 = vmatprep.mubr.bf16.mxu0 %v3382_v52  ;;  %2847 = vmatprep.mubr.bf16.mxu1 %v3430_v17 }
  0xb3   : > { %2870 = vmatpush3.bf16.msra.mxu1 %v3094_v6  ;;  %2838 = vmatpush3.bf16.msra.mxu0 %v3094_v6 }
  0xb6   : > { %2848 = vmatmul.mubr.bf16.vlgmr.msra.gmra.mrb[16].mxu1 %v3441_v22  ;;  %2840 = vmatmul.mubr.bf16.vlgmr.msra.gmra.mrb[0].mxu0 %v3393_v55  ;;  %v2414_v22 = vld [vmem:[%s3621_s2] ss:$0 sm:$0xff] }
  0xb7   : > { %2851 = vmatprep.mubr.bf16.mxu1 %v3455_v27  ;;  %2843 = vmatprep.mubr.bf16.mxu0 %v3406_v61 }
  0xbe   : > { %2852 = vmatmul.mubr.bf16.gmra.mrb[20].mxu1 %v3313_v24  ;;  %2844 = vmatmul.mubr.bf16.gmra.mrb[4].mxu0 %v3417_v12 }
 0x169   : > { %v2681_v7 = vpop.f32.mrb[0].mxu1 }
 0x16a   : > { %v1039_v8 = vpop.f32.mrb[1].mxu1 }
 0x16b   : > { %v2682_v9 = vpop.f32.mrb[2].mxu1 }
 0x16c   : > { %v1042_v49 = vpop.f32.mrb[3].mxu1 }
 0x171   : > { %v3579_v57 = vpop.f32.mrb[4].mxu1 }
 0x172   : > { %v3581_v62 = vpop.f32.mrb[5].mxu1 }
 0x173   : > { %v3583_v20 = vpop.f32.mrb[6].mxu1 }
 0x174   : > { %v3585_v25 = vpop.f32.mrb[7].mxu1 }
 0x179   : > { %v2689_v33 = vpop.f32.mrb[8].mxu1  ;;  %v2817_v37 = vpop.f32.mrb[8].mxu0 }
 0x17a   : > { %v1071_v44 = vpop.f32.mrb[9].mxu1  ;;  %v2879_v51 = vadd.f32 %v2817_v37, %v2689_v33  ;;  %v1805_v52 = vpop.f32.mrb[9].mxu0 }
 0x17b   : > { %v2690_v24 = vpop.f32.mrb[10].mxu1  ;;  %v2881_v53 = vadd.f32 %v1805_v52, %v1071_v44  ;;  %v2818_v54 = vpop.f32.mrb[10].mxu0 }
 0x17c   : > { %v1074_v55 = vpop.f32.mrb[11].mxu1  ;;  %v2883_v56 = vadd.f32 %v2818_v54, %v2690_v24  ;;  %v1808_v58 = vpop.f32.mrb[11].mxu0 }
 0x17d   : > { %v2885_v59 = vadd.f32 %v1808_v58, %v1074_v55 }
 0x181   : > { %v2693_v60 = vpop.f32.mrb[12].mxu1  ;;  %v2821_v61 = vpop.f32.mrb[12].mxu0 }
 0x182   : > { %v1087_v63 = vpop.f32.mrb[13].mxu1  ;;  %v2887_v11 = vadd.f32 %v2821_v61, %v2693_v60  ;;  %v1821_v12 = vpop.f32.mrb[13].mxu0 }
 0x183   : > { %v2694_v13 = vpop.f32.mrb[14].mxu1  ;;  %v2889_v14 = vadd.f32 %v1821_v12, %v1087_v63  ;;  %v2822_v15 = vpop.f32.mrb[14].mxu0 }
 0x184   : > { %v1090_v16 = vpop.f32.mrb[15].mxu1  ;;  %v2891_v17 = vadd.f32 %v2822_v15, %v2694_v13  ;;  %v1824_v18 = vpop.f32.mrb[15].mxu0 }
 0x185   : > { %v2893_v21 = vadd.f32 %v1824_v18, %v1090_v16 }
 0x189   : > { %v2849_v23 = vpop.f32.mrb[16].mxu1  ;;  %v2841_v10 = vpop.f32.mrb[0].mxu0 }
 0x18a   : > { %v2880_v26 = vadd.f32 %v2879_v51, %v2849_v23  ;;  %v1987_v27 = vpop.f32.mrb[17].mxu1  ;;  %v2871_v28 = vadd.f32 %v2841_v10, %v2681_v7  ;;  %v1955_v29 = vpop.f32.mrb[1].mxu0 }
 0x18b   : > { %v2882_v0 = vadd.f32 %v2881_v53, %v1987_v27  ;;  %v2850_v19 = vpop.f32.mrb[18].mxu1  ;;  %v2872_v31 = vadd.f32 %v1955_v29, %v1039_v8  ;;  %v2842_v32 = vpop.f32.mrb[2].mxu0 }
 0x18c   : > { %v2051_v30 = vadd.f32 %v2880_v26, %v2414_v22  ;;  %v2884_v34 = vadd.f32 %v2883_v56, %v2850_v19  ;;  %v1990_v35 = vpop.f32.mrb[19].mxu1  ;;  %v2043_v36 = vadd.f32 %v2871_v28, %v2414_v22  ;;  %v2873_v40 = vadd.f32 %v2842_v32, %v2682_v9  ;;  %v1958_v41 = vpop.f32.mrb[3].mxu0 }
 0x18d   : > { %v2049_v39 = vadd.f32 %v2882_v0, %v2414_v22  ;;  %v2886_v42 = vadd.f32 %v2885_v59, %v1990_v35  ;;  %v2041_v43 = vadd.f32 %v2872_v31, %v2414_v22  ;;  %v2874_v46 = vadd.f32 %v1958_v41, %v1042_v49 }
 0x18e   : > { %2067 = vst [vmem:[%s3171_s23 + $0x50] sm:$0xff] %v2051_v30  ;;  %v2052_v45 = vadd.f32 %v2884_v34, %v2414_v22  ;;  %2059 = vst [vmem:[%s3171_s23 + $0x10] sm:$0xff] %v2043_v36  ;;  %v2044_v47 = vadd.f32 %v2873_v40, %v2414_v22 }
 0x18f   : > { %2065 = vst [vmem:[%s3171_s23 + $0x40] sm:$0xff] %v2049_v39  ;;  %v2050_v38 = vadd.f32 %v2886_v42, %v2414_v22  ;;  %2057 = vst [vmem:[%s3171_s23] sm:$0xff] %v2041_v43  ;;  %v2042_v48 = vadd.f32 %v2874_v46, %v2414_v22 }
 0x190   : > { %2068 = vst [vmem:[%s3171_s23 + $0x58] sm:$0xff] %v2052_v45  ;;  %2060 = vst [vmem:[%s3171_s23 + $0x18] sm:$0xff] %v2044_v47 }
 0x191   : > { %2066 = vst [vmem:[%s3171_s23 + $0x48] sm:$0xff] %v2050_v38  ;;  %v2853_v50 = vpop.f32.mrb[20].mxu1  ;;  %2058 = vst [vmem:[%s3171_s23 + $0x8] sm:$0xff] %v2042_v48  ;;  %v2845_v1 = vpop.f32.mrb[4].mxu0 }
 0x192   : > { %v2888_v2 = vadd.f32 %v2887_v11, %v2853_v50  ;;  %v2003_v3 = vpop.f32.mrb[21].mxu1  ;;  %v2875_v4 = vadd.f32 %v2845_v1, %v3579_v57  ;;  %v1971_v5 = vpop.f32.mrb[5].mxu0 }
 0x193   : > { %v2890_v6 = vadd.f32 %v2889_v14, %v2003_v3  ;;  %v2854_v7 = vpop.f32.mrb[22].mxu1  ;;  %v2876_v9 = vadd.f32 %v1971_v5, %v3581_v62  ;;  %v2846_v49 = vpop.f32.mrb[6].mxu0 }
 0x194   : > { %v2055_v8 = vadd.f32 %v2888_v2, %v2414_v22  ;;  %v2892_v33 = vadd.f32 %v2891_v17, %v2854_v7  ;;  %v2006_v37 = vpop.f32.mrb[23].mxu1  ;;  %v2047_v44 = vadd.f32 %v2875_v4, %v2414_v22  ;;  %v2877_v52 = vadd.f32 %v2846_v49, %v3583_v20  ;;  %v1974_v57 = vpop.f32.mrb[7].mxu0 }
 0x195   : > { %v2053_v51 = vadd.f32 %v2890_v6, %v2414_v22  ;;  %v2894_v24 = vadd.f32 %v2893_v21, %v2006_v37  ;;  %v2045_v53 = vadd.f32 %v2876_v9, %v2414_v22  ;;  %v2878_v55 = vadd.f32 %v1974_v57, %v3585_v25 }
 0x196   : > { %2071 = vst [vmem:[%s3171_s23 + $0x70] sm:$0xff] %v2055_v8  ;;  %v2056_v54 = vadd.f32 %v2892_v33, %v2414_v22  ;;  %2063 = vst [vmem:[%s3171_s23 + $0x30] sm:$0xff] %v2047_v44  ;;  %v2048_v62 = vadd.f32 %v2877_v52, %v2414_v22 }
 0x197   : > { %2069 = vst [vmem:[%s3171_s23 + $0x60] sm:$0xff] %v2053_v51  ;;  %v2054_v56 = vadd.f32 %v2894_v24, %v2414_v22  ;;  %2061 = vst [vmem:[%s3171_s23 + $0x20] sm:$0xff] %v2045_v53  ;;  %v2046_v58 = vadd.f32 %v2878_v55, %v2414_v22 }
 0x198   : > { %2072 = vst [vmem:[%s3171_s23 + $0x78] sm:$0xff] %v2056_v54  ;;  %2064 = vst [vmem:[%s3171_s23 + $0x38] sm:$0xff] %v2048_v62 }
 0x199   : > { %2070 = vst [vmem:[%s3171_s23 + $0x68] sm:$0xff] %v2054_v56  ;;  %2062 = vst [vmem:[%s3171_s23 + $0x28] sm:$0xff] %v2046_v58 }
 0x19a PF: > { %s13_s14 = sadd.s32 1, %s3119_s14   ;;  %s3623_s12 = smov %s3115_s13 }
 0x19b   : > { %p10_p5 = scmp.ge.s32.totalorder %s13_s14, 4   ;;  %s3624_s13 = smov %s3626_s15 }
 0x19d   :  { %12 = sbr.rel (!%p10_p5) target bundleno = 2 (0x2), region = 164 }
 0x1a4   :  { %2105 = vsyncmov [#allocation3] }
 0x1a7   :  { %s2106_s5 = vpop.sfrf %2105 }
 0x1a8   :  { %p2417_p6 = scmp.ne.s32.totalorder %s2106_s5, 0 }
 0x1aa   :  { %2110 = shalt.err (%p2417_p6)  }
 0x1ab   :  { %2112 = vsyncmov [#allocation3 + $0x1] }
 0x1ae   :  { %s2113_s6 = vpop.sfrf %2112 }
 0x1af   :  { %p2418_p7 = scmp.ne.s32.totalorder %s2113_s6, 0 }
 0x1b1   :  { %2117 = shalt.err (%p2418_p7)  }

// kernel: fpn_forward.13
= control target key start
LH: loop header
LB: loop body
LE: loop exit
PB: predicated region body
PF: predicated region fallthrough
CT: control target
= control target key end

     0   :  { %s2302_s12 = smov 0   ;;  %s2304_s13 = smov 0   ;;  %s2640_s0 = inlined_call_operand.vmem [shape: bf16[2,56,128], index: 0, kind: input, shape index: {}]   ;;  %s2641_s1 = inlined_call_operand.vmem [shape: bf16[9,128,128], index: 1, kind: input, shape index: {}]   ;;  %s2642_s2 = inlined_call_operand.vmem [shape: f32[1,128], index: 2, kind: input, shape index: {}]   ;;  %s2643_s3 = inlined_call_operand.vmem [shape: f32[2,4,8,128], index: 3, kind: output, shape index: {}]  }
   0x1   :  { %s2306_s14 = smov 0  }
   0x2 LB: > { %s25_s15 = sadd.s32 1, %s2276_s13  ;;  %p1619_p0 = scmp.ge.s32.totalorder %s2280_s14, 1  ;;  %s2280_s14 = sphi %s2306_s14, %s13_s14   ;;  %s2276_s13 = sphi %s2304_s13, %s2645_s13   ;;  %s2272_s12 = sphi %s2302_s12, %s2644_s12  }
   0x3   : > { %p27_p1 = scmp.ge.s32.totalorder %s25_s15, 2  ;;  %p117_p2 = scmp.lt.s32.totalorder %s2280_s14, 3 }
   0x5   : > { %s2647_s15 = smov (%p27_p1, %s25_s15), 0  ;;  %p118_p3 = pnand %p1619_p0, %p117_p2 }
   0x6   : > { %p139_p4 = scmp.lt.s32.totalorder (!%p118_p3), %s2272_s12, 1  ;;  %s1847_s16 = smul.u32 (!%p118_p3), 28, %s2272_s12 }
   0x7   : > { %121 = sbr.rel (%p118_p3) target bundleno = 401 (0x191), region = 28 }
   0x8   : > { %s160_s19 = scalar_lea.vmem (!%p118_p3), %s2640_s0, %s1847_s16 }
   0x9   : > { %v202_v0 = vld [vmem:[%s160_s19] sm:$0xff] (!%p118_p3)  ;;  %v204_v1 = vld [vmem:[%s160_s19 + $0x8] sm:$0xff] (!%p118_p3)  ;;  %v206_v2 = vld [vmem:[%s160_s19 + $0x10] sm:$0xff] (!%p118_p3) }
   0xa   : > { %203 = vst [vmem:[#allocation2] sm:$0xff] (!%p118_p3), %v202_v0  ;;  %205 = vst [vmem:[#allocation2 + $0x8] sm:$0xff] (!%p118_p3), %v204_v1  ;;  %v1623_v3 = vld [vmem:[%s160_s19 + $0x18] sm:$0xf] (!%p118_p3) }
   0xb   : > { %207 = vst [vmem:[#allocation2 + $0x10] sm:$0xff] (!%p118_p3), %v206_v2  ;;  %1624 = vst [vmem:[#allocation2 + $0x18] sm:$0xf] (!%p118_p3), %v1623_v3 }
   0xe   : > { %s2649_s12 = smov (!%p139_p4, %s2272_s12), 1 }
   0xf   : > { %s1846_s20 = sshll.u32 %s2649_s12, 5 }
  0x10   : > { %s2326_s23 = scalar_lea.vmem %s2643_s3, %s1846_s20 }
  0x11   : > { %222 = vsyncadd [#allocation3], 448 }
  0x12   : > { %2268 = dma.done.wait [#allocation3], 448 }
  0x13   : > { %2269 = vsyncadd [#allocation3], 4294966848  ;;  %v2176_v4 = vld [vmem:[%s2641_s1 + $0x40] sm:$0xff]   ;;  %v2178_v6 = vld [vmem:[%s2641_s1 + $0x48] sm:$0xff]   ;;  %vm359_vm0 = vsmask.f32 7424 }
  0x14   : > { %v2177_v5 = vld [vmem:[%s2641_s1 + $0x100] sm:$0xff]   ;;  %1940 = vmatprep.subr.bf16.mxu1 %v2176_v4  ;;  %v2179_v7 = vld [vmem:[%s2641_s1 + $0x108] sm:$0xff]   ;;  %v2180_v8 = vld [vmem:[%s2641_s1 + $0x50] sm:$0xff]   ;;  %vm595_vm1 = vcmask 1046528  }
  0x15   : > { %2020 = vmatprep.subr.bf16.mxu0 %v2177_v5  ;;  %1941 = vmatpush3.bf16.msra.mxu1 %v2176_v4  ;;  %v2181_v9 = vld [vmem:[%s2641_s1 + $0x110] sm:$0xff]   ;;  %v2182_v10 = vld [vmem:[%s2641_s1 + $0x58] sm:$0xff]   ;;  %v2184_v12 = vld [vmem:[%s2641_s1 + $0x60] sm:$0xff]  }
  0x16   : > { %2021 = vmatpush3.bf16.msra.mxu0 %v2177_v5  ;;  %1942 = vmatprep.subr.bf16.mxu1 %v2178_v6  ;;  %v2183_v11 = vld [vmem:[%s2641_s1 + $0x118] sm:$0xff]   ;;  %v2185_v13 = vld [vmem:[%s2641_s1 + $0x120] sm:$0xff]   ;;  %v2186_v14 = vld [vmem:[%s2641_s1 + $0x68] sm:$0xff]  }
  0x17   : > { %2022 = vmatprep.subr.bf16.mxu0 %v2179_v7  ;;  %v2187_v15 = vld [vmem:[%s2641_s1 + $0x128] sm:$0xff]   ;;  %v306_v16 = vld [vmem:[#allocation2] sm:$0xf]  ;;  %v307_v17 = vld [vmem:[#allocation2 + $0x4] sm:$0xf] }
  0x18   : > { %v308_v18 = vld [vmem:[#allocation2 + $0x8] sm:$0xf]  ;;  %v309_v19 = vld [vmem:[#allocation2 + $0xc] sm:$0xf]  ;;  %v2364_v20 = vcombine.low %v306_v16, %v307_v17  ;;  %v310_v23 = vld [vmem:[#allocation2 + $0x10] sm:$0xf] }
  0x19   : > { %1943 = vmatpush3.bf16.msra.mxu1 %v2178_v6  ;;  %v2366_v21 = vcombine.low %v307_v17, %v308_v18  ;;  %v2368_v22 = vcombine.low %v308_v18, %v309_v19  ;;  %v2372_v26 = vcombine.low %v309_v19, %v310_v23  ;;  %v2188_v27 = vld [vmem:[%s2641_s1 + $0x70] sm:$0xff]   ;;  %v2380_v31 = vcombine.low %v310_v23, %v310_v23  ;;  %v2190_v37 = vld [vmem:[%s2641_s1 + $0x78] sm:$0xff]   ;;  %v2194_v53 = vld [vmem:[%s2641_s1] sm:$0xff]  }
  0x1a   : > { %2023 = vmatpush3.bf16.msra.mxu0 %v2179_v7  ;;  %1944 = vmatprep.subr.bf16.mxu1 %v2180_v8  ;;  %v361_v24 = vshrl.u32 %v2364_v20, 16  ;;  %v363_v25 = vshll.u32 %v2364_v20, 16  ;;  %v311_v32 = vld [vmem:[#allocation2 + $0x14] sm:$0xf]  ;;  %v2191_v48 = vld [vmem:[%s2641_s1 + $0x138] sm:$0xff]   ;;  %v2197_v56 = vld [vmem:[%s2641_s1 + $0x140] sm:$0xff]  }
  0x1b   : > { %2024 = vmatprep.subr.bf16.mxu0 %v2181_v9  ;;  %v368_v28 = vshll.u32 %v2368_v22, 16  ;;  %v847_v29 = vshrl.u32 %v2366_v21, 16  ;;  %v849_v30 = vshll.u32 %v2366_v21, 16  ;;  %v2189_v33 = vld [vmem:[%s2641_s1 + $0x130] sm:$0xff]   ;;  %v854_v35 = vshll.u32 %v2372_v26, 16  ;;  %v2200_v61 = vld [vmem:[%s2641_s1 + $0x8] sm:$0xff]  }
  0x1c   : > { %v365_v34 = vrot.slane %v363_v25, 1  ;;  %v2386_v36 = vcombine.low %v311_v32, %v311_v32  ;;  %v372_v40 = vshrl.u32 %v2368_v22, 16  ;;  %v2392_v41 = vcombine.low %v310_v23, %v311_v32  ;;  %v2201_v62 = vld [vmem:[%s2641_s1 + $0x148] sm:$0xff]   ;;  %v2202_v0 = vld [vmem:[%s2641_s1 + $0x10] sm:$0xff]   ;;  %v2212_v16 = vld [vmem:[%s2641_s1 + $0x38] sm:$0xff]  }
  0x1d   : > { %1945 = vmatpush3.bf16.msra.mxu1 %v2180_v8  ;;  %v370_v38 = vrot.slane %v368_v28, 1  ;;  %v851_v39 = vrot.slane %v849_v30, 1  ;;  %v856_v43 = vrot.slane %v854_v35, 1  ;;  %v376_v44 = vshll.u32 %v2380_v31, 16  ;;  %v2203_v5 = vld [vmem:[%s2641_s1 + $0x150] sm:$0xff]   ;;  %v2204_v8 = vld [vmem:[%s2641_s1 + $0x18] sm:$0xff]  }
  0x1e   : > { %2025 = vmatpush3.bf16.msra.mxu0 %v2181_v9  ;;  %1946 = vmatprep.subr.bf16.mxu1 %v2182_v10  ;;  %v366_v42 = vor.u32 %v365_v34, %v361_v24  ;;  %v858_v46 = vshrl.u32 %v2372_v26, 16  ;;  %v862_v47 = vshll.u32 %v2386_v36, 16  ;;  %v986_v58 = vrot.slane %v2366_v21, 1  ;;  %v2205_v9 = vld [vmem:[%s2641_s1 + $0x158] sm:$0xff]   ;;  %v2214_v18 = vld [vmem:[%s2641_s1 + $0x80] sm:$0xff]   ;;  %v2217_v28 = vld [vmem:[%s2641_s1 + $0x188] sm:$0xff]  }
  0x1f   : > { %2026 = vmatprep.subr.bf16.mxu0 %v2183_v11  ;;  %v852_v45 = vor.u32 %v851_v39, %v847_v29  ;;  %v374_v51 = vor.u32 %v372_v40, %v370_v38  ;;  %v378_v52 = vrot.slane %v376_v44, 1  ;;  %v987_v59 = vrot.slane %v2372_v26, 1  ;;  %v2213_v17 = vld [vmem:[%s2641_s1 + $0x178] sm:$0xff]   ;;  %v2215_v23 = vld [vmem:[%s2641_s1 + $0x180] sm:$0xff]   ;;  %v2218_v29 = vld [vmem:[%s2641_s1 + $0x90] sm:$0xff]  }
  0x20   : > { %v371_v49 = vsel %vm359_vm0, %v366_v42, %v370_v38  ;;  %v860_v54 = vor.u32 %v858_v46, %v856_v43  ;;  %v864_v55 = vrot.slane %v862_v47, 1  ;;  %v1235_v63 = vshll.u32 %v2392_v41, 16  ;;  %v2219_v32 = vld [vmem:[%s2641_s1 + $0x190] sm:$0xff]   ;;  %v2221_v38 = vld [vmem:[%s2641_s1 + $0x198] sm:$0xff]   ;;  %v2222_v42 = vld [vmem:[%s2641_s1 + $0xa0] sm:$0xff]  }
  0x21   : > { %1947 = vmatpush3.bf16.msra.mxu1 %v2182_v10  ;;  %1956 = vmatprep.mubr.bf16.mxu1 %v371_v49  ;;  %v857_v50 = vsel %vm359_vm0, %v852_v45, %v856_v43  ;;  %v379_v57 = vsel %vm359_vm0, %v374_v51, %v378_v52  ;;  %v988_v1 = vsel %vm595_vm1, %v986_v58, %v987_v59  ;;  %v2428_v3 = vrot.slane %v2368_v22, 1  ;;  %v2206_v10 = vld [vmem:[%s2641_s1 + $0x20] sm:$0xff]   ;;  %v2224_v44 = vld [vmem:[%s2641_s1 + $0xa8] sm:$0xff]   ;;  %v2226_v46 = vld [vmem:[%s2641_s1 + $0xb0] sm:$0xff]  }
  0x22   : > { %2027 = vmatpush3.bf16.msra.mxu0 %v2183_v11  ;;  %1948 = vmatprep.subr.bf16.mxu1 %v2184_v12  ;;  %v865_v60 = vsel %vm359_vm0, %v860_v54, %v864_v55  ;;  %v2425_v2 = vrot.slane %v1235_v63, 1  ;;  %v1367_v4 = vrot.slane %v2392_v41, 1  ;;  %v2207_v11 = vld [vmem:[%s2641_s1 + $0x160] sm:$0xff]   ;;  %v989_v19 = vrot.slane %v2386_v36, 1  ;;  %v2220_v36 = vld [vmem:[%s2641_s1 + $0x98] sm:$0xff]   ;;  %v2225_v45 = vld [vmem:[%s2641_s1 + $0x1a8] sm:$0xff]  }
  0x23   : > { %2028 = vmatprep.subr.bf16.mxu0 %v2185_v13  ;;  %2036 = vmatprep.mubr.bf16.mxu0 %v857_v50  ;;  %v596_v24 = vrot.slane %v2364_v20, 1  ;;  %v1239_v30 = vshrl.u32 %v2392_v41, 16  ;;  %v2223_v43 = vld [vmem:[%s2641_s1 + $0x1a0] sm:$0xff]   ;;  %v2227_v47 = vld [vmem:[%s2641_s1 + $0x1b0] sm:$0xff]   ;;  %v2229_v49 = vld [vmem:[%s2641_s1 + $0x1b8] sm:$0xff]   ;;  %v599_v50 = vrot.slane %v2380_v31, 1 }
  0x24   : > { %v2437_v6 = vsel %vm359_vm0, %v374_v51, %v2425_v2  ;;  %v2443_v7 = vsel %vm595_vm1, %v2428_v3, %v1367_v4  ;;  %v990_v25 = vsel %vm595_vm1, %v987_v59, %v989_v19  ;;  %v2230_v51 = vld [vmem:[%s2641_s1 + $0xc0] sm:$0xff]   ;;  %v2233_v31 = vld [vmem:[%s2641_s1 + $0xc8] sm:$0xff]   ;;  %v2235_v55 = vld [vmem:[%s2641_s1 + $0xd0] sm:$0xff]  }
  0x25   : > { %1949 = vmatpush3.bf16.msra.mxu1 %v2184_v12  ;;  %v2208_v12 = vld [vmem:[%s2641_s1 + $0x28] sm:$0xff]   ;;  %v1241_v34 = vor.u32 %v1239_v30, %v2425_v2  ;;  %v2231_v52 = vld [vmem:[%s2641_s1 + $0x1c0] sm:$0xff]   ;;  %v2245_v63 = vld [vmem:[%s2641_s1 + $0xf8] sm:$0xff]  }
  0x26   : > { %2029 = vmatpush3.bf16.msra.mxu0 %v2185_v13  ;;  %1950 = vmatprep.subr.bf16.mxu1 %v2186_v14  ;;  %v2209_v13 = vld [vmem:[%s2641_s1 + $0x168] sm:$0xff]   ;;  %v2240_v58 = vld [vmem:[%s2641_s1 + $0x1e0] sm:$0xff]  }
  0x27   : > { %2030 = vmatprep.subr.bf16.mxu0 %v2187_v15  ;;  %v2234_v54 = vld [vmem:[%s2641_s1 + $0x1c8] sm:$0xff]  }
  0x28   : > { %v2241_v59 = vld [vmem:[%s2641_s1 + $0xe8] sm:$0xff]  }
  0x29   : > { %1951 = vmatpush3.bf16.msra.mxu1 %v2186_v14  ;;  %v2210_v14 = vld [vmem:[%s2641_s1 + $0x30] sm:$0xff]   ;;  %v2249_v2 = vld [vmem:[%s2641_s1 + $0x208] sm:$0xff]  }
  0x2a   : > { %2031 = vmatpush3.bf16.msra.mxu0 %v2187_v15  ;;  %1952 = vmatprep.subr.bf16.mxu1 %v2188_v27  ;;  %v2211_v15 = vld [vmem:[%s2641_s1 + $0x170] sm:$0xff]  }
  0x2b   : > { %2032 = vmatprep.subr.bf16.mxu0 %v2189_v33 }
  0x2d   : > { %1953 = vmatpush3.bf16.msra.mxu1 %v2188_v27  ;;  %v2216_v27 = vld [vmem:[%s2641_s1 + $0x88] sm:$0xff]  }
  0x2e   : > { %2033 = vmatpush3.bf16.msra.mxu0 %v2189_v33  ;;  %1954 = vmatprep.subr.bf16.mxu1 %v2190_v37  ;;  %v2248_v33 = vld [vmem:[#allocation2 + $0x18] ss:$0 sps:$4 sm:$0xff]  }
  0x2f   : > { %2034 = vmatprep.subr.bf16.mxu0 %v2191_v48  ;;  %v1243_v35 = vshll.u32 %v2248_v33, 16 }
  0x31   : > { %1955 = vmatpush3.bf16.msra.mxu1 %v2190_v37  ;;  %v1369_v37 = vrot.slane %v2248_v33, 1  ;;  %v1245_v39 = vrot.slane %v1243_v35, 1 }
  0x32   : > { %2035 = vmatpush3.bf16.msra.mxu0 %v2191_v48  ;;  %1960 = vmatprep.subr.bf16.mxu1 %v2194_v53  ;;  %v2228_v48 = vld [vmem:[%s2641_s1 + $0xb8] sm:$0xff]  }
  0x33   : > { %2040 = vmatprep.subr.bf16.mxu0 %v2197_v56  ;;  %v2516_v40 = vsel %vm359_vm0, %v1241_v34, %v1245_v39 }
  0x34   : > { %1957 = vmatmul.mubr.bf16.vlgmr.msra.gmra.mrb[0].mxu1 %v379_v57  ;;  %v2238_v57 = vld [vmem:[%s2641_s1 + $0x1d8] sm:$0xff]  }
  0x35   : > { %1961 = vmatpush3.bf16.msra.mxu1 %v2194_v53  ;;  %2037 = vmatmul.mubr.bf16.vlgmr.msra.gmra.mrb[0].mxu0 %v865_v60  ;;  %v600_v53 = vsel %vm595_vm1, %v2428_v3, %v599_v50  ;;  %v2242_v60 = vld [vmem:[%s2641_s1 + $0x1e8] sm:$0xff]  }
  0x36   : > { %2041 = vmatpush3.bf16.msra.mxu0 %v2197_v56  ;;  %1962 = vmatprep.subr.bf16.mxu1 %v2200_v61  ;;  %v2236_v56 = vld [vmem:[%s2641_s1 + $0x1d0] sm:$0xff]  }
  0x37   : > { %2042 = vmatprep.subr.bf16.mxu0 %v2201_v62  ;;  %1976 = vmatprep.mubr.bf16.mxu1 %v2364_v20  ;;  %v598_v20 = vsel %vm595_vm1, %v596_v24, %v2428_v3  ;;  %v2250_v3 = vld [vmem:[%s2641_s1 + $0x210] sm:$0xff]  }
  0x38   : > { %2056 = vmatprep.mubr.bf16.mxu0 %v988_v1  ;;  %v2247_v1 = vld [vmem:[%s2641_s1 + $0x200] sm:$0xff]  }
  0x39   : > { %1963 = vmatpush3.bf16.msra.mxu1 %v2200_v61  ;;  %v2243_v61 = vld [vmem:[%s2641_s1 + $0xf0] sm:$0xff]  }
  0x3a   : > { %2043 = vmatpush3.bf16.msra.mxu0 %v2201_v62  ;;  %1964 = vmatprep.subr.bf16.mxu1 %v2202_v0  ;;  %v2244_v62 = vld [vmem:[%s2641_s1 + $0x1f0] sm:$0xff]  }
  0x3b   : > { %2044 = vmatprep.subr.bf16.mxu0 %v2203_v5 }
  0x3d   : > { %1965 = vmatpush3.bf16.msra.mxu1 %v2202_v0  ;;  %v2246_v0 = vld [vmem:[%s2641_s1 + $0x1f8] sm:$0xff]  }
  0x3e   : > { %2045 = vmatpush3.bf16.msra.mxu0 %v2203_v5  ;;  %1966 = vmatprep.subr.bf16.mxu1 %v2204_v8  ;;  %v2253_v5 = vld [vmem:[%s2641_s1 + $0x228] sm:$0xff]  }
  0x3f   : > { %2046 = vmatprep.subr.bf16.mxu0 %v2205_v9 }
  0x41   : > { %1967 = vmatpush3.bf16.msra.mxu1 %v2204_v8 }
  0x42   : > { %2047 = vmatpush3.bf16.msra.mxu0 %v2205_v9  ;;  %1968 = vmatprep.subr.bf16.mxu1 %v2206_v10 }
  0x43   : > { %2048 = vmatprep.subr.bf16.mxu0 %v2207_v11 }
  0x45   : > { %1969 = vmatpush3.bf16.msra.mxu1 %v2206_v10 }
  0x46   : > { %2049 = vmatpush3.bf16.msra.mxu0 %v2207_v11  ;;  %1970 = vmatprep.subr.bf16.mxu1 %v2208_v12 }
  0x47   : > { %2050 = vmatprep.subr.bf16.mxu0 %v2209_v13 }
  0x49   : > { %1971 = vmatpush3.bf16.msra.mxu1 %v2208_v12 }
  0x4a   : > { %2051 = vmatpush3.bf16.msra.mxu0 %v2209_v13  ;;  %1972 = vmatprep.subr.bf16.mxu1 %v2210_v14  ;;  %v1841_v13 = vld [vmem:[%s2642_s2] ss:$0 sm:$0xff] }
  0x4b   : > { %2052 = vmatprep.subr.bf16.mxu0 %v2211_v15 }
  0x4d   : > { %1973 = vmatpush3.bf16.msra.mxu1 %v2210_v14 }
  0x4e   : > { %2053 = vmatpush3.bf16.msra.mxu0 %v2211_v15  ;;  %1974 = vmatprep.subr.bf16.mxu1 %v2212_v16 }
  0x4f   : > { %2054 = vmatprep.subr.bf16.mxu0 %v2213_v17 }
  0x51   : > { %1975 = vmatpush3.bf16.msra.mxu1 %v2212_v16 }
  0x52   : > { %2055 = vmatpush3.bf16.msra.mxu0 %v2213_v17  ;;  %1980 = vmatprep.subr.bf16.mxu1 %v2214_v18 }
  0x53   : > { %2060 = vmatprep.subr.bf16.mxu0 %v2215_v23 }
  0x54   : > { %1977 = vmatmul.mubr.bf16.vlgmr.msra.gmra.mrb[0].mxu1 %v2368_v22 }
  0x55   : > { %1981 = vmatpush3.bf16.msra.mxu1 %v2214_v18  ;;  %2057 = vmatmul.mubr.bf16.vlgmr.msra.gmra.mrb[0].mxu0 %v990_v25 }
  0x56   : > { %2061 = vmatpush3.bf16.msra.mxu0 %v2215_v23  ;;  %1982 = vmatprep.subr.bf16.mxu1 %v2216_v27 }
  0x57   : > { %2062 = vmatprep.subr.bf16.mxu0 %v2217_v28  ;;  %1996 = vmatprep.mubr.bf16.mxu1 %v598_v20 }
  0x58   : > { %2076 = vmatprep.mubr.bf16.mxu0 %v2368_v22  ;;  %v2513_v22 = vsel %vm595_vm1, %v1367_v4, %v1369_v37  ;;  %v2251_v4 = vld [vmem:[%s2641_s1 + $0x218] sm:$0xff]  }
  0x59   : > { %1983 = vmatpush3.bf16.msra.mxu1 %v2216_v27 }
  0x5a   : > { %2063 = vmatpush3.bf16.msra.mxu0 %v2217_v28  ;;  %1984 = vmatprep.subr.bf16.mxu1 %v2218_v29 }
  0x5b   : > { %2064 = vmatprep.subr.bf16.mxu0 %v2219_v32 }
  0x5d   : > { %1985 = vmatpush3.bf16.msra.mxu1 %v2218_v29 }
  0x5e   : > { %2065 = vmatpush3.bf16.msra.mxu0 %v2219_v32  ;;  %1986 = vmatprep.subr.bf16.mxu1 %v2220_v36 }
  0x5f   : > { %2066 = vmatprep.subr.bf16.mxu0 %v2221_v38 }
  0x61   : > { %1987 = vmatpush3.bf16.msra.mxu1 %v2220_v36 }
  0x62   : > { %2067 = vmatpush3.bf16.msra.mxu0 %v2221_v38  ;;  %1988 = vmatprep.subr.bf16.mxu1 %v2222_v42 }
  0x63   : > { %2068 = vmatprep.subr.bf16.mxu0 %v2223_v43 }
  0x65   : > { %1989 = vmatpush3.bf16.msra.mxu1 %v2222_v42 }
  0x66   : > { %2069 = vmatpush3.bf16.msra.mxu0 %v2223_v43  ;;  %1990 = vmatprep.subr.bf16.mxu1 %v2224_v44 }
  0x67   : > { %2070 = vmatprep.subr.bf16.mxu0 %v2225_v45 }
  0x69   : > { %1991 = vmatpush3.bf16.msra.mxu1 %v2224_v44 }
  0x6a   : > { %2071 = vmatpush3.bf16.msra.mxu0 %v2225_v45  ;;  %1992 = vmatprep.subr.bf16.mxu1 %v2226_v46 }
  0x6b   : > { %2072 = vmatprep.subr.bf16.mxu0 %v2227_v47 }
  0x6d   : > { %1993 = vmatpush3.bf16.msra.mxu1 %v2226_v46 }
  0x6e   : > { %2073 = vmatpush3.bf16.msra.mxu0 %v2227_v47  ;;  %1994 = vmatprep.subr.bf16.mxu1 %v2228_v48 }
  0x6f   : > { %2074 = vmatprep.subr.bf16.mxu0 %v2229_v49 }
  0x71   : > { %1995 = vmatpush3.bf16.msra.mxu1 %v2228_v48 }
  0x72   : > { %2075 = vmatpush3.bf16.msra.mxu0 %v2229_v49  ;;  %2000 = vmatprep.subr.bf16.mxu1 %v2230_v51 }
  0x73   : > { %2080 = vmatprep.subr.bf16.mxu0 %v2231_v52 }
  0x74   : > { %1997 = vmatmul.mubr.bf16.vlgmr.msra.gmra.mrb[0].mxu1 %v600_v53 }
  0x75   : > { %2001 = vmatpush3.bf16.msra.mxu1 %v2230_v51  ;;  %2077 = vmatmul.mubr.bf16.vlgmr.msra.gmra.mrb[0].mxu0 %v2392_v41  ;;  %v2237_v41 = vld [vmem:[%s2641_s1 + $0xd8] sm:$0xff]  }
  0x76   : > { %2081 = vmatpush3.bf16.msra.mxu0 %v2231_v52  ;;  %2002 = vmatprep.subr.bf16.mxu1 %v2233_v31 }
  0x77   : > { %2082 = vmatprep.subr.bf16.mxu0 %v2234_v54  ;;  %2016 = vmatprep.mubr.bf16.mxu1 %v2366_v21  ;;  %v2239_v21 = vld [vmem:[%s2641_s1 + $0xe0] sm:$0xff]  }
  0x78   : > { %2096 = vmatprep.mubr.bf16.mxu0 %v2437_v6  ;;  %v2254_v6 = vld [vmem:[%s2641_s1 + $0x230] sm:$0xff]  }
  0x79   : > { %2003 = vmatpush3.bf16.msra.mxu1 %v2233_v31 }
  0x7a   : > { %2083 = vmatpush3.bf16.msra.mxu0 %v2234_v54  ;;  %2004 = vmatprep.subr.bf16.mxu1 %v2235_v55 }
  0x7b   : > { %2084 = vmatprep.subr.bf16.mxu0 %v2236_v56 }
  0x7d   : > { %2005 = vmatpush3.bf16.msra.mxu1 %v2235_v55 }
  0x7e   : > { %2085 = vmatpush3.bf16.msra.mxu0 %v2236_v56  ;;  %2006 = vmatprep.subr.bf16.mxu1 %v2237_v41 }
  0x7f   : > { %2086 = vmatprep.subr.bf16.mxu0 %v2238_v57 }
  0x81   : > { %2007 = vmatpush3.bf16.msra.mxu1 %v2237_v41 }
  0x82   : > { %2087 = vmatpush3.bf16.msra.mxu0 %v2238_v57  ;;  %2008 = vmatprep.subr.bf16.mxu1 %v2239_v21 }
  0x83   : > { %2088 = vmatprep.subr.bf16.mxu0 %v2240_v58 }
  0x85   : > { %2009 = vmatpush3.bf16.msra.mxu1 %v2239_v21 }
  0x86   : > { %2089 = vmatpush3.bf16.msra.mxu0 %v2240_v58  ;;  %2010 = vmatprep.subr.bf16.mxu1 %v2241_v59 }
  0x87   : > { %2090 = vmatprep.subr.bf16.mxu0 %v2242_v60 }
  0x89   : > { %2011 = vmatpush3.bf16.msra.mxu1 %v2241_v59 }
  0x8a   : > { %2091 = vmatpush3.bf16.msra.mxu0 %v2242_v60  ;;  %2012 = vmatprep.subr.bf16.mxu1 %v2243_v61 }
  0x8b   : > { %2092 = vmatprep.subr.bf16.mxu0 %v2244_v62 }
  0x8d   : > { %2013 = vmatpush3.bf16.msra.mxu1 %v2243_v61 }
  0x8e   : > { %2093 = vmatpush3.bf16.msra.mxu0 %v2244_v62  ;;  %2014 = vmatprep.subr.bf16.mxu1 %v2245_v63 }
  0x8f   : > { %2094 = vmatprep.subr.bf16.mxu0 %v2246_v0 }
  0x91   : > { %2015 = vmatpush3.bf16.msra.mxu1 %v2245_v63 }
  0x92   : > { %2095 = vmatpush3.bf16.msra.mxu0 %v2246_v0 }
  0x93   : > { %2100 = vmatprep.subr.bf16.mxu0 %v2247_v1 }
  0x94   : > { %2017 = vmatmul.mubr.bf16.vlgmr.msra.gmra.mrb[0].mxu1 %v2372_v26  ;;  %v2252_v26 = vld [vmem:[%s2641_s1 + $0x220] sm:$0xff]  }
  0x95   : > { %2097 = vmatmul.mubr.bf16.vlgmr.msra.gmra.mrb[0].mxu0 %v2516_v40 }
  0x96   : > { %2101 = vmatpush3.bf16.msra.mxu0 %v2247_v1  ;;  %2116 = vmatprep.mubr.bf16.mxu0 %v2443_v7  ;;  %v2255_v7 = vld [vmem:[%s2641_s1 + $0x238] sm:$0xff]  }
  0x97   : > { %2102 = vmatprep.subr.bf16.mxu0 %v2249_v2 }
  0x9a   : > { %2103 = vmatpush3.bf16.msra.mxu0 %v2249_v2 }
  0x9b   : > { %2104 = vmatprep.subr.bf16.mxu0 %v2250_v3 }
  0x9e   : > { %2105 = vmatpush3.bf16.msra.mxu0 %v2250_v3 }
  0x9f   : > { %2106 = vmatprep.subr.bf16.mxu0 %v2251_v4 }
  0xa2   : > { %2107 = vmatpush3.bf16.msra.mxu0 %v2251_v4 }
  0xa3   : > { %2108 = vmatprep.subr.bf16.mxu0 %v2252_v26 }
  0xa6   : > { %2109 = vmatpush3.bf16.msra.mxu0 %v2252_v26 }
  0xa7   : > { %2110 = vmatprep.subr.bf16.mxu0 %v2253_v5 }
  0xaa   : > { %2111 = vmatpush3.bf16.msra.mxu0 %v2253_v5 }
  0xab   : > { %2112 = vmatprep.subr.bf16.mxu0 %v2254_v6 }
  0xae   : > { %2113 = vmatpush3.bf16.msra.mxu0 %v2254_v6 }
  0xaf   : > { %2114 = vmatprep.subr.bf16.mxu0 %v2255_v7 }
  0xb2   : > { %2115 = vmatpush3.bf16.msra.mxu0 %v2255_v7 }
  0xb5   : > { %2117 = vmatmul.mubr.bf16.vlgmr.msra.gmra.mrb[0].mxu0 %v2513_v22 }
 0x167   : > { %v2018_v8 = vpop.f32.mrb[0].mxu1 }
 0x168   : > { %v807_v9 = vpop.f32.mrb[1].mxu1 }
 0x169   : > { %v2019_v10 = vpop.f32.mrb[2].mxu1 }
 0x16a   : > { %v810_v11 = vpop.f32.mrb[3].mxu1 }
 0x188   : > { %v2118_v12 = vpop.f32.mrb[0].mxu0 }
 0x189   : > { %v2120_v14 = vadd.f32 %v2118_v12, %v2018_v8  ;;  %v1455_v15 = vpop.f32.mrb[1].mxu0 }
 0x18a   : > { %v2121_v16 = vadd.f32 %v1455_v15, %v807_v9  ;;  %v2119_v17 = vpop.f32.mrb[2].mxu0 }
 0x18b   : > { %v1483_v18 = vadd.f32 %v2120_v14, %v1841_v13  ;;  %v2122_v19 = vadd.f32 %v2119_v17, %v2019_v10  ;;  %v1458_v23 = vpop.f32.mrb[3].mxu0 }
 0x18c   : > { %v1481_v24 = vadd.f32 %v2121_v16, %v1841_v13  ;;  %v2123_v25 = vadd.f32 %v1458_v23, %v810_v11 }
 0x18d   : > { %1487 = vst [vmem:[%s2326_s23 + $0x10] sm:$0xff] %v1483_v18  ;;  %v1484_v27 = vadd.f32 %v2122_v19, %v1841_v13 }
 0x18e   : > { %1485 = vst [vmem:[%s2326_s23] sm:$0xff] %v1481_v24  ;;  %v1482_v28 = vadd.f32 %v2123_v25, %v1841_v13 }
 0x18f   : > { %1488 = vst [vmem:[%s2326_s23 + $0x18] sm:$0xff] %v1484_v27 }
 0x190   : > { %1486 = vst [vmem:[%s2326_s23 + $0x8] sm:$0xff] %v1482_v28 }
 0x191 PF: > { %s13_s14 = sadd.s32 1, %s2280_s14   ;;  %s2644_s12 = smov %s2276_s13 }
 0x192   : > { %p10_p5 = scmp.ge.s32.totalorder %s13_s14, 4   ;;  %s2645_s13 = smov %s2647_s15 }
 0x194   :  { %12 = sbr.rel (!%p10_p5) target bundleno = 2 (0x2), region = 182 }
 0x19b   :  { %1519 = vsyncmov [#allocation3] }
 0x19e   :  { %s1520_s5 = vpop.sfrf %1519 }
 0x19f   :  { %p1844_p6 = scmp.ne.s32.totalorder %s1520_s5, 0 }
 0x1a1   :  { %1524 = shalt.err (%p1844_p6)  }
 0x1a2   :  { %1526 = vsyncmov [#allocation3 + $0x1] }
 0x1a5   :  { %s1527_s6 = vpop.sfrf %1526 }
 0x1a6   :  { %p1845_p7 = scmp.ne.s32.totalorder %s1527_s6, 0 }
 0x1a8   :  { %1531 = shalt.err (%p1845_p7)  }

// kernel: fpn_forward.11
= control target key start
LH: loop header
LB: loop body
LE: loop exit
PB: predicated region body
PF: predicated region fallthrough
CT: control target
= control target key end

     0   :  { %s6265_s12 = smov 0   ;;  %s6267_s13 = smov 0   ;;  %s7424_s0 = inlined_call_operand.vmem [shape: bf16[2,456,128], index: 0, kind: input, shape index: {}]   ;;  %s7425_s1 = inlined_call_operand.vmem [shape: bf16[9,128,128], index: 1, kind: input, shape index: {}]   ;;  %s7426_s2 = inlined_call_operand.vmem [shape: f32[1,128], index: 2, kind: input, shape index: {}]   ;;  %s7427_s3 = inlined_call_operand.vmem [shape: f32[2,16,24,128], index: 3, kind: output, shape index: {}]  }
   0x1   :  { %s6269_s14 = smov 0  }
   0x2 LB: > { %s25_s15 = sadd.s32 1, %s6239_s13  ;;  %p4495_p0 = scmp.ge.s32.totalorder %s6243_s14, 1  ;;  %s6243_s14 = sphi %s6269_s14, %s13_s14   ;;  %s6239_s13 = sphi %s6267_s13, %s7519_s13   ;;  %s6235_s12 = sphi %s6265_s12, %s7518_s12  }
   0x3   : > { %p27_p1 = scmp.ge.s32.totalorder %s25_s15, 2  ;;  %p117_p2 = scmp.lt.s32.totalorder %s6243_s14, 3 }
   0x5   : > { %s7521_s15 = smov (%p27_p1, %s25_s15), 0  ;;  %p118_p3 = pnand %p4495_p0, %p117_p2 }
   0x7   : > { %121 = sbr.rel (%p118_p3) target bundleno = 712 (0x2c8), region = 28 }
   0xe   : > { %p140_p4 = scmp.lt.s32.totalorder %s6235_s12, 1  ;;  %s4792_s16 = smul.u32 228, %s6235_s12 }
  0x10   : > { %s7523_s12 = smov (!%p140_p4, %s6235_s12), 1  ;;  %s6286_s19 = scalar_lea.vmem %s7424_s0, %s4792_s16 }
  0x11   : > { %s6059_s20 = smul.u32 384, %s7523_s12  ;;  %v204_v0 = vld [vmem:[%s6286_s19] sm:$0xff]  ;;  %v206_v1 = vld [vmem:[%s6286_s19 + $0x8] sm:$0xff]  ;;  %v208_v2 = vld [vmem:[%s6286_s19 + $0x10] sm:$0xff] }
  0x12   : > { %205 = vst [vmem:[#allocation2] sm:$0xff] %v204_v0  ;;  %207 = vst [vmem:[#allocation2 + $0x8] sm:$0xff] %v206_v1  ;;  %v210_v3 = vld [vmem:[%s6286_s19 + $0x18] sm:$0xff]  ;;  %v212_v4 = vld [vmem:[%s6286_s19 + $0x20] sm:$0xff] }
  0x13   : > { %209 = vst [vmem:[#allocation2 + $0x10] sm:$0xff] %v208_v2  ;;  %v214_v5 = vld [vmem:[%s6286_s19 + $0x28] sm:$0xff]  ;;  %s6297_s23 = scalar_lea.vmem %s7427_s3, %s6059_s20  ;;  %211 = vst [vmem:[#allocation2 + $0x18] sm:$0xff] %v210_v3  ;;  %v216_v6 = vld [vmem:[%s6286_s19 + $0x30] sm:$0xff] }
  0x14   : > { %213 = vst [vmem:[#allocation2 + $0x20] sm:$0xff] %v212_v4  ;;  %215 = vst [vmem:[#allocation2 + $0x28] sm:$0xff] %v214_v5  ;;  %v218_v7 = vld [vmem:[%s6286_s19 + $0x38] sm:$0xff]  ;;  %v220_v8 = vld [vmem:[%s6286_s19 + $0x40] sm:$0xff] }
  0x15   : > { %217 = vst [vmem:[#allocation2 + $0x30] sm:$0xff] %v216_v6  ;;  %219 = vst [vmem:[#allocation2 + $0x38] sm:$0xff] %v218_v7  ;;  %v222_v9 = vld [vmem:[%s6286_s19 + $0x48] sm:$0xff]  ;;  %v224_v10 = vld [vmem:[%s6286_s19 + $0x50] sm:$0xff] }
  0x16   : > { %221 = vst [vmem:[#allocation2 + $0x40] sm:$0xff] %v220_v8  ;;  %v226_v11 = vld [vmem:[%s6286_s19 + $0x58] sm:$0xff]  ;;  %223 = vst [vmem:[#allocation2 + $0x48] sm:$0xff] %v222_v9  ;;  %v228_v12 = vld [vmem:[%s6286_s19 + $0x60] sm:$0xff] }
  0x17   : > { %225 = vst [vmem:[#allocation2 + $0x50] sm:$0xff] %v224_v10  ;;  %227 = vst [vmem:[#allocation2 + $0x58] sm:$0xff] %v226_v11  ;;  %v230_v13 = vld [vmem:[%s6286_s19 + $0x68] sm:$0xff]  ;;  %v232_v14 = vld [vmem:[%s6286_s19 + $0x70] sm:$0xff] }
  0x18   : > { %229 = vst [vmem:[#allocation2 + $0x60] sm:$0xff] %v228_v12  ;;  %231 = vst [vmem:[#allocation2 + $0x68] sm:$0xff] %v230_v13  ;;  %v234_v15 = vld [vmem:[%s6286_s19 + $0x78] sm:$0xff]  ;;  %v236_v16 = vld [vmem:[%s6286_s19 + $0x80] sm:$0xff] }
  0x19   : > { %233 = vst [vmem:[#allocation2 + $0x70] sm:$0xff] %v232_v14  ;;  %v238_v17 = vld [vmem:[%s6286_s19 + $0x88] sm:$0xff]  ;;  %235 = vst [vmem:[#allocation2 + $0x78] sm:$0xff] %v234_v15  ;;  %v240_v18 = vld [vmem:[%s6286_s19 + $0x90] sm:$0xff] }
  0x1a   : > { %237 = vst [vmem:[#allocation2 + $0x80] sm:$0xff] %v236_v16  ;;  %239 = vst [vmem:[#allocation2 + $0x88] sm:$0xff] %v238_v17  ;;  %v242_v19 = vld [vmem:[%s6286_s19 + $0x98] sm:$0xff]  ;;  %v244_v20 = vld [vmem:[%s6286_s19 + $0xa0] sm:$0xff] }
  0x1b   : > { %241 = vst [vmem:[#allocation2 + $0x90] sm:$0xff] %v240_v18  ;;  %243 = vst [vmem:[#allocation2 + $0x98] sm:$0xff] %v242_v19  ;;  %v246_v21 = vld [vmem:[%s6286_s19 + $0xa8] sm:$0xff]  ;;  %v248_v22 = vld [vmem:[%s6286_s19 + $0xb0] sm:$0xff] }
  0x1c   : > { %245 = vst [vmem:[#allocation2 + $0xa0] sm:$0xff] %v244_v20  ;;  %v250_v23 = vld [vmem:[%s6286_s19 + $0xb8] sm:$0xff]  ;;  %247 = vst [vmem:[#allocation2 + $0xa8] sm:$0xff] %v246_v21  ;;  %v252_v24 = vld [vmem:[%s6286_s19 + $0xc0] sm:$0xff] }
  0x1d   : > { %249 = vst [vmem:[#allocation2 + $0xb0] sm:$0xff] %v248_v22  ;;  %251 = vst [vmem:[#allocation2 + $0xb8] sm:$0xff] %v250_v23  ;;  %v254_v25 = vld [vmem:[%s6286_s19 + $0xc8] sm:$0xff]  ;;  %v256_v26 = vld [vmem:[%s6286_s19 + $0xd0] sm:$0xff] }
  0x1e   : > { %253 = vst [vmem:[#allocation2 + $0xc0] sm:$0xff] %v252_v24  ;;  %255 = vst [vmem:[#allocation2 + $0xc8] sm:$0xff] %v254_v25  ;;  %v258_v27 = vld [vmem:[%s6286_s19 + $0xd8] sm:$0xff] }
  0x1f   : > { %257 = vst [vmem:[#allocation2 + $0xd0] sm:$0xff] %v256_v26  ;;  %259 = vst [vmem:[#allocation2 + $0xd8] sm:$0xff] %v258_v27 }
  0x20   : > { %274 = vsyncadd [#allocation3], 3648 }
  0x21   : > { %6231 = dma.done.wait [#allocation3], 3648 }
  0x22   : > { %6232 = vsyncadd [#allocation3], 4294963648  ;;  %v6084_v28 = vld [vmem:[%s7425_s1 + $0x40] sm:$0xff]   ;;  %v6086_v30 = vld [vmem:[%s7425_s1 + $0x48] sm:$0xff]   ;;  %vm619_vm0 = vsmask.f32 7424 }
  0x23   : > { %v6085_v29 = vld [vmem:[%s7425_s1 + $0x100] sm:$0xff]   ;;  %5083 = vmatprep.subr.bf16.mxu1 %v6084_v28  ;;  %v6087_v31 = vld [vmem:[%s7425_s1 + $0x108] sm:$0xff]   ;;  %v6088_v32 = vld [vmem:[%s7425_s1 + $0x50] sm:$0xff]   ;;  %vm1427_vm1 = vcmask 1046528  }
  0x24   : > { %5339 = vmatprep.subr.bf16.mxu0 %v6085_v29  ;;  %5084 = vmatpush3.bf16.msra.mxu1 %v6084_v28  ;;  %v6089_v33 = vld [vmem:[%s7425_s1 + $0x110] sm:$0xff]   ;;  %v6090_v34 = vld [vmem:[%s7425_s1 + $0x58] sm:$0xff]   ;;  %v6092_v36 = vld [vmem:[%s7425_s1 + $0x60] sm:$0xff]  }
  0x25   : > { %5340 = vmatpush3.bf16.msra.mxu0 %v6085_v29  ;;  %5085 = vmatprep.subr.bf16.mxu1 %v6086_v30  ;;  %v6091_v35 = vld [vmem:[%s7425_s1 + $0x118] sm:$0xff]   ;;  %v6093_v37 = vld [vmem:[%s7425_s1 + $0x120] sm:$0xff]   ;;  %v6094_v38 = vld [vmem:[%s7425_s1 + $0x68] sm:$0xff]  }
  0x26   : > { %5341 = vmatprep.subr.bf16.mxu0 %v6087_v31  ;;  %v6095_v39 = vld [vmem:[%s7425_s1 + $0x128] sm:$0xff]   ;;  %v6100_v42 = vld [vmem:[#allocation2] sm:$0xff]   ;;  %v412_v43 = vld [vmem:[#allocation2 + $0x10] sm:$0xf] }
  0x27   : > { %v410_v40 = vld [vmem:[#allocation2 + $0x8] sm:$0xf]  ;;  %v411_v41 = vld [vmem:[#allocation2 + $0xc] sm:$0xf]  ;;  %v413_v45 = vld [vmem:[#allocation2 + $0x14] sm:$0xf] }
  0x28   : > { %5086 = vmatpush3.bf16.msra.mxu1 %v6086_v30  ;;  %v6357_v44 = vcombine.low %v410_v40, %v411_v41  ;;  %v414_v46 = vld [vmem:[#allocation2 + $0x18] sm:$0xf]  ;;  %v415_v47 = vld [vmem:[#allocation2 + $0x1c] sm:$0xf]  ;;  %v6359_v48 = vcombine.low %v411_v41, %v412_v43  ;;  %v621_v49 = vshrl.u32 %v6100_v42, 16  ;;  %v623_v50 = vshll.u32 %v6100_v42, 16 }
  0x29   : > { %5342 = vmatpush3.bf16.msra.mxu0 %v6087_v31  ;;  %5087 = vmatprep.subr.bf16.mxu1 %v6088_v32  ;;  %v6361_v51 = vcombine.low %v413_v45, %v414_v46  ;;  %v6096_v52 = vld [vmem:[%s7425_s1 + $0x70] sm:$0xff]   ;;  %v6369_v56 = vcombine.low %v412_v43, %v413_v45  ;;  %v416_v57 = vld [vmem:[#allocation2 + $0x20] sm:$0xf]  ;;  %v6374_v60 = vcombine.low %v414_v46, %v415_v47  ;;  %v6098_v5 = vld [vmem:[%s7425_s1 + $0x78] sm:$0xff]  }
  0x2a   : > { %5343 = vmatprep.subr.bf16.mxu0 %v6089_v33  ;;  %7460 = vst [vmem:[#allocation7_spill] sm:$0xff] %v6359_v48  ;;  %v628_v53 = vshll.u32 %v6357_v44, 16  ;;  %v2233_v54 = vshrl.u32 %v6359_v48, 16  ;;  %v2235_v55 = vshll.u32 %v6359_v48, 16  ;;  %v6097_v58 = vld [vmem:[%s7425_s1 + $0x130] sm:$0xff]   ;;  %v625_v59 = vrot.slane %v623_v50, 1 }
  0x2b   : > { %7461 = vst [vmem:[#allocation8_spill] sm:$0xff] %v6361_v51  ;;  %v2240_v61 = vshll.u32 %v6361_v51, 16  ;;  %v6377_v62 = vcombine.low %v415_v47, %v416_v57  ;;  %v632_v1 = vshrl.u32 %v6357_v44, 16  ;;  %v636_v4 = vshll.u32 %v6369_v56, 16  ;;  %v6099_v6 = vld [vmem:[%s7425_s1 + $0x138] sm:$0xff]   ;;  %v6106_v23 = vld [vmem:[%s7425_s1] sm:$0xff]  }
  0x2c   : > { %5088 = vmatpush3.bf16.msra.mxu1 %v6088_v32  ;;  %v630_v63 = vrot.slane %v628_v53, 1  ;;  %v2237_v0 = vrot.slane %v2235_v55, 1  ;;  %v626_v2 = vor.u32 %v625_v59, %v621_v49  ;;  %v2244_v8 = vshrl.u32 %v6361_v51, 16  ;;  %v417_v10 = vld [vmem:[#allocation2 + $0x24] sm:$0xf] }
  0x2d   : > { %5344 = vmatpush3.bf16.msra.mxu0 %v6089_v33  ;;  %5089 = vmatprep.subr.bf16.mxu1 %v6090_v34  ;;  %7462 = vst [vmem:[#allocation9_spill] sm:$0xff] %v6377_v62  ;;  %v2242_v3 = vrot.slane %v2240_v61, 1  ;;  %v2248_v9 = vshll.u32 %v6377_v62, 16  ;;  %v640_v12 = vshrl.u32 %v6369_v56, 16  ;;  %v644_v13 = vshll.u32 %v6374_v60, 16  ;;  %v6108_v29 = vld [vmem:[%s7425_s1 + $0x140] sm:$0xff]  }
  0x2e   : > { %5345 = vmatprep.subr.bf16.mxu0 %v6091_v35  ;;  %v2238_v7 = vor.u32 %v2237_v0, %v2233_v54  ;;  %v631_v11 = vsel %vm619_vm0, %v626_v2, %v630_v63  ;;  %v418_v14 = vld [vmem:[#allocation2 + $0x28] sm:$0xf]  ;;  %v419_v15 = vld [vmem:[#allocation2 + $0x2c] sm:$0xf]  ;;  %v6393_v17 = vcombine.low %v416_v57, %v417_v10  ;;  %v420_v18 = vld [vmem:[#allocation2 + $0x30] sm:$0xf]  ;;  %v634_v19 = vor.u32 %v632_v1, %v630_v63 }
  0x2f   : > { %5099 = vmatprep.mubr.bf16.mxu1 %v631_v11  ;;  %v638_v20 = vrot.slane %v636_v4, 1  ;;  %v6395_v21 = vcombine.low %v417_v10, %v418_v14  ;;  %v2252_v22 = vshrl.u32 %v6377_v62, 16  ;;  %v2246_v24 = vor.u32 %v2244_v8, %v2242_v3  ;;  %v421_v28 = vld [vmem:[#allocation2 + $0x34] sm:$0xf]  ;;  %v422_v33 = vld [vmem:[#allocation2 + $0x38] sm:$0xf] }
  0x30   : > { %5090 = vmatpush3.bf16.msra.mxu1 %v6090_v34  ;;  %v2243_v16 = vsel %vm619_vm0, %v2238_v7, %v2242_v3  ;;  %v2250_v25 = vrot.slane %v2248_v9, 1  ;;  %v6401_v26 = vcombine.low %v418_v14, %v419_v15  ;;  %v6403_v27 = vcombine.low %v419_v15, %v420_v18  ;;  %v423_v47 = vld [vmem:[#allocation2 + $0x3c] sm:$0xf]  ;;  %v424_v49 = vld [vmem:[#allocation2 + $0x40] sm:$0xf]  ;;  %v6115_v7 = vld [vmem:[%s7425_s1 + $0x150] sm:$0xff]  }
  0x31   : > { %5346 = vmatpush3.bf16.msra.mxu0 %v6091_v35  ;;  %5091 = vmatprep.subr.bf16.mxu1 %v6092_v36  ;;  %7463 = vst [vmem:[#allocation10_spill] sm:$0xff] %v6395_v21  ;;  %v642_v30 = vor.u32 %v640_v12, %v638_v20  ;;  %v646_v31 = vrot.slane %v644_v13, 1  ;;  %v2256_v32 = vshll.u32 %v6395_v21, 16  ;;  %v648_v35 = vshrl.u32 %v6374_v60, 16  ;;  %v425_v61 = vld [vmem:[#allocation2 + $0x44] sm:$0xf] }
  0x32   : > { %5347 = vmatprep.subr.bf16.mxu0 %v6093_v37  ;;  %5355 = vmatprep.mubr.bf16.mxu0 %v2243_v16  ;;  %7464 = vst [vmem:[#allocation11_spill] sm:$0xff] %v6403_v27  ;;  %v2254_v34 = vor.u32 %v2252_v22, %v2250_v25  ;;  %v2260_v41 = vshrl.u32 %v6395_v21, 16  ;;  %v6417_v42 = vcombine.low %v421_v28, %v422_v33  ;;  %v656_v45 = vshrl.u32 %v6393_v17, 16  ;;  %v426_v1 = vld [vmem:[#allocation2 + $0x48] sm:$0xf]  ;;  %v6120_v16 = vld [vmem:[%s7425_s1 + $0x158] sm:$0xff]  }
  0x33   : > { %v2258_v40 = vrot.slane %v2256_v32, 1  ;;  %v2251_v43 = vsel %vm619_vm0, %v2246_v24, %v2250_v25  ;;  %v660_v46 = vshll.u32 %v6401_v26, 16  ;;  %v647_v50 = vsel %vm619_vm0, %v642_v30, %v646_v31  ;;  %v428_v24 = vld [vmem:[#allocation2 + $0x50] sm:$0xf]  ;;  %v429_v32 = vld [vmem:[#allocation2 + $0x54] sm:$0xf] }
  0x34   : > { %5092 = vmatpush3.bf16.msra.mxu1 %v6092_v36  ;;  %v652_v36 = vshll.u32 %v6393_v17, 16  ;;  %7465 = vst [vmem:[#allocation12_spill] sm:$0xff] %v6417_v42  ;;  %v2272_v53 = vshll.u32 %v6417_v42, 16  ;;  %v6429_v59 = vcombine.low %v420_v18, %v421_v28  ;;  %v650_v63 = vor.u32 %v648_v35, %v646_v31  ;;  %v427_v18 = vld [vmem:[#allocation2 + $0x4c] sm:$0xf] }
  0x35   : > { %5348 = vmatpush3.bf16.msra.mxu0 %v6093_v37  ;;  %5093 = vmatprep.subr.bf16.mxu1 %v6094_v38  ;;  %v2264_v37 = vshll.u32 %v6403_v27, 16  ;;  %v2259_v54 = vsel %vm619_vm0, %v2254_v34, %v2258_v40  ;;  %v6431_v0 = vcombine.low %v423_v47, %v424_v49  ;;  %v2262_v2 = vor.u32 %v2260_v41, %v2258_v40  ;;  %v6132_v34 = vld [vmem:[%s7425_s1 + $0x18] sm:$0xff]  }
  0x36   : > { %5349 = vmatprep.subr.bf16.mxu0 %v6095_v39  ;;  %v654_v55 = vrot.slane %v652_v36, 1  ;;  %v662_v4 = vrot.slane %v660_v46, 1  ;;  %v2274_v9 = vrot.slane %v2272_v53, 1  ;;  %v664_v10 = vshrl.u32 %v6401_v26, 16  ;;  %v6126_v46 = vld [vmem:[%s7425_s1 + $0x160] sm:$0xff]  }
  0x37   : > { %v2266_v57 = vrot.slane %v2264_v37, 1  ;;  %7466 = vst [vmem:[#allocation13_spill] sm:$0xff] %v6431_v0  ;;  %v668_v11 = vshll.u32 %v6429_v59, 16  ;;  %v6443_v12 = vcombine.low %v425_v61, %v426_v1  ;;  %v2276_v14 = vshrl.u32 %v6417_v42, 16 }
  0x38   : > { %5094 = vmatpush3.bf16.msra.mxu1 %v6094_v38  ;;  %v639_v38 = vsel %vm619_vm0, %v634_v19, %v638_v20  ;;  %v658_v3 = vor.u32 %v656_v45, %v654_v55  ;;  %v6446_v13 = vsel %vm619_vm0, %v650_v63, %v654_v55  ;;  %v2280_v15 = vshll.u32 %v6431_v0, 16 }
  0x39   : > { %5350 = vmatpush3.bf16.msra.mxu0 %v6095_v39  ;;  %5095 = vmatprep.subr.bf16.mxu1 %v6096_v52  ;;  %v6109_v39 = vld [vmem:[%s7425_s1 + $0x148] sm:$0xff]   ;;  %7467 = vst [vmem:[#allocation14_spill] sm:$0xff] %v6443_v12  ;;  %7468 = vst [vmem:[#allocation15_spill] sm:$0xff] %v6446_v13  ;;  %v2267_v19 = vsel %vm619_vm0, %v2262_v2, %v2266_v57  ;;  %v672_v22 = vshrl.u32 %v6429_v59, 16  ;;  %v2284_v28 = vshrl.u32 %v6431_v0, 16  ;;  %v670_v30 = vrot.slane %v668_v11, 1 }
  0x3a   : > { %5351 = vmatprep.subr.bf16.mxu0 %v6097_v58  ;;  %v6455_v20 = vsel %vm619_vm0, %v658_v3, %v662_v4  ;;  %v6463_v31 = vcombine.low %v424_v49, %v425_v61  ;;  %v666_v35 = vor.u32 %v664_v10, %v662_v4  ;;  %v2278_v36 = vor.u32 %v2276_v14, %v2274_v9  ;;  %v6127_v61 = vld [vmem:[%s7425_s1 + $0x168] sm:$0xff]   ;;  %v432_v2 = vld [vmem:[#allocation2 + $0x60] sm:$0xf] }
  0x3b   : > { %7469 = vst [vmem:[#allocation16_spill] sm:$0xff] %v6455_v20  ;;  %v2282_v37 = vrot.slane %v2280_v15, 1  ;;  %v6471_v41 = vcombine.low %v426_v1, %v427_v18  ;;  %v6498_v10 = vcombine.low %v428_v24, %v429_v32  ;;  %v6140_v11 = vld [vmem:[%s7425_s1 + $0x20] sm:$0xff]  }
  0x3c   : > { %5096 = vmatpush3.bf16.msra.mxu1 %v6096_v52  ;;  %v2268_v52 = vshrl.u32 %v6403_v27, 16  ;;  %v684_v49 = vshll.u32 %v6463_v31, 16  ;;  %v688_v63 = vshrl.u32 %v6463_v31, 16 }
  0x3d   : > { %5352 = vmatpush3.bf16.msra.mxu0 %v6097_v58  ;;  %5097 = vmatprep.subr.bf16.mxu1 %v6098_v5  ;;  %v6114_v58 = vld [vmem:[%s7425_s1 + $0x8] sm:$0xff]   ;;  %v2283_v53 = vsel %vm619_vm0, %v2278_v36, %v2282_v37  ;;  %v692_v1 = vshll.u32 %v6471_v41, 16 }
  0x3e   : > { %5353 = vmatprep.subr.bf16.mxu0 %v6099_v6  ;;  %v2270_v8 = vor.u32 %v2268_v52, %v2266_v57  ;;  %v6480_v52 = vsel %vm619_vm0, %v666_v35, %v670_v30 }
  0x3f   : > { %7472 = vst [vmem:[#allocation19_spill] sm:$0xff] %v6480_v52 }
  0x40   : > { %5098 = vmatpush3.bf16.msra.mxu1 %v6098_v5  ;;  %v6433_v5 = vcombine.low %v422_v33, %v423_v47  ;;  %v2275_v25 = vsel %vm619_vm0, %v2270_v8, %v2274_v9  ;;  %v430_v33 = vld [vmem:[#allocation2 + $0x58] sm:$0xf]  ;;  %v434_v8 = vld [vmem:[#allocation2 + $0x68] sm:$0xf]  ;;  %v686_v9 = vrot.slane %v684_v49, 1 }
  0x41   : > { %5354 = vmatpush3.bf16.msra.mxu0 %v6099_v6  ;;  %5147 = vmatprep.subr.bf16.mxu1 %v6106_v23  ;;  %v6123_v6 = vld [vmem:[%s7425_s1 + $0x10] sm:$0xff]   ;;  %v6476_v47 = vcombine.low %v429_v32, %v430_v33  ;;  %v700_v32 = vshll.u32 %v6498_v10, 16 }
  0x42   : > { %5403 = vmatprep.subr.bf16.mxu0 %v6108_v29 }
  0x43   : > { %5100 = vmatmul.mubr.bf16.vlgmr.msra.gmra.mrb[0].mxu1 %v639_v38  ;;  %v6469_v38 = vcombine.low %v427_v18, %v428_v24  ;;  %7471 = vst [vmem:[#allocation18_spill] sm:$0xff] %v6476_v47  ;;  %v6144_v24 = vld [vmem:[%s7425_s1 + $0x28] sm:$0xff]   ;;  %v2308_v35 = vshrl.u32 %v6476_v47, 16 }
  0x44   : > { %5356 = vmatmul.mubr.bf16.vlgmr.msra.gmra.mrb[0].mxu0 %v2251_v43  ;;  %5148 = vmatpush3.bf16.msra.mxu1 %v6106_v23  ;;  %v676_v23 = vshll.u32 %v6433_v5, 16  ;;  %v2286_v43 = vor.u32 %v2284_v28, %v2282_v37 }
  0x45   : > { %5404 = vmatpush3.bf16.msra.mxu0 %v6108_v29  ;;  %5103 = vmatprep.mubr.bf16.mxu1 %v647_v50  ;;  %v2288_v29 = vshll.u32 %v6443_v12, 16  ;;  %7470 = vst [vmem:[#allocation17_spill] sm:$0xff] %v6469_v38  ;;  %v431_v50 = vld [vmem:[#allocation2 + $0x5c] sm:$0xf]  ;;  %v2296_v55 = vshll.u32 %v6469_v38, 16  ;;  %v2300_v4 = vshrl.u32 %v6469_v38, 16 }
  0x46   : > { %5405 = vmatprep.subr.bf16.mxu0 %v6109_v39  ;;  %5359 = vmatprep.mubr.bf16.mxu0 %v2259_v54  ;;  %v678_v40 = vrot.slane %v676_v23, 1  ;;  %v680_v54 = vshrl.u32 %v6433_v5, 16  ;;  %v6506_v23 = vcombine.low %v430_v33, %v431_v50  ;;  %v696_v33 = vshrl.u32 %v6471_v41, 16 }
  0x47   : > { %5149 = vmatprep.subr.bf16.mxu1 %v6114_v58  ;;  %v2290_v45 = vrot.slane %v2288_v29, 1  ;;  %v2298_v15 = vrot.slane %v2296_v55, 1  ;;  %v6133_v29 = vld [vmem:[%s7425_s1 + $0x170] sm:$0xff]   ;;  %v702_v55 = vrot.slane %v700_v32, 1 }
  0x48   : > { %5150 = vmatpush3.bf16.msra.mxu1 %v6114_v58  ;;  %v2292_v58 = vshrl.u32 %v6443_v12, 16  ;;  %v682_v14 = vor.u32 %v680_v54, %v678_v40  ;;  %v6139_v54 = vld [vmem:[%s7425_s1 + $0x178] sm:$0xff]  }
  0x49   : > { %5406 = vmatpush3.bf16.msra.mxu0 %v6109_v39  ;;  %5151 = vmatprep.subr.bf16.mxu1 %v6123_v6  ;;  %v674_v39 = vor.u32 %v672_v22, %v670_v30  ;;  %v2291_v3 = vsel %vm619_vm0, %v2286_v43, %v2290_v45  ;;  %v694_v22 = vrot.slane %v692_v1, 1  ;;  %v708_v43 = vshll.u32 %v6506_v23, 16 }
  0x4a   : > { %5407 = vmatprep.subr.bf16.mxu0 %v6115_v7  ;;  %v2294_v18 = vor.u32 %v2292_v58, %v2290_v45  ;;  %v435_v45 = vld [vmem:[#allocation2 + $0x6c] sm:$0xf] }
  0x4b   : > { %5104 = vmatmul.mubr.bf16.gmra.mrb[4].mxu1 %v6446_v13  ;;  %v6486_v57 = vsel %vm619_vm0, %v674_v39, %v678_v40  ;;  %v704_v40 = vshrl.u32 %v6498_v10, 16  ;;  %v6705_v13 = vld [vmem:[#allocation2 + $0xb4] sm:$0xf] }
  0x4c   : > { %5360 = vmatmul.mubr.bf16.gmra.mrb[4].mxu0 %v2267_v19  ;;  %5107 = vmatprep.mubr.bf16.mxu1 %v6455_v20  ;;  %7473 = vst [vmem:[#allocation20_spill] sm:$0xff] %v6486_v57  ;;  %v690_v19 = vor.u32 %v688_v63, %v686_v9  ;;  %v2299_v37 = vsel %vm619_vm0, %v2294_v18, %v2298_v15  ;;  %v6154_v18 = vld [vmem:[%s7425_s1 + $0x38] sm:$0xff]   ;;  %v6703_v20 = vld [vmem:[#allocation2 + $0xb0] sm:$0xf] }
  0x4d   : > { %5408 = vmatpush3.bf16.msra.mxu0 %v6115_v7  ;;  %5363 = vmatprep.mubr.bf16.mxu0 %v2275_v25  ;;  %v433_v7 = vld [vmem:[#allocation2 + $0x64] sm:$0xf]  ;;  %v2302_v25 = vor.u32 %v2300_v4, %v2298_v15  ;;  %v698_v63 = vor.u32 %v696_v33, %v694_v22  ;;  %v706_v4 = vor.u32 %v704_v40, %v702_v55 }
  0x4e   : > { %5409 = vmatprep.subr.bf16.mxu0 %v6120_v16  ;;  %5152 = vmatpush3.bf16.msra.mxu1 %v6123_v6  ;;  %v2304_v6 = vshll.u32 %v6476_v47, 16  ;;  %v6514_v30 = vcombine.low %v433_v7, %v434_v8  ;;  %v6525_v39 = vsel %vm619_vm0, %v690_v19, %v694_v22  ;;  %v6536_v58 = vcombine.low %v432_v2, %v433_v7 }
  0x4f   : > { %5153 = vmatprep.subr.bf16.mxu1 %v6132_v34  ;;  %7475 = vst [vmem:[#allocation22_spill] sm:$0xff] %v6525_v39  ;;  %v712_v22 = vshrl.u32 %v6506_v23, 16 }
  0x50   : > { %v2306_v28 = vrot.slane %v2304_v6, 1  ;;  %v710_v6 = vrot.slane %v708_v43, 1  ;;  %v716_v15 = vshll.u32 %v6536_v58, 16  ;;  %v720_v32 = vshrl.u32 %v6536_v58, 16 }
  0x51   : > { %5410 = vmatpush3.bf16.msra.mxu0 %v6120_v16  ;;  %v6504_v16 = vcombine.low %v431_v50, %v432_v2 }
  0x52   : > { %5411 = vmatprep.subr.bf16.mxu0 %v6126_v46  ;;  %5154 = vmatpush3.bf16.msra.mxu1 %v6132_v34  ;;  %v6518_v34 = vsel %vm619_vm0, %v682_v14, %v686_v9  ;;  %v2307_v49 = vsel %vm619_vm0, %v2302_v25, %v2306_v28  ;;  %v2310_v1 = vor.u32 %v2308_v35, %v2306_v28  ;;  %v6549_v14 = vld [vmem:[%s7425_s1 + $0x180] sm:$0xff]   ;;  %v6560_v25 = vld [vmem:[#allocation2 + $0x74] sm:$0xf]  ;;  %v2324_v28 = vshrl.u32 %v6514_v30, 16 }
  0x53   : > { %5108 = vmatmul.mubr.bf16.gmra.mrb[8].mxu1 %v6480_v52  ;;  %5155 = vmatprep.subr.bf16.mxu1 %v6140_v11  ;;  %7474 = vst [vmem:[#allocation21_spill] sm:$0xff] %v6518_v34  ;;  %v2312_v36 = vshll.u32 %v6504_v16, 16  ;;  %v2316_v50 = vshrl.u32 %v6504_v16, 16  ;;  %v6542_v9 = vcombine.low %v434_v8, %v435_v45  ;;  %v6556_v8 = vsel %vm619_vm0, %v698_v63, %v702_v55  ;;  %v6593_v63 = vld [vmem:[#allocation2 + $0x84] sm:$0xf] }
  0x54   : > { %5364 = vmatmul.mubr.bf16.gmra.mrb[8].mxu0 %v2283_v53  ;;  %5111 = vmatprep.mubr.bf16.mxu1 %v6486_v57  ;;  %v2320_v53 = vshll.u32 %v6514_v30, 16  ;;  %7476 = vst [vmem:[#allocation23_spill] sm:$0xff] %v6556_v8  ;;  %v718_v40 = vrot.slane %v716_v15, 1 }
  0x55   : > { %5367 = vmatprep.mubr.bf16.mxu0 %v2291_v3  ;;  %5412 = vmatpush3.bf16.msra.mxu0 %v6126_v46  ;;  %v436_v46 = vld [vmem:[#allocation2 + $0x70] sm:$0xf]  ;;  %v2314_v3 = vrot.slane %v2312_v36, 1  ;;  %v724_v33 = vshll.u32 %v6542_v9, 16  ;;  %v6571_v36 = vld [vmem:[#allocation2 + $0x78] sm:$0xf] }
  0x56   : > { %5413 = vmatprep.subr.bf16.mxu0 %v6127_v61  ;;  %5156 = vmatpush3.bf16.msra.mxu1 %v6140_v11  ;;  %v6544_v11 = vcombine.low %v435_v45, %v436_v46  ;;  %v2322_v7 = vrot.slane %v2320_v53, 1  ;;  %v6577_v43 = vcombine.low %v436_v46, %v6560_v25  ;;  %v6582_v45 = vld [vmem:[%s7425_s1 + $0x80] sm:$0xff]  }
  0x57   : > { %5157 = vmatprep.subr.bf16.mxu1 %v6144_v24  ;;  %v2318_v2 = vor.u32 %v2316_v50, %v2314_v3  ;;  %v2315_v19 = vsel %vm619_vm0, %v2310_v1, %v2314_v3  ;;  %v726_v55 = vrot.slane %v724_v33, 1  ;;  %v2790_v1 = vrot.slane %v6359_v48, 1 }
  0x58   : > { %v2326_v50 = vor.u32 %v2324_v28, %v2322_v7  ;;  %v2791_v3 = vrot.slane %v6361_v51, 1 }
  0x59   : > { %5414 = vmatpush3.bf16.msra.mxu0 %v6127_v61  ;;  %v6150_v61 = vld [vmem:[%s7425_s1 + $0x30] sm:$0xff]   ;;  %v2323_v35 = vsel %vm619_vm0, %v2318_v2, %v2322_v7  ;;  %v728_v2 = vshrl.u32 %v6542_v9, 16 }
  0x5a   : > { %5415 = vmatprep.subr.bf16.mxu0 %v6133_v29  ;;  %5158 = vmatpush3.bf16.msra.mxu1 %v6144_v24  ;;  %v6564_v24 = vsel %vm619_vm0, %v706_v4, %v710_v6  ;;  %v732_v4 = vshll.u32 %v6577_v43, 16 }
  0x5b   : > { %5112 = vmatmul.mubr.bf16.gmra.mrb[12].mxu1 %v6518_v34  ;;  %5159 = vmatprep.subr.bf16.mxu1 %v6150_v61  ;;  %7477 = vst [vmem:[#allocation24_spill] sm:$0xff] %v6564_v24  ;;  %v2801_v34 = vrot.slane %v6431_v0, 1 }
  0x5c   : > { %5368 = vmatmul.mubr.bf16.gmra.mrb[12].mxu0 %v2299_v37  ;;  %5115 = vmatprep.mubr.bf16.mxu1 %v6525_v39  ;;  %v6573_v37 = vld [vmem:[#allocation2 + $0x7c] sm:$0xf]  ;;  %v734_v33 = vrot.slane %v732_v4, 1  ;;  %v6630_v4 = vld [vmem:[#allocation2 + $0x94] sm:$0xf] }
  0x5d   : > { %5371 = vmatprep.mubr.bf16.mxu0 %v2307_v49  ;;  %5416 = vmatpush3.bf16.msra.mxu0 %v6133_v29  ;;  %v2328_v29 = vshll.u32 %v6544_v11, 16  ;;  %v714_v49 = vor.u32 %v712_v22, %v710_v6  ;;  %v6589_v46 = vcombine.low %v6571_v36, %v6573_v37  ;;  %v2792_v22 = vsel %vm1427_vm1, %v2790_v1, %v2791_v3  ;;  %v6626_v1 = vld [vmem:[#allocation2 + $0x90] sm:$0xf] }
  0x5e   : > { %5417 = vmatprep.subr.bf16.mxu0 %v6139_v54  ;;  %5160 = vmatpush3.bf16.msra.mxu1 %v6150_v61  ;;  %v6591_v61 = vld [vmem:[#allocation2 + $0x80] sm:$0xf] }
  0x5f   : > { %5161 = vmatprep.subr.bf16.mxu1 %v6154_v18  ;;  %v6585_v53 = vrot.slane %v2328_v29, 1  ;;  %v6600_v6 = vsel %vm619_vm0, %v714_v49, %v718_v40  ;;  %v6613_v28 = vcombine.low %v6591_v61, %v6593_v63  ;;  %v6615_v29 = vld [vmem:[#allocation2 + $0x88] sm:$0xf] }
  0x60   : > { %7479 = vst [vmem:[#allocation26_spill] sm:$0xff] %v6600_v6 }
  0x61   : > { %5418 = vmatpush3.bf16.msra.mxu0 %v6139_v54  ;;  %7478 = vst [vmem:[#allocation25_spill] sm:$0xff] %v6585_v53  ;;  %v722_v54 = vor.u32 %v720_v32, %v718_v40  ;;  %v2331_v7 = vsel %vm619_vm0, %v2326_v50, %v6585_v53  ;;  %v6617_v32 = vld [vmem:[#allocation2 + $0x8c] sm:$0xf]  ;;  %v2793_v40 = vrot.slane %v6377_v62, 1  ;;  %v2795_v53 = vrot.slane %v6395_v21, 1 }
  0x62   : > { %5467 = vmatprep.subr.bf16.mxu0 %v6549_v14  ;;  %5162 = vmatpush3.bf16.msra.mxu1 %v6154_v18  ;;  %v740_v18 = vshll.u32 %v6589_v46, 16  ;;  %v748_v51 = vshll.u32 %v6613_v28, 16  ;;  %v752_v21 = vshrl.u32 %v6613_v28, 16 }
  0x63   : > { %5116 = vmatmul.mubr.bf16.gmra.mrb[16].mxu1 %v6556_v8  ;;  %5211 = vmatprep.subr.bf16.mxu1 %v6582_v45  ;;  %v6606_v15 = vsel %vm619_vm0, %v722_v54, %v726_v55  ;;  %v6624_v54 = vcombine.low %v6615_v29, %v6617_v32  ;;  %v2796_v48 = vsel %vm1427_vm1, %v2793_v40, %v2795_v53 }
  0x64   : > { %5372 = vmatmul.mubr.bf16.gmra.mrb[16].mxu0 %v2315_v19  ;;  %5119 = vmatprep.mubr.bf16.mxu1 %v6564_v24  ;;  %7480 = vst [vmem:[#allocation27_spill] sm:$0xff] %v6606_v15  ;;  %v736_v19 = vshrl.u32 %v6577_v43, 16  ;;  %v742_v50 = vrot.slane %v740_v18, 1  ;;  %v2794_v18 = vsel %vm1427_vm1, %v2791_v3, %v2793_v40  ;;  %v6655_v3 = vld [vmem:[#allocation2 + $0xa0] sm:$0xf] }
  0x65   : > { %5375 = vmatprep.mubr.bf16.mxu0 %v2323_v35  ;;  %v730_v35 = vor.u32 %v728_v2, %v726_v55  ;;  %v6633_v55 = vld [vmem:[#allocation2 + $0x98] sm:$0xf]  ;;  %v6635_v2 = vld [vmem:[#allocation2 + $0x9c] sm:$0xf]  ;;  %v756_v62 = vshll.u32 %v6624_v54, 16 }
  0x66   : > { %v738_v49 = vor.u32 %v736_v19, %v734_v33  ;;  %v6664_v40 = vld [vmem:[#allocation2 + $0xa8] sm:$0xf]  ;;  %v6666_v24 = vld [vmem:[#allocation2 + $0xac] sm:$0xf] }
  0x67   : > { %v6638_v19 = vsel %vm619_vm0, %v730_v35, %v734_v33  ;;  %v6652_v33 = vcombine.low %v6626_v1, %v6630_v4  ;;  %v6657_v35 = vld [vmem:[#allocation2 + $0xa4] sm:$0xf]  ;;  %v758_v39 = vrot.slane %v756_v62, 1 }
  0x68   : > { %7481 = vst [vmem:[#allocation28_spill] sm:$0xff] %v6638_v19 }
  0x69   : > { %7483 = vst [vmem:[#allocation30_spill] sm:$0xff] %v6652_v33 }
  0x6b   : > { %5120 = vmatmul.mubr.bf16.gmra.mrb[20].mxu1 %v6600_v6  ;;  %v6145_v6 = vld [vmem:[%s7425_s1 + $0x188] sm:$0xff]  }
  0x6c   : > { %5376 = vmatmul.mubr.bf16.gmra.mrb[20].mxu0 %v2331_v7  ;;  %5123 = vmatprep.mubr.bf16.mxu1 %v6606_v15  ;;  %v744_v7 = vshrl.u32 %v6589_v46, 16  ;;  %v750_v15 = vrot.slane %v748_v51, 1  ;;  %v6662_v51 = vcombine.low %v6633_v55, %v6635_v2 }
  0x6d   : > { %5419 = vmatprep.mubr.bf16.mxu0 %v2792_v22  ;;  %v6642_v22 = vsel %vm619_vm0, %v738_v49, %v742_v50 }
  0x6e   : > { %7482 = vst [vmem:[#allocation29_spill] sm:$0xff] %v6642_v22  ;;  %v746_v49 = vor.u32 %v744_v7, %v742_v50  ;;  %7484 = vst [vmem:[#allocation31_spill] sm:$0xff] %v6662_v51  ;;  %v754_v8 = vor.u32 %v752_v21, %v750_v15  ;;  %v6151_v50 = vld [vmem:[%s7425_s1 + $0x190] sm:$0xff]   ;;  %v760_v7 = vshrl.u32 %v6624_v54, 16  ;;  %v772_v62 = vshll.u32 %v6662_v51, 16 }
  0x6f   : > { %v2803_v21 = vrot.slane %v6443_v12, 1  ;;  %v776_v52 = vshrl.u32 %v6662_v51, 16  ;;  %v6172_v51 = vld [vmem:[%s7425_s1 + $0x1b0] sm:$0xff]  }
  0x70   : > { %v6692_v0 = vsel %vm619_vm0, %v754_v8, %v758_v39 }
  0x71   : > { %7487 = vst [vmem:[#allocation34_spill] sm:$0xff] %v6692_v0 }
  0x73   : > { %5124 = vmatmul.mubr.bf16.gmra.mrb[24].mxu1 %v6638_v19  ;;  %v2797_v19 = vrot.slane %v6403_v27, 1  ;;  %v6155_v27 = vld [vmem:[%s7425_s1 + $0x198] sm:$0xff]  }
  0x74   : > { %5420 = vmatmul.mubr.bf16.vlgmr.msra.gmra.mrb[0].mxu0 %v2794_v18  ;;  %5127 = vmatprep.mubr.bf16.mxu1 %v6642_v22  ;;  %v2799_v18 = vrot.slane %v6417_v42, 1  ;;  %v764_v22 = vshll.u32 %v6652_v33, 16  ;;  %v6685_v42 = vcombine.low %v6655_v3, %v6657_v35 }
  0x75   : > { %5468 = vmatpush3.bf16.msra.mxu0 %v6549_v14  ;;  %5423 = vmatprep.mubr.bf16.mxu0 %v2796_v48  ;;  %v768_v14 = vshrl.u32 %v6652_v33, 16  ;;  %v6679_v48 = vsel %vm619_vm0, %v746_v49, %v750_v15  ;;  %v2798_v57 = vsel %vm1427_vm1, %v2795_v53, %v2797_v19  ;;  %v6696_v15 = vcombine.low %v6664_v40, %v6666_v24 }
  0x76   : > { %5469 = vmatprep.subr.bf16.mxu0 %v6145_v6  ;;  %7485 = vst [vmem:[#allocation32_spill] sm:$0xff] %v6679_v48  ;;  %7486 = vst [vmem:[#allocation33_spill] sm:$0xff] %v6685_v42  ;;  %v2800_v49 = vsel %vm1427_vm1, %v2797_v19, %v2799_v18  ;;  %v766_v12 = vrot.slane %v764_v22, 1  ;;  %v762_v53 = vor.u32 %v760_v7, %v758_v39  ;;  %v780_v8 = vshll.u32 %v6685_v42, 16  ;;  %v6162_v19 = vld [vmem:[%s7425_s1 + $0x1a0] sm:$0xff]  }
  0x77   : > { %v6715_v7 = vld [vmem:[#allocation2 + $0xb8] sm:$0xf] }
  0x78   : > { %v770_v22 = vor.u32 %v768_v14, %v766_v12  ;;  %v6713_v39 = vsel %vm619_vm0, %v762_v53, %v766_v12  ;;  %v6728_v14 = vcombine.low %v6703_v20, %v6705_v13  ;;  %v2804_v12 = vsel %vm1427_vm1, %v2801_v34, %v2803_v21 }
  0x79   : > { %5470 = vmatpush3.bf16.msra.mxu0 %v6145_v6  ;;  %v774_v6 = vrot.slane %v772_v62, 1  ;;  %v6717_v62 = vld [vmem:[#allocation2 + $0xbc] sm:$0xf]  ;;  %v782_v53 = vrot.slane %v780_v8, 1 }
  0x7a   : > { %5471 = vmatprep.subr.bf16.mxu0 %v6151_v50  ;;  %v6741_v8 = vcombine.low %v6715_v7, %v6717_v62 }
  0x7b   : > { %5128 = vmatmul.mubr.bf16.gmra.mrb[28].mxu1 %v6679_v48  ;;  %v784_v48 = vshrl.u32 %v6685_v42, 16  ;;  %v778_v42 = vor.u32 %v776_v52, %v774_v6 }
  0x7c   : > { %5424 = vmatmul.mubr.bf16.gmra.mrb[4].mxu0 %v2798_v57  ;;  %5131 = vmatprep.mubr.bf16.mxu1 %v6692_v0  ;;  %v788_v57 = vshll.u32 %v6696_v15, 16  ;;  %v6166_v0 = vld [vmem:[%s7425_s1 + $0x1a8] sm:$0xff]  }
  0x7d   : > { %5427 = vmatprep.mubr.bf16.mxu0 %v2800_v49  ;;  %5472 = vmatpush3.bf16.msra.mxu0 %v6151_v50  ;;  %v2802_v49 = vsel %vm1427_vm1, %v2799_v18, %v2801_v34  ;;  %v6724_v50 = vsel %vm619_vm0, %v770_v22, %v774_v6  ;;  %v2805_v18 = vrot.slane %v6469_v38, 1  ;;  %v2807_v22 = vrot.slane %v6476_v47, 1 }
  0x7e   : > { %5473 = vmatprep.subr.bf16.mxu0 %v6155_v27  ;;  %7488 = vst [vmem:[#allocation35_spill] sm:$0xff] %v6724_v50  ;;  %v790_v33 = vrot.slane %v788_v57, 1  ;;  %v796_v34 = vshll.u32 %v6728_v14, 16  ;;  %v6744_v52 = vsel %vm619_vm0, %v778_v42, %v782_v53  ;;  %v792_v6 = vshrl.u32 %v6696_v15, 16  ;;  %v6175_v42 = vld [vmem:[%s7425_s1 + $0x1b8] sm:$0xff]  }
  0x7f   : > { %v804_v57 = vshll.u32 %v6741_v8, 16 }
  0x81   : > { %5474 = vmatpush3.bf16.msra.mxu0 %v6155_v27  ;;  %v786_v27 = vor.u32 %v784_v48, %v782_v53  ;;  %v800_v48 = vshrl.u32 %v6728_v14, 16  ;;  %v794_v53 = vor.u32 %v792_v6, %v790_v33  ;;  %v806_v38 = vrot.slane %v804_v57, 1 }
  0x82   : > { %5475 = vmatprep.subr.bf16.mxu0 %v6162_v19  ;;  %v808_v6 = vshrl.u32 %v6741_v8, 16  ;;  %v6784_v57 = vcombine.low %v6560_v25, %v6571_v36  ;;  %v6798_v36 = vcombine.low %v6573_v37, %v6591_v61  ;;  %v6813_v61 = vcombine.low %v6617_v32, %v6626_v1 }
  0x83   : > { %5132 = vmatmul.mubr.bf16.gmra.mrb[32].mxu1 %v6713_v39  ;;  %v6749_v47 = vsel %vm619_vm0, %v786_v27, %v790_v33 }
  0x84   : > { %5428 = vmatmul.mubr.bf16.gmra.mrb[8].mxu0 %v2802_v49  ;;  %5135 = vmatprep.mubr.bf16.mxu1 %v6724_v50  ;;  %v2806_v49 = vsel %vm1427_vm1, %v2803_v21, %v2805_v18  ;;  %v798_v21 = vrot.slane %v796_v34, 1  ;;  %v2811_v50 = vrot.slane %v6514_v30, 1  ;;  %v6770_v34 = vld [vmem:[%s7425_s1 + $0x1c0] sm:$0xff]   ;;  %v2821_v1 = vrot.slane %v6813_v61, 1 }
  0x85   : > { %5431 = vmatprep.mubr.bf16.mxu0 %v2804_v12  ;;  %5476 = vmatpush3.bf16.msra.mxu0 %v6162_v19  ;;  %v6753_v12 = vld [vmem:[#allocation2 + $0xc0] sm:$0xf]  ;;  %v2808_v19 = vsel %vm1427_vm1, %v2805_v18, %v2807_v22 }
  0x86   : > { %5477 = vmatprep.subr.bf16.mxu0 %v6166_v0  ;;  %v6763_v27 = vcombine.low %v6753_v12, %v6753_v12  ;;  %v802_v18 = vor.u32 %v800_v48, %v798_v21  ;;  %v6773_v33 = vsel %vm619_vm0, %v794_v53, %v798_v21  ;;  %v6789_v21 = vor.u32 %v808_v6, %v806_v38  ;;  %v6805_v6 = vld [vmem:[#allocation2] sm:$0xff]  }
  0x87   : > { %v2813_v53 = vrot.slane %v6544_v11, 1 }
  0x88   : > { %v6779_v48 = vsel %vm619_vm0, %v802_v18, %v806_v38  ;;  %v6803_v38 = vcombine.low %v6593_v63, %v6615_v29  ;;  %v6165_v29 = vld [vmem:[%s7425_s1 + $0x88] sm:$0xff]  }
  0x89   : > { %5478 = vmatpush3.bf16.msra.mxu0 %v6166_v0  ;;  %v2809_v0 = vrot.slane %v6504_v16, 1  ;;  %v2814_v25 = vsel %vm1427_vm1, %v2811_v50, %v2813_v53 }
  0x8a   : > { %5479 = vmatprep.subr.bf16.mxu0 %v6172_v51 }
  0x8b   : > { %5136 = vmatmul.mubr.bf16.gmra.mrb[36].mxu1 %v6744_v52 }
  0x8c   : > { %5432 = vmatmul.mubr.bf16.gmra.mrb[12].mxu0 %v2806_v49  ;;  %5139 = vmatprep.mubr.bf16.mxu1 %v6749_v47  ;;  %v812_v49 = vshll.u32 %v6763_v27, 16 }
  0x8d   : > { %5435 = vmatprep.mubr.bf16.mxu0 %v2808_v19  ;;  %5480 = vmatpush3.bf16.msra.mxu0 %v6172_v51  ;;  %v2810_v19 = vsel %vm1427_vm1, %v2807_v22, %v2809_v0  ;;  %v2812_v51 = vsel %vm1427_vm1, %v2809_v0, %v2811_v50  ;;  %v2819_v50 = vrot.slane %v6803_v38, 1 }
  0x8e   : > { %5481 = vmatprep.subr.bf16.mxu0 %v6175_v42  ;;  %v814_v22 = vrot.slane %v812_v49, 1  ;;  %v2817_v49 = vrot.slane %v6798_v36, 1 }
  0x90   : > { %v815_v0 = vsel %vm619_vm0, %v6789_v21, %v814_v22  ;;  %v2820_v63 = vsel %vm1427_vm1, %v2817_v49, %v2819_v50 }
  0x91   : > { %5482 = vmatpush3.bf16.msra.mxu0 %v6175_v42  ;;  %v2815_v42 = vrot.slane %v6784_v57, 1 }
  0x92   : > { %5531 = vmatprep.subr.bf16.mxu0 %v6770_v34 }
  0x93   : > { %5140 = vmatmul.mubr.bf16.gmra.mrb[40].mxu1 %v6773_v33  ;;  %v2816_v18 = vsel %vm1427_vm1, %v2813_v53, %v2815_v42  ;;  %v2818_v37 = vsel %vm1427_vm1, %v2815_v42, %v2817_v49  ;;  %v458_v53 = vld [vmem:[#allocation2 + $0xc8] sm:$0xf]  ;;  %v459_v42 = vld [vmem:[#allocation2 + $0xcc] sm:$0xf]  ;;  %v6174_v49 = vld [vmem:[%s7425_s1 + $0x98] sm:$0xff]  }
  0x94   : > { %5436 = vmatmul.mubr.bf16.gmra.mrb[16].mxu0 %v2810_v19  ;;  %5143 = vmatprep.mubr.bf16.mxu1 %v6779_v48  ;;  %v457_v19 = vld [vmem:[#allocation2 + $0xc4] sm:$0xf]  ;;  %v6828_v32 = vcombine.low %v458_v53, %v459_v42 }
  0x95   : > { %5439 = vmatprep.mubr.bf16.mxu0 %v2812_v51  ;;  %v6821_v51 = vcombine.low %v6630_v4, %v6633_v55  ;;  %v6824_v22 = vcombine.low %v6753_v12, %v457_v19  ;;  %v6170_v4 = vld [vmem:[%s7425_s1 + $0x90] sm:$0xff]  }
  0x97   : > { %v2823_v55 = vrot.slane %v6821_v51, 1 }
  0x9b   : > { %5144 = vmatmul.mubr.bf16.gmra.mrb[44].mxu1 %v815_v0  ;;  %v2822_v0 = vsel %vm1427_vm1, %v2819_v50, %v2821_v1  ;;  %v6859_v50 = vcombine.low %v6666_v24, %v6703_v20 }
  0x9c   : > { %5440 = vmatmul.mubr.bf16.gmra.mrb[20].mxu0 %v2814_v25  ;;  %5163 = vmatprep.mubr.bf16.mxu1 %v6805_v6  ;;  %v2824_v25 = vsel %vm1427_vm1, %v2821_v1, %v2823_v55 }
  0x9d   : > { %5443 = vmatprep.mubr.bf16.mxu0 %v2816_v18  ;;  %v6844_v18 = vcombine.low %v6657_v35, %v6664_v40  ;;  %v6178_v35 = vld [vmem:[%s7425_s1 + $0xa0] sm:$0xff]   ;;  %v2829_v20 = vrot.slane %v6859_v50, 1 }
  0xa3   : > { %5164 = vmatmul.mubr.bf16.vlgmr.msra.gmra.mrb[0].mxu1 %v6357_v44 }
  0xa4   : > { %5444 = vmatmul.mubr.bf16.gmra.mrb[24].mxu0 %v2818_v37  ;;  %5212 = vmatpush3.bf16.msra.mxu1 %v6582_v45  ;;  %v6839_v45 = vcombine.low %v6635_v2, %v6655_v3  ;;  %v2827_v3 = vrot.slane %v6844_v18, 1 }
  0xa5   : > { %5167 = vmatprep.mubr.bf16.mxu1 %v6369_v56  ;;  %5447 = vmatprep.mubr.bf16.mxu0 %v2820_v63  ;;  %v6864_v63 = vcombine.low %v6705_v13, %v6715_v7  ;;  %v6182_v13 = vld [vmem:[%s7425_s1 + $0xb0] sm:$0xff]   ;;  %v6878_v7 = vcombine.low %v6717_v62, %v6753_v12 }
  0xa6   : > { %5213 = vmatprep.subr.bf16.mxu1 %v6165_v29  ;;  %v2825_v2 = vrot.slane %v6839_v45, 1  ;;  %v2830_v1 = vsel %vm1427_vm1, %v2827_v3, %v2829_v20 }
  0xa7   : > { %v2831_v24 = vrot.slane %v6864_v63, 1  ;;  %v2833_v62 = vrot.slane %v6878_v7, 1 }
  0xa8   : > { %5214 = vmatpush3.bf16.msra.mxu1 %v6165_v29  ;;  %v2826_v40 = vsel %vm1427_vm1, %v2823_v55, %v2825_v2  ;;  %v2828_v37 = vsel %vm1427_vm1, %v2825_v2, %v2827_v3  ;;  %v6180_v29 = vld [vmem:[%s7425_s1 + $0xa8] sm:$0xff]   ;;  %v6882_v55 = vcombine.low %v457_v19, %v458_v53  ;;  %v6894_v19 = vld [vmem:[%s7425_s1 + $0xc0] sm:$0xff]  }
  0xa9   : > { %5215 = vmatprep.subr.bf16.mxu1 %v6170_v4  ;;  %v2834_v53 = vsel %vm1427_vm1, %v2831_v24, %v2833_v62 }
  0xaa   : > { %v2835_v12 = vrot.slane %v6882_v55, 1 }
  0xab   : > { %5168 = vmatmul.mubr.bf16.gmra.mrb[4].mxu1 %v6374_v60 }
  0xac   : > { %5448 = vmatmul.mubr.bf16.gmra.mrb[28].mxu0 %v2822_v0  ;;  %5171 = vmatprep.mubr.bf16.mxu1 %v6393_v17  ;;  %v6184_v0 = vld [vmem:[%s7425_s1 + $0xb8] sm:$0xff]  }
  0xad   : > { %5451 = vmatprep.mubr.bf16.mxu0 %v2824_v25  ;;  %5216 = vmatpush3.bf16.msra.mxu1 %v6170_v4  ;;  %v2832_v4 = vsel %vm1427_vm1, %v2829_v20, %v2831_v24  ;;  %v6897_v25 = vcombine.low %v459_v42, %v459_v42  ;;  %v6181_v42 = vld [vmem:[%s7425_s1 + $0x1c8] sm:$0xff]   ;;  %v6191_v20 = vld [vmem:[%s7425_s1 + $0x1f0] sm:$0xff]   ;;  %v6194_v24 = vld [vmem:[%s7425_s1 + $0x1f8] sm:$0xff]  }
  0xae   : > { %5217 = vmatprep.subr.bf16.mxu1 %v6174_v49 }
  0xaf   : > { %v2837_v2 = vrot.slane %v6897_v25, 1 }
  0xb1   : > { %5218 = vmatpush3.bf16.msra.mxu1 %v6174_v49  ;;  %v2836_v49 = vsel %vm1427_vm1, %v2833_v62, %v2835_v12  ;;  %v2838_v3 = vsel %vm1427_vm1, %v2835_v12, %v2837_v2  ;;  %v1429_v62 = vrot.slane %v6357_v44, 1  ;;  %v6188_v44 = vld [vmem:[%s7425_s1 + $0xc8] sm:$0xff]  }
  0xb2   : > { %5219 = vmatprep.subr.bf16.mxu1 %v6178_v35 }
  0xb3   : > { %5172 = vmatmul.mubr.bf16.gmra.mrb[8].mxu1 %v6401_v26 }
  0xb4   : > { %5452 = vmatmul.mubr.bf16.gmra.mrb[32].mxu0 %v2826_v40  ;;  %5175 = vmatprep.mubr.bf16.mxu1 %v6429_v59  ;;  %v6185_v40 = vld [vmem:[%s7425_s1 + $0x1d8] sm:$0xff]  }
  0xb5   : > { %5455 = vmatprep.mubr.bf16.mxu0 %v2828_v37  ;;  %5220 = vmatpush3.bf16.msra.mxu1 %v6178_v35  ;;  %v6183_v35 = vld [vmem:[%s7425_s1 + $0x1d0] sm:$0xff]   ;;  %v6189_v37 = vld [vmem:[%s7425_s1 + $0x1e8] sm:$0xff]  }
  0xb6   : > { %5221 = vmatprep.subr.bf16.mxu1 %v6180_v29 }
  0xb9   : > { %5222 = vmatpush3.bf16.msra.mxu1 %v6180_v29  ;;  %v7489_v29 = vld [vmem:[#allocation30_spill] sm:$0xff] }
  0xba   : > { %5223 = vmatprep.subr.bf16.mxu1 %v6182_v13 }
  0xbb   : > { %5176 = vmatmul.mubr.bf16.gmra.mrb[12].mxu1 %v6433_v5 }
  0xbc   : > { %5456 = vmatmul.mubr.bf16.gmra.mrb[36].mxu0 %v2830_v1  ;;  %5179 = vmatprep.mubr.bf16.mxu1 %v6463_v31  ;;  %v7491_v1 = vld [vmem:[#allocation33_spill] sm:$0xff] }
  0xbd   : > { %5459 = vmatprep.mubr.bf16.mxu0 %v2832_v4  ;;  %5224 = vmatpush3.bf16.msra.mxu1 %v6182_v13  ;;  %v7490_v13 = vld [vmem:[#allocation31_spill] sm:$0xff]  ;;  %v6949_v4 = vld [vmem:[%s7425_s1 + $0x200] sm:$0xff]  }
  0xbe   : > { %5225 = vmatprep.subr.bf16.mxu1 %v6184_v0 }
  0xc1   : > { %5226 = vmatpush3.bf16.msra.mxu1 %v6184_v0  ;;  %v1428_v0 = vrot.slane %v6805_v6, 1  ;;  %v1435_v6 = vrot.slane %v6393_v17, 1 }
  0xc2   : > { %5275 = vmatprep.subr.bf16.mxu1 %v6894_v19 }
  0xc3   : > { %5180 = vmatmul.mubr.bf16.gmra.mrb[16].mxu1 %v6471_v41  ;;  %v1430_v12 = vsel %vm1427_vm1, %v1428_v0, %v1429_v62 }
  0xc4   : > { %5460 = vmatmul.mubr.bf16.gmra.mrb[40].mxu0 %v2834_v53  ;;  %5183 = vmatprep.mubr.bf16.mxu1 %v6498_v10  ;;  %v1431_v53 = vrot.slane %v6369_v56, 1  ;;  %v1437_v56 = vrot.slane %v6401_v26, 1 }
  0xc5   : > { %5463 = vmatprep.mubr.bf16.mxu0 %v2836_v49  ;;  %v1433_v49 = vrot.slane %v6374_v60, 1 }
  0xc6   : > { %v1432_v2 = vsel %vm1427_vm1, %v1429_v62, %v1431_v53 }
  0xcb   : > { %5184 = vmatmul.mubr.bf16.gmra.mrb[20].mxu1 %v6506_v23 }
  0xcc   : > { %5464 = vmatmul.mubr.bf16.gmra.mrb[44].mxu0 %v2838_v3  ;;  %5187 = vmatprep.mubr.bf16.mxu1 %v6536_v58  ;;  %v1434_v3 = vsel %vm1427_vm1, %v1431_v53, %v1433_v49 }
  0xcd   : > { %5483 = vmatprep.mubr.bf16.mxu0 %v6374_v60  ;;  %v6190_v60 = vld [vmem:[%s7425_s1 + $0xd0] sm:$0xff]  }
  0xd3   : > { %5188 = vmatmul.mubr.bf16.gmra.mrb[24].mxu1 %v6542_v9 }
  0xd4   : > { %5484 = vmatmul.mubr.bf16.vlgmr.msra.gmra.mrb[0].mxu0 %v6393_v17  ;;  %5191 = vmatprep.mubr.bf16.mxu1 %v6577_v43  ;;  %v6193_v17 = vld [vmem:[%s7425_s1 + $0xd8] sm:$0xff]  }
  0xd5   : > { %5532 = vmatpush3.bf16.msra.mxu0 %v6770_v34  ;;  %5487 = vmatprep.mubr.bf16.mxu0 %v6401_v26  ;;  %v6187_v34 = vld [vmem:[%s7425_s1 + $0x1e0] sm:$0xff]   ;;  %v1439_v26 = vrot.slane %v6429_v59, 1 }
  0xd6   : > { %5533 = vmatprep.subr.bf16.mxu0 %v6181_v42 }
  0xd9   : > { %5534 = vmatpush3.bf16.msra.mxu0 %v6181_v42  ;;  %v6978_v42 = vsel %vm1427_vm1, %v1433_v49, %v1435_v6 }
  0xda   : > { %5535 = vmatprep.subr.bf16.mxu0 %v6183_v35 }
  0xdb   : > { %5192 = vmatmul.mubr.bf16.gmra.mrb[28].mxu1 %v6589_v46 }
  0xdc   : > { %5488 = vmatmul.mubr.bf16.gmra.mrb[4].mxu0 %v6429_v59  ;;  %5195 = vmatprep.mubr.bf16.mxu1 %v6613_v28  ;;  %v6199_v59 = vld [vmem:[%s7425_s1 + $0xe8] sm:$0xff]  }
  0xdd   : > { %5491 = vmatprep.mubr.bf16.mxu0 %v6433_v5  ;;  %5536 = vmatpush3.bf16.msra.mxu0 %v6183_v35  ;;  %v6981_v35 = vsel %vm1427_vm1, %v1435_v6, %v1437_v56 }
  0xde   : > { %5537 = vmatprep.subr.bf16.mxu0 %v6185_v40 }
  0xe1   : > { %5538 = vmatpush3.bf16.msra.mxu0 %v6185_v40  ;;  %v6197_v40 = vld [vmem:[%s7425_s1 + $0xe0] sm:$0xff]  }
  0xe2   : > { %5539 = vmatprep.subr.bf16.mxu0 %v6187_v34 }
  0xe3   : > { %5196 = vmatmul.mubr.bf16.gmra.mrb[32].mxu1 %v6624_v54 }
  0xe4   : > { %5492 = vmatmul.mubr.bf16.gmra.mrb[8].mxu0 %v6463_v31  ;;  %5199 = vmatprep.mubr.bf16.mxu1 %v7489_v29 }
  0xe5   : > { %5495 = vmatprep.mubr.bf16.mxu0 %v6471_v41  ;;  %5540 = vmatpush3.bf16.msra.mxu0 %v6187_v34  ;;  %v6996_v34 = vsel %vm1427_vm1, %v1437_v56, %v1439_v26  ;;  %v7492_v56 = vld [vmem:[#allocation15_spill] sm:$0xff] }
  0xe6   : > { %5541 = vmatprep.subr.bf16.mxu0 %v6189_v37 }
  0xe9   : > { %5542 = vmatpush3.bf16.msra.mxu0 %v6189_v37 }
  0xea   : > { %5543 = vmatprep.subr.bf16.mxu0 %v6191_v20 }
  0xeb   : > { %5200 = vmatmul.mubr.bf16.gmra.mrb[36].mxu1 %v7490_v13 }
  0xec   : > { %5496 = vmatmul.mubr.bf16.gmra.mrb[12].mxu0 %v6498_v10  ;;  %5203 = vmatprep.mubr.bf16.mxu1 %v7491_v1 }
  0xed   : > { %5499 = vmatprep.mubr.bf16.mxu0 %v6506_v23  ;;  %5544 = vmatpush3.bf16.msra.mxu0 %v6191_v20  ;;  %v1445_v20 = vrot.slane %v6471_v41, 1  ;;  %v1447_v41 = vrot.slane %v6498_v10, 1  ;;  %v1451_v10 = vrot.slane %v6536_v58, 1 }
  0xee   : > { %5545 = vmatprep.subr.bf16.mxu0 %v6194_v24 }
  0xef   : > { %v7029_v53 = vsel %vm1427_vm1, %v1445_v20, %v1447_v41 }
  0xf1   : > { %5546 = vmatpush3.bf16.msra.mxu0 %v6194_v24  ;;  %v6201_v24 = vld [vmem:[%s7425_s1 + $0xf0] sm:$0xff]  }
  0xf2   : > { %5595 = vmatprep.subr.bf16.mxu0 %v6949_v4 }
  0xf3   : > { %5204 = vmatmul.mubr.bf16.gmra.mrb[40].mxu1 %v6696_v15 }
  0xf4   : > { %5500 = vmatmul.mubr.bf16.gmra.mrb[16].mxu0 %v6536_v58  ;;  %5207 = vmatprep.mubr.bf16.mxu1 %v6728_v14  ;;  %v1455_v58 = vrot.slane %v6577_v43, 1 }
  0xf5   : > { %5503 = vmatprep.mubr.bf16.mxu0 %v6542_v9 }
  0xfb   : > { %5208 = vmatmul.mubr.bf16.gmra.mrb[44].mxu1 %v6741_v8 }
  0xfc   : > { %5504 = vmatmul.mubr.bf16.gmra.mrb[20].mxu0 %v6577_v43  ;;  %5227 = vmatprep.mubr.bf16.mxu1 %v1430_v12  ;;  %v1449_v12 = vrot.slane %v6506_v23, 1  ;;  %v1453_v23 = vrot.slane %v6542_v9, 1  ;;  %v1457_v9 = vrot.slane %v6589_v46, 1  ;;  %v1459_v43 = vrot.slane %v6613_v28, 1 }
  0xfd   : > { %5507 = vmatprep.mubr.bf16.mxu0 %v6589_v46  ;;  %v7494_v46 = vld [vmem:[#allocation19_spill] sm:$0xff] }
  0xfe   : > { %v7032_v49 = vsel %vm1427_vm1, %v1447_v41, %v1449_v12  ;;  %v7052_v6 = vsel %vm1427_vm1, %v1451_v10, %v1453_v23  ;;  %v6205_v41 = vld [vmem:[%s7425_s1 + $0x220] sm:$0xff]  }
 0x103   : > { %5228 = vmatmul.mubr.bf16.vlgmr.msra.gmra.mrb[0].mxu1 %v1432_v2  ;;  %v7037_v2 = vld [vmem:[%s7425_s1 + $0x100] sm:$0xff]  }
 0x104   : > { %5508 = vmatmul.mubr.bf16.gmra.mrb[24].mxu0 %v6613_v28  ;;  %5276 = vmatpush3.bf16.msra.mxu1 %v6894_v19  ;;  %v1441_v19 = vrot.slane %v6433_v5, 1  ;;  %v1443_v5 = vrot.slane %v6463_v31, 1  ;;  %v6203_v31 = vld [vmem:[%s7425_s1 + $0xf8] sm:$0xff]  }
 0x105   : > { %5231 = vmatprep.mubr.bf16.mxu1 %v1434_v3  ;;  %5511 = vmatprep.mubr.bf16.mxu0 %v6624_v54  ;;  %v7047_v3 = vsel %vm1427_vm1, %v1449_v12, %v1451_v10  ;;  %v6204_v28 = vld [vmem:[%s7425_s1 + $0x218] sm:$0xff]  }
 0x106   : > { %5277 = vmatprep.subr.bf16.mxu1 %v6188_v44  ;;  %v6999_v37 = vsel %vm1427_vm1, %v1439_v26, %v1441_v19  ;;  %v7014_v0 = vsel %vm1427_vm1, %v1441_v19, %v1443_v5  ;;  %v7017_v62 = vsel %vm1427_vm1, %v1443_v5, %v1445_v20  ;;  %v6200_v26 = vld [vmem:[%s7425_s1 + $0x208] sm:$0xff]   ;;  %v7493_v19 = vld [vmem:[#allocation16_spill] sm:$0xff]  ;;  %v7080_v5 = vsel %vm1427_vm1, %v1457_v9, %v1459_v43 }
 0x108   : > { %5278 = vmatpush3.bf16.msra.mxu1 %v6188_v44  ;;  %v7049_v44 = vld [vmem:[#allocation2 + $0xd0] sm:$0xff]  }
 0x109   : > { %5279 = vmatprep.subr.bf16.mxu1 %v6190_v60 }
 0x10b   : > { %5232 = vmatmul.mubr.bf16.gmra.mrb[4].mxu1 %v6978_v42 }
 0x10c   : > { %5512 = vmatmul.mubr.bf16.gmra.mrb[28].mxu0 %v7489_v29  ;;  %5235 = vmatprep.mubr.bf16.mxu1 %v6981_v35 }
 0x10d   : > { %5515 = vmatprep.mubr.bf16.mxu0 %v7490_v13  ;;  %5280 = vmatpush3.bf16.msra.mxu1 %v6190_v60  ;;  %v7061_v60 = vsel %vm1427_vm1, %v1453_v23, %v1455_v58  ;;  %v1467_v23 = vrot.slane %v7491_v1, 1 }
 0x10e   : > { %5281 = vmatprep.subr.bf16.mxu1 %v6193_v17 }
 0x111   : > { %5282 = vmatpush3.bf16.msra.mxu1 %v6193_v17  ;;  %v7064_v17 = vsel %vm1427_vm1, %v1455_v58, %v1457_v9  ;;  %v7498_v58 = vld [vmem:[#allocation23_spill] sm:$0xff]  ;;  %v6207_v9 = vld [vmem:[%s7425_s1 + $0x230] sm:$0xff]  }
 0x112   : > { %5283 = vmatprep.subr.bf16.mxu1 %v6197_v40 }
 0x113   : > { %5236 = vmatmul.mubr.bf16.gmra.mrb[8].mxu1 %v6996_v34 }
 0x114   : > { %5516 = vmatmul.mubr.bf16.gmra.mrb[32].mxu0 %v7491_v1  ;;  %5239 = vmatprep.mubr.bf16.mxu1 %v6999_v37  ;;  %v6208_v1 = vld [vmem:[%s7425_s1 + $0x238] sm:$0xff]  }
 0x115   : > { %5519 = vmatprep.mubr.bf16.mxu0 %v6696_v15  ;;  %5284 = vmatpush3.bf16.msra.mxu1 %v6197_v40  ;;  %v1461_v40 = vrot.slane %v6624_v54, 1  ;;  %v7495_v54 = vld [vmem:[#allocation20_spill] sm:$0xff] }
 0x116   : > { %5285 = vmatprep.subr.bf16.mxu1 %v6199_v59 }
 0x117   : > { %v7083_v20 = vsel %vm1427_vm1, %v1459_v43, %v1461_v40  ;;  %v1471_v43 = vrot.slane %v6728_v14, 1 }
 0x119   : > { %5286 = vmatpush3.bf16.msra.mxu1 %v6199_v59  ;;  %v6202_v59 = vld [vmem:[%s7425_s1 + $0x210] sm:$0xff]  }
 0x11a   : > { %5287 = vmatprep.subr.bf16.mxu1 %v6201_v24 }
 0x11b   : > { %5240 = vmatmul.mubr.bf16.gmra.mrb[12].mxu1 %v7014_v0 }
 0x11c   : > { %5520 = vmatmul.mubr.bf16.gmra.mrb[36].mxu0 %v6728_v14  ;;  %5243 = vmatprep.mubr.bf16.mxu1 %v7017_v62  ;;  %v1475_v14 = vrot.slane %v6763_v27, 1  ;;  %v6212_v27 = vld [vmem:[%s7425_s1 + $0x108] sm:$0xff]  }
 0x11d   : > { %5523 = vmatprep.mubr.bf16.mxu0 %v6741_v8  ;;  %5288 = vmatpush3.bf16.msra.mxu1 %v6201_v24  ;;  %v7496_v24 = vld [vmem:[#allocation21_spill] sm:$0xff] }
 0x11e   : > { %5289 = vmatprep.subr.bf16.mxu1 %v6203_v31 }
 0x121   : > { %5290 = vmatpush3.bf16.msra.mxu1 %v6203_v31  ;;  %v1465_v31 = vrot.slane %v7490_v13, 1  ;;  %v7497_v13 = vld [vmem:[#allocation22_spill] sm:$0xff] }
 0x122   : > { %5659 = vmatprep.subr.bf16.mxu1 %v7037_v2 }
 0x123   : > { %5244 = vmatmul.mubr.bf16.gmra.mrb[16].mxu1 %v7029_v53 }
 0x124   : > { %5524 = vmatmul.mubr.bf16.gmra.mrb[40].mxu0 %v6824_v22  ;;  %5247 = vmatprep.mubr.bf16.mxu1 %v7032_v49 }
 0x125   : > { %5527 = vmatprep.mubr.bf16.mxu0 %v6828_v32 }
 0x12b   : > { %5248 = vmatmul.mubr.bf16.gmra.mrb[20].mxu1 %v7047_v3 }
 0x12c   : > { %5528 = vmatmul.mubr.bf16.gmra.mrb[44].mxu0 %v7049_v44  ;;  %5251 = vmatprep.mubr.bf16.mxu1 %v7052_v6 }
 0x12d   : > { %5547 = vmatprep.mubr.bf16.mxu0 %v7492_v56  ;;  %v1469_v56 = vrot.slane %v6696_v15, 1  ;;  %v7499_v15 = vld [vmem:[#allocation24_spill] sm:$0xff] }
 0x133   : > { %5252 = vmatmul.mubr.bf16.gmra.mrb[24].mxu1 %v7061_v60 }
 0x134   : > { %5548 = vmatmul.mubr.bf16.vlgmr.msra.gmra.mrb[0].mxu0 %v7493_v19  ;;  %5255 = vmatprep.mubr.bf16.mxu1 %v7064_v17  ;;  %v7119_v19 = vsel %vm1427_vm1, %v1467_v23, %v1469_v56 }
 0x135   : > { %5596 = vmatpush3.bf16.msra.mxu0 %v6949_v4  ;;  %5551 = vmatprep.mubr.bf16.mxu0 %v7494_v46  ;;  %v1463_v4 = vrot.slane %v7489_v29, 1  ;;  %v6206_v29 = vld [vmem:[%s7425_s1 + $0x228] sm:$0xff]   ;;  %v7500_v46 = vld [vmem:[#allocation26_spill] sm:$0xff] }
 0x136   : > { %5597 = vmatprep.subr.bf16.mxu0 %v6200_v26 }
 0x137   : > { %v7098_v12 = vsel %vm1427_vm1, %v1461_v40, %v1463_v4  ;;  %v7101_v10 = vsel %vm1427_vm1, %v1463_v4, %v1465_v31  ;;  %v7130_v40 = vrot.slane %v6741_v8, 1  ;;  %v7502_v8 = vld [vmem:[#allocation28_spill] sm:$0xff] }
 0x139   : > { %5598 = vmatpush3.bf16.msra.mxu0 %v6200_v26  ;;  %v7116_v26 = vsel %vm1427_vm1, %v1465_v31, %v1467_v23  ;;  %v1476_v4 = vsel %vm1427_vm1, %v7130_v40, %v1475_v14  ;;  %v7504_v31 = vld [vmem:[#allocation7_spill] sm:$0xff]  ;;  %v7508_v23 = vld [vmem:[#allocation9_spill] sm:$0xff]  ;;  %v3561_v14 = vshll.u32 %v6828_v32, 16 }
 0x13a   : > { %5599 = vmatprep.subr.bf16.mxu0 %v6202_v59 }
 0x13b   : > { %5256 = vmatmul.mubr.bf16.gmra.mrb[28].mxu1 %v7080_v5 }
 0x13c   : > { %5552 = vmatmul.mubr.bf16.gmra.mrb[4].mxu0 %v7495_v54  ;;  %5259 = vmatprep.mubr.bf16.mxu1 %v7083_v20  ;;  %v7501_v54 = vld [vmem:[#allocation27_spill] sm:$0xff] }
 0x13d   : > { %5555 = vmatprep.mubr.bf16.mxu0 %v7496_v24  ;;  %5600 = vmatpush3.bf16.msra.mxu0 %v6202_v59  ;;  %v7133_v59 = vsel %vm1427_vm1, %v1469_v56, %v1471_v43  ;;  %v7503_v24 = vld [vmem:[#allocation29_spill] sm:$0xff]  ;;  %v7509_v56 = vld [vmem:[#allocation10_spill] sm:$0xff] }
 0x13e   : > { %5601 = vmatprep.subr.bf16.mxu0 %v6204_v28 }
 0x141   : > { %5602 = vmatpush3.bf16.msra.mxu0 %v6204_v28  ;;  %v7137_v28 = vsel %vm1427_vm1, %v1471_v43, %v7130_v40  ;;  %v7512_v43 = vld [vmem:[#allocation12_spill] sm:$0xff] }
 0x142   : > { %5603 = vmatprep.subr.bf16.mxu0 %v6205_v41 }
 0x143   : > { %5260 = vmatmul.mubr.bf16.gmra.mrb[32].mxu1 %v7098_v12 }
 0x144   : > { %5556 = vmatmul.mubr.bf16.gmra.mrb[8].mxu0 %v7497_v13  ;;  %5263 = vmatprep.mubr.bf16.mxu1 %v7101_v10  ;;  %v7507_v13 = vld [vmem:[#allocation34_spill] sm:$0xff] }
 0x145   : > { %5559 = vmatprep.mubr.bf16.mxu0 %v7498_v58  ;;  %5604 = vmatpush3.bf16.msra.mxu0 %v6205_v41  ;;  %v7505_v41 = vld [vmem:[#allocation32_spill] sm:$0xff] }
 0x146   : > { %5605 = vmatprep.subr.bf16.mxu0 %v6206_v29  ;;  %v6213_v58 = vld [vmem:[%s7425_s1 + $0x110] sm:$0xff]  }
 0x149   : > { %5606 = vmatpush3.bf16.msra.mxu0 %v6206_v29  ;;  %v7506_v29 = vld [vmem:[#allocation8_spill] sm:$0xff] }
 0x14a   : > { %5607 = vmatprep.subr.bf16.mxu0 %v6207_v9 }
 0x14b   : > { %5264 = vmatmul.mubr.bf16.gmra.mrb[36].mxu1 %v7116_v26 }
 0x14c   : > { %5560 = vmatmul.mubr.bf16.gmra.mrb[12].mxu0 %v7499_v15  ;;  %5267 = vmatprep.mubr.bf16.mxu1 %v7119_v19  ;;  %v6215_v15 = vld [vmem:[%s7425_s1 + $0x120] sm:$0xff]  }
 0x14d   : > { %5563 = vmatprep.mubr.bf16.mxu0 %v7500_v46  ;;  %5608 = vmatpush3.bf16.msra.mxu0 %v6207_v9  ;;  %v7510_v9 = vld [vmem:[#allocation35_spill] sm:$0xff]  ;;  %v7513_v46 = vld [vmem:[#allocation13_spill] sm:$0xff] }
 0x14e   : > { %5609 = vmatprep.subr.bf16.mxu0 %v6208_v1 }
 0x151   : > { %5610 = vmatpush3.bf16.msra.mxu0 %v6208_v1  ;;  %v3553_v1 = vshll.u32 %v6824_v22, 16 }
 0x153   : > { %5268 = vmatmul.mubr.bf16.gmra.mrb[40].mxu1 %v7133_v59 }
 0x154   : > { %5564 = vmatmul.mubr.bf16.gmra.mrb[16].mxu0 %v7501_v54  ;;  %5271 = vmatprep.mubr.bf16.mxu1 %v7137_v28  ;;  %v6216_v54 = vld [vmem:[%s7425_s1 + $0x128] sm:$0xff]  }
 0x155   : > { %5567 = vmatprep.mubr.bf16.mxu0 %v7502_v8  ;;  %v3557_v8 = vshrl.u32 %v6824_v22, 16 }
 0x15b   : > { %5272 = vmatmul.mubr.bf16.gmra.mrb[44].mxu1 %v1476_v4 }
 0x15c   : > { %5568 = vmatmul.mubr.bf16.gmra.mrb[20].mxu0 %v7503_v24  ;;  %5291 = vmatprep.mubr.bf16.mxu1 %v7504_v31  ;;  %v3569_v24 = vshll.u32 %v7049_v44, 16  ;;  %v7514_v31 = vld [vmem:[#allocation14_spill] sm:$0xff] }
 0x15d   : > { %5571 = vmatprep.mubr.bf16.mxu0 %v7505_v41  ;;  %v7515_v41 = vld [vmem:[#allocation17_spill] sm:$0xff] }
 0x163   : > { %5292 = vmatmul.mubr.bf16.vlgmr.msra.gmra.mrb[0].mxu1 %v7506_v29  ;;  %v3563_v29 = vrot.slane %v3561_v14, 1  ;;  %v2368_v14 = vshll.u32 %v6821_v51, 16 }
 0x164   : > { %5572 = vmatmul.mubr.bf16.gmra.mrb[24].mxu0 %v7507_v13  ;;  %5667 = vmatpush3.bf16.msra.mxu1 %v7037_v2  ;;  %v7511_v2 = vld [vmem:[#allocation11_spill] sm:$0xff] }
 0x165   : > { %5295 = vmatprep.mubr.bf16.mxu1 %v7508_v23  ;;  %5575 = vmatprep.mubr.bf16.mxu0 %v6713_v39  ;;  %v6214_v39 = vld [vmem:[%s7425_s1 + $0x118] sm:$0xff]  }
 0x166   : > { %5660 = vmatprep.subr.bf16.mxu1 %v6212_v27  ;;  %v7190_v23 = vld [vmem:[#allocation2 + $0xd8] ss:$0 sps:$4 sm:$0xff]  }
 0x168   : > { %5668 = vmatpush3.bf16.msra.mxu1 %v6212_v27  ;;  %v3571_v27 = vrot.slane %v3569_v24, 1  ;;  %v2372_v24 = vshrl.u32 %v6821_v51, 16 }
 0x169   : > { %5661 = vmatprep.subr.bf16.mxu1 %v6213_v58 }
 0x16b   : > { %5296 = vmatmul.mubr.bf16.gmra.mrb[4].mxu1 %v7509_v56 }
 0x16c   : > { %5576 = vmatmul.mubr.bf16.gmra.mrb[28].mxu0 %v7510_v9  ;;  %5299 = vmatprep.mubr.bf16.mxu1 %v7511_v2  ;;  %v3573_v9 = vshrl.u32 %v7049_v44, 16 }
 0x16d   : > { %5579 = vmatprep.mubr.bf16.mxu0 %v6744_v52  ;;  %5669 = vmatpush3.bf16.msra.mxu1 %v6213_v58  ;;  %v3555_v52 = vrot.slane %v3553_v1, 1  ;;  %v6218_v58 = vld [vmem:[%s7425_s1 + $0x138] sm:$0xff]  }
 0x16e   : > { %5662 = vmatprep.subr.bf16.mxu1 %v6214_v39  ;;  %v3575_v1 = vor.u32 %v3573_v9, %v3571_v27 }
 0x16f   : > { %v3556_v4 = vsel %vm619_vm0, %v6789_v21, %v3555_v52  ;;  %v3559_v13 = vor.u32 %v3557_v8, %v3555_v52  ;;  %v2356_v52 = vshrl.u32 %v6803_v38, 16 }
 0x171   : > { %5670 = vmatpush3.bf16.msra.mxu1 %v6214_v39  ;;  %v3564_v56 = vsel %vm619_vm0, %v3559_v13, %v3563_v29  ;;  %v7516_v39 = vld [vmem:[#allocation18_spill] sm:$0xff]  ;;  %v2392_v13 = vshll.u32 %v6859_v50, 16 }
 0x172   : > { %5663 = vmatprep.subr.bf16.mxu1 %v6215_v15 }
 0x173   : > { %5300 = vmatmul.mubr.bf16.gmra.mrb[8].mxu1 %v7512_v43 }
 0x174   : > { %5580 = vmatmul.mubr.bf16.gmra.mrb[32].mxu0 %v6749_v47  ;;  %5303 = vmatprep.mubr.bf16.mxu1 %v7513_v46  ;;  %v3565_v47 = vshrl.u32 %v6828_v32, 16  ;;  %v2360_v46 = vshll.u32 %v6813_v61, 16 }
 0x175   : > { %5583 = vmatprep.mubr.bf16.mxu0 %v6773_v33  ;;  %5671 = vmatpush3.bf16.msra.mxu1 %v6215_v15  ;;  %v6217_v33 = vld [vmem:[%s7425_s1 + $0x130] sm:$0xff]  }
 0x176   : > { %5664 = vmatprep.subr.bf16.mxu1 %v6216_v54  ;;  %v3567_v21 = vor.u32 %v3565_v47, %v3563_v29  ;;  %v2376_v47 = vshll.u32 %v6839_v45, 16 }
 0x178   : > { %v3572_v2 = vsel %vm619_vm0, %v3567_v21, %v3571_v27  ;;  %v2388_v21 = vshrl.u32 %v6844_v18, 16  ;;  %v2396_v27 = vshrl.u32 %v6859_v50, 16 }
 0x179   : > { %5672 = vmatpush3.bf16.msra.mxu1 %v6216_v54  ;;  %v2364_v54 = vshrl.u32 %v6813_v61, 16 }
 0x17a   : > { %5665 = vmatprep.subr.bf16.mxu1 %v6217_v33 }
 0x17b   : > { %5304 = vmatmul.mubr.bf16.gmra.mrb[12].mxu1 %v7514_v31  ;;  %v2384_v31 = vshll.u32 %v6844_v18, 16 }
 0x17c   : > { %5584 = vmatmul.mubr.bf16.gmra.mrb[36].mxu0 %v6779_v48  ;;  %5307 = vmatprep.mubr.bf16.mxu1 %v7515_v41  ;;  %v3577_v48 = vshll.u32 %v7190_v23, 16 }
 0x17d   : > { %5587 = vmatprep.mubr.bf16.mxu0 %v3556_v4  ;;  %5673 = vmatpush3.bf16.msra.mxu1 %v6217_v33  ;;  %v2370_v4 = vrot.slane %v2368_v14, 1  ;;  %v2380_v33 = vshrl.u32 %v6839_v45, 16  ;;  %v2386_v29 = vrot.slane %v2384_v31, 1 }
 0x17e   : > { %5666 = vmatprep.subr.bf16.mxu1 %v6218_v58  ;;  %v3579_v15 = vrot.slane %v3577_v48, 1  ;;  %v3923_v48 = vrot.slane %v6824_v22, 1 }
 0x180   : > { %v3580_v43 = vsel %vm619_vm0, %v3575_v1, %v3579_v15  ;;  %v2412_v1 = vshrl.u32 %v6878_v7, 16  ;;  %v3924_v15 = vsel %vm1427_vm1, %v7130_v40, %v3923_v48 }
 0x181   : > { %5674 = vmatpush3.bf16.msra.mxu1 %v6218_v58  ;;  %v2400_v58 = vshll.u32 %v6864_v63, 16 }
 0x183   : > { %5308 = vmatmul.mubr.bf16.gmra.mrb[16].mxu1 %v7516_v39  ;;  %v2402_v9 = vrot.slane %v2400_v58, 1 }
 0x184   : > { %5588 = vmatmul.mubr.bf16.gmra.mrb[40].mxu0 %v3564_v56  ;;  %5311 = vmatprep.mubr.bf16.mxu1 %v6504_v16  ;;  %v2332_v16 = vshrl.u32 %v6544_v11, 16 }
 0x185   : > { %5591 = vmatprep.mubr.bf16.mxu0 %v3572_v2 }
 0x18b   : > { %5312 = vmatmul.mubr.bf16.gmra.mrb[20].mxu1 %v6514_v30  ;;  %v2336_v30 = vshll.u32 %v6784_v57, 16 }
 0x18c   : > { %5592 = vmatmul.mubr.bf16.gmra.mrb[44].mxu0 %v3580_v43  ;;  %5315 = vmatprep.mubr.bf16.mxu1 %v6544_v11  ;;  %v2348_v11 = vshrl.u32 %v6798_v36, 16  ;;  %v3925_v43 = vrot.slane %v6828_v32, 1 }
 0x18d   : > { %5611 = vmatprep.mubr.bf16.mxu0 %v6978_v42  ;;  %v7517_v42 = vld [vmem:[#allocation25_spill] sm:$0xff] }
 0x18e   : > { %v3926_v40 = vsel %vm1427_vm1, %v3923_v48, %v3925_v43 }
 0x193   : > { %5316 = vmatmul.mubr.bf16.gmra.mrb[24].mxu1 %v6784_v57 }
 0x194   : > { %5612 = vmatmul.mubr.bf16.vlgmr.msra.gmra.mrb[0].mxu0 %v6981_v35  ;;  %5319 = vmatprep.mubr.bf16.mxu1 %v6798_v36  ;;  %v2334_v35 = vor.u32 %v2332_v16, %v7517_v42  ;;  %v2420_v42 = vshrl.u32 %v6882_v55, 16 }
 0x195   : > { %5615 = vmatprep.mubr.bf16.mxu0 %v6996_v34  ;;  %v2338_v34 = vrot.slane %v2336_v30, 1  ;;  %v3927_v30 = vrot.slane %v7049_v44, 1  ;;  %v3929_v44 = vrot.slane %v7190_v23, 1 }
 0x19b   : > { %5320 = vmatmul.mubr.bf16.gmra.mrb[28].mxu1 %v6803_v38 }
 0x19c   : > { %5616 = vmatmul.mubr.bf16.gmra.mrb[4].mxu0 %v6999_v37  ;;  %5323 = vmatprep.mubr.bf16.mxu1 %v6813_v61  ;;  %v2344_v37 = vshll.u32 %v6798_v36, 16 }
 0x19d   : > { %5619 = vmatprep.mubr.bf16.mxu0 %v7014_v0  ;;  %v2340_v0 = vshrl.u32 %v6784_v57, 16 }
 0x1a3   : > { %5324 = vmatmul.mubr.bf16.gmra.mrb[32].mxu1 %v6821_v51 }
 0x1a4   : > { %5620 = vmatmul.mubr.bf16.gmra.mrb[8].mxu0 %v7017_v62  ;;  %5327 = vmatprep.mubr.bf16.mxu1 %v6839_v45  ;;  %v2339_v62 = vsel %vm619_vm0, %v2334_v35, %v2338_v34  ;;  %v2424_v35 = vshll.u32 %v6897_v25, 16 }
 0x1a5   : > { %5623 = vmatprep.mubr.bf16.mxu0 %v7029_v53  ;;  %v2352_v53 = vshll.u32 %v6803_v38, 16 }
 0x1ab   : > { %5328 = vmatmul.mubr.bf16.gmra.mrb[36].mxu1 %v6844_v18  ;;  %v2408_v18 = vshll.u32 %v6878_v7, 16 }
 0x1ac   : > { %5624 = vmatmul.mubr.bf16.gmra.mrb[12].mxu0 %v7032_v49  ;;  %5331 = vmatprep.mubr.bf16.mxu1 %v6859_v50  ;;  %v2346_v49 = vrot.slane %v2344_v37, 1  ;;  %v2404_v50 = vshrl.u32 %v6864_v63, 16  ;;  %v2426_v37 = vrot.slane %v2424_v35, 1 }
 0x1ad   : > { %5627 = vmatprep.mubr.bf16.mxu0 %v7047_v3  ;;  %v2342_v3 = vor.u32 %v2340_v0, %v2338_v34 }
 0x1ae   : > { %v2406_v22 = vor.u32 %v2404_v50, %v2402_v9 }
 0x1af   : > { %v2347_v57 = vsel %vm619_vm0, %v2342_v3, %v2346_v49 }
 0x1b3   : > { %5332 = vmatmul.mubr.bf16.gmra.mrb[40].mxu1 %v6864_v63 }
 0x1b4   : > { %5628 = vmatmul.mubr.bf16.gmra.mrb[16].mxu0 %v7052_v6  ;;  %5335 = vmatprep.mubr.bf16.mxu1 %v6878_v7  ;;  %v2350_v6 = vor.u32 %v2348_v11, %v2346_v49 }
 0x1b5   : > { %5631 = vmatprep.mubr.bf16.mxu0 %v7061_v60  ;;  %v2354_v60 = vrot.slane %v2352_v53, 1 }
 0x1b7   : > { %v2355_v36 = vsel %vm619_vm0, %v2350_v6, %v2354_v60 }
 0x1bb   : > { %5336 = vmatmul.mubr.bf16.gmra.mrb[44].mxu1 %v6882_v55 }
 0x1bc   : > { %5632 = vmatmul.mubr.bf16.gmra.mrb[20].mxu0 %v7064_v17  ;;  %5379 = vmatprep.mubr.bf16.mxu1 %v2339_v62  ;;  %v2362_v17 = vrot.slane %v2360_v46, 1 }
 0x1bd   : > { %5635 = vmatprep.mubr.bf16.mxu0 %v7080_v5  ;;  %v2358_v5 = vor.u32 %v2356_v52, %v2354_v60 }
 0x1be   : > { %v2366_v8 = vor.u32 %v2364_v54, %v2362_v17 }
 0x1bf   : > { %v2363_v38 = vsel %vm619_vm0, %v2358_v5, %v2362_v17 }
 0x1c0   : > { %v2371_v61 = vsel %vm619_vm0, %v2366_v8, %v2370_v4 }
 0x1c3   : > { %5380 = vmatmul.mubr.bf16.vlgmr.msra.gmra.mrb[24].mxu1 %v2347_v57 }
 0x1c4   : > { %5636 = vmatmul.mubr.bf16.gmra.mrb[24].mxu0 %v7083_v20  ;;  %5383 = vmatprep.mubr.bf16.mxu1 %v2355_v36  ;;  %v2378_v20 = vrot.slane %v2376_v47, 1 }
 0x1c5   : > { %5639 = vmatprep.mubr.bf16.mxu0 %v7098_v12  ;;  %v2374_v12 = vor.u32 %v2372_v24, %v2370_v4 }
 0x1c6   : > { %v2382_v41 = vor.u32 %v2380_v33, %v2378_v20 }
 0x1c7   : > { %v2379_v51 = vsel %vm619_vm0, %v2374_v12, %v2378_v20  ;;  %v7306_v20 = vld [vmem:[%s7426_s2] ss:$0 sm:$0xff] }
 0x1c8   : > { %v2387_v45 = vsel %vm619_vm0, %v2382_v41, %v2386_v29 }
 0x1cb   : > { %5384 = vmatmul.mubr.bf16.gmra.mrb[28].mxu1 %v2363_v38 }
 0x1cc   : > { %5640 = vmatmul.mubr.bf16.gmra.mrb[28].mxu0 %v7101_v10  ;;  %5387 = vmatprep.mubr.bf16.mxu1 %v2371_v61  ;;  %v2394_v10 = vrot.slane %v2392_v13, 1 }
 0x1cd   : > { %5643 = vmatprep.mubr.bf16.mxu0 %v7116_v26  ;;  %v2390_v26 = vor.u32 %v2388_v21, %v2386_v29 }
 0x1ce   : > { %v2398_v56 = vor.u32 %v2396_v27, %v2394_v10 }
 0x1cf   : > { %v2395_v2 = vsel %vm619_vm0, %v2390_v26, %v2394_v10 }
 0x1d0   : > { %v2403_v39 = vsel %vm619_vm0, %v2398_v56, %v2402_v9 }
 0x1d3   : > { %5388 = vmatmul.mubr.bf16.gmra.mrb[32].mxu1 %v2379_v51 }
 0x1d4   : > { %5644 = vmatmul.mubr.bf16.gmra.mrb[32].mxu0 %v7119_v19  ;;  %5391 = vmatprep.mubr.bf16.mxu1 %v2387_v45  ;;  %v2416_v19 = vshll.u32 %v6882_v55, 16  ;;  %v3930_v55 = vsel %vm1427_vm1, %v3927_v30, %v3929_v44 }
 0x1d5   : > { %5647 = vmatprep.mubr.bf16.mxu0 %v7133_v59  ;;  %v2410_v59 = vrot.slane %v2408_v18, 1 }
 0x1d6   : > { %v2418_v63 = vrot.slane %v2416_v19, 1 }
 0x1d7   : > { %v2414_v16 = vor.u32 %v2412_v1, %v2410_v59  ;;  %v2411_v7 = vsel %vm619_vm0, %v2406_v22, %v2410_v59 }
 0x1d8   : > { %v2422_v32 = vor.u32 %v2420_v42, %v2418_v63 }
 0x1d9   : > { %v2419_v34 = vsel %vm619_vm0, %v2414_v16, %v2418_v63 }
 0x1da   : > { %v2427_v0 = vsel %vm619_vm0, %v2422_v32, %v2426_v37 }
 0x1db   : > { %5392 = vmatmul.mubr.bf16.gmra.mrb[36].mxu1 %v2395_v2 }
 0x1dc   : > { %5648 = vmatmul.mubr.bf16.gmra.mrb[36].mxu0 %v7137_v28  ;;  %5395 = vmatprep.mubr.bf16.mxu1 %v2403_v39  ;;  %v3928_v28 = vsel %vm1427_vm1, %v3925_v43, %v3927_v30 }
 0x1dd   : > { %5651 = vmatprep.mubr.bf16.mxu0 %v3924_v15 }
 0x1e3   : > { %5396 = vmatmul.mubr.bf16.gmra.mrb[40].mxu1 %v2411_v7 }
 0x1e4   : > { %5652 = vmatmul.mubr.bf16.gmra.mrb[40].mxu0 %v3926_v40  ;;  %5399 = vmatprep.mubr.bf16.mxu1 %v2419_v34 }
 0x1e5   : > { %5655 = vmatprep.mubr.bf16.mxu0 %v3928_v28 }
 0x1eb   : > { %5400 = vmatmul.mubr.bf16.gmra.mrb[44].mxu1 %v2427_v0 }
 0x1ec   : > { %5656 = vmatmul.mubr.bf16.gmra.mrb[44].mxu0 %v3930_v55 }
 0x236   : > { %v5293_v25 = vpop.f32.mrb[0].mxu1 }
 0x237   : > { %v1973_v62 = vpop.f32.mrb[1].mxu1 }
 0x238   : > { %v5294_v11 = vpop.f32.mrb[2].mxu1 }
 0x239   : > { %v1976_v53 = vpop.f32.mrb[3].mxu1 }
 0x23e   : > { %v5297_v49 = vpop.f32.mrb[4].mxu1 }
 0x23f   : > { %v1989_v3 = vpop.f32.mrb[5].mxu1 }
 0x240   : > { %v5298_v6 = vpop.f32.mrb[6].mxu1 }
 0x241   : > { %v1992_v60 = vpop.f32.mrb[7].mxu1 }
 0x246   : > { %v5301_v46 = vpop.f32.mrb[8].mxu1 }
 0x247   : > { %v2005_v57 = vpop.f32.mrb[9].mxu1 }
 0x248   : > { %v5302_v52 = vpop.f32.mrb[10].mxu1 }
 0x249   : > { %v2008_v36 = vpop.f32.mrb[11].mxu1 }
 0x24e   : > { %v5305_v54 = vpop.f32.mrb[12].mxu1 }
 0x24f   : > { %v7281_v23 = vpop.f32.mrb[13].mxu1 }
 0x250   : > { %v7283_v14 = vpop.f32.mrb[14].mxu1 }
 0x251   : > { %v7285_v17 = vpop.f32.mrb[15].mxu1 }
 0x256   : > { %v7287_v5 = vpop.f32.mrb[16].mxu1 }
 0x257   : > { %v7289_v8 = vpop.f32.mrb[17].mxu1 }
 0x258   : > { %v7291_v4 = vpop.f32.mrb[18].mxu1 }
 0x259   : > { %v7293_v47 = vpop.f32.mrb[19].mxu1 }
 0x25e   : > { %v7295_v38 = vpop.f32.mrb[20].mxu1 }
 0x25f   : > { %v7297_v24 = vpop.f32.mrb[21].mxu1 }
 0x260   : > { %v7299_v61 = vpop.f32.mrb[22].mxu1 }
 0x261   : > { %v7301_v33 = vpop.f32.mrb[23].mxu1 }
 0x267   : > { %v5613_v31 = vpop.f32.mrb[0].mxu0 }
 0x268   : > { %v5675_v12 = vadd.f32 %v5613_v31, %v5293_v25  ;;  %v4017_v41 = vpop.f32.mrb[1].mxu0 }
 0x269   : > { %v5676_v29 = vadd.f32 %v4017_v41, %v1973_v62  ;;  %v5614_v13 = vpop.f32.mrb[2].mxu0 }
 0x26a   : > { %v4265_v51 = vadd.f32 %v5675_v12, %v7306_v20  ;;  %v5677_v21 = vadd.f32 %v5614_v13, %v5294_v11  ;;  %v4020_v45 = vpop.f32.mrb[3].mxu0 }
 0x26b   : > { %v4263_v27 = vadd.f32 %v5676_v29, %v7306_v20  ;;  %v5678_v58 = vadd.f32 %v4020_v45, %v1976_v53 }
 0x26c   : > { %4313 = vst [vmem:[%s6297_s23 + $0x10] sm:$0xff] %v4265_v51  ;;  %v4266_v10 = vadd.f32 %v5677_v21, %v7306_v20 }
 0x26d   : > { %4311 = vst [vmem:[%s6297_s23] sm:$0xff] %v4263_v27  ;;  %v4264_v26 = vadd.f32 %v5678_v58, %v7306_v20 }
 0x26e   : > { %4314 = vst [vmem:[%s6297_s23 + $0x18] sm:$0xff] %v4266_v10 }
 0x26f   : > { %4312 = vst [vmem:[%s6297_s23 + $0x8] sm:$0xff] %v4264_v26  ;;  %v5617_v56 = vpop.f32.mrb[4].mxu0 }
 0x270   : > { %v5679_v9 = vadd.f32 %v5617_v56, %v5297_v49  ;;  %v4033_v48 = vpop.f32.mrb[5].mxu0 }
 0x271   : > { %v5680_v18 = vadd.f32 %v4033_v48, %v1989_v3  ;;  %v5618_v2 = vpop.f32.mrb[6].mxu0 }
 0x272   : > { %v4269_v50 = vadd.f32 %v5679_v9, %v7306_v20  ;;  %v5681_v39 = vadd.f32 %v5618_v2, %v5298_v6  ;;  %v4036_v1 = vpop.f32.mrb[7].mxu0 }
 0x273   : > { %v4267_v19 = vadd.f32 %v5680_v18, %v7306_v20  ;;  %v5682_v15 = vadd.f32 %v4036_v1, %v1992_v60 }
 0x274   : > { %4317 = vst [vmem:[%s6297_s23 + $0x30] sm:$0xff] %v4269_v50  ;;  %v4270_v59 = vadd.f32 %v5681_v39, %v7306_v20 }
 0x275   : > { %4315 = vst [vmem:[%s6297_s23 + $0x20] sm:$0xff] %v4267_v19  ;;  %v4268_v22 = vadd.f32 %v5682_v15, %v7306_v20 }
 0x276   : > { %4318 = vst [vmem:[%s6297_s23 + $0x38] sm:$0xff] %v4270_v59 }
 0x277   : > { %4316 = vst [vmem:[%s6297_s23 + $0x28] sm:$0xff] %v4268_v22  ;;  %v5621_v43 = vpop.f32.mrb[8].mxu0 }
 0x278   : > { %v5683_v16 = vadd.f32 %v5621_v43, %v5301_v46  ;;  %v4049_v63 = vpop.f32.mrb[9].mxu0 }
 0x279   : > { %v5684_v30 = vadd.f32 %v4049_v63, %v2005_v57  ;;  %v5622_v7 = vpop.f32.mrb[10].mxu0 }
 0x27a   : > { %v4273_v42 = vadd.f32 %v5683_v16, %v7306_v20  ;;  %v5685_v35 = vadd.f32 %v5622_v7, %v5302_v52  ;;  %v4052_v40 = vpop.f32.mrb[11].mxu0 }
 0x27b   : > { %v4271_v34 = vadd.f32 %v5684_v30, %v7306_v20  ;;  %v5686_v28 = vadd.f32 %v4052_v40, %v2008_v36 }
 0x27c   : > { %4321 = vst [vmem:[%s6297_s23 + $0x50] sm:$0xff] %v4273_v42  ;;  %v4274_v32 = vadd.f32 %v5685_v35, %v7306_v20 }
 0x27d   : > { %4319 = vst [vmem:[%s6297_s23 + $0x40] sm:$0xff] %v4271_v34  ;;  %v4272_v37 = vadd.f32 %v5686_v28, %v7306_v20 }
 0x27e   : > { %4322 = vst [vmem:[%s6297_s23 + $0x58] sm:$0xff] %v4274_v32 }
 0x27f   : > { %4320 = vst [vmem:[%s6297_s23 + $0x48] sm:$0xff] %v4272_v37  ;;  %v5625_v44 = vpop.f32.mrb[12].mxu0 }
 0x280   : > { %v5687_v0 = vadd.f32 %v5625_v44, %v5305_v54  ;;  %v4065_v55 = vpop.f32.mrb[13].mxu0 }
 0x281   : > { %v5688_v25 = vadd.f32 %v4065_v55, %v7281_v23  ;;  %v5626_v62 = vpop.f32.mrb[14].mxu0 }
 0x282   : > { %v4277_v11 = vadd.f32 %v5687_v0, %v7306_v20  ;;  %v5689_v53 = vadd.f32 %v5626_v62, %v7283_v14  ;;  %v4068_v49 = vpop.f32.mrb[15].mxu0 }
 0x283   : > { %v4275_v3 = vadd.f32 %v5688_v25, %v7306_v20  ;;  %v5690_v6 = vadd.f32 %v4068_v49, %v7285_v17 }
 0x284   : > { %4325 = vst [vmem:[%s6297_s23 + $0x70] sm:$0xff] %v4277_v11  ;;  %v4278_v60 = vadd.f32 %v5689_v53, %v7306_v20 }
 0x285   : > { %4323 = vst [vmem:[%s6297_s23 + $0x60] sm:$0xff] %v4275_v3  ;;  %v4276_v46 = vadd.f32 %v5690_v6, %v7306_v20 }
 0x286   : > { %4326 = vst [vmem:[%s6297_s23 + $0x78] sm:$0xff] %v4278_v60 }
 0x287   : > { %4324 = vst [vmem:[%s6297_s23 + $0x68] sm:$0xff] %v4276_v46  ;;  %v5629_v57 = vpop.f32.mrb[16].mxu0 }
 0x288   : > { %v5691_v52 = vadd.f32 %v5629_v57, %v7287_v5  ;;  %v4081_v36 = vpop.f32.mrb[17].mxu0 }
 0x289   : > { %v5692_v54 = vadd.f32 %v4081_v36, %v7289_v8  ;;  %v5630_v23 = vpop.f32.mrb[18].mxu0 }
 0x28a   : > { %v4281_v14 = vadd.f32 %v5691_v52, %v7306_v20  ;;  %v5693_v17 = vadd.f32 %v5630_v23, %v7291_v4  ;;  %v4084_v31 = vpop.f32.mrb[19].mxu0 }
 0x28b   : > { %v4279_v12 = vadd.f32 %v5692_v54, %v7306_v20  ;;  %v5694_v41 = vadd.f32 %v4084_v31, %v7293_v47 }
 0x28c   : > { %4329 = vst [vmem:[%s6297_s23 + $0x90] sm:$0xff] %v4281_v14  ;;  %v4282_v29 = vadd.f32 %v5693_v17, %v7306_v20 }
 0x28d   : > { %4327 = vst [vmem:[%s6297_s23 + $0x80] sm:$0xff] %v4279_v12  ;;  %v4280_v5 = vadd.f32 %v5694_v41, %v7306_v20 }
 0x28e   : > { %4330 = vst [vmem:[%s6297_s23 + $0x98] sm:$0xff] %v4282_v29 }
 0x28f   : > { %4328 = vst [vmem:[%s6297_s23 + $0x88] sm:$0xff] %v4280_v5  ;;  %v5633_v8 = vpop.f32.mrb[20].mxu0 }
 0x290   : > { %v5695_v4 = vadd.f32 %v5633_v8, %v7295_v38  ;;  %v4097_v13 = vpop.f32.mrb[21].mxu0 }
 0x291   : > { %v5696_v51 = vadd.f32 %v4097_v13, %v7297_v24  ;;  %v5634_v21 = vpop.f32.mrb[22].mxu0 }
 0x292   : > { %v4285_v47 = vadd.f32 %v5695_v4, %v7306_v20  ;;  %v5697_v45 = vadd.f32 %v5634_v21, %v7299_v61  ;;  %v4100_v27 = vpop.f32.mrb[23].mxu0 }
 0x293   : > { %v4283_v58 = vadd.f32 %v5696_v51, %v7306_v20  ;;  %v5698_v10 = vadd.f32 %v4100_v27, %v7301_v33 }
 0x294   : > { %4333 = vst [vmem:[%s6297_s23 + $0xb0] sm:$0xff] %v4285_v47  ;;  %v4286_v26 = vadd.f32 %v5697_v45, %v7306_v20 }
 0x295   : > { %4331 = vst [vmem:[%s6297_s23 + $0xa0] sm:$0xff] %v4283_v58  ;;  %v4284_v56 = vadd.f32 %v5698_v10, %v7306_v20 }
 0x296   : > { %4334 = vst [vmem:[%s6297_s23 + $0xb8] sm:$0xff] %v4286_v26  ;;  %v5381_v38 = vpop.f32.mrb[24].mxu1 }
 0x297   : > { %4332 = vst [vmem:[%s6297_s23 + $0xa8] sm:$0xff] %v4284_v56  ;;  %v5637_v24 = vpop.f32.mrb[24].mxu0  ;;  %v2630_v9 = vpop.f32.mrb[25].mxu1 }
 0x298   : > { %v5699_v61 = vadd.f32 %v5637_v24, %v5381_v38  ;;  %v4113_v48 = vpop.f32.mrb[25].mxu0  ;;  %v5382_v18 = vpop.f32.mrb[26].mxu1 }
 0x299   : > { %v5700_v2 = vadd.f32 %v4113_v48, %v2630_v9  ;;  %v5638_v33 = vpop.f32.mrb[26].mxu0  ;;  %v2633_v50 = vpop.f32.mrb[27].mxu1 }
 0x29a   : > { %v4289_v39 = vadd.f32 %v5699_v61, %v7306_v20  ;;  %v5701_v1 = vadd.f32 %v5638_v33, %v5382_v18  ;;  %v4116_v19 = vpop.f32.mrb[27].mxu0 }
 0x29b   : > { %v4287_v15 = vadd.f32 %v5700_v2, %v7306_v20  ;;  %v5702_v59 = vadd.f32 %v4116_v19, %v2633_v50 }
 0x29c   : > { %4337 = vst [vmem:[%s6297_s23 + $0xd0] sm:$0xff] %v4289_v39  ;;  %v4290_v22 = vadd.f32 %v5701_v1, %v7306_v20 }
 0x29d   : > { %4335 = vst [vmem:[%s6297_s23 + $0xc0] sm:$0xff] %v4287_v15  ;;  %v4288_v43 = vadd.f32 %v5702_v59, %v7306_v20 }
 0x29e   : > { %4338 = vst [vmem:[%s6297_s23 + $0xd8] sm:$0xff] %v4290_v22  ;;  %v5385_v16 = vpop.f32.mrb[28].mxu1 }
 0x29f   : > { %4336 = vst [vmem:[%s6297_s23 + $0xc8] sm:$0xff] %v4288_v43  ;;  %v5641_v63 = vpop.f32.mrb[28].mxu0  ;;  %v2646_v30 = vpop.f32.mrb[29].mxu1 }
 0x2a0   : > { %v5703_v7 = vadd.f32 %v5641_v63, %v5385_v16  ;;  %v4129_v42 = vpop.f32.mrb[29].mxu0  ;;  %v5386_v35 = vpop.f32.mrb[30].mxu1 }
 0x2a1   : > { %v5704_v40 = vadd.f32 %v4129_v42, %v2646_v30  ;;  %v5642_v34 = vpop.f32.mrb[30].mxu0  ;;  %v2649_v28 = vpop.f32.mrb[31].mxu1 }
 0x2a2   : > { %v4293_v32 = vadd.f32 %v5703_v7, %v7306_v20  ;;  %v5705_v37 = vadd.f32 %v5642_v34, %v5386_v35  ;;  %v4132_v44 = vpop.f32.mrb[31].mxu0 }
 0x2a3   : > { %v4291_v0 = vadd.f32 %v5704_v40, %v7306_v20  ;;  %v5706_v55 = vadd.f32 %v4132_v44, %v2649_v28 }
 0x2a4   : > { %4341 = vst [vmem:[%s6297_s23 + $0xf0] sm:$0xff] %v4293_v32  ;;  %v4294_v25 = vadd.f32 %v5705_v37, %v7306_v20 }
 0x2a5   : > { %4339 = vst [vmem:[%s6297_s23 + $0xe0] sm:$0xff] %v4291_v0  ;;  %v4292_v62 = vadd.f32 %v5706_v55, %v7306_v20 }
 0x2a6   : > { %4342 = vst [vmem:[%s6297_s23 + $0xf8] sm:$0xff] %v4294_v25  ;;  %v5389_v11 = vpop.f32.mrb[32].mxu1 }
 0x2a7   : > { %4340 = vst [vmem:[%s6297_s23 + $0xe8] sm:$0xff] %v4292_v62  ;;  %v5645_v53 = vpop.f32.mrb[32].mxu0  ;;  %v2662_v49 = vpop.f32.mrb[33].mxu1 }
 0x2a8   : > { %v5707_v3 = vadd.f32 %v5645_v53, %v5389_v11  ;;  %v4145_v6 = vpop.f32.mrb[33].mxu0  ;;  %v5390_v60 = vpop.f32.mrb[34].mxu1 }
 0x2a9   : > { %v5708_v46 = vadd.f32 %v4145_v6, %v2662_v49  ;;  %v5646_v57 = vpop.f32.mrb[34].mxu0  ;;  %v2665_v52 = vpop.f32.mrb[35].mxu1 }
 0x2aa   : > { %v4297_v36 = vadd.f32 %v5707_v3, %v7306_v20  ;;  %v5709_v54 = vadd.f32 %v5646_v57, %v5390_v60  ;;  %v4148_v23 = vpop.f32.mrb[35].mxu0 }
 0x2ab   : > { %v4295_v14 = vadd.f32 %v5708_v46, %v7306_v20  ;;  %v5710_v17 = vadd.f32 %v4148_v23, %v2665_v52 }
 0x2ac   : > { %4345 = vst [vmem:[%s6297_s23 + $0x110] sm:$0xff] %v4297_v36  ;;  %v4298_v31 = vadd.f32 %v5709_v54, %v7306_v20 }
 0x2ad   : > { %4343 = vst [vmem:[%s6297_s23 + $0x100] sm:$0xff] %v4295_v14  ;;  %v4296_v12 = vadd.f32 %v5710_v17, %v7306_v20 }
 0x2ae   : > { %4346 = vst [vmem:[%s6297_s23 + $0x118] sm:$0xff] %v4298_v31  ;;  %v5393_v41 = vpop.f32.mrb[36].mxu1 }
 0x2af   : > { %4344 = vst [vmem:[%s6297_s23 + $0x108] sm:$0xff] %v4296_v12  ;;  %v5649_v29 = vpop.f32.mrb[36].mxu0  ;;  %v2678_v5 = vpop.f32.mrb[37].mxu1 }
 0x2b0   : > { %v5711_v8 = vadd.f32 %v5649_v29, %v5393_v41  ;;  %v4161_v4 = vpop.f32.mrb[37].mxu0  ;;  %v5394_v13 = vpop.f32.mrb[38].mxu1 }
 0x2b1   : > { %v5712_v51 = vadd.f32 %v4161_v4, %v2678_v5  ;;  %v5650_v21 = vpop.f32.mrb[38].mxu0  ;;  %v2681_v47 = vpop.f32.mrb[39].mxu1 }
 0x2b2   : > { %v4301_v45 = vadd.f32 %v5711_v8, %v7306_v20  ;;  %v5713_v27 = vadd.f32 %v5650_v21, %v5394_v13  ;;  %v4164_v58 = vpop.f32.mrb[39].mxu0 }
 0x2b3   : > { %v4299_v10 = vadd.f32 %v5712_v51, %v7306_v20  ;;  %v5714_v26 = vadd.f32 %v4164_v58, %v2681_v47 }
 0x2b4   : > { %4349 = vst [vmem:[%s6297_s23 + $0x130] sm:$0xff] %v4301_v45  ;;  %v4302_v56 = vadd.f32 %v5713_v27, %v7306_v20 }
 0x2b5   : > { %4347 = vst [vmem:[%s6297_s23 + $0x120] sm:$0xff] %v4299_v10  ;;  %v4300_v38 = vadd.f32 %v5714_v26, %v7306_v20 }
 0x2b6   : > { %4350 = vst [vmem:[%s6297_s23 + $0x138] sm:$0xff] %v4302_v56  ;;  %v5397_v24 = vpop.f32.mrb[40].mxu1 }
 0x2b7   : > { %4348 = vst [vmem:[%s6297_s23 + $0x128] sm:$0xff] %v4300_v38  ;;  %v5653_v9 = vpop.f32.mrb[40].mxu0  ;;  %v2694_v61 = vpop.f32.mrb[41].mxu1 }
 0x2b8   : > { %v5715_v48 = vadd.f32 %v5653_v9, %v5397_v24  ;;  %v4177_v18 = vpop.f32.mrb[41].mxu0  ;;  %v5398_v2 = vpop.f32.mrb[42].mxu1 }
 0x2b9   : > { %v5716_v33 = vadd.f32 %v4177_v18, %v2694_v61  ;;  %v5654_v50 = vpop.f32.mrb[42].mxu0  ;;  %v2697_v39 = vpop.f32.mrb[43].mxu1 }
 0x2ba   : > { %v4305_v1 = vadd.f32 %v5715_v48, %v7306_v20  ;;  %v5717_v19 = vadd.f32 %v5654_v50, %v5398_v2  ;;  %v4180_v15 = vpop.f32.mrb[43].mxu0 }
 0x2bb   : > { %v4303_v59 = vadd.f32 %v5716_v33, %v7306_v20  ;;  %v5718_v22 = vadd.f32 %v4180_v15, %v2697_v39 }
 0x2bc   : > { %4353 = vst [vmem:[%s6297_s23 + $0x150] sm:$0xff] %v4305_v1  ;;  %v4306_v43 = vadd.f32 %v5717_v19, %v7306_v20 }
 0x2bd   : > { %4351 = vst [vmem:[%s6297_s23 + $0x140] sm:$0xff] %v4303_v59  ;;  %v4304_v16 = vadd.f32 %v5718_v22, %v7306_v20 }
 0x2be   : > { %4354 = vst [vmem:[%s6297_s23 + $0x158] sm:$0xff] %v4306_v43  ;;  %v5401_v63 = vpop.f32.mrb[44].mxu1 }
 0x2bf   : > { %4352 = vst [vmem:[%s6297_s23 + $0x148] sm:$0xff] %v4304_v16  ;;  %v5657_v30 = vpop.f32.mrb[44].mxu0  ;;  %v2710_v7 = vpop.f32.mrb[45].mxu1 }
 0x2c0   : > { %v5719_v42 = vadd.f32 %v5657_v30, %v5401_v63  ;;  %v4193_v35 = vpop.f32.mrb[45].mxu0  ;;  %v5402_v40 = vpop.f32.mrb[46].mxu1 }
 0x2c1   : > { %v5720_v34 = vadd.f32 %v4193_v35, %v2710_v7  ;;  %v5658_v28 = vpop.f32.mrb[46].mxu0  ;;  %v2713_v32 = vpop.f32.mrb[47].mxu1 }
 0x2c2   : > { %v4309_v37 = vadd.f32 %v5719_v42, %v7306_v20  ;;  %v5721_v44 = vadd.f32 %v5658_v28, %v5402_v40  ;;  %v4196_v0 = vpop.f32.mrb[47].mxu0 }
 0x2c3   : > { %v4307_v55 = vadd.f32 %v5720_v34, %v7306_v20  ;;  %v5722_v25 = vadd.f32 %v4196_v0, %v2713_v32 }
 0x2c4   : > { %4357 = vst [vmem:[%s6297_s23 + $0x170] sm:$0xff] %v4309_v37  ;;  %v4310_v62 = vadd.f32 %v5721_v44, %v7306_v20 }
 0x2c5   : > { %4355 = vst [vmem:[%s6297_s23 + $0x160] sm:$0xff] %v4307_v55  ;;  %v4308_v11 = vadd.f32 %v5722_v25, %v7306_v20 }
 0x2c6   : > { %4358 = vst [vmem:[%s6297_s23 + $0x178] sm:$0xff] %v4310_v62 }
 0x2c7   : > { %4356 = vst [vmem:[%s6297_s23 + $0x168] sm:$0xff] %v4308_v11 }
 0x2c8 PF: > { %s13_s14 = sadd.s32 1, %s6243_s14   ;;  %s7518_s12 = smov %s6239_s13 }
 0x2c9   : > { %p10_p5 = scmp.ge.s32.totalorder %s13_s14, 4   ;;  %s7519_s13 = smov %s7521_s15 }
 0x2cb   :  { %12 = sbr.rel (!%p10_p5) target bundleno = 2 (0x2), region = 182 }
 0x2d2   :  { %4391 = vsyncmov [#allocation3] }
 0x2d5   :  { %s4392_s25 = vpop.sfrf %4391 }
 0x2d6   :  { %p4790_p6 = scmp.ne.s32.totalorder %s4392_s25, 0 }
 0x2d8   :  { %4396 = shalt.err (%p4790_p6)  }
 0x2d9   :  { %4398 = vsyncmov [#allocation3 + $0x1] }
 0x2dc   :  { %s4399_s26 = vpop.sfrf %4398 }
 0x2dd   :  { %p4791_p7 = scmp.ne.s32.totalorder %s4399_s26, 0 }
 0x2df   :  { %4403 = shalt.err (%p4791_p7)  }

// kernel: fpn_forward.14
= control target key start
LH: loop header
LB: loop body
LE: loop exit
PB: predicated region body
PF: predicated region fallthrough
CT: control target
= control target key end

     0   :  { %v1540_v0 = vmov 0.0   ;;  %vm1541_vm0 = vmmov 0   ;;  %s1901_s1 = inlined_call_operand.vmem [shape: bf16[9,128,128], index: 1, kind: input, shape index: {}]   ;;  %s1902_s0 = inlined_call_operand.vmem [shape: bf16[9,8,128], index: 0, kind: input, shape index: {}]   ;;  %s1903_s2 = inlined_call_operand.vmem [shape: f32[1,128], index: 2, kind: input, shape index: {}]   ;;  %s1904_s3 = inlined_call_operand.vmem [shape: f32[8,128], index: 3, kind: output, shape index: {}]  }
   0x1   :  { %1286 = vmatprep.subr.bf16.mxu0 %v1540_v0  ;;  %v1468_v1 = vld [vmem:[%s1901_s1 + $0x40] sm:$0xff]   ;;  %1306 = vmatprep.subr.bf16.mxu1 %v1540_v0  ;;  %v1470_v3 = vld [vmem:[%s1901_s1 + $0x48] sm:$0xff]   ;;  %v1472_v5 = vld [vmem:[%s1901_s1 + $0x50] sm:$0xff]  }
   0x2   :  { %v1469_v2 = vld [vmem:[%s1901_s1] sm:$0xff]   ;;  %1302 = vmatprep.mubr.msk.bf16.mxu0 %vm1541_vm0, %v1540_v0  ;;  %1322 = vmatprep.mubr.msk.bf16.mxu1 %vm1541_vm0, %v1540_v0  ;;  %v1471_v4 = vld [vmem:[%s1901_s1 + $0x8] sm:$0xff]   ;;  %v1473_v6 = vld [vmem:[%s1901_s1 + $0x10] sm:$0xff]  }
   0x3   :  { %1287 = vmatpush3.bf16.msra.mxu0 %v1468_v1  ;;  %1307 = vmatpush3.bf16.msra.mxu1 %v1469_v2  ;;  %v1474_v7 = vld [vmem:[%s1901_s1 + $0x58] sm:$0xff]   ;;  %v1476_v9 = vld [vmem:[%s1901_s1 + $0x60] sm:$0xff]   ;;  %v1478_v11 = vld [vmem:[%s1901_s1 + $0x68] sm:$0xff]  }
   0x4   :  { %1288 = vmatprep.subr.bf16.mxu0 %v1540_v0  ;;  %1308 = vmatprep.subr.bf16.mxu1 %v1540_v0  ;;  %v1475_v8 = vld [vmem:[%s1901_s1 + $0x18] sm:$0xff]   ;;  %v1477_v10 = vld [vmem:[%s1901_s1 + $0x20] sm:$0xff]   ;;  %v1479_v12 = vld [vmem:[%s1901_s1 + $0x28] sm:$0xff]  }
   0x5   :  { %v1480_v13 = vld [vmem:[%s1901_s1 + $0x70] sm:$0xff]   ;;  %v1482_v15 = vld [vmem:[%s1901_s1 + $0x78] sm:$0xff]   ;;  %v996_v17 = vld [vmem:[%s1902_s0 + $0x4] sm:$0xf] }
   0x6   :  { %v1481_v14 = vld [vmem:[%s1901_s1 + $0x30] sm:$0xff]   ;;  %v1483_v16 = vld [vmem:[%s1901_s1 + $0x38] sm:$0xff]   ;;  %v15_v18 = vld [vmem:[%s1902_s0] sm:$0xf] }
   0x7   :  { %1289 = vmatpush3.bf16.msra.mxu0 %v1470_v3  ;;  %1309 = vmatpush3.bf16.msra.mxu1 %v1471_v4  ;;  %v1484_v19 = vld [vmem:[%s1901_s1 + $0x80] sm:$0xff]   ;;  %v1486_v21 = vld [vmem:[%s1901_s1 + $0x88] sm:$0xff]   ;;  %v1488_v23 = vld [vmem:[%s1901_s1 + $0x90] sm:$0xff]  }
   0x8   :  { %1290 = vmatprep.subr.bf16.mxu0 %v1540_v0  ;;  %1310 = vmatprep.subr.bf16.mxu1 %v1540_v0  ;;  %v1485_v20 = vld [vmem:[%s1901_s1 + $0xc0] sm:$0xff]   ;;  %v1487_v22 = vld [vmem:[%s1901_s1 + $0xc8] sm:$0xff]   ;;  %v1489_v24 = vld [vmem:[%s1901_s1 + $0xd0] sm:$0xff]  }
   0x9   :  { %v1490_v25 = vld [vmem:[%s1901_s1 + $0x98] sm:$0xff]   ;;  %v1492_v27 = vld [vmem:[%s1901_s1 + $0xa0] sm:$0xff]   ;;  %v1494_v29 = vld [vmem:[%s1901_s1 + $0xa8] sm:$0xff]  }
   0xa   :  { %v1491_v26 = vld [vmem:[%s1901_s1 + $0xd8] sm:$0xff]   ;;  %v1493_v28 = vld [vmem:[%s1901_s1 + $0xe0] sm:$0xff]   ;;  %v1495_v30 = vld [vmem:[%s1901_s1 + $0xe8] sm:$0xff]  }
   0xb   :  { %1291 = vmatpush3.bf16.msra.mxu0 %v1472_v5  ;;  %1311 = vmatpush3.bf16.msra.mxu1 %v1473_v6  ;;  %v1496_v31 = vld [vmem:[%s1901_s1 + $0xb0] sm:$0xff]   ;;  %v1498_v33 = vld [vmem:[%s1901_s1 + $0xb8] sm:$0xff]   ;;  %v1029_v35 = vld [vmem:[%s1902_s0 + $0x8] sm:$0xf] }
   0xc   :  { %1292 = vmatprep.subr.bf16.mxu0 %v1540_v0  ;;  %1312 = vmatprep.subr.bf16.mxu1 %v1540_v0  ;;  %v1497_v32 = vld [vmem:[%s1901_s1 + $0xf0] sm:$0xff]   ;;  %v1499_v34 = vld [vmem:[%s1901_s1 + $0xf8] sm:$0xff]   ;;  %v1500_v36 = vld [vmem:[%s1901_s1 + $0x100] sm:$0xff]  }
   0xd   :  { %v1054_v37 = vld [vmem:[%s1902_s0 + $0xc] sm:$0xf]  ;;  %v1501_v38 = vld [vmem:[%s1901_s1 + $0x140] sm:$0xff]   ;;  %v1504_v41 = vld [vmem:[%s1901_s1 + $0x110] sm:$0xff]  }
   0xe   :  { %v1502_v39 = vld [vmem:[%s1901_s1 + $0x108] sm:$0xff]   ;;  %v1505_v42 = vld [vmem:[%s1901_s1 + $0x150] sm:$0xff]   ;;  %v1506_v43 = vld [vmem:[%s1901_s1 + $0x118] sm:$0xff]  }
   0xf   :  { %1293 = vmatpush3.bf16.msra.mxu0 %v1474_v7  ;;  %1313 = vmatpush3.bf16.msra.mxu1 %v1475_v8  ;;  %v1503_v40 = vld [vmem:[%s1901_s1 + $0x148] sm:$0xff]   ;;  %v1507_v44 = vld [vmem:[%s1901_s1 + $0x158] sm:$0xff]   ;;  %v1508_v45 = vld [vmem:[%s1901_s1 + $0x120] sm:$0xff]  }
  0x10   :  { %1294 = vmatprep.subr.bf16.mxu0 %v1540_v0  ;;  %1314 = vmatprep.subr.bf16.mxu1 %v1540_v0  ;;  %v1509_v46 = vld [vmem:[%s1901_s1 + $0x160] sm:$0xff]   ;;  %v1510_v47 = vld [vmem:[%s1901_s1 + $0x128] sm:$0xff]   ;;  %v1512_v49 = vld [vmem:[%s1901_s1 + $0x130] sm:$0xff]  }
  0x11   :  { %v1511_v48 = vld [vmem:[%s1901_s1 + $0x168] sm:$0xff]   ;;  %v1513_v50 = vld [vmem:[%s1901_s1 + $0x170] sm:$0xff]   ;;  %v1514_v51 = vld [vmem:[%s1901_s1 + $0x138] sm:$0xff]  }
  0x12   :  { %v1515_v52 = vld [vmem:[%s1901_s1 + $0x178] sm:$0xff]   ;;  %v1079_v53 = vld [vmem:[%s1902_s0 + $0x10] sm:$0xf]  ;;  %v1516_v54 = vld [vmem:[%s1901_s1 + $0x180] sm:$0xff]  }
  0x13   :  { %1295 = vmatpush3.bf16.msra.mxu0 %v1476_v9  ;;  %1315 = vmatpush3.bf16.msra.mxu1 %v1477_v10  ;;  %v1104_v55 = vld [vmem:[%s1902_s0 + $0x14] sm:$0xf]  ;;  %v1517_v56 = vld [vmem:[%s1901_s1 + $0x1c0] sm:$0xff]   ;;  %v1518_v57 = vld [vmem:[%s1901_s1 + $0x188] sm:$0xff]  }
  0x14   :  { %1296 = vmatprep.subr.bf16.mxu0 %v1540_v0  ;;  %1316 = vmatprep.subr.bf16.mxu1 %v1540_v0  ;;  %v1519_v58 = vld [vmem:[%s1901_s1 + $0x1c8] sm:$0xff]   ;;  %v1520_v59 = vld [vmem:[%s1901_s1 + $0x190] sm:$0xff]   ;;  %v1522_v61 = vld [vmem:[%s1901_s1 + $0x198] sm:$0xff]  }
  0x15   :  { %v1521_v60 = vld [vmem:[%s1901_s1 + $0x1d0] sm:$0xff]   ;;  %v1523_v62 = vld [vmem:[%s1901_s1 + $0x1d8] sm:$0xff]   ;;  %v1524_v63 = vld [vmem:[%s1901_s1 + $0x1a0] sm:$0xff]  }
  0x16   :  { %v1525_v1 = vld [vmem:[%s1901_s1 + $0x1e0] sm:$0xff]   ;;  %v1526_v2 = vld [vmem:[%s1901_s1 + $0x1a8] sm:$0xff]   ;;  %v1528_v4 = vld [vmem:[%s1901_s1 + $0x1b0] sm:$0xff]  }
  0x17   :  { %1297 = vmatpush3.bf16.msra.mxu0 %v1478_v11  ;;  %1317 = vmatpush3.bf16.msra.mxu1 %v1479_v12  ;;  %v1527_v3 = vld [vmem:[%s1901_s1 + $0x1e8] sm:$0xff]   ;;  %v1529_v5 = vld [vmem:[%s1901_s1 + $0x1f0] sm:$0xff]   ;;  %v1530_v6 = vld [vmem:[%s1901_s1 + $0x1b8] sm:$0xff]  }
  0x18   :  { %1298 = vmatprep.subr.bf16.mxu0 %v1540_v0  ;;  %1318 = vmatprep.subr.bf16.mxu1 %v1540_v0  ;;  %v1531_v7 = vld [vmem:[%s1901_s1 + $0x1f8] sm:$0xff]   ;;  %v1532_v9 = vld [vmem:[%s1901_s1 + $0x200] sm:$0xff]   ;;  %v1533_v11 = vld [vmem:[%s1901_s1 + $0x208] sm:$0xff]  }
  0x19   :  { %v1129_v8 = vld [vmem:[%s1902_s0 + $0x18] sm:$0xf]  ;;  %v1154_v10 = vld [vmem:[%s1902_s0 + $0x1c] sm:$0xf]  ;;  %v1534_v12 = vld [vmem:[%s1901_s1 + $0x210] sm:$0xff]  }
  0x1b   :  { %1299 = vmatpush3.bf16.msra.mxu0 %v1480_v13  ;;  %1319 = vmatpush3.bf16.msra.mxu1 %v1481_v14  ;;  %v1535_v13 = vld [vmem:[%s1901_s1 + $0x218] sm:$0xff]   ;;  %v1536_v14 = vld [vmem:[%s1901_s1 + $0x220] sm:$0xff]  }
  0x1c   :  { %1300 = vmatprep.subr.bf16.mxu0 %v1540_v0  ;;  %1320 = vmatprep.subr.bf16.mxu1 %v1540_v0 }
  0x1f   :  { %1301 = vmatpush3.bf16.msra.mxu0 %v1482_v15  ;;  %1321 = vmatpush3.bf16.msra.mxu1 %v1483_v16  ;;  %v1537_v15 = vld [vmem:[%s1901_s1 + $0x228] sm:$0xff]   ;;  %v1538_v16 = vld [vmem:[%s1901_s1 + $0x230] sm:$0xff]  }
  0x20   :  { %1326 = vmatprep.subr.bf16.mxu0 %v1540_v0  ;;  %1346 = vmatprep.subr.bf16.mxu1 %v1540_v0 }
  0x22   :  { %1303 = vmatmul.mubr.bf16.vlgmr.msra.gmra.mrb[0].mxu0 %v996_v17  ;;  %1323 = vmatmul.mubr.bf16.vlgmr.msra.gmra.mrb[0].mxu1 %v15_v18  ;;  %v1539_v17 = vld [vmem:[%s1901_s1 + $0x238] sm:$0xff]   ;;  %v1179_v18 = vld [vmem:[%s1902_s0 + $0x20] sm:$0xf] }
  0x23   :  { %1327 = vmatpush3.bf16.msra.mxu0 %v1484_v19  ;;  %1347 = vmatpush3.bf16.msra.mxu1 %v1485_v20 }
  0x24   :  { %1328 = vmatprep.subr.bf16.mxu0 %v1540_v0  ;;  %1348 = vmatprep.subr.bf16.mxu1 %v1540_v0 }
  0x25   :  { %1342 = vmatprep.mubr.msk.bf16.mxu0 %vm1541_vm0, %v1540_v0  ;;  %1362 = vmatprep.mubr.msk.bf16.mxu1 %vm1541_vm0, %v1540_v0 }
  0x27   :  { %1329 = vmatpush3.bf16.msra.mxu0 %v1486_v21  ;;  %1349 = vmatpush3.bf16.msra.mxu1 %v1487_v22 }
  0x28   :  { %1330 = vmatprep.subr.bf16.mxu0 %v1540_v0  ;;  %1350 = vmatprep.subr.bf16.mxu1 %v1540_v0 }
  0x2b   :  { %1331 = vmatpush3.bf16.msra.mxu0 %v1488_v23  ;;  %1351 = vmatpush3.bf16.msra.mxu1 %v1489_v24 }
  0x2c   :  { %1332 = vmatprep.subr.bf16.mxu0 %v1540_v0  ;;  %1352 = vmatprep.subr.bf16.mxu1 %v1540_v0 }
  0x2f   :  { %1333 = vmatpush3.bf16.msra.mxu0 %v1490_v25  ;;  %1353 = vmatpush3.bf16.msra.mxu1 %v1491_v26 }
  0x30   :  { %1334 = vmatprep.subr.bf16.mxu0 %v1540_v0  ;;  %1354 = vmatprep.subr.bf16.mxu1 %v1540_v0 }
  0x33   :  { %1335 = vmatpush3.bf16.msra.mxu0 %v1492_v27  ;;  %1355 = vmatpush3.bf16.msra.mxu1 %v1493_v28 }
  0x34   :  { %1336 = vmatprep.subr.bf16.mxu0 %v1540_v0  ;;  %1356 = vmatprep.subr.bf16.mxu1 %v1540_v0 }
  0x37   :  { %1337 = vmatpush3.bf16.msra.mxu0 %v1494_v29  ;;  %1357 = vmatpush3.bf16.msra.mxu1 %v1495_v30 }
  0x38   :  { %1338 = vmatprep.subr.bf16.mxu0 %v1540_v0  ;;  %1358 = vmatprep.subr.bf16.mxu1 %v1540_v0 }
  0x3b   :  { %1339 = vmatpush3.bf16.msra.mxu0 %v1496_v31  ;;  %1359 = vmatpush3.bf16.msra.mxu1 %v1497_v32 }
  0x3c   :  { %1340 = vmatprep.subr.bf16.mxu0 %v1540_v0  ;;  %1360 = vmatprep.subr.bf16.mxu1 %v1540_v0 }
  0x3f   :  { %1341 = vmatpush3.bf16.msra.mxu0 %v1498_v33  ;;  %1361 = vmatpush3.bf16.msra.mxu1 %v1499_v34 }
  0x40   :  { %1366 = vmatprep.subr.bf16.mxu0 %v1540_v0  ;;  %1386 = vmatprep.subr.bf16.mxu1 %v1540_v0 }
  0x42   :  { %1343 = vmatmul.mubr.bf16.vlgmr.msra.gmra.mrb[4].mxu0 %v1029_v35  ;;  %1363 = vmatmul.mubr.bf16.vlgmr.msra.gmra.mrb[4].mxu1 %v1054_v37 }
  0x43   :  { %1367 = vmatpush3.bf16.msra.mxu0 %v1500_v36  ;;  %1387 = vmatpush3.bf16.msra.mxu1 %v1501_v38 }
  0x44   :  { %1368 = vmatprep.subr.bf16.mxu0 %v1540_v0  ;;  %1388 = vmatprep.subr.bf16.mxu1 %v1540_v0 }
  0x45   :  { %1382 = vmatprep.mubr.msk.bf16.mxu0 %vm1541_vm0, %v1540_v0  ;;  %1402 = vmatprep.mubr.msk.bf16.mxu1 %vm1541_vm0, %v1540_v0 }
  0x47   :  { %1369 = vmatpush3.bf16.msra.mxu0 %v1502_v39  ;;  %1389 = vmatpush3.bf16.msra.mxu1 %v1503_v40 }
  0x48   :  { %1370 = vmatprep.subr.bf16.mxu0 %v1540_v0  ;;  %1390 = vmatprep.subr.bf16.mxu1 %v1540_v0 }
  0x4b   :  { %1371 = vmatpush3.bf16.msra.mxu0 %v1504_v41  ;;  %1391 = vmatpush3.bf16.msra.mxu1 %v1505_v42 }
  0x4c   :  { %1372 = vmatprep.subr.bf16.mxu0 %v1540_v0  ;;  %1392 = vmatprep.subr.bf16.mxu1 %v1540_v0 }
  0x4f   :  { %1373 = vmatpush3.bf16.msra.mxu0 %v1506_v43  ;;  %1393 = vmatpush3.bf16.msra.mxu1 %v1507_v44 }
  0x50   :  { %1374 = vmatprep.subr.bf16.mxu0 %v1540_v0  ;;  %1394 = vmatprep.subr.bf16.mxu1 %v1540_v0 }
  0x53   :  { %1375 = vmatpush3.bf16.msra.mxu0 %v1508_v45  ;;  %1395 = vmatpush3.bf16.msra.mxu1 %v1509_v46 }
  0x54   :  { %1376 = vmatprep.subr.bf16.mxu0 %v1540_v0  ;;  %1396 = vmatprep.subr.bf16.mxu1 %v1540_v0 }
  0x57   :  { %1377 = vmatpush3.bf16.msra.mxu0 %v1510_v47  ;;  %1397 = vmatpush3.bf16.msra.mxu1 %v1511_v48 }
  0x58   :  { %1378 = vmatprep.subr.bf16.mxu0 %v1540_v0  ;;  %1398 = vmatprep.subr.bf16.mxu1 %v1540_v0 }
  0x5b   :  { %1379 = vmatpush3.bf16.msra.mxu0 %v1512_v49  ;;  %1399 = vmatpush3.bf16.msra.mxu1 %v1513_v50 }
  0x5c   :  { %1380 = vmatprep.subr.bf16.mxu0 %v1540_v0  ;;  %1400 = vmatprep.subr.bf16.mxu1 %v1540_v0 }
  0x5f   :  { %1381 = vmatpush3.bf16.msra.mxu0 %v1514_v51  ;;  %1401 = vmatpush3.bf16.msra.mxu1 %v1515_v52 }
  0x60   :  { %1406 = vmatprep.subr.bf16.mxu0 %v1540_v0  ;;  %1426 = vmatprep.subr.bf16.mxu1 %v1540_v0 }
  0x62   :  { %1383 = vmatmul.mubr.bf16.vlgmr.msra.gmra.mrb[8].mxu0 %v1079_v53  ;;  %1403 = vmatmul.mubr.bf16.vlgmr.msra.gmra.mrb[8].mxu1 %v1104_v55 }
  0x63   :  { %1407 = vmatpush3.bf16.msra.mxu0 %v1516_v54  ;;  %1427 = vmatpush3.bf16.msra.mxu1 %v1517_v56 }
  0x64   :  { %1408 = vmatprep.subr.bf16.mxu0 %v1540_v0  ;;  %1428 = vmatprep.subr.bf16.mxu1 %v1540_v0 }
  0x65   :  { %1422 = vmatprep.mubr.msk.bf16.mxu0 %vm1541_vm0, %v1540_v0  ;;  %1442 = vmatprep.mubr.msk.bf16.mxu1 %vm1541_vm0, %v1540_v0 }
  0x67   :  { %1409 = vmatpush3.bf16.msra.mxu0 %v1518_v57  ;;  %1429 = vmatpush3.bf16.msra.mxu1 %v1519_v58  ;;  %v1204_v58 = vld [vmem:[%s1903_s2] ss:$0 sm:$0xff] }
  0x68   :  { %1410 = vmatprep.subr.bf16.mxu0 %v1540_v0  ;;  %1430 = vmatprep.subr.bf16.mxu1 %v1540_v0 }
  0x6b   :  { %1411 = vmatpush3.bf16.msra.mxu0 %v1520_v59  ;;  %1431 = vmatpush3.bf16.msra.mxu1 %v1521_v60 }
  0x6c   :  { %1412 = vmatprep.subr.bf16.mxu0 %v1540_v0  ;;  %1432 = vmatprep.subr.bf16.mxu1 %v1540_v0 }
  0x6f   :  { %1413 = vmatpush3.bf16.msra.mxu0 %v1522_v61  ;;  %1433 = vmatpush3.bf16.msra.mxu1 %v1523_v62 }
  0x70   :  { %1414 = vmatprep.subr.bf16.mxu0 %v1540_v0  ;;  %1434 = vmatprep.subr.bf16.mxu1 %v1540_v0 }
  0x73   :  { %1415 = vmatpush3.bf16.msra.mxu0 %v1524_v63  ;;  %1435 = vmatpush3.bf16.msra.mxu1 %v1525_v1 }
  0x74   :  { %1416 = vmatprep.subr.bf16.mxu0 %v1540_v0  ;;  %1436 = vmatprep.subr.bf16.mxu1 %v1540_v0 }
  0x77   :  { %1417 = vmatpush3.bf16.msra.mxu0 %v1526_v2  ;;  %1437 = vmatpush3.bf16.msra.mxu1 %v1527_v3 }
  0x78   :  { %1418 = vmatprep.subr.bf16.mxu0 %v1540_v0  ;;  %1438 = vmatprep.subr.bf16.mxu1 %v1540_v0 }
  0x7b   :  { %1419 = vmatpush3.bf16.msra.mxu0 %v1528_v4  ;;  %1439 = vmatpush3.bf16.msra.mxu1 %v1529_v5 }
  0x7c   :  { %1420 = vmatprep.subr.bf16.mxu0 %v1540_v0  ;;  %1440 = vmatprep.subr.bf16.mxu1 %v1540_v0 }
  0x7f   :  { %1421 = vmatpush3.bf16.msra.mxu0 %v1530_v6  ;;  %1441 = vmatpush3.bf16.msra.mxu1 %v1531_v7 }
  0x80   :  { %1446 = vmatprep.subr.bf16.mxu0 %v1540_v0 }
  0x82   :  { %1423 = vmatmul.mubr.bf16.vlgmr.msra.gmra.mrb[12].mxu0 %v1129_v8  ;;  %1443 = vmatmul.mubr.bf16.vlgmr.msra.gmra.mrb[12].mxu1 %v1154_v10 }
  0x83   :  { %1447 = vmatpush3.bf16.msra.mxu0 %v1532_v9  ;;  %1462 = vmatprep.mubr.msk.bf16.mxu0 %vm1541_vm0, %v1540_v0 }
  0x84   :  { %1448 = vmatprep.subr.bf16.mxu0 %v1540_v0 }
  0x87   :  { %1449 = vmatpush3.bf16.msra.mxu0 %v1533_v11 }
  0x88   :  { %1450 = vmatprep.subr.bf16.mxu0 %v1540_v0 }
  0x8b   :  { %1451 = vmatpush3.bf16.msra.mxu0 %v1534_v12 }
  0x8c   :  { %1452 = vmatprep.subr.bf16.mxu0 %v1540_v0 }
  0x8f   :  { %1453 = vmatpush3.bf16.msra.mxu0 %v1535_v13 }
  0x90   :  { %1454 = vmatprep.subr.bf16.mxu0 %v1540_v0 }
  0x93   :  { %1455 = vmatpush3.bf16.msra.mxu0 %v1536_v14 }
  0x94   :  { %1456 = vmatprep.subr.bf16.mxu0 %v1540_v0 }
  0x97   :  { %1457 = vmatpush3.bf16.msra.mxu0 %v1537_v15 }
  0x98   :  { %1458 = vmatprep.subr.bf16.mxu0 %v1540_v0 }
  0x9b   :  { %1459 = vmatpush3.bf16.msra.mxu0 %v1538_v16 }
  0x9c   :  { %1460 = vmatprep.subr.bf16.mxu0 %v1540_v0 }
  0x9f   :  { %1461 = vmatpush3.bf16.msra.mxu0 %v1539_v17 }
  0xa2   :  { %1463 = vmatmul.mubr.bf16.vlgmr.msra.gmra.mrb[16].mxu0 %v1179_v18 }
  0xf5   :  { %v133_v19 = vpop.f32.mrb[0].mxu0  ;;  %v221_v21 = vpop.f32.mrb[0].mxu1 }
  0xf6   :  { %v1304_v20 = vpop.f32.mrb[1].mxu0  ;;  %v222_v22 = vadd.f32 %v221_v21, %v133_v19  ;;  %v1324_v24 = vpop.f32.mrb[1].mxu1 }
  0xf7   :  { %v136_v23 = vpop.f32.mrb[2].mxu0  ;;  %v224_v26 = vpop.f32.mrb[2].mxu1 }
  0xf8   :  { %v1305_v25 = vpop.f32.mrb[3].mxu0  ;;  %v1325_v27 = vpop.f32.mrb[3].mxu1 }
 0x115   :  { %v328_v28 = vpop.f32.mrb[4].mxu0  ;;  %v436_v31 = vpop.f32.mrb[4].mxu1 }
 0x116   :  { %v334_v29 = vadd.f32 %v328_v28, %v222_v22  ;;  %v1344_v30 = vpop.f32.mrb[5].mxu0  ;;  %v1364_v32 = vpop.f32.mrb[5].mxu1 }
 0x117   :  { %v331_v0 = vpop.f32.mrb[6].mxu0  ;;  %v439_v35 = vpop.f32.mrb[6].mxu1 }
 0x118   :  { %v442_v33 = vadd.f32 %v436_v31, %v334_v29  ;;  %v1345_v34 = vpop.f32.mrb[7].mxu0  ;;  %v1365_v36 = vpop.f32.mrb[7].mxu1 }
 0x135   :  { %v544_v37 = vpop.f32.mrb[8].mxu0  ;;  %v652_v40 = vpop.f32.mrb[8].mxu1 }
 0x136   :  { %v550_v38 = vadd.f32 %v544_v37, %v442_v33  ;;  %v1384_v39 = vpop.f32.mrb[9].mxu0  ;;  %v1404_v42 = vpop.f32.mrb[9].mxu1 }
 0x137   :  { %v547_v41 = vpop.f32.mrb[10].mxu0  ;;  %v655_v45 = vpop.f32.mrb[10].mxu1 }
 0x138   :  { %v658_v43 = vadd.f32 %v652_v40, %v550_v38  ;;  %v1385_v44 = vpop.f32.mrb[11].mxu0  ;;  %v1405_v46 = vpop.f32.mrb[11].mxu1 }
 0x155   :  { %v760_v47 = vpop.f32.mrb[12].mxu0  ;;  %v868_v50 = vpop.f32.mrb[12].mxu1 }
 0x156   :  { %v766_v48 = vadd.f32 %v760_v47, %v658_v43  ;;  %v1424_v49 = vpop.f32.mrb[13].mxu0  ;;  %v1444_v52 = vpop.f32.mrb[13].mxu1 }
 0x157   :  { %v763_v51 = vpop.f32.mrb[14].mxu0  ;;  %v871_v55 = vpop.f32.mrb[14].mxu1 }
 0x158   :  { %v874_v53 = vadd.f32 %v868_v50, %v766_v48  ;;  %v1425_v54 = vpop.f32.mrb[15].mxu0  ;;  %v1445_v56 = vpop.f32.mrb[15].mxu1 }
 0x175   :  { %v976_v57 = vpop.f32.mrb[16].mxu0 }
 0x176   :  { %v982_v59 = vadd.f32 %v976_v57, %v874_v53  ;;  %v1464_v60 = vpop.f32.mrb[17].mxu0 }
 0x177   :  { %v979_v61 = vpop.f32.mrb[18].mxu0 }
 0x178   :  { %v990_v62 = vadd.f32 %v1204_v58, %v982_v59  ;;  %v1465_v63 = vpop.f32.mrb[19].mxu0 }
 0x17a   :  { %991 = vst [vmem:[%s1904_s3] sm:$0xff] %v990_v62 }

// kernel: fpn_forward.15
= control target key start
LH: loop header
LB: loop body
LE: loop exit
PB: predicated region body
PF: predicated region fallthrough
CT: control target
= control target key end

     0   :  { %v1576_v1 = vmov 0.0   ;;  %vm1577_vm0 = vmmov 0   ;;  %s1947_s0 = inlined_call_operand.vmem [shape: bf16[9,2,128], index: 0, kind: input, shape index: {}]   ;;  %s1948_s1 = inlined_call_operand.vmem [shape: bf16[9,128,128], index: 1, kind: input, shape index: {}]   ;;  %s1949_s2 = inlined_call_operand.vmem [shape: f32[1,128], index: 2, kind: input, shape index: {}]   ;;  %s1950_s3 = inlined_call_operand.hbm [shape: f32[2,128], index: 3, kind: output, shape index: {}]  }
   0x1   :  { %v1480_v0 = vld [vmem:[%s1948_s1 + $0x40] sm:$0xff]   ;;  %1297 = vmatprep.subr.bf16.mxu0 %v1576_v1  ;;  %1317 = vmatprep.subr.bf16.mxu1 %v1576_v1  ;;  %v1482_v3 = vld [vmem:[%s1948_s1 + $0x48] sm:$0xff]   ;;  %v1484_v5 = vld [vmem:[%s1948_s1 + $0x50] sm:$0xff]  }
   0x2   :  { %v1481_v2 = vld [vmem:[%s1948_s1] sm:$0xff]   ;;  %1298 = vmatpush3.bf16.msra.mxu0 %v1480_v0  ;;  %1313 = vmatprep.mubr.msk.bf16.mxu0 %vm1577_vm0, %v1576_v1  ;;  %v1483_v4 = vld [vmem:[%s1948_s1 + $0x8] sm:$0xff]   ;;  %v1485_v6 = vld [vmem:[%s1948_s1 + $0x10] sm:$0xff]  }
   0x3   :  { %1318 = vmatpush3.bf16.msra.mxu1 %v1481_v2  ;;  %1299 = vmatprep.subr.bf16.mxu0 %v1576_v1  ;;  %v1486_v7 = vld [vmem:[%s1948_s1 + $0x58] sm:$0xff]   ;;  %v1488_v9 = vld [vmem:[%s1948_s1 + $0x60] sm:$0xff]   ;;  %v1490_v11 = vld [vmem:[%s1948_s1 + $0x68] sm:$0xff]  }
   0x4   :  { %1319 = vmatprep.subr.bf16.mxu1 %v1576_v1  ;;  %1333 = vmatprep.mubr.msk.bf16.mxu1 %vm1577_vm0, %v1576_v1  ;;  %v1487_v8 = vld [vmem:[%s1948_s1 + $0x18] sm:$0xff]   ;;  %v1489_v10 = vld [vmem:[%s1948_s1 + $0x20] sm:$0xff]   ;;  %v1491_v12 = vld [vmem:[%s1948_s1 + $0x28] sm:$0xff]  }
   0x5   :  { %v1492_v13 = vld [vmem:[%s1948_s1 + $0x70] sm:$0xff]   ;;  %v1494_v15 = vld [vmem:[%s1948_s1 + $0x78] sm:$0xff]   ;;  %v1007_v17 = vld [vmem:[%s1947_s0 + $0x1] sm:$0x1] }
   0x6   :  { %1300 = vmatpush3.bf16.msra.mxu0 %v1482_v3  ;;  %v1493_v14 = vld [vmem:[%s1948_s1 + $0x30] sm:$0xff]   ;;  %v1495_v16 = vld [vmem:[%s1948_s1 + $0x38] sm:$0xff]   ;;  %v16_v18 = vld [vmem:[%s1947_s0] sm:$0x1] }
   0x7   :  { %1320 = vmatpush3.bf16.msra.mxu1 %v1483_v4  ;;  %1301 = vmatprep.subr.bf16.mxu0 %v1576_v1  ;;  %v1496_v19 = vld [vmem:[%s1948_s1 + $0x80] sm:$0xff]   ;;  %v1498_v21 = vld [vmem:[%s1948_s1 + $0x88] sm:$0xff]   ;;  %v1500_v23 = vld [vmem:[%s1948_s1 + $0x90] sm:$0xff]  }
   0x8   :  { %1321 = vmatprep.subr.bf16.mxu1 %v1576_v1  ;;  %v1497_v20 = vld [vmem:[%s1948_s1 + $0xc0] sm:$0xff]   ;;  %v1499_v22 = vld [vmem:[%s1948_s1 + $0xc8] sm:$0xff]   ;;  %v1501_v24 = vld [vmem:[%s1948_s1 + $0xd0] sm:$0xff]  }
   0x9   :  { %v1502_v25 = vld [vmem:[%s1948_s1 + $0x98] sm:$0xff]   ;;  %v1504_v27 = vld [vmem:[%s1948_s1 + $0xa0] sm:$0xff]   ;;  %v1506_v29 = vld [vmem:[%s1948_s1 + $0xa8] sm:$0xff]  }
   0xa   :  { %1302 = vmatpush3.bf16.msra.mxu0 %v1484_v5  ;;  %v1503_v26 = vld [vmem:[%s1948_s1 + $0xd8] sm:$0xff]   ;;  %v1505_v28 = vld [vmem:[%s1948_s1 + $0xe0] sm:$0xff]   ;;  %v1507_v30 = vld [vmem:[%s1948_s1 + $0xe8] sm:$0xff]  }
   0xb   :  { %1322 = vmatpush3.bf16.msra.mxu1 %v1485_v6  ;;  %1303 = vmatprep.subr.bf16.mxu0 %v1576_v1  ;;  %v1508_v31 = vld [vmem:[%s1948_s1 + $0xb0] sm:$0xff]   ;;  %v1510_v33 = vld [vmem:[%s1948_s1 + $0xb8] sm:$0xff]   ;;  %v1040_v35 = vld [vmem:[%s1947_s0 + $0x2] sm:$0x1] }
   0xc   :  { %1323 = vmatprep.subr.bf16.mxu1 %v1576_v1  ;;  %v1509_v32 = vld [vmem:[%s1948_s1 + $0xf0] sm:$0xff]   ;;  %v1511_v34 = vld [vmem:[%s1948_s1 + $0xf8] sm:$0xff]   ;;  %v1512_v36 = vld [vmem:[%s1948_s1 + $0x100] sm:$0xff]  }
   0xd   :  { %v1065_v37 = vld [vmem:[%s1947_s0 + $0x3] sm:$0x1]  ;;  %v1514_v39 = vld [vmem:[%s1948_s1 + $0x108] sm:$0xff]   ;;  %v1516_v41 = vld [vmem:[%s1948_s1 + $0x110] sm:$0xff]  }
   0xe   :  { %1304 = vmatpush3.bf16.msra.mxu0 %v1486_v7  ;;  %v1513_v38 = vld [vmem:[%s1948_s1 + $0x140] sm:$0xff]   ;;  %v1515_v40 = vld [vmem:[%s1948_s1 + $0x148] sm:$0xff]   ;;  %v1517_v42 = vld [vmem:[%s1948_s1 + $0x150] sm:$0xff]  }
   0xf   :  { %1324 = vmatpush3.bf16.msra.mxu1 %v1487_v8  ;;  %1305 = vmatprep.subr.bf16.mxu0 %v1576_v1  ;;  %v1518_v43 = vld [vmem:[%s1948_s1 + $0x118] sm:$0xff]  }
  0x10   :  { %1325 = vmatprep.subr.bf16.mxu1 %v1576_v1  ;;  %v1519_v44 = vld [vmem:[%s1948_s1 + $0x158] sm:$0xff]  }
  0x12   :  { %1306 = vmatpush3.bf16.msra.mxu0 %v1488_v9 }
  0x13   :  { %1326 = vmatpush3.bf16.msra.mxu1 %v1489_v10  ;;  %1307 = vmatprep.subr.bf16.mxu0 %v1576_v1 }
  0x14   :  { %1327 = vmatprep.subr.bf16.mxu1 %v1576_v1 }
  0x16   :  { %1308 = vmatpush3.bf16.msra.mxu0 %v1490_v11 }
  0x17   :  { %1328 = vmatpush3.bf16.msra.mxu1 %v1491_v12  ;;  %1309 = vmatprep.subr.bf16.mxu0 %v1576_v1 }
  0x18   :  { %1329 = vmatprep.subr.bf16.mxu1 %v1576_v1 }
  0x1a   :  { %1310 = vmatpush3.bf16.msra.mxu0 %v1492_v13 }
  0x1b   :  { %1330 = vmatpush3.bf16.msra.mxu1 %v1493_v14  ;;  %1311 = vmatprep.subr.bf16.mxu0 %v1576_v1 }
  0x1c   :  { %1331 = vmatprep.subr.bf16.mxu1 %v1576_v1 }
  0x1e   :  { %1312 = vmatpush3.bf16.msra.mxu0 %v1494_v15 }
  0x1f   :  { %1332 = vmatpush3.bf16.msra.mxu1 %v1495_v16  ;;  %1337 = vmatprep.subr.bf16.mxu0 %v1576_v1 }
  0x20   :  { %1357 = vmatprep.subr.bf16.mxu1 %v1576_v1 }
  0x21   :  { %1314 = vmatmul.mubr.bf16.vlgmr.msra.gmra.mrb[0].mxu0 %v1007_v17 }
  0x22   :  { %1334 = vmatmul.mubr.bf16.vlgmr.msra.gmra.mrb[0].mxu1 %v16_v18  ;;  %1338 = vmatpush3.bf16.msra.mxu0 %v1496_v19 }
  0x23   :  { %1358 = vmatpush3.bf16.msra.mxu1 %v1497_v20  ;;  %1339 = vmatprep.subr.bf16.mxu0 %v1576_v1 }
  0x24   :  { %1359 = vmatprep.subr.bf16.mxu1 %v1576_v1  ;;  %1353 = vmatprep.mubr.msk.bf16.mxu0 %vm1577_vm0, %v1576_v1 }
  0x25   :  { %1373 = vmatprep.mubr.msk.bf16.mxu1 %vm1577_vm0, %v1576_v1 }
  0x26   :  { %1340 = vmatpush3.bf16.msra.mxu0 %v1498_v21 }
  0x27   :  { %1360 = vmatpush3.bf16.msra.mxu1 %v1499_v22  ;;  %1341 = vmatprep.subr.bf16.mxu0 %v1576_v1 }
  0x28   :  { %1361 = vmatprep.subr.bf16.mxu1 %v1576_v1 }
  0x2a   :  { %1342 = vmatpush3.bf16.msra.mxu0 %v1500_v23 }
  0x2b   :  { %1362 = vmatpush3.bf16.msra.mxu1 %v1501_v24  ;;  %1343 = vmatprep.subr.bf16.mxu0 %v1576_v1 }
  0x2c   :  { %1363 = vmatprep.subr.bf16.mxu1 %v1576_v1 }
  0x2e   :  { %1344 = vmatpush3.bf16.msra.mxu0 %v1502_v25 }
  0x2f   :  { %1364 = vmatpush3.bf16.msra.mxu1 %v1503_v26  ;;  %1345 = vmatprep.subr.bf16.mxu0 %v1576_v1 }
  0x30   :  { %1365 = vmatprep.subr.bf16.mxu1 %v1576_v1 }
  0x32   :  { %1346 = vmatpush3.bf16.msra.mxu0 %v1504_v27 }
  0x33   :  { %1366 = vmatpush3.bf16.msra.mxu1 %v1505_v28  ;;  %1347 = vmatprep.subr.bf16.mxu0 %v1576_v1 }
  0x34   :  { %1367 = vmatprep.subr.bf16.mxu1 %v1576_v1 }
  0x36   :  { %1348 = vmatpush3.bf16.msra.mxu0 %v1506_v29 }
  0x37   :  { %1368 = vmatpush3.bf16.msra.mxu1 %v1507_v30  ;;  %1349 = vmatprep.subr.bf16.mxu0 %v1576_v1 }
  0x38   :  { %1369 = vmatprep.subr.bf16.mxu1 %v1576_v1 }
  0x3a   :  { %1350 = vmatpush3.bf16.msra.mxu0 %v1508_v31 }
  0x3b   :  { %1370 = vmatpush3.bf16.msra.mxu1 %v1509_v32  ;;  %1351 = vmatprep.subr.bf16.mxu0 %v1576_v1 }
  0x3c   :  { %1371 = vmatprep.subr.bf16.mxu1 %v1576_v1 }
  0x3e   :  { %1352 = vmatpush3.bf16.msra.mxu0 %v1510_v33 }
  0x3f   :  { %1372 = vmatpush3.bf16.msra.mxu1 %v1511_v34  ;;  %1377 = vmatprep.subr.bf16.mxu0 %v1576_v1 }
  0x40   :  { %1397 = vmatprep.subr.bf16.mxu1 %v1576_v1 }
  0x41   :  { %1354 = vmatmul.mubr.bf16.vlgmr.msra.gmra.mrb[4].mxu0 %v1040_v35 }
  0x42   :  { %1378 = vmatpush3.bf16.msra.mxu0 %v1512_v36  ;;  %1374 = vmatmul.mubr.bf16.vlgmr.msra.gmra.mrb[4].mxu1 %v1065_v37 }
  0x43   :  { %1398 = vmatpush3.bf16.msra.mxu1 %v1513_v38  ;;  %1379 = vmatprep.subr.bf16.mxu0 %v1576_v1 }
  0x44   :  { %1399 = vmatprep.subr.bf16.mxu1 %v1576_v1  ;;  %1393 = vmatprep.mubr.msk.bf16.mxu0 %vm1577_vm0, %v1576_v1 }
  0x45   :  { %1413 = vmatprep.mubr.msk.bf16.mxu1 %vm1577_vm0, %v1576_v1 }
  0x46   :  { %1380 = vmatpush3.bf16.msra.mxu0 %v1514_v39 }
  0x47   :  { %1400 = vmatpush3.bf16.msra.mxu1 %v1515_v40  ;;  %1381 = vmatprep.subr.bf16.mxu0 %v1576_v1 }
  0x48   :  { %1401 = vmatprep.subr.bf16.mxu1 %v1576_v1 }
  0x4a   :  { %1382 = vmatpush3.bf16.msra.mxu0 %v1516_v41 }
  0x4b   :  { %1402 = vmatpush3.bf16.msra.mxu1 %v1517_v42  ;;  %1383 = vmatprep.subr.bf16.mxu0 %v1576_v1 }
  0x4c   :  { %8 = vsyncpa [#allocation3], 0  ;;  %1403 = vmatprep.subr.bf16.mxu1 %v1576_v1  ;;  %v1520_v45 = vld [vmem:[%s1948_s1 + $0x120] sm:$0xff]   ;;  %v1522_v47 = vld [vmem:[%s1948_s1 + $0x128] sm:$0xff]   ;;  %s1578_s12 = smov [#allocation2]  }
  0x4d   :  { %v1521_v46 = vld [vmem:[%s1948_s1 + $0x160] sm:$0xff]   ;;  %v1523_v48 = vld [vmem:[%s1948_s1 + $0x168] sm:$0xff]   ;;  %v1524_v49 = vld [vmem:[%s1948_s1 + $0x130] sm:$0xff]   ;;  %s999_s13 = sshll.u32 %s1578_s12, 4  ;;  %s1000_s13 = int_to_ptr.vmem [resolvable:$true] %s999_s13 }
  0x4e   :  { %1384 = vmatpush3.bf16.msra.mxu0 %v1518_v43  ;;  %v1525_v50 = vld [vmem:[%s1948_s1 + $0x170] sm:$0xff]   ;;  %v1526_v51 = vld [vmem:[%s1948_s1 + $0x138] sm:$0xff]   ;;  %v1090_v53 = vld [vmem:[%s1947_s0 + $0x4] sm:$0x1]  ;;  %s1552_s14 = scalar_lea.vmem %s1000_s13, 32  ;;  %p1557_p1 = scmp.lt.s32.totalorder %s1000_s13, %s1000_s13 }
  0x4f   :  { %1404 = vmatpush3.bf16.msra.mxu1 %v1519_v44  ;;  %1385 = vmatprep.subr.bf16.mxu0 %v1576_v1  ;;  %v1527_v52 = vld [vmem:[%s1948_s1 + $0x178] sm:$0xff]   ;;  %v1528_v54 = vld [vmem:[%s1948_s1 + $0x180] sm:$0xff]   ;;  %v1530_v57 = vld [vmem:[%s1948_s1 + $0x188] sm:$0xff]   ;;  %p1553_p0 = scmp.ne.s32.totalorder %s1000_s13, %s1552_s14  ;;  %p1558_p2 = scmp.lt.s32.totalorder %s1552_s14, %s1552_s14 }
  0x50   :  { %1405 = vmatprep.subr.bf16.mxu1 %v1576_v1  ;;  %v1115_v55 = vld [vmem:[%s1947_s0 + $0x5] sm:$0x1]  ;;  %v1531_v58 = vld [vmem:[%s1948_s1 + $0x1c8] sm:$0xff]   ;;  %v1532_v59 = vld [vmem:[%s1948_s1 + $0x190] sm:$0xff]  }
  0x51   :  { %v1529_v56 = vld [vmem:[%s1948_s1 + $0x1c0] sm:$0xff]   ;;  %v1533_v60 = vld [vmem:[%s1948_s1 + $0x1d0] sm:$0xff]   ;;  %v1534_v61 = vld [vmem:[%s1948_s1 + $0x198] sm:$0xff]   ;;  %p1559_p3 = por %p1558_p2, %p1557_p1 }
  0x52   :  { %1386 = vmatpush3.bf16.msra.mxu0 %v1520_v45  ;;  %v1535_v62 = vld [vmem:[%s1948_s1 + $0x1d8] sm:$0xff]   ;;  %v1536_v63 = vld [vmem:[%s1948_s1 + $0x1a0] sm:$0xff]   ;;  %v1538_v2 = vld [vmem:[%s1948_s1 + $0x1a8] sm:$0xff]  }
  0x53   :  { %1406 = vmatpush3.bf16.msra.mxu1 %v1521_v46  ;;  %1387 = vmatprep.subr.bf16.mxu0 %v1576_v1  ;;  %v1537_v0 = vld [vmem:[%s1948_s1 + $0x1e0] sm:$0xff]   ;;  %v1539_v3 = vld [vmem:[%s1948_s1 + $0x1e8] sm:$0xff]   ;;  %v1540_v4 = vld [vmem:[%s1948_s1 + $0x1b0] sm:$0xff]   ;;  %p1560_p4 = pnand %p1559_p3, %p1553_p0 }
  0x54   :  { %1407 = vmatprep.subr.bf16.mxu1 %v1576_v1  ;;  %v1541_v5 = vld [vmem:[%s1948_s1 + $0x1f0] sm:$0xff]   ;;  %v1542_v6 = vld [vmem:[%s1948_s1 + $0x1b8] sm:$0xff]   ;;  %v1140_v8 = vld [vmem:[%s1947_s0 + $0x6] sm:$0x1] }
  0x55   :  { %v1543_v7 = vld [vmem:[%s1948_s1 + $0x1f8] sm:$0xff]   ;;  %v1544_v9 = vld [vmem:[%s1948_s1 + $0x200] sm:$0xff]   ;;  %v1545_v11 = vld [vmem:[%s1948_s1 + $0x208] sm:$0xff]  }
  0x56   :  { %1388 = vmatpush3.bf16.msra.mxu0 %v1522_v47  ;;  %v1165_v10 = vld [vmem:[%s1947_s0 + $0x7] sm:$0x1]  ;;  %v1546_v12 = vld [vmem:[%s1948_s1 + $0x210] sm:$0xff]   ;;  %v1547_v13 = vld [vmem:[%s1948_s1 + $0x218] sm:$0xff]  }
  0x57   :  { %1408 = vmatpush3.bf16.msra.mxu1 %v1523_v48  ;;  %1389 = vmatprep.subr.bf16.mxu0 %v1576_v1  ;;  %v1548_v14 = vld [vmem:[%s1948_s1 + $0x220] sm:$0xff]   ;;  %v1549_v15 = vld [vmem:[%s1948_s1 + $0x228] sm:$0xff]   ;;  %v1550_v16 = vld [vmem:[%s1948_s1 + $0x230] sm:$0xff]  }
  0x58   :  { %1409 = vmatprep.subr.bf16.mxu1 %v1576_v1  ;;  %v1551_v17 = vld [vmem:[%s1948_s1 + $0x238] sm:$0xff]   ;;  %v1190_v18 = vld [vmem:[%s1947_s0 + $0x8] sm:$0x1] }
  0x5a   :  { %1390 = vmatpush3.bf16.msra.mxu0 %v1524_v49 }
  0x5b   :  { %1410 = vmatpush3.bf16.msra.mxu1 %v1525_v50  ;;  %1391 = vmatprep.subr.bf16.mxu0 %v1576_v1 }
  0x5c   :  { %1411 = vmatprep.subr.bf16.mxu1 %v1576_v1 }
  0x5e   :  { %1392 = vmatpush3.bf16.msra.mxu0 %v1526_v51 }
  0x5f   :  { %1412 = vmatpush3.bf16.msra.mxu1 %v1527_v52  ;;  %1417 = vmatprep.subr.bf16.mxu0 %v1576_v1 }
  0x60   :  { %1437 = vmatprep.subr.bf16.mxu1 %v1576_v1 }
  0x61   :  { %1394 = vmatmul.mubr.bf16.vlgmr.msra.gmra.mrb[8].mxu0 %v1090_v53 }
  0x62   :  { %1418 = vmatpush3.bf16.msra.mxu0 %v1528_v54  ;;  %1414 = vmatmul.mubr.bf16.vlgmr.msra.gmra.mrb[8].mxu1 %v1115_v55 }
  0x63   :  { %1438 = vmatpush3.bf16.msra.mxu1 %v1529_v56  ;;  %1419 = vmatprep.subr.bf16.mxu0 %v1576_v1 }
  0x64   :  { %1439 = vmatprep.subr.bf16.mxu1 %v1576_v1  ;;  %1433 = vmatprep.mubr.msk.bf16.mxu0 %vm1577_vm0, %v1576_v1 }
  0x65   :  { %1453 = vmatprep.mubr.msk.bf16.mxu1 %vm1577_vm0, %v1576_v1 }
  0x66   :  { %1420 = vmatpush3.bf16.msra.mxu0 %v1530_v57 }
  0x67   :  { %1440 = vmatpush3.bf16.msra.mxu1 %v1531_v58  ;;  %1421 = vmatprep.subr.bf16.mxu0 %v1576_v1  ;;  %v1215_v58 = vld [vmem:[%s1949_s2] ss:$0 sm:$0xff] }
  0x68   :  { %1441 = vmatprep.subr.bf16.mxu1 %v1576_v1 }
  0x6a   :  { %1422 = vmatpush3.bf16.msra.mxu0 %v1532_v59 }
  0x6b   :  { %1442 = vmatpush3.bf16.msra.mxu1 %v1533_v60  ;;  %1423 = vmatprep.subr.bf16.mxu0 %v1576_v1 }
  0x6c   :  { %1443 = vmatprep.subr.bf16.mxu1 %v1576_v1 }
  0x6e   :  { %1424 = vmatpush3.bf16.msra.mxu0 %v1534_v61 }
  0x6f   :  { %1444 = vmatpush3.bf16.msra.mxu1 %v1535_v62  ;;  %1425 = vmatprep.subr.bf16.mxu0 %v1576_v1 }
  0x70   :  { %1445 = vmatprep.subr.bf16.mxu1 %v1576_v1 }
  0x72   :  { %1426 = vmatpush3.bf16.msra.mxu0 %v1536_v63 }
  0x73   :  { %1446 = vmatpush3.bf16.msra.mxu1 %v1537_v0  ;;  %1427 = vmatprep.subr.bf16.mxu0 %v1576_v1 }
  0x74   :  { %1447 = vmatprep.subr.bf16.mxu1 %v1576_v1 }
  0x76   :  { %1428 = vmatpush3.bf16.msra.mxu0 %v1538_v2 }
  0x77   :  { %1448 = vmatpush3.bf16.msra.mxu1 %v1539_v3  ;;  %1429 = vmatprep.subr.bf16.mxu0 %v1576_v1 }
  0x78   :  { %1449 = vmatprep.subr.bf16.mxu1 %v1576_v1 }
  0x7a   :  { %1430 = vmatpush3.bf16.msra.mxu0 %v1540_v4 }
  0x7b   :  { %1450 = vmatpush3.bf16.msra.mxu1 %v1541_v5  ;;  %1431 = vmatprep.subr.bf16.mxu0 %v1576_v1 }
  0x7c   :  { %1451 = vmatprep.subr.bf16.mxu1 %v1576_v1 }
  0x7e   :  { %1432 = vmatpush3.bf16.msra.mxu0 %v1542_v6 }
  0x7f   :  { %1452 = vmatpush3.bf16.msra.mxu1 %v1543_v7  ;;  %1457 = vmatprep.subr.bf16.mxu0 %v1576_v1 }
  0x81   :  { %1434 = vmatmul.mubr.bf16.vlgmr.msra.gmra.mrb[12].mxu0 %v1140_v8 }
  0x82   :  { %1458 = vmatpush3.bf16.msra.mxu0 %v1544_v9  ;;  %1454 = vmatmul.mubr.bf16.vlgmr.msra.gmra.mrb[12].mxu1 %v1165_v10 }
  0x83   :  { %1459 = vmatprep.subr.bf16.mxu0 %v1576_v1  ;;  %1473 = vmatprep.mubr.msk.bf16.mxu0 %vm1577_vm0, %v1576_v1 }
  0x86   :  { %1460 = vmatpush3.bf16.msra.mxu0 %v1545_v11 }
  0x87   :  { %1461 = vmatprep.subr.bf16.mxu0 %v1576_v1 }
  0x8a   :  { %1462 = vmatpush3.bf16.msra.mxu0 %v1546_v12 }
  0x8b   :  { %1463 = vmatprep.subr.bf16.mxu0 %v1576_v1 }
  0x8e   :  { %1464 = vmatpush3.bf16.msra.mxu0 %v1547_v13 }
  0x8f   :  { %1465 = vmatprep.subr.bf16.mxu0 %v1576_v1 }
  0x92   :  { %1466 = vmatpush3.bf16.msra.mxu0 %v1548_v14 }
  0x93   :  { %1467 = vmatprep.subr.bf16.mxu0 %v1576_v1 }
  0x96   :  { %1468 = vmatpush3.bf16.msra.mxu0 %v1549_v15 }
  0x97   :  { %1469 = vmatprep.subr.bf16.mxu0 %v1576_v1 }
  0x9a   :  { %1470 = vmatpush3.bf16.msra.mxu0 %v1550_v16 }
  0x9b   :  { %1471 = vmatprep.subr.bf16.mxu0 %v1576_v1 }
  0x9e   :  { %1472 = vmatpush3.bf16.msra.mxu0 %v1551_v17 }
  0xa1   :  { %1474 = vmatmul.mubr.bf16.vlgmr.msra.gmra.mrb[16].mxu0 %v1190_v18 }
  0xf4   :  { %v134_v19 = vpop.f32.mrb[0].mxu0 }
  0xf5   :  { %v1315_v20 = vpop.f32.mrb[1].mxu0  ;;  %v222_v21 = vpop.f32.mrb[0].mxu1 }
  0xf6   :  { %v223_v22 = vadd.f32 %v222_v21, %v134_v19  ;;  %v137_v23 = vpop.f32.mrb[2].mxu0  ;;  %v1335_v24 = vpop.f32.mrb[1].mxu1 }
  0xf7   :  { %v1316_v25 = vpop.f32.mrb[3].mxu0  ;;  %v225_v26 = vpop.f32.mrb[2].mxu1 }
  0xf8   :  { %v1336_v27 = vpop.f32.mrb[3].mxu1 }
 0x114   :  { %v329_v28 = vpop.f32.mrb[4].mxu0 }
 0x115   :  { %v335_v29 = vadd.f32 %v329_v28, %v223_v22  ;;  %v1355_v30 = vpop.f32.mrb[5].mxu0  ;;  %v437_v31 = vpop.f32.mrb[4].mxu1 }
 0x116   :  { %v332_v1 = vpop.f32.mrb[6].mxu0  ;;  %v1375_v32 = vpop.f32.mrb[5].mxu1 }
 0x117   :  { %v443_v33 = vadd.f32 %v437_v31, %v335_v29  ;;  %v1356_v34 = vpop.f32.mrb[7].mxu0  ;;  %v440_v35 = vpop.f32.mrb[6].mxu1 }
 0x118   :  { %v1376_v36 = vpop.f32.mrb[7].mxu1 }
 0x134   :  { %v545_v37 = vpop.f32.mrb[8].mxu0 }
 0x135   :  { %v551_v38 = vadd.f32 %v545_v37, %v443_v33  ;;  %v1395_v39 = vpop.f32.mrb[9].mxu0  ;;  %v653_v40 = vpop.f32.mrb[8].mxu1 }
 0x136   :  { %v548_v41 = vpop.f32.mrb[10].mxu0  ;;  %v1415_v42 = vpop.f32.mrb[9].mxu1 }
 0x137   :  { %v659_v43 = vadd.f32 %v653_v40, %v551_v38  ;;  %v1396_v44 = vpop.f32.mrb[11].mxu0  ;;  %v656_v45 = vpop.f32.mrb[10].mxu1 }
 0x138   :  { %v1416_v46 = vpop.f32.mrb[11].mxu1 }
 0x154   :  { %v761_v47 = vpop.f32.mrb[12].mxu0 }
 0x155   :  { %v767_v48 = vadd.f32 %v761_v47, %v659_v43  ;;  %v1435_v49 = vpop.f32.mrb[13].mxu0  ;;  %v869_v50 = vpop.f32.mrb[12].mxu1 }
 0x156   :  { %v764_v51 = vpop.f32.mrb[14].mxu0  ;;  %v1455_v52 = vpop.f32.mrb[13].mxu1 }
 0x157   :  { %v875_v53 = vadd.f32 %v869_v50, %v767_v48  ;;  %v1436_v54 = vpop.f32.mrb[15].mxu0  ;;  %v872_v55 = vpop.f32.mrb[14].mxu1 }
 0x158   :  { %v1456_v56 = vpop.f32.mrb[15].mxu1 }
 0x174   :  { %v977_v57 = vpop.f32.mrb[16].mxu0 }
 0x175   :  { %v983_v59 = vadd.f32 %v977_v57, %v875_v53  ;;  %v1475_v60 = vpop.f32.mrb[17].mxu0 }
 0x176   :  { %v980_v61 = vpop.f32.mrb[18].mxu0 }
 0x177   :  { %v1476_v62 = vpop.f32.mrb[19].mxu0  ;;  %v991_v63 = vadd.f32 %v1215_v58, %v983_v59 }
 0x179   :  { %992 = vst [vmem:[#allocation2] sm:$0x3] %v991_v63 }
 0x17a   :  { %1563 = shalt.err (!%p1560_p4)
}
 0x17b   :  { %s1564_s2 = scalar_lea.hbm %s1950_s3, 32 }
 0x17c   :  { %p1565_p5 = scmp.ne.s32.totalorder %s1950_s3, %s1564_s2  ;;  %p1568_p6 = scmp.lt.u32.totalorder %s1564_s2, %s1950_s3 }
 0x17e   :  { %p1570_p7 = pnand %p1568_p6, %p1565_p5 }
 0x180   :  { %1573 = shalt.err (!%p1570_p7)
}
 0x181   :  { %1002 = dma.vmem_to_hbm [thread:$0]  %s1000_s13, 32, %s1950_s3, [#allocation3]  }
 0x182   :  { %1574 = dma.done.wait [#allocation3], 32  }
 0x183   :  { %1575 = vsyncadd [#allocation3], 4294967264 }
 0x184   :  { %1006 = vsyncpa [#allocation3], 1 }

</bundles_post_ra>
